<compile_context>
chip_gen: v7x
topology: tpu7x:2x2x1
jax: 0.10.0
libtpu: 0.0.40
codegen_flags: <defaults>
</compile_context>

<pallas_src>
import functools
import math

import jax
import jax.numpy as jnp
from jax.experimental import pallas as pl
from jax.experimental.pallas import tpu as pltpu


CONV_CFG = [(3, 16), (16, 32), (32, 128)]   # 16x16 input -> 2x2x128 -> flatten 512
LANE = 128
NUM_CLASSES = 10


# ---------------------------------------------------------------------------
# Fused Conv3x3(pad=1) + bias + ReLU + MaxPool2x2 kernel
# ---------------------------------------------------------------------------

def _conv_relu_pool_kernel(x_ref, w_ref, b_ref, o_ref, y_scr, *, Wp, Ho, Wo, Jlen, tb):
    """Fused 3x3 conv (pad=1) + bias + ReLU + 2x2 maxpool for `tb` images.

    x_ref : (tb, Hp*Wp, Cin)   bf16  padded input plane, row pitch Wp
    w_ref : (9, Cin, Cout)     bf16  tap-major weights (kh*3+kw)
    b_ref : (1, Cout)          f32
    o_ref : (tb, Ho, Wo, Cout) bf16  pooled output
    y_scr : (Jlen, Cout)       f32   conv+ReLU plane scratch, row pitch Wp
                                     (y_scr[h*Wp + w] = conv output at (h, w))
    """
    bias = b_ref[...]
    cout = b_ref.shape[1]
    for t in range(tb):
        # --- conv as 9 shifted-window matmuls over the padded plane ---------
        acc = jnp.zeros((Jlen, cout), jnp.float32)
        for kh in range(3):
            for kw in range(3):
                off = kh * Wp + kw
                xs = x_ref[t, off:off + Jlen, :]            # (Jlen, Cin) bf16
                acc = acc + jnp.dot(xs, w_ref[kh * 3 + kw],
                                    preferred_element_type=jnp.float32)
        # --- bias + ReLU (f32), keep the plane in VMEM scratch ---------------
        y_scr[...] = jnp.maximum(acc + bias, 0.0)
        # --- 2x2 maxpool epilogue via strided reads; lane-dense store --------
        for ho in range(Ho):
            r0 = (2 * ho) * Wp
            r1 = (2 * ho + 1) * Wp
            a = y_scr[pl.ds(r0, Wo, stride=2), :]
            b = y_scr[pl.ds(r0 + 1, Wo, stride=2), :]
            c = y_scr[pl.ds(r1, Wo, stride=2), :]
            d = y_scr[pl.ds(r1 + 1, Wo, stride=2), :]
            o_ref[t, ho, :, :] = jnp.maximum(jnp.maximum(a, b),
                                             jnp.maximum(c, d)).astype(o_ref.dtype)


def conv3x3_relu_maxpool(x, wk, bk):
    """x: (N,H,W,Cin) bf16 NHWC;  wk: (9,Cin,Cout) bf16;  bk: (1,Cout) f32."""
    N, H, W, Cin = x.shape
    assert H % 2 == 0 and W % 2 == 0, "MaxPool2x2 expects even H, W"
    assert wk.shape[1] == Cin
    Cout = wk.shape[2]
    Hp, Wp = H + 2, W + 2
    Ho, Wo = H // 2, W // 2
    Jlen = (H - 1) * Wp + W          # rows of the conv plane actually needed

    # Pad once (halo of 1) and view as a 2-D plane with row pitch Wp.
    xp = jnp.pad(x, ((0, 0), (1, 1), (1, 1), (0, 0))).reshape(N, Hp * Wp, Cin)

    # Images per grid step (always divides N; keep grid extent >= 2 when possible
    # so the "parallel" axis can shard across v7x's two TensorCores).
    tb = math.gcd(N, 8)
    if N // tb < 2 and tb > 1:
        tb //= 2
    grid = (N // tb,)

    kernel = functools.partial(_conv_relu_pool_kernel,
                               Wp=Wp, Ho=Ho, Wo=Wo, Jlen=Jlen, tb=tb)
    flops = 2 * N * 9 * Jlen * Cin * Cout
    bytes_accessed = xp.size * 2 + wk.size * 2 + bk.size * 4 + N * Ho * Wo * Cout * 2

    return pl.pallas_call(
        kernel,
        out_shape=jax.ShapeDtypeStruct((N, Ho, Wo, Cout), jnp.bfloat16),
        grid_spec=pltpu.PrefetchScalarGridSpec(
            num_scalar_prefetch=0,
            grid=grid,
            in_specs=[
                pl.BlockSpec((tb, Hp * Wp, Cin), lambda i: (i, 0, 0)),
                pl.BlockSpec((9, Cin, Cout), lambda i: (0, 0, 0)),
                pl.BlockSpec((1, Cout), lambda i: (0, 0)),
            ],
            out_specs=pl.BlockSpec((tb, Ho, Wo, Cout), lambda i: (i, 0, 0, 0)),
            scratch_shapes=[pltpu.VMEM((Jlen, Cout), jnp.float32)],
        ),
        compiler_params=pltpu.CompilerParams(dimension_semantics=("parallel",)),
        cost_estimate=pl.CostEstimate(flops=flops, transcendentals=0,
                                      bytes_accessed=bytes_accessed),
    )(xp, wk, bk)


# ---------------------------------------------------------------------------
# Fused classifier kernel: Linear+ReLU -> Linear+ReLU -> Linear
# ---------------------------------------------------------------------------

def _classifier_kernel(x_ref, w1_ref, b1_ref, w2_ref, b2_ref, w3_ref, b3_ref, o_ref):
    # TODO(synk): nn.Dropout treated as identity (inference mode).
    h = jnp.dot(x_ref[...], w1_ref[...], preferred_element_type=jnp.float32) + b1_ref[...]
    h = jnp.maximum(h, 0.0)
    h = jnp.dot(h.astype(w2_ref.dtype), w2_ref[...],
                preferred_element_type=jnp.float32) + b2_ref[...]
    h = jnp.maximum(h, 0.0)
    out = jnp.dot(h.astype(w3_ref.dtype), w3_ref[...],
                  preferred_element_type=jnp.float32) + b3_ref[...]
    o_ref[...] = out


def classifier_fused(x, fc1, fc2, fc3):
    """x: (M, 512) bf16. Returns (M, 128) f32 (fc3 columns zero-padded to 128)."""
    (w1, b1), (w2, b2), (w3, b3) = fc1, fc2, fc3
    M, K = x.shape
    H1, H2, NO = w1.shape[1], w2.shape[1], w3.shape[1]
    assert w1.shape[0] == K and w2.shape[0] == H1 and w3.shape[0] == H2

    tm = M if M <= 128 else 128
    grid = (pl.cdiv(M, tm),)
    flops = 2 * M * (K * H1 + H1 * H2 + H2 * NO)
    bytes_accessed = (x.size * 2 + (w1.size + w2.size + w3.size) * 2
                      + (b1.size + b2.size + b3.size) * 4 + M * NO * 4)

    return pl.pallas_call(
        _classifier_kernel,
        out_shape=jax.ShapeDtypeStruct((M, NO), jnp.float32),
        grid_spec=pltpu.PrefetchScalarGridSpec(
            num_scalar_prefetch=0,
            grid=grid,
            in_specs=[
                pl.BlockSpec((tm, K), lambda i: (i, 0)),
                pl.BlockSpec((K, H1), lambda i: (0, 0)),
                pl.BlockSpec((1, H1), lambda i: (0, 0)),
                pl.BlockSpec((H1, H2), lambda i: (0, 0)),
                pl.BlockSpec((1, H2), lambda i: (0, 0)),
                pl.BlockSpec((H2, NO), lambda i: (0, 0)),
                pl.BlockSpec((1, NO), lambda i: (0, 0)),
            ],
            out_specs=pl.BlockSpec((tm, NO), lambda i: (i, 0)),
        ),
        compiler_params=pltpu.CompilerParams(dimension_semantics=("parallel",)),
        cost_estimate=pl.CostEstimate(flops=flops, transcendentals=0,
                                      bytes_accessed=bytes_accessed),
    )(x, w1, b1, w2, b2, w3, b3)


# ---------------------------------------------------------------------------
# Parameter init (mirrors the module's __init__) and one-time kernel-layout prep
# ---------------------------------------------------------------------------

def _conv_init(key, cin, cout):
    # module: weight ~ N(0, sqrt(2 / (kh*kw*cout))), bias = 0
    n = 3 * 3 * cout
    w = jax.random.normal(key, (cout, cin, 3, 3), jnp.float32) * math.sqrt(2.0 / n)
    b = jnp.zeros((cout,), jnp.float32)
    return w, b


def _linear_init(key, fan_in, fan_out):
    # PyTorch nn.Linear default: U(-1/sqrt(fan_in), 1/sqrt(fan_in))
    kw, kb = jax.random.split(key)
    bound = 1.0 / math.sqrt(fan_in)
    w = jax.random.uniform(kw, (fan_out, fan_in), jnp.float32, -bound, bound)
    b = jax.random.uniform(kb, (fan_out,), jnp.float32, -bound, bound)
    return w, b


def init_params(key):
    keys = jax.random.split(key, len(CONV_CFG) + 3)
    return {
        "conv": [_conv_init(keys[i], cin, cout) for i, (cin, cout) in enumerate(CONV_CFG)],
        "fc1": _linear_init(keys[-3], 512, 512),
        "fc2": _linear_init(keys[-2], 512, 512),
        "fc3": _linear_init(keys[-1], 512, NUM_CLASSES),
    }


def prepare_params(params, final_hw=(2, 2)):
    """One-time conversion from PyTorch-layout params to kernel layout.

    * conv weights -> (9, Cin, Cout) tap-major bf16, in/out channels zero-padded
      to 128 lanes so all activations stay lane-dense end-to-end;
    * fc weights pre-transposed to (K, N) bf16; fc1 rows pre-permuted so a plain
      NHWC flatten matches torch's NCHW nn.Flatten; fc3 columns padded to 128.
    """
    kp = {"conv": []}
    cin_carried = CONV_CFG[0][0]                 # conv1 sees the raw 3-channel input
    for (w, b) in params["conv"]:
        cout, cin = w.shape[0], w.shape[1]
        wk = jnp.transpose(w, (2, 3, 1, 0)).reshape(9, cin, cout)   # (kh,kw,cin,cout)
        if cin_carried > cin:                    # previous output was lane-padded
            wk = jnp.pad(wk, ((0, 0), (0, cin_carried - cin), (0, 0)))
        if cout < LANE:
            wk = jnp.pad(wk, ((0, 0), (0, 0), (0, LANE - cout)))
        bk = jnp.pad(b, (0, LANE - cout)) if cout < LANE else b
        kp["conv"].append((wk.astype(jnp.bfloat16),
                           bk.reshape(1, LANE).astype(jnp.float32)))
        cin_carried = LANE

    # fc1: absorb the NCHW flatten permutation into the weight rows.
    fh, fw = final_hw
    fc = CONV_CFG[-1][1]
    assert fc == LANE, "last conv width must be 128 so the flatten has no lane padding"
    assert fh * fw * fc == params["fc1"][0].shape[1]
    hh, ww, cc = jnp.meshgrid(jnp.arange(fh), jnp.arange(fw), jnp.arange(fc),
                              indexing="ij")
    perm = (cc * (fh * fw) + hh * fw + ww).reshape(-1)   # nhwc position -> nchw feature
    w1, b1 = params["fc1"]
    kp["fc1"] = (w1.T[perm, :].astype(jnp.bfloat16),
                 b1.reshape(1, -1).astype(jnp.float32))
    w2, b2 = params["fc2"]
    kp["fc2"] = (w2.T.astype(jnp.bfloat16), b2.reshape(1, -1).astype(jnp.float32))
    w3, b3 = params["fc3"]
    w3k = jnp.pad(w3.T, ((0, 0), (0, LANE - w3.shape[0])))
    b3k = jnp.pad(b3, (0, LANE - b3.shape[0]))
    kp["fc3"] = (w3k.astype(jnp.bfloat16), b3k.reshape(1, LANE).astype(jnp.float32))
    return kp


# ---------------------------------------------------------------------------
# Forward pass
# ---------------------------------------------------------------------------

def vgg_forward(kparams, x_nchw):
    # NCHW (PyTorch) -> NHWC; bf16 MXU operands (accumulation stays f32 in-kernel).
    x = jnp.transpose(x_nchw, (0, 2, 3, 1)).astype(jnp.bfloat16)

    # features: fused Conv3x3+ReLU+MaxPool2 blocks (channels lane-padded to 128)
    for (wk, bk) in kparams["conv"]:
        x = conv3x3_relu_maxpool(x, wk, bk)

    # Flatten: plain NHWC reshape -- the NCHW flatten order of nn.Flatten is
    # absorbed into the pre-permuted fc1 weight rows (no transpose here).
    n = x.shape[0]
    x = x.reshape(n, -1)                                   # (N, 512) bf16

    # classifier (Dropout = identity, see TODO in the kernel)
    logits = classifier_fused(x, kparams["fc1"], kparams["fc2"], kparams["fc3"])
    return logits[:, :NUM_CLASSES]


if __name__ == "__main__":
    key = jax.random.PRNGKey(0)
    k_params, k_x = jax.random.split(key)

    params = init_params(k_params)          # PyTorch-layout, module init rules
    kparams = prepare_params(params)        # one-time kernel-layout conversion

    # CIFAR-like NCHW input sized so the flatten is 512 (=128*2*2), matching
    # the module's Linear(512, 512) classifier.
    x = jax.random.normal(k_x, (2, 3, 16, 16), dtype=jnp.float32)

    out = jax.jit(vgg_forward)(kparams, x)
    out = jax.block_until_ready(out)

    assert out.shape == (2, 10), out.shape
    assert out.dtype == jnp.float32
    assert bool(jnp.all(jnp.isfinite(out)))
    print("KERNEL_OK")
</pallas_src>

<mosaic_0001>
module attributes {stable_mosaic.version = 11 : i64} {
  func.func @_conv_relu_pool_kernel(%arg0: i32, %arg1: memref<1x324x3xbf16, #tpu.memory_space<vmem>>, %arg2: memref<9x3x128xbf16, #tpu.memory_space<vmem>>, %arg3: memref<1x128xf32, #tpu.memory_space<vmem>>, %arg4: memref<1x8x8x128xbf16, #tpu.memory_space<vmem>>, %arg5: memref<286x128xf32, #tpu.memory_space<vmem>>) attributes {dimension_semantics = [#tpu.dimension_semantics<parallel>], iteration_bounds = array<i64: 2>, scalar_prefetch = 0 : i64, scratch_operands = 1 : i64, tpu.core_type = #tpu.core_type<tc>, window_params = [{transform_indices = @transform_0, window_bounds = array<i64: 1, 324, 3>}, {pipeline_mode = #tpu.pipeline_mode<synchronous>, transform_indices = @transform_1, window_bounds = array<i64: 9, 3, 128>}, {pipeline_mode = #tpu.pipeline_mode<synchronous>, transform_indices = @transform_2, window_bounds = array<i64: 1, 128>}, {transform_indices = @transform_3, window_bounds = array<i64: 1, 8, 8, 128>}]} {
    %c0 = arith.constant 0 : index
    %c0_0 = arith.constant 0 : index
    %0 = vector.load %arg3[%c0, %c0_0] : memref<1x128xf32, #tpu.memory_space<vmem>>, vector<1x128xf32>
    %cst = arith.constant 0.000000e+00 : f32
    %1 = vector.broadcast %cst : f32 to vector<286x128xf32>
    %c0_1 = arith.constant 0 : index
    %c0_2 = arith.constant 0 : index
    %c0_3 = arith.constant 0 : index
    %2 = vector.load %arg1[%c0_1, %c0_2, %c0_3] : memref<1x324x3xbf16, #tpu.memory_space<vmem>>, vector<1x286x3xbf16>
    %3 = vector.shape_cast %2 : vector<1x286x3xbf16> to vector<286x3xbf16>
    %c0_4 = arith.constant 0 : index
    %c0_5 = arith.constant 0 : index
    %c0_6 = arith.constant 0 : index
    %4 = vector.load %arg2[%c0_4, %c0_5, %c0_6] : memref<9x3x128xbf16, #tpu.memory_space<vmem>>, vector<1x3x128xbf16>
    %5 = vector.shape_cast %4 : vector<1x3x128xbf16> to vector<3x128xbf16>
    %cst_7 = arith.constant dense<0.000000e+00> : vector<286x128xf32>
    %6 = tpu.matmul %3, %5, %cst_7 {dimension_numbers = #tpu.dot_dimension_numbers<[1], [0], [0], [1], [0, 0, 1, 1], [], []>} : vector<286x3xbf16>, vector<3x128xbf16>, vector<286x128xf32> -> vector<286x128xf32>
    %7 = arith.addf %1, %6 : vector<286x128xf32>
    %c0_8 = arith.constant 0 : index
    %c1 = arith.constant 1 : index
    %c0_9 = arith.constant 0 : index
    %8 = vector.load %arg1[%c0_8, %c1, %c0_9] : memref<1x324x3xbf16, #tpu.memory_space<vmem>>, vector<1x286x3xbf16>
    %9 = vector.shape_cast %8 : vector<1x286x3xbf16> to vector<286x3xbf16>
    %c1_10 = arith.constant 1 : index
    %c0_11 = arith.constant 0 : index
    %c0_12 = arith.constant 0 : index
    %10 = vector.load %arg2[%c1_10, %c0_11, %c0_12] : memref<9x3x128xbf16, #tpu.memory_space<vmem>>, vector<1x3x128xbf16>
    %11 = vector.shape_cast %10 : vector<1x3x128xbf16> to vector<3x128xbf16>
    %cst_13 = arith.constant dense<0.000000e+00> : vector<286x128xf32>
    %12 = tpu.matmul %9, %11, %cst_13 {dimension_numbers = #tpu.dot_dimension_numbers<[1], [0], [0], [1], [0, 0, 1, 1], [], []>} : vector<286x3xbf16>, vector<3x128xbf16>, vector<286x128xf32> -> vector<286x128xf32>
    %13 = arith.addf %7, %12 : vector<286x128xf32>
    %c0_14 = arith.constant 0 : index
    %c2 = arith.constant 2 : index
    %c0_15 = arith.constant 0 : index
    %14 = vector.load %arg1[%c0_14, %c2, %c0_15] : memref<1x324x3xbf16, #tpu.memory_space<vmem>>, vector<1x286x3xbf16>
    %15 = vector.shape_cast %14 : vector<1x286x3xbf16> to vector<286x3xbf16>
    %c2_16 = arith.constant 2 : index
    %c0_17 = arith.constant 0 : index
    %c0_18 = arith.constant 0 : index
    %16 = vector.load %arg2[%c2_16, %c0_17, %c0_18] : memref<9x3x128xbf16, #tpu.memory_space<vmem>>, vector<1x3x128xbf16>
    %17 = vector.shape_cast %16 : vector<1x3x128xbf16> to vector<3x128xbf16>
    %cst_19 = arith.constant dense<0.000000e+00> : vector<286x128xf32>
    %18 = tpu.matmul %15, %17, %cst_19 {dimension_numbers = #tpu.dot_dimension_numbers<[1], [0], [0], [1], [0, 0, 1, 1], [], []>} : vector<286x3xbf16>, vector<3x128xbf16>, vector<286x128xf32> -> vector<286x128xf32>
    %19 = arith.addf %13, %18 : vector<286x128xf32>
    %c0_20 = arith.constant 0 : index
    %c18 = arith.constant 18 : index
    %c0_21 = arith.constant 0 : index
    %20 = vector.load %arg1[%c0_20, %c18, %c0_21] : memref<1x324x3xbf16, #tpu.memory_space<vmem>>, vector<1x286x3xbf16>
    %21 = vector.shape_cast %20 : vector<1x286x3xbf16> to vector<286x3xbf16>
    %c3 = arith.constant 3 : index
    %c0_22 = arith.constant 0 : index
    %c0_23 = arith.constant 0 : index
    %22 = vector.load %arg2[%c3, %c0_22, %c0_23] : memref<9x3x128xbf16, #tpu.memory_space<vmem>>, vector<1x3x128xbf16>
    %23 = vector.shape_cast %22 : vector<1x3x128xbf16> to vector<3x128xbf16>
    %cst_24 = arith.constant dense<0.000000e+00> : vector<286x128xf32>
    %24 = tpu.matmul %21, %23, %cst_24 {dimension_numbers = #tpu.dot_dimension_numbers<[1], [0], [0], [1], [0, 0, 1, 1], [], []>} : vector<286x3xbf16>, vector<3x128xbf16>, vector<286x128xf32> -> vector<286x128xf32>
    %25 = arith.addf %19, %24 : vector<286x128xf32>
    %c0_25 = arith.constant 0 : index
    %c19 = arith.constant 19 : index
    %c0_26 = arith.constant 0 : index
    %26 = vector.load %arg1[%c0_25, %c19, %c0_26] : memref<1x324x3xbf16, #tpu.memory_space<vmem>>, vector<1x286x3xbf16>
    %27 = vector.shape_cast %26 : vector<1x286x3xbf16> to vector<286x3xbf16>
    %c4 = arith.constant 4 : index
    %c0_27 = arith.constant 0 : index
    %c0_28 = arith.constant 0 : index
    %28 = vector.load %arg2[%c4, %c0_27, %c0_28] : memref<9x3x128xbf16, #tpu.memory_space<vmem>>, vector<1x3x128xbf16>
    %29 = vector.shape_cast %28 : vector<1x3x128xbf16> to vector<3x128xbf16>
    %cst_29 = arith.constant dense<0.000000e+00> : vector<286x128xf32>
    %30 = tpu.matmul %27, %29, %cst_29 {dimension_numbers = #tpu.dot_dimension_numbers<[1], [0], [0], [1], [0, 0, 1, 1], [], []>} : vector<286x3xbf16>, vector<3x128xbf16>, vector<286x128xf32> -> vector<286x128xf32>
    %31 = arith.addf %25, %30 : vector<286x128xf32>
    %c0_30 = arith.constant 0 : index
    %c20 = arith.constant 20 : index
    %c0_31 = arith.constant 0 : index
    %32 = vector.load %arg1[%c0_30, %c20, %c0_31] : memref<1x324x3xbf16, #tpu.memory_space<vmem>>, vector<1x286x3xbf16>
    %33 = vector.shape_cast %32 : vector<1x286x3xbf16> to vector<286x3xbf16>
    %c5 = arith.constant 5 : index
    %c0_32 = arith.constant 0 : index
    %c0_33 = arith.constant 0 : index
    %34 = vector.load %arg2[%c5, %c0_32, %c0_33] : memref<9x3x128xbf16, #tpu.memory_space<vmem>>, vector<1x3x128xbf16>
    %35 = vector.shape_cast %34 : vector<1x3x128xbf16> to vector<3x128xbf16>
    %cst_34 = arith.constant dense<0.000000e+00> : vector<286x128xf32>
    %36 = tpu.matmul %33, %35, %cst_34 {dimension_numbers = #tpu.dot_dimension_numbers<[1], [0], [0], [1], [0, 0, 1, 1], [], []>} : vector<286x3xbf16>, vector<3x128xbf16>, vector<286x128xf32> -> vector<286x128xf32>
    %37 = arith.addf %31, %36 : vector<286x128xf32>
    %c0_35 = arith.constant 0 : index
    %c36 = arith.constant 36 : index
    %c0_36 = arith.constant 0 : index
    %38 = vector.load %arg1[%c0_35, %c36, %c0_36] : memref<1x324x3xbf16, #tpu.memory_space<vmem>>, vector<1x286x3xbf16>
    %39 = vector.shape_cast %38 : vector<1x286x3xbf16> to vector<286x3xbf16>
    %c6 = arith.constant 6 : index
    %c0_37 = arith.constant 0 : index
    %c0_38 = arith.constant 0 : index
    %40 = vector.load %arg2[%c6, %c0_37, %c0_38] : memref<9x3x128xbf16, #tpu.memory_space<vmem>>, vector<1x3x128xbf16>
    %41 = vector.shape_cast %40 : vector<1x3x128xbf16> to vector<3x128xbf16>
    %cst_39 = arith.constant dense<0.000000e+00> : vector<286x128xf32>
    %42 = tpu.matmul %39, %41, %cst_39 {dimension_numbers = #tpu.dot_dimension_numbers<[1], [0], [0], [1], [0, 0, 1, 1], [], []>} : vector<286x3xbf16>, vector<3x128xbf16>, vector<286x128xf32> -> vector<286x128xf32>
    %43 = arith.addf %37, %42 : vector<286x128xf32>
    %c0_40 = arith.constant 0 : index
    %c37 = arith.constant 37 : index
    %c0_41 = arith.constant 0 : index
    %44 = vector.load %arg1[%c0_40, %c37, %c0_41] : memref<1x324x3xbf16, #tpu.memory_space<vmem>>, vector<1x286x3xbf16>
    %45 = vector.shape_cast %44 : vector<1x286x3xbf16> to vector<286x3xbf16>
    %c7 = arith.constant 7 : index
    %c0_42 = arith.constant 0 : index
    %c0_43 = arith.constant 0 : index
    %46 = vector.load %arg2[%c7, %c0_42, %c0_43] : memref<9x3x128xbf16, #tpu.memory_space<vmem>>, vector<1x3x128xbf16>
    %47 = vector.shape_cast %46 : vector<1x3x128xbf16> to vector<3x128xbf16>
    %cst_44 = arith.constant dense<0.000000e+00> : vector<286x128xf32>
    %48 = tpu.matmul %45, %47, %cst_44 {dimension_numbers = #tpu.dot_dimension_numbers<[1], [0], [0], [1], [0, 0, 1, 1], [], []>} : vector<286x3xbf16>, vector<3x128xbf16>, vector<286x128xf32> -> vector<286x128xf32>
    %49 = arith.addf %43, %48 : vector<286x128xf32>
    %c0_45 = arith.constant 0 : index
    %c38 = arith.constant 38 : index
    %c0_46 = arith.constant 0 : index
    %50 = vector.load %arg1[%c0_45, %c38, %c0_46] : memref<1x324x3xbf16, #tpu.memory_space<vmem>>, vector<1x286x3xbf16>
    %51 = vector.shape_cast %50 : vector<1x286x3xbf16> to vector<286x3xbf16>
    %c8 = arith.constant 8 : index
    %c0_47 = arith.constant 0 : index
    %c0_48 = arith.constant 0 : index
    %52 = vector.load %arg2[%c8, %c0_47, %c0_48] : memref<9x3x128xbf16, #tpu.memory_space<vmem>>, vector<1x3x128xbf16>
    %53 = vector.shape_cast %52 : vector<1x3x128xbf16> to vector<3x128xbf16>
    %cst_49 = arith.constant dense<0.000000e+00> : vector<286x128xf32>
    %54 = tpu.matmul %51, %53, %cst_49 {dimension_numbers = #tpu.dot_dimension_numbers<[1], [0], [0], [1], [0, 0, 1, 1], [], []>} : vector<286x3xbf16>, vector<3x128xbf16>, vector<286x128xf32> -> vector<286x128xf32>
    %55 = arith.addf %49, %54 : vector<286x128xf32>
    %56 = vector.broadcast %0 : vector<1x128xf32> to vector<286x128xf32>
    %57 = arith.addf %55, %56 : vector<286x128xf32>
    %cst_50 = arith.constant 0.000000e+00 : f32
    %58 = vector.broadcast %cst_50 : f32 to vector<286x128xf32>
    %59 = arith.maximumf %57, %58 : vector<286x128xf32>
    %c0_51 = arith.constant 0 : index
    %c0_52 = arith.constant 0 : index
    %60 = vector.load %arg5[%c0_51, %c0_52] : memref<286x128xf32, #tpu.memory_space<vmem>>, vector<286x128xf32>
    tpu.vector_store %arg5[%c0_51, %c0_52], %59 {strides = array<i32>} : memref<286x128xf32, #tpu.memory_space<vmem>>, vector<286x128xf32>,
    %c0_53 = arith.constant 0 : index
    %c0_54 = arith.constant 0 : index
    %61 = tpu.strided_load %arg5[%c0_53, %c0_54] {strides = array<i32: 2, 1>} : memref<286x128xf32, #tpu.memory_space<vmem>>, vector<8x128xf32>
    %c1_55 = arith.constant 1 : index
    %c0_56 = arith.constant 0 : index
    %62 = tpu.strided_load %arg5[%c1_55, %c0_56] {strides = array<i32: 2, 1>} : memref<286x128xf32, #tpu.memory_space<vmem>>, vector<8x128xf32>
    %c18_57 = arith.constant 18 : index
    %c0_58 = arith.constant 0 : index
    %63 = tpu.strided_load %arg5[%c18_57, %c0_58] {strides = array<i32: 2, 1>} : memref<286x128xf32, #tpu.memory_space<vmem>>, vector<8x128xf32>
    %c19_59 = arith.constant 19 : index
    %c0_60 = arith.constant 0 : index
    %64 = tpu.strided_load %arg5[%c19_59, %c0_60] {strides = array<i32: 2, 1>} : memref<286x128xf32, #tpu.memory_space<vmem>>, vector<8x128xf32>
    %65 = arith.maximumf %61, %62 : vector<8x128xf32>
    %66 = arith.maximumf %63, %64 : vector<8x128xf32>
    %67 = arith.maximumf %65, %66 : vector<8x128xf32>
    %68 = arith.truncf %67 : vector<8x128xf32> to vector<8x128xbf16>
    %c0_61 = arith.constant 0 : index
    %c0_62 = arith.constant 0 : index
    %c0_63 = arith.constant 0 : index
    %c0_64 = arith.constant 0 : index
    %69 = vector.load %arg4[%c0_61, %c0_62, %c0_63, %c0_64] : memref<1x8x8x128xbf16, #tpu.memory_space<vmem>>, vector<1x1x8x128xbf16>
    %70 = vector.shape_cast %69 : vector<1x1x8x128xbf16> to vector<8x128xbf16>
    %71 = vector.shape_cast %68 : vector<8x128xbf16> to vector<1x1x8x128xbf16>
    tpu.vector_store %arg4[%c0_61, %c0_62, %c0_63, %c0_64], %71 {strides = array<i32>} : memref<1x8x8x128xbf16, #tpu.memory_space<vmem>>, vector<1x1x8x128xbf16>,
    %c36_65 = arith.constant 36 : index
    %c0_66 = arith.constant 0 : index
    %72 = tpu.strided_load %arg5[%c36_65, %c0_66] {strides = array<i32: 2, 1>} : memref<286x128xf32, #tpu.memory_space<vmem>>, vector<8x128xf32>
    %c37_67 = arith.constant 37 : index
    %c0_68 = arith.constant 0 : index
    %73 = tpu.strided_load %arg5[%c37_67, %c0_68] {strides = array<i32: 2, 1>} : memref<286x128xf32, #tpu.memory_space<vmem>>, vector<8x128xf32>
    %c54 = arith.constant 54 : index
    %c0_69 = arith.constant 0 : index
    %74 = tpu.strided_load %arg5[%c54, %c0_69] {strides = array<i32: 2, 1>} : memref<286x128xf32, #tpu.memory_space<vmem>>, vector<8x128xf32>
    %c55 = arith.constant 55 : index
    %c0_70 = arith.constant 0 : index
    %75 = tpu.strided_load %arg5[%c55, %c0_70] {strides = array<i32: 2, 1>} : memref<286x128xf32, #tpu.memory_space<vmem>>, vector<8x128xf32>
    %76 = arith.maximumf %72, %73 : vector<8x128xf32>
    %77 = arith.maximumf %74, %75 : vector<8x128xf32>
    %78 = arith.maximumf %76, %77 : vector<8x128xf32>
    %79 = arith.truncf %78 : vector<8x128xf32> to vector<8x128xbf16>
    %c0_71 = arith.constant 0 : index
    %c1_72 = arith.constant 1 : index
    %c0_73 = arith.constant 0 : index
    %c0_74 = arith.constant 0 : index
    %80 = vector.load %arg4[%c0_71, %c1_72, %c0_73, %c0_74] : memref<1x8x8x128xbf16, #tpu.memory_space<vmem>>, vector<1x1x8x128xbf16>
    %81 = vector.shape_cast %80 : vector<1x1x8x128xbf16> to vector<8x128xbf16>
    %82 = vector.shape_cast %79 : vector<8x128xbf16> to vector<1x1x8x128xbf16>
    tpu.vector_store %arg4[%c0_71, %c1_72, %c0_73, %c0_74], %82 {strides = array<i32>} : memref<1x8x8x128xbf16, #tpu.memory_space<vmem>>, vector<1x1x8x128xbf16>,
    %c72 = arith.constant 72 : index
    %c0_75 = arith.constant 0 : index
    %83 = tpu.strided_load %arg5[%c72, %c0_75] {strides = array<i32: 2, 1>} : memref<286x128xf32, #tpu.memory_space<vmem>>, vector<8x128xf32>
    %c73 = arith.constant 73 : index
    %c0_76 = arith.constant 0 : index
    %84 = tpu.strided_load %arg5[%c73, %c0_76] {strides = array<i32: 2, 1>} : memref<286x128xf32, #tpu.memory_space<vmem>>, vector<8x128xf32>
    %c90 = arith.constant 90 : index
    %c0_77 = arith.constant 0 : index
    %85 = tpu.strided_load %arg5[%c90, %c0_77] {strides = array<i32: 2, 1>} : memref<286x128xf32, #tpu.memory_space<vmem>>, vector<8x128xf32>
    %c91 = arith.constant 91 : index
    %c0_78 = arith.constant 0 : index
    %86 = tpu.strided_load %arg5[%c91, %c0_78] {strides = array<i32: 2, 1>} : memref<286x128xf32, #tpu.memory_space<vmem>>, vector<8x128xf32>
    %87 = arith.maximumf %83, %84 : vector<8x128xf32>
    %88 = arith.maximumf %85, %86 : vector<8x128xf32>
    %89 = arith.maximumf %87, %88 : vector<8x128xf32>
    %90 = arith.truncf %89 : vector<8x128xf32> to vector<8x128xbf16>
    %c0_79 = arith.constant 0 : index
    %c2_80 = arith.constant 2 : index
    %c0_81 = arith.constant 0 : index
    %c0_82 = arith.constant 0 : index
    %91 = vector.load %arg4[%c0_79, %c2_80, %c0_81, %c0_82] : memref<1x8x8x128xbf16, #tpu.memory_space<vmem>>, vector<1x1x8x128xbf16>
    %92 = vector.shape_cast %91 : vector<1x1x8x128xbf16> to vector<8x128xbf16>
    %93 = vector.shape_cast %90 : vector<8x128xbf16> to vector<1x1x8x128xbf16>
    tpu.vector_store %arg4[%c0_79, %c2_80, %c0_81, %c0_82], %93 {strides = array<i32>} : memref<1x8x8x128xbf16, #tpu.memory_space<vmem>>, vector<1x1x8x128xbf16>,
    %c108 = arith.constant 108 : index
    %c0_83 = arith.constant 0 : index
    %94 = tpu.strided_load %arg5[%c108, %c0_83] {strides = array<i32: 2, 1>} : memref<286x128xf32, #tpu.memory_space<vmem>>, vector<8x128xf32>
    %c109 = arith.constant 109 : index
    %c0_84 = arith.constant 0 : index
    %95 = tpu.strided_load %arg5[%c109, %c0_84] {strides = array<i32: 2, 1>} : memref<286x128xf32, #tpu.memory_space<vmem>>, vector<8x128xf32>
    %c126 = arith.constant 126 : index
    %c0_85 = arith.constant 0 : index
    %96 = tpu.strided_load %arg5[%c126, %c0_85] {strides = array<i32: 2, 1>} : memref<286x128xf32, #tpu.memory_space<vmem>>, vector<8x128xf32>
    %c127 = arith.constant 127 : index
    %c0_86 = arith.constant 0 : index
    %97 = tpu.strided_load %arg5[%c127, %c0_86] {strides = array<i32: 2, 1>} : memref<286x128xf32, #tpu.memory_space<vmem>>, vector<8x128xf32>
    %98 = arith.maximumf %94, %95 : vector<8x128xf32>
    %99 = arith.maximumf %96, %97 : vector<8x128xf32>
    %100 = arith.maximumf %98, %99 : vector<8x128xf32>
    %101 = arith.truncf %100 : vector<8x128xf32> to vector<8x128xbf16>
    %c0_87 = arith.constant 0 : index
    %c3_88 = arith.constant 3 : index
    %c0_89 = arith.constant 0 : index
    %c0_90 = arith.constant 0 : index
    %102 = vector.load %arg4[%c0_87, %c3_88, %c0_89, %c0_90] : memref<1x8x8x128xbf16, #tpu.memory_space<vmem>>, vector<1x1x8x128xbf16>
    %103 = vector.shape_cast %102 : vector<1x1x8x128xbf16> to vector<8x128xbf16>
    %104 = vector.shape_cast %101 : vector<8x128xbf16> to vector<1x1x8x128xbf16>
    tpu.vector_store %arg4[%c0_87, %c3_88, %c0_89, %c0_90], %104 {strides = array<i32>} : memref<1x8x8x128xbf16, #tpu.memory_space<vmem>>, vector<1x1x8x128xbf16>,
    %c144 = arith.constant 144 : index
    %c0_91 = arith.constant 0 : index
    %105 = tpu.strided_load %arg5[%c144, %c0_91] {strides = array<i32: 2, 1>} : memref<286x128xf32, #tpu.memory_space<vmem>>, vector<8x128xf32>
    %c145 = arith.constant 145 : index
    %c0_92 = arith.constant 0 : index
    %106 = tpu.strided_load %arg5[%c145, %c0_92] {strides = array<i32: 2, 1>} : memref<286x128xf32, #tpu.memory_space<vmem>>, vector<8x128xf32>
    %c162 = arith.constant 162 : index
    %c0_93 = arith.constant 0 : index
    %107 = tpu.strided_load %arg5[%c162, %c0_93] {strides = array<i32: 2, 1>} : memref<286x128xf32, #tpu.memory_space<vmem>>, vector<8x128xf32>
    %c163 = arith.constant 163 : index
    %c0_94 = arith.constant 0 : index
    %108 = tpu.strided_load %arg5[%c163, %c0_94] {strides = array<i32: 2, 1>} : memref<286x128xf32, #tpu.memory_space<vmem>>, vector<8x128xf32>
    %109 = arith.maximumf %105, %106 : vector<8x128xf32>
    %110 = arith.maximumf %107, %108 : vector<8x128xf32>
    %111 = arith.maximumf %109, %110 : vector<8x128xf32>
    %112 = arith.truncf %111 : vector<8x128xf32> to vector<8x128xbf16>
    %c0_95 = arith.constant 0 : index
    %c4_96 = arith.constant 4 : index
    %c0_97 = arith.constant 0 : index
    %c0_98 = arith.constant 0 : index
    %113 = vector.load %arg4[%c0_95, %c4_96, %c0_97, %c0_98] : memref<1x8x8x128xbf16, #tpu.memory_space<vmem>>, vector<1x1x8x128xbf16>
    %114 = vector.shape_cast %113 : vector<1x1x8x128xbf16> to vector<8x128xbf16>
    %115 = vector.shape_cast %112 : vector<8x128xbf16> to vector<1x1x8x128xbf16>
    tpu.vector_store %arg4[%c0_95, %c4_96, %c0_97, %c0_98], %115 {strides = array<i32>} : memref<1x8x8x128xbf16, #tpu.memory_space<vmem>>, vector<1x1x8x128xbf16>,
    %c180 = arith.constant 180 : index
    %c0_99 = arith.constant 0 : index
    %116 = tpu.strided_load %arg5[%c180, %c0_99] {strides = array<i32: 2, 1>} : memref<286x128xf32, #tpu.memory_space<vmem>>, vector<8x128xf32>
    %c181 = arith.constant 181 : index
    %c0_100 = arith.constant 0 : index
    %117 = tpu.strided_load %arg5[%c181, %c0_100] {strides = array<i32: 2, 1>} : memref<286x128xf32, #tpu.memory_space<vmem>>, vector<8x128xf32>
    %c198 = arith.constant 198 : index
    %c0_101 = arith.constant 0 : index
    %118 = tpu.strided_load %arg5[%c198, %c0_101] {strides = array<i32: 2, 1>} : memref<286x128xf32, #tpu.memory_space<vmem>>, vector<8x128xf32>
    %c199 = arith.constant 199 : index
    %c0_102 = arith.constant 0 : index
    %119 = tpu.strided_load %arg5[%c199, %c0_102] {strides = array<i32: 2, 1>} : memref<286x128xf32, #tpu.memory_space<vmem>>, vector<8x128xf32>
    %120 = arith.maximumf %116, %117 : vector<8x128xf32>
    %121 = arith.maximumf %118, %119 : vector<8x128xf32>
    %122 = arith.maximumf %120, %121 : vector<8x128xf32>
    %123 = arith.truncf %122 : vector<8x128xf32> to vector<8x128xbf16>
    %c0_103 = arith.constant 0 : index
    %c5_104 = arith.constant 5 : index
    %c0_105 = arith.constant 0 : index
    %c0_106 = arith.constant 0 : index
    %124 = vector.load %arg4[%c0_103, %c5_104, %c0_105, %c0_106] : memref<1x8x8x128xbf16, #tpu.memory_space<vmem>>, vector<1x1x8x128xbf16>
    %125 = vector.shape_cast %124 : vector<1x1x8x128xbf16> to vector<8x128xbf16>
    %126 = vector.shape_cast %123 : vector<8x128xbf16> to vector<1x1x8x128xbf16>
    tpu.vector_store %arg4[%c0_103, %c5_104, %c0_105, %c0_106], %126 {strides = array<i32>} : memref<1x8x8x128xbf16, #tpu.memory_space<vmem>>, vector<1x1x8x128xbf16>,
    %c216 = arith.constant 216 : index
    %c0_107 = arith.constant 0 : index
    %127 = tpu.strided_load %arg5[%c216, %c0_107] {strides = array<i32: 2, 1>} : memref<286x128xf32, #tpu.memory_space<vmem>>, vector<8x128xf32>
    %c217 = arith.constant 217 : index
    %c0_108 = arith.constant 0 : index
    %128 = tpu.strided_load %arg5[%c217, %c0_108] {strides = array<i32: 2, 1>} : memref<286x128xf32, #tpu.memory_space<vmem>>, vector<8x128xf32>
    %c234 = arith.constant 234 : index
    %c0_109 = arith.constant 0 : index
    %129 = tpu.strided_load %arg5[%c234, %c0_109] {strides = array<i32: 2, 1>} : memref<286x128xf32, #tpu.memory_space<vmem>>, vector<8x128xf32>
    %c235 = arith.constant 235 : index
    %c0_110 = arith.constant 0 : index
    %130 = tpu.strided_load %arg5[%c235, %c0_110] {strides = array<i32: 2, 1>} : memref<286x128xf32, #tpu.memory_space<vmem>>, vector<8x128xf32>
    %131 = arith.maximumf %127, %128 : vector<8x128xf32>
    %132 = arith.maximumf %129, %130 : vector<8x128xf32>
    %133 = arith.maximumf %131, %132 : vector<8x128xf32>
    %134 = arith.truncf %133 : vector<8x128xf32> to vector<8x128xbf16>
    %c0_111 = arith.constant 0 : index
    %c6_112 = arith.constant 6 : index
    %c0_113 = arith.constant 0 : index
    %c0_114 = arith.constant 0 : index
    %135 = vector.load %arg4[%c0_111, %c6_112, %c0_113, %c0_114] : memref<1x8x8x128xbf16, #tpu.memory_space<vmem>>, vector<1x1x8x128xbf16>
    %136 = vector.shape_cast %135 : vector<1x1x8x128xbf16> to vector<8x128xbf16>
    %137 = vector.shape_cast %134 : vector<8x128xbf16> to vector<1x1x8x128xbf16>
    tpu.vector_store %arg4[%c0_111, %c6_112, %c0_113, %c0_114], %137 {strides = array<i32>} : memref<1x8x8x128xbf16, #tpu.memory_space<vmem>>, vector<1x1x8x128xbf16>,
    %c252 = arith.constant 252 : index
    %c0_115 = arith.constant 0 : index
    %138 = tpu.strided_load %arg5[%c252, %c0_115] {strides = array<i32: 2, 1>} : memref<286x128xf32, #tpu.memory_space<vmem>>, vector<8x128xf32>
    %c253 = arith.constant 253 : index
    %c0_116 = arith.constant 0 : index
    %139 = tpu.strided_load %arg5[%c253, %c0_116] {strides = array<i32: 2, 1>} : memref<286x128xf32, #tpu.memory_space<vmem>>, vector<8x128xf32>
    %c270 = arith.constant 270 : index
    %c0_117 = arith.constant 0 : index
    %140 = tpu.strided_load %arg5[%c270, %c0_117] {strides = array<i32: 2, 1>} : memref<286x128xf32, #tpu.memory_space<vmem>>, vector<8x128xf32>
    %c271 = arith.constant 271 : index
    %c0_118 = arith.constant 0 : index
    %141 = tpu.strided_load %arg5[%c271, %c0_118] {strides = array<i32: 2, 1>} : memref<286x128xf32, #tpu.memory_space<vmem>>, vector<8x128xf32>
    %142 = arith.maximumf %138, %139 : vector<8x128xf32>
    %143 = arith.maximumf %140, %141 : vector<8x128xf32>
    %144 = arith.maximumf %142, %143 : vector<8x128xf32>
    %145 = arith.truncf %144 : vector<8x128xf32> to vector<8x128xbf16>
    %c0_119 = arith.constant 0 : index
    %c7_120 = arith.constant 7 : index
    %c0_121 = arith.constant 0 : index
    %c0_122 = arith.constant 0 : index
    %146 = vector.load %arg4[%c0_119, %c7_120, %c0_121, %c0_122] : memref<1x8x8x128xbf16, #tpu.memory_space<vmem>>, vector<1x1x8x128xbf16>
    %147 = vector.shape_cast %146 : vector<1x1x8x128xbf16> to vector<8x128xbf16>
    %148 = vector.shape_cast %145 : vector<8x128xbf16> to vector<1x1x8x128xbf16>
    tpu.vector_store %arg4[%c0_119, %c7_120, %c0_121, %c0_122], %148 {strides = array<i32>} : memref<1x8x8x128xbf16, #tpu.memory_space<vmem>>, vector<1x1x8x128xbf16>,
    return
  }
  func.func @transform_0(%arg0: i32) -> (i32, i32, i32) {
    %c0_i32 = arith.constant 0 : i32
    %c0_i32_0 = arith.constant 0 : i32
    %c0_i32_1 = arith.constant 0 : i32
    return %arg0, %c0_i32, %c0_i32_0 : i32, i32, i32
  }
  func.func @transform_1(%arg0: i32) -> (i32, i32, i32) {
    %c0_i32 = arith.constant 0 : i32
    %c0_i32_0 = arith.constant 0 : i32
    %c0_i32_1 = arith.constant 0 : i32
    %c0_i32_2 = arith.constant 0 : i32
    return %c0_i32, %c0_i32_0, %c0_i32_1 : i32, i32, i32
  }
  func.func @transform_2(%arg0: i32) -> (i32, i32) {
    %c0_i32 = arith.constant 0 : i32
    %c0_i32_0 = arith.constant 0 : i32
    %c0_i32_1 = arith.constant 0 : i32
    return %c0_i32, %c0_i32_0 : i32, i32
  }
  func.func @transform_3(%arg0: i32) -> (i32, i32, i32, i32) {
    %c0_i32 = arith.constant 0 : i32
    %c0_i32_0 = arith.constant 0 : i32
    %c0_i32_1 = arith.constant 0 : i32
    %c0_i32_2 = arith.constant 0 : i32
    return %arg0, %c0_i32, %c0_i32_0, %c0_i32_1 : i32, i32, i32, i32
  }
}

module attributes {stable_mosaic.version = 11 : i64} {
  func.func @_conv_relu_pool_kernel(%arg0: i32, %arg1: memref<1x36x128xbf16, #tpu.memory_space<vmem>>, %arg2: memref<9x128x128xbf16, #tpu.memory_space<vmem>>, %arg3: memref<1x128xf32, #tpu.memory_space<vmem>>, %arg4: memref<1x2x2x128xbf16, #tpu.memory_space<vmem>>, %arg5: memref<22x128xf32, #tpu.memory_space<vmem>>) attributes {dimension_semantics = [#tpu.dimension_semantics<parallel>], iteration_bounds = array<i64: 2>, scalar_prefetch = 0 : i64, scratch_operands = 1 : i64, tpu.core_type = #tpu.core_type<tc>, window_params = [{transform_indices = @transform_0, window_bounds = array<i64: 1, 36, 128>}, {pipeline_mode = #tpu.pipeline_mode<synchronous>, transform_indices = @transform_1, window_bounds = array<i64: 9, 128, 128>}, {pipeline_mode = #tpu.pipeline_mode<synchronous>, transform_indices = @transform_2, window_bounds = array<i64: 1, 128>}, {transform_indices = @transform_3, window_bounds = array<i64: 1, 2, 2, 128>}]} {
    %c0 = arith.constant 0 : index
    %c0_0 = arith.constant 0 : index
    %0 = vector.load %arg3[%c0, %c0_0] : memref<1x128xf32, #tpu.memory_space<vmem>>, vector<1x128xf32>
    %cst = arith.constant 0.000000e+00 : f32
    %1 = vector.broadcast %cst : f32 to vector<22x128xf32>
    %c0_1 = arith.constant 0 : index
    %c0_2 = arith.constant 0 : index
    %c0_3 = arith.constant 0 : index
    %2 = vector.load %arg1[%c0_1, %c0_2, %c0_3] : memref<1x36x128xbf16, #tpu.memory_space<vmem>>, vector<1x22x128xbf16>
    %3 = vector.shape_cast %2 : vector<1x22x128xbf16> to vector<22x128xbf16>
    %c0_4 = arith.constant 0 : index
    %c0_5 = arith.constant 0 : index
    %c0_6 = arith.constant 0 : index
    %4 = vector.load %arg2[%c0_4, %c0_5, %c0_6] : memref<9x128x128xbf16, #tpu.memory_space<vmem>>, vector<1x128x128xbf16>
    %5 = vector.shape_cast %4 : vector<1x128x128xbf16> to vector<128x128xbf16>
    %cst_7 = arith.constant dense<0.000000e+00> : vector<22x128xf32>
    %6 = tpu.matmul %3, %5, %cst_7 {dimension_numbers = #tpu.dot_dimension_numbers<[1], [0], [0], [1], [0, 0, 1, 1], [], []>} : vector<22x128xbf16>, vector<128x128xbf16>, vector<22x128xf32> -> vector<22x128xf32>
    %7 = arith.addf %1, %6 : vector<22x128xf32>
    %c0_8 = arith.constant 0 : index
    %c1 = arith.constant 1 : index
    %c0_9 = arith.constant 0 : index
    %8 = vector.load %arg1[%c0_8, %c1, %c0_9] : memref<1x36x128xbf16, #tpu.memory_space<vmem>>, vector<1x22x128xbf16>
    %9 = vector.shape_cast %8 : vector<1x22x128xbf16> to vector<22x128xbf16>
    %c1_10 = arith.constant 1 : index
    %c0_11 = arith.constant 0 : index
    %c0_12 = arith.constant 0 : index
    %10 = vector.load %arg2[%c1_10, %c0_11, %c0_12] : memref<9x128x128xbf16, #tpu.memory_space<vmem>>, vector<1x128x128xbf16>
    %11 = vector.shape_cast %10 : vector<1x128x128xbf16> to vector<128x128xbf16>
    %cst_13 = arith.constant dense<0.000000e+00> : vector<22x128xf32>
    %12 = tpu.matmul %9, %11, %cst_13 {dimension_numbers = #tpu.dot_dimension_numbers<[1], [0], [0], [1], [0, 0, 1, 1], [], []>} : vector<22x128xbf16>, vector<128x128xbf16>, vector<22x128xf32> -> vector<22x128xf32>
    %13 = arith.addf %7, %12 : vector<22x128xf32>
    %c0_14 = arith.constant 0 : index
    %c2 = arith.constant 2 : index
    %c0_15 = arith.constant 0 : index
    %14 = vector.load %arg1[%c0_14, %c2, %c0_15] : memref<1x36x128xbf16, #tpu.memory_space<vmem>>, vector<1x22x128xbf16>
    %15 = vector.shape_cast %14 : vector<1x22x128xbf16> to vector<22x128xbf16>
    %c2_16 = arith.constant 2 : index
    %c0_17 = arith.constant 0 : index
    %c0_18 = arith.constant 0 : index
    %16 = vector.load %arg2[%c2_16, %c0_17, %c0_18] : memref<9x128x128xbf16, #tpu.memory_space<vmem>>, vector<1x128x128xbf16>
    %17 = vector.shape_cast %16 : vector<1x128x128xbf16> to vector<128x128xbf16>
    %cst_19 = arith.constant dense<0.000000e+00> : vector<22x128xf32>
    %18 = tpu.matmul %15, %17, %cst_19 {dimension_numbers = #tpu.dot_dimension_numbers<[1], [0], [0], [1], [0, 0, 1, 1], [], []>} : vector<22x128xbf16>, vector<128x128xbf16>, vector<22x128xf32> -> vector<22x128xf32>
    %19 = arith.addf %13, %18 : vector<22x128xf32>
    %c0_20 = arith.constant 0 : index
    %c6 = arith.constant 6 : index
    %c0_21 = arith.constant 0 : index
    %20 = vector.load %arg1[%c0_20, %c6, %c0_21] : memref<1x36x128xbf16, #tpu.memory_space<vmem>>, vector<1x22x128xbf16>
    %21 = vector.shape_cast %20 : vector<1x22x128xbf16> to vector<22x128xbf16>
    %c3 = arith.constant 3 : index
    %c0_22 = arith.constant 0 : index
    %c0_23 = arith.constant 0 : index
    %22 = vector.load %arg2[%c3, %c0_22, %c0_23] : memref<9x128x128xbf16, #tpu.memory_space<vmem>>, vector<1x128x128xbf16>
    %23 = vector.shape_cast %22 : vector<1x128x128xbf16> to vector<128x128xbf16>
    %cst_24 = arith.constant dense<0.000000e+00> : vector<22x128xf32>
    %24 = tpu.matmul %21, %23, %cst_24 {dimension_numbers = #tpu.dot_dimension_numbers<[1], [0], [0], [1], [0, 0, 1, 1], [], []>} : vector<22x128xbf16>, vector<128x128xbf16>, vector<22x128xf32> -> vector<22x128xf32>
    %25 = arith.addf %19, %24 : vector<22x128xf32>
    %c0_25 = arith.constant 0 : index
    %c7 = arith.constant 7 : index
    %c0_26 = arith.constant 0 : index
    %26 = vector.load %arg1[%c0_25, %c7, %c0_26] : memref<1x36x128xbf16, #tpu.memory_space<vmem>>, vector<1x22x128xbf16>
    %27 = vector.shape_cast %26 : vector<1x22x128xbf16> to vector<22x128xbf16>
    %c4 = arith.constant 4 : index
    %c0_27 = arith.constant 0 : index
    %c0_28 = arith.constant 0 : index
    %28 = vector.load %arg2[%c4, %c0_27, %c0_28] : memref<9x128x128xbf16, #tpu.memory_space<vmem>>, vector<1x128x128xbf16>
    %29 = vector.shape_cast %28 : vector<1x128x128xbf16> to vector<128x128xbf16>
    %cst_29 = arith.constant dense<0.000000e+00> : vector<22x128xf32>
    %30 = tpu.matmul %27, %29, %cst_29 {dimension_numbers = #tpu.dot_dimension_numbers<[1], [0], [0], [1], [0, 0, 1, 1], [], []>} : vector<22x128xbf16>, vector<128x128xbf16>, vector<22x128xf32> -> vector<22x128xf32>
    %31 = arith.addf %25, %30 : vector<22x128xf32>
    %c0_30 = arith.constant 0 : index
    %c8 = arith.constant 8 : index
    %c0_31 = arith.constant 0 : index
    %32 = vector.load %arg1[%c0_30, %c8, %c0_31] : memref<1x36x128xbf16, #tpu.memory_space<vmem>>, vector<1x22x128xbf16>
    %33 = vector.shape_cast %32 : vector<1x22x128xbf16> to vector<22x128xbf16>
    %c5 = arith.constant 5 : index
    %c0_32 = arith.constant 0 : index
    %c0_33 = arith.constant 0 : index
    %34 = vector.load %arg2[%c5, %c0_32, %c0_33] : memref<9x128x128xbf16, #tpu.memory_space<vmem>>, vector<1x128x128xbf16>
    %35 = vector.shape_cast %34 : vector<1x128x128xbf16> to vector<128x128xbf16>
    %cst_34 = arith.constant dense<0.000000e+00> : vector<22x128xf32>
    %36 = tpu.matmul %33, %35, %cst_34 {dimension_numbers = #tpu.dot_dimension_numbers<[1], [0], [0], [1], [0, 0, 1, 1], [], []>} : vector<22x128xbf16>, vector<128x128xbf16>, vector<22x128xf32> -> vector<22x128xf32>
    %37 = arith.addf %31, %36 : vector<22x128xf32>
    %c0_35 = arith.constant 0 : index
    %c12 = arith.constant 12 : index
    %c0_36 = arith.constant 0 : index
    %38 = vector.load %arg1[%c0_35, %c12, %c0_36] : memref<1x36x128xbf16, #tpu.memory_space<vmem>>, vector<1x22x128xbf16>
    %39 = vector.shape_cast %38 : vector<1x22x128xbf16> to vector<22x128xbf16>
    %c6_37 = arith.constant 6 : index
    %c0_38 = arith.constant 0 : index
    %c0_39 = arith.constant 0 : index
    %40 = vector.load %arg2[%c6_37, %c0_38, %c0_39] : memref<9x128x128xbf16, #tpu.memory_space<vmem>>, vector<1x128x128xbf16>
    %41 = vector.shape_cast %40 : vector<1x128x128xbf16> to vector<128x128xbf16>
    %cst_40 = arith.constant dense<0.000000e+00> : vector<22x128xf32>
    %42 = tpu.matmul %39, %41, %cst_40 {dimension_numbers = #tpu.dot_dimension_numbers<[1], [0], [0], [1], [0, 0, 1, 1], [], []>} : vector<22x128xbf16>, vector<128x128xbf16>, vector<22x128xf32> -> vector<22x128xf32>
    %43 = arith.addf %37, %42 : vector<22x128xf32>
    %c0_41 = arith.constant 0 : index
    %c13 = arith.constant 13 : index
    %c0_42 = arith.constant 0 : index
    %44 = vector.load %arg1[%c0_41, %c13, %c0_42] : memref<1x36x128xbf16, #tpu.memory_space<vmem>>, vector<1x22x128xbf16>
    %45 = vector.shape_cast %44 : vector<1x22x128xbf16> to vector<22x128xbf16>
    %c7_43 = arith.constant 7 : index
    %c0_44 = arith.constant 0 : index
    %c0_45 = arith.constant 0 : index
    %46 = vector.load %arg2[%c7_43, %c0_44, %c0_45] : memref<9x128x128xbf16, #tpu.memory_space<vmem>>, vector<1x128x128xbf16>
    %47 = vector.shape_cast %46 : vector<1x128x128xbf16> to vector<128x128xbf16>
    %cst_46 = arith.constant dense<0.000000e+00> : vector<22x128xf32>
    %48 = tpu.matmul %45, %47, %cst_46 {dimension_numbers = #tpu.dot_dimension_numbers<[1], [0], [0], [1], [0, 0, 1, 1], [], []>} : vector<22x128xbf16>, vector<128x128xbf16>, vector<22x128xf32> -> vector<22x128xf32>
    %49 = arith.addf %43, %48 : vector<22x128xf32>
    %c0_47 = arith.constant 0 : index
    %c14 = arith.constant 14 : index
    %c0_48 = arith.constant 0 : index
    %50 = vector.load %arg1[%c0_47, %c14, %c0_48] : memref<1x36x128xbf16, #tpu.memory_space<vmem>>, vector<1x22x128xbf16>
    %51 = vector.shape_cast %50 : vector<1x22x128xbf16> to vector<22x128xbf16>
    %c8_49 = arith.constant 8 : index
    %c0_50 = arith.constant 0 : index
    %c0_51 = arith.constant 0 : index
    %52 = vector.load %arg2[%c8_49, %c0_50, %c0_51] : memref<9x128x128xbf16, #tpu.memory_space<vmem>>, vector<1x128x128xbf16>
    %53 = vector.shape_cast %52 : vector<1x128x128xbf16> to vector<128x128xbf16>
    %cst_52 = arith.constant dense<0.000000e+00> : vector<22x128xf32>
    %54 = tpu.matmul %51, %53, %cst_52 {dimension_numbers = #tpu.dot_dimension_numbers<[1], [0], [0], [1], [0, 0, 1, 1], [], []>} : vector<22x128xbf16>, vector<128x128xbf16>, vector<22x128xf32> -> vector<22x128xf32>
    %55 = arith.addf %49, %54 : vector<22x128xf32>
    %56 = vector.broadcast %0 : vector<1x128xf32> to vector<22x128xf32>
    %57 = arith.addf %55, %56 : vector<22x128xf32>
    %cst_53 = arith.constant 0.000000e+00 : f32
    %58 = vector.broadcast %cst_53 : f32 to vector<22x128xf32>
    %59 = arith.maximumf %57, %58 : vector<22x128xf32>
    %c0_54 = arith.constant 0 : index
    %c0_55 = arith.constant 0 : index
    %60 = vector.load %arg5[%c0_54, %c0_55] : memref<22x128xf32, #tpu.memory_space<vmem>>, vector<22x128xf32>
    tpu.vector_store %arg5[%c0_54, %c0_55], %59 {strides = array<i32>} : memref<22x128xf32, #tpu.memory_space<vmem>>, vector<22x128xf32>,
    %c0_56 = arith.constant 0 : index
    %c0_57 = arith.constant 0 : index
    %61 = tpu.strided_load %arg5[%c0_56, %c0_57] {strides = array<i32: 2, 1>} : memref<22x128xf32, #tpu.memory_space<vmem>>, vector<2x128xf32>
    %c1_58 = arith.constant 1 : index
    %c0_59 = arith.constant 0 : index
    %62 = tpu.strided_load %arg5[%c1_58, %c0_59] {strides = array<i32: 2, 1>} : memref<22x128xf32, #tpu.memory_space<vmem>>, vector<2x128xf32>
    %c6_60 = arith.constant 6 : index
    %c0_61 = arith.constant 0 : index
    %63 = tpu.strided_load %arg5[%c6_60, %c0_61] {strides = array<i32: 2, 1>} : memref<22x128xf32, #tpu.memory_space<vmem>>, vector<2x128xf32>
    %c7_62 = arith.constant 7 : index
    %c0_63 = arith.constant 0 : index
    %64 = tpu.strided_load %arg5[%c7_62, %c0_63] {strides = array<i32: 2, 1>} : memref<22x128xf32, #tpu.memory_space<vmem>>, vector<2x128xf32>
    %65 = arith.maximumf %61, %62 : vector<2x128xf32>
    %66 = arith.maximumf %63, %64 : vector<2x128xf32>
    %67 = arith.maximumf %65, %66 : vector<2x128xf32>
    %68 = arith.truncf %67 : vector<2x128xf32> to vector<2x128xbf16>
    %c0_64 = arith.constant 0 : index
    %c0_65 = arith.constant 0 : index
    %c0_66 = arith.constant 0 : index
    %c0_67 = arith.constant 0 : index
    %69 = vector.load %arg4[%c0_64, %c0_65, %c0_66, %c0_67] : memref<1x2x2x128xbf16, #tpu.memory_space<vmem>>, vector<1x1x2x128xbf16>
    %70 = vector.shape_cast %69 : vector<1x1x2x128xbf16> to vector<2x128xbf16>
    %71 = vector.shape_cast %68 : vector<2x128xbf16> to vector<1x1x2x128xbf16>
    tpu.vector_store %arg4[%c0_64, %c0_65, %c0_66, %c0_67], %71 {strides = array<i32>} : memref<1x2x2x128xbf16, #tpu.memory_space<vmem>>, vector<1x1x2x128xbf16>,
    %c12_68 = arith.constant 12 : index
    %c0_69 = arith.constant 0 : index
    %72 = tpu.strided_load %arg5[%c12_68, %c0_69] {strides = array<i32: 2, 1>} : memref<22x128xf32, #tpu.memory_space<vmem>>, vector<2x128xf32>
    %c13_70 = arith.constant 13 : index
    %c0_71 = arith.constant 0 : index
    %73 = tpu.strided_load %arg5[%c13_70, %c0_71] {strides = array<i32: 2, 1>} : memref<22x128xf32, #tpu.memory_space<vmem>>, vector<2x128xf32>
    %c18 = arith.constant 18 : index
    %c0_72 = arith.constant 0 : index
    %74 = tpu.strided_load %arg5[%c18, %c0_72] {strides = array<i32: 2, 1>} : memref<22x128xf32, #tpu.memory_space<vmem>>, vector<2x128xf32>
    %c19 = arith.constant 19 : index
    %c0_73 = arith.constant 0 : index
    %75 = tpu.strided_load %arg5[%c19, %c0_73] {strides = array<i32: 2, 1>} : memref<22x128xf32, #tpu.memory_space<vmem>>, vector<2x128xf32>
    %76 = arith.maximumf %72, %73 : vector<2x128xf32>
    %77 = arith.maximumf %74, %75 : vector<2x128xf32>
    %78 = arith.maximumf %76, %77 : vector<2x128xf32>
    %79 = arith.truncf %78 : vector<2x128xf32> to vector<2x128xbf16>
    %c0_74 = arith.constant 0 : index
    %c1_75 = arith.constant 1 : index
    %c0_76 = arith.constant 0 : index
    %c0_77 = arith.constant 0 : index
    %80 = vector.load %arg4[%c0_74, %c1_75, %c0_76, %c0_77] : memref<1x2x2x128xbf16, #tpu.memory_space<vmem>>, vector<1x1x2x128xbf16>
    %81 = vector.shape_cast %80 : vector<1x1x2x128xbf16> to vector<2x128xbf16>
    %82 = vector.shape_cast %79 : vector<2x128xbf16> to vector<1x1x2x128xbf16>
    tpu.vector_store %arg4[%c0_74, %c1_75, %c0_76, %c0_77], %82 {strides = array<i32>} : memref<1x2x2x128xbf16, #tpu.memory_space<vmem>>, vector<1x1x2x128xbf16>,
    return
  }
  func.func @transform_0(%arg0: i32) -> (i32, i32, i32) {
    %c0_i32 = arith.constant 0 : i32
    %c0_i32_0 = arith.constant 0 : i32
    %c0_i32_1 = arith.constant 0 : i32
    return %arg0, %c0_i32, %c0_i32_0 : i32, i32, i32
  }
  func.func @transform_1(%arg0: i32) -> (i32, i32, i32) {
    %c0_i32 = arith.constant 0 : i32
    %c0_i32_0 = arith.constant 0 : i32
    %c0_i32_1 = arith.constant 0 : i32
    %c0_i32_2 = arith.constant 0 : i32
    return %c0_i32, %c0_i32_0, %c0_i32_1 : i32, i32, i32
  }
  func.func @transform_2(%arg0: i32) -> (i32, i32) {
    %c0_i32 = arith.constant 0 : i32
    %c0_i32_0 = arith.constant 0 : i32
    %c0_i32_1 = arith.constant 0 : i32
    return %c0_i32, %c0_i32_0 : i32, i32
  }
  func.func @transform_3(%arg0: i32) -> (i32, i32, i32, i32) {
    %c0_i32 = arith.constant 0 : i32
    %c0_i32_0 = arith.constant 0 : i32
    %c0_i32_1 = arith.constant 0 : i32
    %c0_i32_2 = arith.constant 0 : i32
    return %arg0, %c0_i32, %c0_i32_0, %c0_i32_1 : i32, i32, i32, i32
  }
}

module attributes {stable_mosaic.version = 11 : i64} {
  func.func @_conv_relu_pool_kernel(%arg0: i32, %arg1: memref<1x100x128xbf16, #tpu.memory_space<vmem>>, %arg2: memref<9x128x128xbf16, #tpu.memory_space<vmem>>, %arg3: memref<1x128xf32, #tpu.memory_space<vmem>>, %arg4: memref<1x4x4x128xbf16, #tpu.memory_space<vmem>>, %arg5: memref<78x128xf32, #tpu.memory_space<vmem>>) attributes {dimension_semantics = [#tpu.dimension_semantics<parallel>], iteration_bounds = array<i64: 2>, scalar_prefetch = 0 : i64, scratch_operands = 1 : i64, tpu.core_type = #tpu.core_type<tc>, window_params = [{transform_indices = @transform_0, window_bounds = array<i64: 1, 100, 128>}, {pipeline_mode = #tpu.pipeline_mode<synchronous>, transform_indices = @transform_1, window_bounds = array<i64: 9, 128, 128>}, {pipeline_mode = #tpu.pipeline_mode<synchronous>, transform_indices = @transform_2, window_bounds = array<i64: 1, 128>}, {transform_indices = @transform_3, window_bounds = array<i64: 1, 4, 4, 128>}]} {
    %c0 = arith.constant 0 : index
    %c0_0 = arith.constant 0 : index
    %0 = vector.load %arg3[%c0, %c0_0] : memref<1x128xf32, #tpu.memory_space<vmem>>, vector<1x128xf32>
    %cst = arith.constant 0.000000e+00 : f32
    %1 = vector.broadcast %cst : f32 to vector<78x128xf32>
    %c0_1 = arith.constant 0 : index
    %c0_2 = arith.constant 0 : index
    %c0_3 = arith.constant 0 : index
    %2 = vector.load %arg1[%c0_1, %c0_2, %c0_3] : memref<1x100x128xbf16, #tpu.memory_space<vmem>>, vector<1x78x128xbf16>
    %3 = vector.shape_cast %2 : vector<1x78x128xbf16> to vector<78x128xbf16>
    %c0_4 = arith.constant 0 : index
    %c0_5 = arith.constant 0 : index
    %c0_6 = arith.constant 0 : index
    %4 = vector.load %arg2[%c0_4, %c0_5, %c0_6] : memref<9x128x128xbf16, #tpu.memory_space<vmem>>, vector<1x128x128xbf16>
    %5 = vector.shape_cast %4 : vector<1x128x128xbf16> to vector<128x128xbf16>
    %cst_7 = arith.constant dense<0.000000e+00> : vector<78x128xf32>
    %6 = tpu.matmul %3, %5, %cst_7 {dimension_numbers = #tpu.dot_dimension_numbers<[1], [0], [0], [1], [0, 0, 1, 1], [], []>} : vector<78x128xbf16>, vector<128x128xbf16>, vector<78x128xf32> -> vector<78x128xf32>
    %7 = arith.addf %1, %6 : vector<78x128xf32>
    %c0_8 = arith.constant 0 : index
    %c1 = arith.constant 1 : index
    %c0_9 = arith.constant 0 : index
    %8 = vector.load %arg1[%c0_8, %c1, %c0_9] : memref<1x100x128xbf16, #tpu.memory_space<vmem>>, vector<1x78x128xbf16>
    %9 = vector.shape_cast %8 : vector<1x78x128xbf16> to vector<78x128xbf16>
    %c1_10 = arith.constant 1 : index
    %c0_11 = arith.constant 0 : index
    %c0_12 = arith.constant 0 : index
    %10 = vector.load %arg2[%c1_10, %c0_11, %c0_12] : memref<9x128x128xbf16, #tpu.memory_space<vmem>>, vector<1x128x128xbf16>
    %11 = vector.shape_cast %10 : vector<1x128x128xbf16> to vector<128x128xbf16>
    %cst_13 = arith.constant dense<0.000000e+00> : vector<78x128xf32>
    %12 = tpu.matmul %9, %11, %cst_13 {dimension_numbers = #tpu.dot_dimension_numbers<[1], [0], [0], [1], [0, 0, 1, 1], [], []>} : vector<78x128xbf16>, vector<128x128xbf16>, vector<78x128xf32> -> vector<78x128xf32>
    %13 = arith.addf %7, %12 : vector<78x128xf32>
    %c0_14 = arith.constant 0 : index
    %c2 = arith.constant 2 : index
    %c0_15 = arith.constant 0 : index
    %14 = vector.load %arg1[%c0_14, %c2, %c0_15] : memref<1x100x128xbf16, #tpu.memory_space<vmem>>, vector<1x78x128xbf16>
    %15 = vector.shape_cast %14 : vector<1x78x128xbf16> to vector<78x128xbf16>
    %c2_16 = arith.constant 2 : index
    %c0_17 = arith.constant 0 : index
    %c0_18 = arith.constant 0 : index
    %16 = vector.load %arg2[%c2_16, %c0_17, %c0_18] : memref<9x128x128xbf16, #tpu.memory_space<vmem>>, vector<1x128x128xbf16>
    %17 = vector.shape_cast %16 : vector<1x128x128xbf16> to vector<128x128xbf16>
    %cst_19 = arith.constant dense<0.000000e+00> : vector<78x128xf32>
    %18 = tpu.matmul %15, %17, %cst_19 {dimension_numbers = #tpu.dot_dimension_numbers<[1], [0], [0], [1], [0, 0, 1, 1], [], []>} : vector<78x128xbf16>, vector<128x128xbf16>, vector<78x128xf32> -> vector<78x128xf32>
    %19 = arith.addf %13, %18 : vector<78x128xf32>
    %c0_20 = arith.constant 0 : index
    %c10 = arith.constant 10 : index
    %c0_21 = arith.constant 0 : index
    %20 = vector.load %arg1[%c0_20, %c10, %c0_21] : memref<1x100x128xbf16, #tpu.memory_space<vmem>>, vector<1x78x128xbf16>
    %21 = vector.shape_cast %20 : vector<1x78x128xbf16> to vector<78x128xbf16>
    %c3 = arith.constant 3 : index
    %c0_22 = arith.constant 0 : index
    %c0_23 = arith.constant 0 : index
    %22 = vector.load %arg2[%c3, %c0_22, %c0_23] : memref<9x128x128xbf16, #tpu.memory_space<vmem>>, vector<1x128x128xbf16>
    %23 = vector.shape_cast %22 : vector<1x128x128xbf16> to vector<128x128xbf16>
    %cst_24 = arith.constant dense<0.000000e+00> : vector<78x128xf32>
    %24 = tpu.matmul %21, %23, %cst_24 {dimension_numbers = #tpu.dot_dimension_numbers<[1], [0], [0], [1], [0, 0, 1, 1], [], []>} : vector<78x128xbf16>, vector<128x128xbf16>, vector<78x128xf32> -> vector<78x128xf32>
    %25 = arith.addf %19, %24 : vector<78x128xf32>
    %c0_25 = arith.constant 0 : index
    %c11 = arith.constant 11 : index
    %c0_26 = arith.constant 0 : index
    %26 = vector.load %arg1[%c0_25, %c11, %c0_26] : memref<1x100x128xbf16, #tpu.memory_space<vmem>>, vector<1x78x128xbf16>
    %27 = vector.shape_cast %26 : vector<1x78x128xbf16> to vector<78x128xbf16>
    %c4 = arith.constant 4 : index
    %c0_27 = arith.constant 0 : index
    %c0_28 = arith.constant 0 : index
    %28 = vector.load %arg2[%c4, %c0_27, %c0_28] : memref<9x128x128xbf16, #tpu.memory_space<vmem>>, vector<1x128x128xbf16>
    %29 = vector.shape_cast %28 : vector<1x128x128xbf16> to vector<128x128xbf16>
    %cst_29 = arith.constant dense<0.000000e+00> : vector<78x128xf32>
    %30 = tpu.matmul %27, %29, %cst_29 {dimension_numbers = #tpu.dot_dimension_numbers<[1], [0], [0], [1], [0, 0, 1, 1], [], []>} : vector<78x128xbf16>, vector<128x128xbf16>, vector<78x128xf32> -> vector<78x128xf32>
    %31 = arith.addf %25, %30 : vector<78x128xf32>
    %c0_30 = arith.constant 0 : index
    %c12 = arith.constant 12 : index
    %c0_31 = arith.constant 0 : index
    %32 = vector.load %arg1[%c0_30, %c12, %c0_31] : memref<1x100x128xbf16, #tpu.memory_space<vmem>>, vector<1x78x128xbf16>
    %33 = vector.shape_cast %32 : vector<1x78x128xbf16> to vector<78x128xbf16>
    %c5 = arith.constant 5 : index
    %c0_32 = arith.constant 0 : index
    %c0_33 = arith.constant 0 : index
    %34 = vector.load %arg2[%c5, %c0_32, %c0_33] : memref<9x128x128xbf16, #tpu.memory_space<vmem>>, vector<1x128x128xbf16>
    %35 = vector.shape_cast %34 : vector<1x128x128xbf16> to vector<128x128xbf16>
    %cst_34 = arith.constant dense<0.000000e+00> : vector<78x128xf32>
    %36 = tpu.matmul %33, %35, %cst_34 {dimension_numbers = #tpu.dot_dimension_numbers<[1], [0], [0], [1], [0, 0, 1, 1], [], []>} : vector<78x128xbf16>, vector<128x128xbf16>, vector<78x128xf32> -> vector<78x128xf32>
    %37 = arith.addf %31, %36 : vector<78x128xf32>
    %c0_35 = arith.constant 0 : index
    %c20 = arith.constant 20 : index
    %c0_36 = arith.constant 0 : index
    %38 = vector.load %arg1[%c0_35, %c20, %c0_36] : memref<1x100x128xbf16, #tpu.memory_space<vmem>>, vector<1x78x128xbf16>
    %39 = vector.shape_cast %38 : vector<1x78x128xbf16> to vector<78x128xbf16>
    %c6 = arith.constant 6 : index
    %c0_37 = arith.constant 0 : index
    %c0_38 = arith.constant 0 : index
    %40 = vector.load %arg2[%c6, %c0_37, %c0_38] : memref<9x128x128xbf16, #tpu.memory_space<vmem>>, vector<1x128x128xbf16>
    %41 = vector.shape_cast %40 : vector<1x128x128xbf16> to vector<128x128xbf16>
    %cst_39 = arith.constant dense<0.000000e+00> : vector<78x128xf32>
    %42 = tpu.matmul %39, %41, %cst_39 {dimension_numbers = #tpu.dot_dimension_numbers<[1], [0], [0], [1], [0, 0, 1, 1], [], []>} : vector<78x128xbf16>, vector<128x128xbf16>, vector<78x128xf32> -> vector<78x128xf32>
    %43 = arith.addf %37, %42 : vector<78x128xf32>
    %c0_40 = arith.constant 0 : index
    %c21 = arith.constant 21 : index
    %c0_41 = arith.constant 0 : index
    %44 = vector.load %arg1[%c0_40, %c21, %c0_41] : memref<1x100x128xbf16, #tpu.memory_space<vmem>>, vector<1x78x128xbf16>
    %45 = vector.shape_cast %44 : vector<1x78x128xbf16> to vector<78x128xbf16>
    %c7 = arith.constant 7 : index
    %c0_42 = arith.constant 0 : index
    %c0_43 = arith.constant 0 : index
    %46 = vector.load %arg2[%c7, %c0_42, %c0_43] : memref<9x128x128xbf16, #tpu.memory_space<vmem>>, vector<1x128x128xbf16>
    %47 = vector.shape_cast %46 : vector<1x128x128xbf16> to vector<128x128xbf16>
    %cst_44 = arith.constant dense<0.000000e+00> : vector<78x128xf32>
    %48 = tpu.matmul %45, %47, %cst_44 {dimension_numbers = #tpu.dot_dimension_numbers<[1], [0], [0], [1], [0, 0, 1, 1], [], []>} : vector<78x128xbf16>, vector<128x128xbf16>, vector<78x128xf32> -> vector<78x128xf32>
    %49 = arith.addf %43, %48 : vector<78x128xf32>
    %c0_45 = arith.constant 0 : index
    %c22 = arith.constant 22 : index
    %c0_46 = arith.constant 0 : index
    %50 = vector.load %arg1[%c0_45, %c22, %c0_46] : memref<1x100x128xbf16, #tpu.memory_space<vmem>>, vector<1x78x128xbf16>
    %51 = vector.shape_cast %50 : vector<1x78x128xbf16> to vector<78x128xbf16>
    %c8 = arith.constant 8 : index
    %c0_47 = arith.constant 0 : index
    %c0_48 = arith.constant 0 : index
    %52 = vector.load %arg2[%c8, %c0_47, %c0_48] : memref<9x128x128xbf16, #tpu.memory_space<vmem>>, vector<1x128x128xbf16>
    %53 = vector.shape_cast %52 : vector<1x128x128xbf16> to vector<128x128xbf16>
    %cst_49 = arith.constant dense<0.000000e+00> : vector<78x128xf32>
    %54 = tpu.matmul %51, %53, %cst_49 {dimension_numbers = #tpu.dot_dimension_numbers<[1], [0], [0], [1], [0, 0, 1, 1], [], []>} : vector<78x128xbf16>, vector<128x128xbf16>, vector<78x128xf32> -> vector<78x128xf32>
    %55 = arith.addf %49, %54 : vector<78x128xf32>
    %56 = vector.broadcast %0 : vector<1x128xf32> to vector<78x128xf32>
    %57 = arith.addf %55, %56 : vector<78x128xf32>
    %cst_50 = arith.constant 0.000000e+00 : f32
    %58 = vector.broadcast %cst_50 : f32 to vector<78x128xf32>
    %59 = arith.maximumf %57, %58 : vector<78x128xf32>
    %c0_51 = arith.constant 0 : index
    %c0_52 = arith.constant 0 : index
    %60 = vector.load %arg5[%c0_51, %c0_52] : memref<78x128xf32, #tpu.memory_space<vmem>>, vector<78x128xf32>
    tpu.vector_store %arg5[%c0_51, %c0_52], %59 {strides = array<i32>} : memref<78x128xf32, #tpu.memory_space<vmem>>, vector<78x128xf32>,
    %c0_53 = arith.constant 0 : index
    %c0_54 = arith.constant 0 : index
    %61 = tpu.strided_load %arg5[%c0_53, %c0_54] {strides = array<i32: 2, 1>} : memref<78x128xf32, #tpu.memory_space<vmem>>, vector<4x128xf32>
    %c1_55 = arith.constant 1 : index
    %c0_56 = arith.constant 0 : index
    %62 = tpu.strided_load %arg5[%c1_55, %c0_56] {strides = array<i32: 2, 1>} : memref<78x128xf32, #tpu.memory_space<vmem>>, vector<4x128xf32>
    %c10_57 = arith.constant 10 : index
    %c0_58 = arith.constant 0 : index
    %63 = tpu.strided_load %arg5[%c10_57, %c0_58] {strides = array<i32: 2, 1>} : memref<78x128xf32, #tpu.memory_space<vmem>>, vector<4x128xf32>
    %c11_59 = arith.constant 11 : index
    %c0_60 = arith.constant 0 : index
    %64 = tpu.strided_load %arg5[%c11_59, %c0_60] {strides = array<i32: 2, 1>} : memref<78x128xf32, #tpu.memory_space<vmem>>, vector<4x128xf32>
    %65 = arith.maximumf %61, %62 : vector<4x128xf32>
    %66 = arith.maximumf %63, %64 : vector<4x128xf32>
    %67 = arith.maximumf %65, %66 : vector<4x128xf32>
    %68 = arith.truncf %67 : vector<4x128xf32> to vector<4x128xbf16>
    %c0_61 = arith.constant 0 : index
    %c0_62 = arith.constant 0 : index
    %c0_63 = arith.constant 0 : index
    %c0_64 = arith.constant 0 : index
    %69 = vector.load %arg4[%c0_61, %c0_62, %c0_63, %c0_64] : memref<1x4x4x128xbf16, #tpu.memory_space<vmem>>, vector<1x1x4x128xbf16>
    %70 = vector.shape_cast %69 : vector<1x1x4x128xbf16> to vector<4x128xbf16>
    %71 = vector.shape_cast %68 : vector<4x128xbf16> to vector<1x1x4x128xbf16>
    tpu.vector_store %arg4[%c0_61, %c0_62, %c0_63, %c0_64], %71 {strides = array<i32>} : memref<1x4x4x128xbf16, #tpu.memory_space<vmem>>, vector<1x1x4x128xbf16>,
    %c20_65 = arith.constant 20 : index
    %c0_66 = arith.constant 0 : index
    %72 = tpu.strided_load %arg5[%c20_65, %c0_66] {strides = array<i32: 2, 1>} : memref<78x128xf32, #tpu.memory_space<vmem>>, vector<4x128xf32>
    %c21_67 = arith.constant 21 : index
    %c0_68 = arith.constant 0 : index
    %73 = tpu.strided_load %arg5[%c21_67, %c0_68] {strides = array<i32: 2, 1>} : memref<78x128xf32, #tpu.memory_space<vmem>>, vector<4x128xf32>
    %c30 = arith.constant 30 : index
    %c0_69 = arith.constant 0 : index
    %74 = tpu.strided_load %arg5[%c30, %c0_69] {strides = array<i32: 2, 1>} : memref<78x128xf32, #tpu.memory_space<vmem>>, vector<4x128xf32>
    %c31 = arith.constant 31 : index
    %c0_70 = arith.constant 0 : index
    %75 = tpu.strided_load %arg5[%c31, %c0_70] {strides = array<i32: 2, 1>} : memref<78x128xf32, #tpu.memory_space<vmem>>, vector<4x128xf32>
    %76 = arith.maximumf %72, %73 : vector<4x128xf32>
    %77 = arith.maximumf %74, %75 : vector<4x128xf32>
    %78 = arith.maximumf %76, %77 : vector<4x128xf32>
    %79 = arith.truncf %78 : vector<4x128xf32> to vector<4x128xbf16>
    %c0_71 = arith.constant 0 : index
    %c1_72 = arith.constant 1 : index
    %c0_73 = arith.constant 0 : index
    %c0_74 = arith.constant 0 : index
    %80 = vector.load %arg4[%c0_71, %c1_72, %c0_73, %c0_74] : memref<1x4x4x128xbf16, #tpu.memory_space<vmem>>, vector<1x1x4x128xbf16>
    %81 = vector.shape_cast %80 : vector<1x1x4x128xbf16> to vector<4x128xbf16>
    %82 = vector.shape_cast %79 : vector<4x128xbf16> to vector<1x1x4x128xbf16>
    tpu.vector_store %arg4[%c0_71, %c1_72, %c0_73, %c0_74], %82 {strides = array<i32>} : memref<1x4x4x128xbf16, #tpu.memory_space<vmem>>, vector<1x1x4x128xbf16>,
    %c40 = arith.constant 40 : index
    %c0_75 = arith.constant 0 : index
    %83 = tpu.strided_load %arg5[%c40, %c0_75] {strides = array<i32: 2, 1>} : memref<78x128xf32, #tpu.memory_space<vmem>>, vector<4x128xf32>
    %c41 = arith.constant 41 : index
    %c0_76 = arith.constant 0 : index
    %84 = tpu.strided_load %arg5[%c41, %c0_76] {strides = array<i32: 2, 1>} : memref<78x128xf32, #tpu.memory_space<vmem>>, vector<4x128xf32>
    %c50 = arith.constant 50 : index
    %c0_77 = arith.constant 0 : index
    %85 = tpu.strided_load %arg5[%c50, %c0_77] {strides = array<i32: 2, 1>} : memref<78x128xf32, #tpu.memory_space<vmem>>, vector<4x128xf32>
    %c51 = arith.constant 51 : index
    %c0_78 = arith.constant 0 : index
    %86 = tpu.strided_load %arg5[%c51, %c0_78] {strides = array<i32: 2, 1>} : memref<78x128xf32, #tpu.memory_space<vmem>>, vector<4x128xf32>
    %87 = arith.maximumf %83, %84 : vector<4x128xf32>
    %88 = arith.maximumf %85, %86 : vector<4x128xf32>
    %89 = arith.maximumf %87, %88 : vector<4x128xf32>
    %90 = arith.truncf %89 : vector<4x128xf32> to vector<4x128xbf16>
    %c0_79 = arith.constant 0 : index
    %c2_80 = arith.constant 2 : index
    %c0_81 = arith.constant 0 : index
    %c0_82 = arith.constant 0 : index
    %91 = vector.load %arg4[%c0_79, %c2_80, %c0_81, %c0_82] : memref<1x4x4x128xbf16, #tpu.memory_space<vmem>>, vector<1x1x4x128xbf16>
    %92 = vector.shape_cast %91 : vector<1x1x4x128xbf16> to vector<4x128xbf16>
    %93 = vector.shape_cast %90 : vector<4x128xbf16> to vector<1x1x4x128xbf16>
    tpu.vector_store %arg4[%c0_79, %c2_80, %c0_81, %c0_82], %93 {strides = array<i32>} : memref<1x4x4x128xbf16, #tpu.memory_space<vmem>>, vector<1x1x4x128xbf16>,
    %c60 = arith.constant 60 : index
    %c0_83 = arith.constant 0 : index
    %94 = tpu.strided_load %arg5[%c60, %c0_83] {strides = array<i32: 2, 1>} : memref<78x128xf32, #tpu.memory_space<vmem>>, vector<4x128xf32>
    %c61 = arith.constant 61 : index
    %c0_84 = arith.constant 0 : index
    %95 = tpu.strided_load %arg5[%c61, %c0_84] {strides = array<i32: 2, 1>} : memref<78x128xf32, #tpu.memory_space<vmem>>, vector<4x128xf32>
    %c70 = arith.constant 70 : index
    %c0_85 = arith.constant 0 : index
    %96 = tpu.strided_load %arg5[%c70, %c0_85] {strides = array<i32: 2, 1>} : memref<78x128xf32, #tpu.memory_space<vmem>>, vector<4x128xf32>
    %c71 = arith.constant 71 : index
    %c0_86 = arith.constant 0 : index
    %97 = tpu.strided_load %arg5[%c71, %c0_86] {strides = array<i32: 2, 1>} : memref<78x128xf32, #tpu.memory_space<vmem>>, vector<4x128xf32>
    %98 = arith.maximumf %94, %95 : vector<4x128xf32>
    %99 = arith.maximumf %96, %97 : vector<4x128xf32>
    %100 = arith.maximumf %98, %99 : vector<4x128xf32>
    %101 = arith.truncf %100 : vector<4x128xf32> to vector<4x128xbf16>
    %c0_87 = arith.constant 0 : index
    %c3_88 = arith.constant 3 : index
    %c0_89 = arith.constant 0 : index
    %c0_90 = arith.constant 0 : index
    %102 = vector.load %arg4[%c0_87, %c3_88, %c0_89, %c0_90] : memref<1x4x4x128xbf16, #tpu.memory_space<vmem>>, vector<1x1x4x128xbf16>
    %103 = vector.shape_cast %102 : vector<1x1x4x128xbf16> to vector<4x128xbf16>
    %104 = vector.shape_cast %101 : vector<4x128xbf16> to vector<1x1x4x128xbf16>
    tpu.vector_store %arg4[%c0_87, %c3_88, %c0_89, %c0_90], %104 {strides = array<i32>} : memref<1x4x4x128xbf16, #tpu.memory_space<vmem>>, vector<1x1x4x128xbf16>,
    return
  }
  func.func @transform_0(%arg0: i32) -> (i32, i32, i32) {
    %c0_i32 = arith.constant 0 : i32
    %c0_i32_0 = arith.constant 0 : i32
    %c0_i32_1 = arith.constant 0 : i32
    return %arg0, %c0_i32, %c0_i32_0 : i32, i32, i32
  }
  func.func @transform_1(%arg0: i32) -> (i32, i32, i32) {
    %c0_i32 = arith.constant 0 : i32
    %c0_i32_0 = arith.constant 0 : i32
    %c0_i32_1 = arith.constant 0 : i32
    %c0_i32_2 = arith.constant 0 : i32
    return %c0_i32, %c0_i32_0, %c0_i32_1 : i32, i32, i32
  }
  func.func @transform_2(%arg0: i32) -> (i32, i32) {
    %c0_i32 = arith.constant 0 : i32
    %c0_i32_0 = arith.constant 0 : i32
    %c0_i32_1 = arith.constant 0 : i32
    return %c0_i32, %c0_i32_0 : i32, i32
  }
  func.func @transform_3(%arg0: i32) -> (i32, i32, i32, i32) {
    %c0_i32 = arith.constant 0 : i32
    %c0_i32_0 = arith.constant 0 : i32
    %c0_i32_1 = arith.constant 0 : i32
    %c0_i32_2 = arith.constant 0 : i32
    return %arg0, %c0_i32, %c0_i32_0, %c0_i32_1 : i32, i32, i32, i32
  }
}

module attributes {stable_mosaic.version = 11 : i64} {
  func.func @_classifier_kernel(%arg0: i32, %arg1: memref<2x512xbf16, #tpu.memory_space<vmem>>, %arg2: memref<512x512xbf16, #tpu.memory_space<vmem>>, %arg3: memref<1x512xf32, #tpu.memory_space<vmem>>, %arg4: memref<512x512xbf16, #tpu.memory_space<vmem>>, %arg5: memref<1x512xf32, #tpu.memory_space<vmem>>, %arg6: memref<512x128xbf16, #tpu.memory_space<vmem>>, %arg7: memref<1x128xf32, #tpu.memory_space<vmem>>, %arg8: memref<2x128xf32, #tpu.memory_space<vmem>>) attributes {dimension_semantics = [#tpu.dimension_semantics<parallel>], iteration_bounds = array<i64: 1>, scalar_prefetch = 0 : i64, scratch_operands = 0 : i64, tpu.core_type = #tpu.core_type<tc>, window_params = [{transform_indices = @transform_0, window_bounds = array<i64: 2, 512>}, {pipeline_mode = #tpu.pipeline_mode<synchronous>, transform_indices = @transform_1, window_bounds = array<i64: 512, 512>}, {pipeline_mode = #tpu.pipeline_mode<synchronous>, transform_indices = @transform_2, window_bounds = array<i64: 1, 512>}, {pipeline_mode = #tpu.pipeline_mode<synchronous>, transform_indices = @transform_3, window_bounds = array<i64: 512, 512>}, {pipeline_mode = #tpu.pipeline_mode<synchronous>, transform_indices = @transform_4, window_bounds = array<i64: 1, 512>}, {pipeline_mode = #tpu.pipeline_mode<synchronous>, transform_indices = @transform_5, window_bounds = array<i64: 512, 128>}, {pipeline_mode = #tpu.pipeline_mode<synchronous>, transform_indices = @transform_6, window_bounds = array<i64: 1, 128>}, {transform_indices = @transform_7, window_bounds = array<i64: 2, 128>}]} {
    %c0 = arith.constant 0 : index
    %c0_0 = arith.constant 0 : index
    %0 = vector.load %arg1[%c0, %c0_0] : memref<2x512xbf16, #tpu.memory_space<vmem>>, vector<2x512xbf16>
    %c0_1 = arith.constant 0 : index
    %c0_2 = arith.constant 0 : index
    %1 = vector.load %arg2[%c0_1, %c0_2] : memref<512x512xbf16, #tpu.memory_space<vmem>>, vector<512x512xbf16>
    %cst = arith.constant dense<0.000000e+00> : vector<2x512xf32>
    %2 = tpu.matmul %0, %1, %cst {dimension_numbers = #tpu.dot_dimension_numbers<[1], [0], [0], [1], [0, 0, 1, 1], [], []>} : vector<2x512xbf16>, vector<512x512xbf16>, vector<2x512xf32> -> vector<2x512xf32>
    %c0_3 = arith.constant 0 : index
    %c0_4 = arith.constant 0 : index
    %3 = vector.load %arg3[%c0_3, %c0_4] : memref<1x512xf32, #tpu.memory_space<vmem>>, vector<1x512xf32>
    %4 = vector.broadcast %3 : vector<1x512xf32> to vector<2x512xf32>
    %5 = arith.addf %2, %4 : vector<2x512xf32>
    %cst_5 = arith.constant 0.000000e+00 : f32
    %6 = vector.broadcast %cst_5 : f32 to vector<2x512xf32>
    %7 = arith.maximumf %5, %6 : vector<2x512xf32>
    %8 = arith.truncf %7 : vector<2x512xf32> to vector<2x512xbf16>
    %c0_6 = arith.constant 0 : index
    %c0_7 = arith.constant 0 : index
    %9 = vector.load %arg4[%c0_6, %c0_7] : memref<512x512xbf16, #tpu.memory_space<vmem>>, vector<512x512xbf16>
    %cst_8 = arith.constant dense<0.000000e+00> : vector<2x512xf32>
    %10 = tpu.matmul %8, %9, %cst_8 {dimension_numbers = #tpu.dot_dimension_numbers<[1], [0], [0], [1], [0, 0, 1, 1], [], []>} : vector<2x512xbf16>, vector<512x512xbf16>, vector<2x512xf32> -> vector<2x512xf32>
    %c0_9 = arith.constant 0 : index
    %c0_10 = arith.constant 0 : index
    %11 = vector.load %arg5[%c0_9, %c0_10] : memref<1x512xf32, #tpu.memory_space<vmem>>, vector<1x512xf32>
    %12 = vector.broadcast %11 : vector<1x512xf32> to vector<2x512xf32>
    %13 = arith.addf %10, %12 : vector<2x512xf32>
    %cst_11 = arith.constant 0.000000e+00 : f32
    %14 = vector.broadcast %cst_11 : f32 to vector<2x512xf32>
    %15 = arith.maximumf %13, %14 : vector<2x512xf32>
    %16 = arith.truncf %15 : vector<2x512xf32> to vector<2x512xbf16>
    %c0_12 = arith.constant 0 : index
    %c0_13 = arith.constant 0 : index
    %17 = vector.load %arg6[%c0_12, %c0_13] : memref<512x128xbf16, #tpu.memory_space<vmem>>, vector<512x128xbf16>
    %cst_14 = arith.constant dense<0.000000e+00> : vector<2x128xf32>
    %18 = tpu.matmul %16, %17, %cst_14 {dimension_numbers = #tpu.dot_dimension_numbers<[1], [0], [0], [1], [0, 0, 1, 1], [], []>} : vector<2x512xbf16>, vector<512x128xbf16>, vector<2x128xf32> -> vector<2x128xf32>
    %c0_15 = arith.constant 0 : index
    %c0_16 = arith.constant 0 : index
    %19 = vector.load %arg7[%c0_15, %c0_16] : memref<1x128xf32, #tpu.memory_space<vmem>>, vector<1x128xf32>
    %20 = vector.broadcast %19 : vector<1x128xf32> to vector<2x128xf32>
    %21 = arith.addf %18, %20 : vector<2x128xf32>
    %c0_17 = arith.constant 0 : index
    %c0_18 = arith.constant 0 : index
    %22 = vector.load %arg8[%c0_17, %c0_18] : memref<2x128xf32, #tpu.memory_space<vmem>>, vector<2x128xf32>
    tpu.vector_store %arg8[%c0_17, %c0_18], %21 {strides = array<i32>} : memref<2x128xf32, #tpu.memory_space<vmem>>, vector<2x128xf32>,
    return
  }
  func.func @transform_0(%arg0: i32) -> (i32, i32) {
    %c0_i32 = arith.constant 0 : i32
    %c0_i32_0 = arith.constant 0 : i32
    return %arg0, %c0_i32 : i32, i32
  }
  func.func @transform_1(%arg0: i32) -> (i32, i32) {
    %c0_i32 = arith.constant 0 : i32
    %c0_i32_0 = arith.constant 0 : i32
    %c0_i32_1 = arith.constant 0 : i32
    return %c0_i32, %c0_i32_0 : i32, i32
  }
  func.func @transform_2(%arg0: i32) -> (i32, i32) {
    %c0_i32 = arith.constant 0 : i32
    %c0_i32_0 = arith.constant 0 : i32
    %c0_i32_1 = arith.constant 0 : i32
    return %c0_i32, %c0_i32_0 : i32, i32
  }
  func.func @transform_3(%arg0: i32) -> (i32, i32) {
    %c0_i32 = arith.constant 0 : i32
    %c0_i32_0 = arith.constant 0 : i32
    %c0_i32_1 = arith.constant 0 : i32
    return %c0_i32, %c0_i32_0 : i32, i32
  }
  func.func @transform_4(%arg0: i32) -> (i32, i32) {
    %c0_i32 = arith.constant 0 : i32
    %c0_i32_0 = arith.constant 0 : i32
    %c0_i32_1 = arith.constant 0 : i32
    return %c0_i32, %c0_i32_0 : i32, i32
  }
  func.func @transform_5(%arg0: i32) -> (i32, i32) {
    %c0_i32 = arith.constant 0 : i32
    %c0_i32_0 = arith.constant 0 : i32
    %c0_i32_1 = arith.constant 0 : i32
    return %c0_i32, %c0_i32_0 : i32, i32
  }
  func.func @transform_6(%arg0: i32) -> (i32, i32) {
    %c0_i32 = arith.constant 0 : i32
    %c0_i32_0 = arith.constant 0 : i32
    %c0_i32_1 = arith.constant 0 : i32
    return %c0_i32, %c0_i32_0 : i32, i32
  }
  func.func @transform_7(%arg0: i32) -> (i32, i32) {
    %c0_i32 = arith.constant 0 : i32
    %c0_i32_0 = arith.constant 0 : i32
    return %arg0, %c0_i32 : i32, i32
  }
}

</mosaic_0001>

<bundles_post_ra>
// kernel: vgg_forward.6
= control target key start
LH: loop header
LB: loop body
LE: loop exit
PB: predicated region body
PF: predicated region fallthrough
CT: control target
= control target key end

     0   :  { %8 = vsyncpa [#allocation4], 0  ;;  %s2013_s12 = smov 0   ;;  %s2137_s0 = inlined_call_operand.vmem [shape: bf16[2,36,128], index: 0, kind: input, shape index: {}]   ;;  %s2138_s1 = inlined_call_operand.hbm [shape: bf16[9,128,128], index: 1, kind: input, shape index: {}]   ;;  %s2139_s2 = inlined_call_operand.vmem [shape: f32[1,128], index: 2, kind: input, shape index: {}]   ;;  %s2140_s3 = inlined_call_operand.vmem [shape: bf16[2,2,2,128], index: 3, kind: output, shape index: {}]  }
   0x1 LB: > { %s2019_s13 = sadd.s32 4294967295, %s1988_s12   ;;  %p1477_p0 = scmp.ge.s32.totalorder %s1988_s12, 1  ;;  %s1988_s12 = sphi %s2013_s12, %s14_s12  }
   0x2   : > { %p113_p1 = scmp.lt.s32.totalorder %s1988_s12, 3  ;;  %s1990_s14 = smov [#allocation3]  }
   0x3   : > { %s125_s15 = sshll.u32 %s1990_s14, 4  ;;  %p2141_p3 = scmp.eq.s32.totalorder %s2019_s13, 0  ;;  %s126_s15 = int_to_ptr.vmem [resolvable:$true] %s125_s15 }
   0x4   : > { %p2023_p2 = pnand %p1477_p0, %p113_p1  ;;  %s1950_s20 = scalar_lea.hbm %s2138_s1, 9216 }
   0x5   : > { %p1951_p6 = scmp.ne.s32.totalorder %s2138_s1, %s1950_s20  ;;  %p1957_p10 = scmp.lt.u32.totalorder %s1950_s20, %s2138_s1 }
   0x6   : > { %s2143_s16 = scalar_select %p2023_p2, 1, 0 }
   0x7   : > { %p1848_p4 = pneg %p2023_p2 }
   0x9   : > { %p2032_p5 = pnand %p2141_p3, %p1848_p4 }
   0xb   : > { %p1952_p7 = pneg %p2032_p5 }
   0xd   : > { %p1953_p8 = pnand %p1952_p7, %p1951_p6 }
   0xf   : > { %p1954_p9 = pneg %p1953_p8 }
  0x11   : > { %p1959_p11 = pnand %p1957_p10, %p1954_p9 }
  0x13   : > { %1962 = shalt.err (!%p1959_p11)
}
  0x14   : > { %s1963_s25 = scalar_lea.vmem %s126_s15, 9216  ;;  %p1971_p1 = scmp.lt.s32.totalorder %s126_s15, %s126_s15 }
  0x15   : > { %p1964_p12 = scmp.ne.s32.totalorder %s126_s15, %s1963_s25  ;;  %p1972_p4 = scmp.lt.s32.totalorder %s1963_s25, %s1963_s25 }
  0x17   : > { %p1966_p13 = pnand %p1964_p12, %p1952_p7  ;;  %p1973_p3 = por %p1972_p4, %p1971_p1 }
  0x19   : > { %p1967_p0 = pneg %p1966_p13 }
  0x1b   : > { %p1974_p2 = pnand %p1973_p3, %p1967_p0 }
  0x1d   : > { %1977 = shalt.err (!%p1974_p2)
}
  0x1e   : > { %s1991_s26 = smov 64   ;;  %s1992_s27 = smov 4  }
  0x1f   : > { %1851 = dma.hbm_to_vmem [thread:$0]  (!%p2032_p5), %s2138_s1, 9216, %s126_s15, [#allocation4], %s1991_s26, %s1991_s26, %s1992_s27  }
  0x20   : > { %p2145_p6 = scmp.ne.s32.totalorder %s2143_s16, 0 }
  0x21   : > { %p2146_p8 = scmp.eq.s32.totalorder (!%p2145_p6), %s2019_s13, 0 }
  0x22   : > { %152 = sbr.rel (%p2145_p6) target bundleno = 440 (0x1b8), region = 32 }
  0x29   : > { %1983 = dma.done.wait (%p2146_p8), [#allocation4], 9216   ;;  %p2147_p7 = pmov %p2146_p8 }
  0x2a   : > { %v1865_v0 = vld [vmem:[#allocation3 + $0x40] sm:$0xff]   ;;  %p175_p2 = scmp.lt.s32.totalorder %s2019_s13, 1  ;;  %v1867_v2 = vld [vmem:[#allocation3 + $0x48] sm:$0xff]   ;;  %v1869_v4 = vld [vmem:[#allocation3 + $0x50] sm:$0xff]   ;;  %vm231_vm0 = vsmask.f32 7424 }
  0x2b   : > { %1985 = vsyncadd (%p2147_p7), [#allocation4], 4294958080  ;;  %v1866_v1 = vld [vmem:[#allocation3] sm:$0xff]   ;;  %1663 = vmatprep.subr.bf16.mxu0 %v1865_v0  ;;  %v1868_v3 = vld [vmem:[#allocation3 + $0x8] sm:$0xff]   ;;  %vm467_vm1 = vcmask 1046528   ;;  %vm603_vm2 = vcmask 1044480  }
  0x2c   : > { %1683 = vmatprep.subr.bf16.mxu1 %v1866_v1  ;;  %1664 = vmatpush3.bf16.msra.mxu0 %v1865_v0  ;;  %v1870_v5 = vld [vmem:[#allocation3 + $0x10] sm:$0xff]   ;;  %s2149_s13 = smov (!%p175_p2, %s2019_s13), 1  ;;  %v1871_v6 = vld [vmem:[#allocation3 + $0x58] sm:$0xff]   ;;  %v1873_v8 = vld [vmem:[#allocation3 + $0x60] sm:$0xff]   ;;  %vm729_vm3 = vsmask.f32 4352 }
  0x2d   : > { %1684 = vmatpush3.bf16.msra.mxu1 %v1866_v1  ;;  %1665 = vmatprep.subr.bf16.mxu0 %v1867_v2  ;;  %v1872_v7 = vld [vmem:[#allocation3 + $0x18] sm:$0xff]   ;;  %s1843_s30 = smul.u32 20, %s2149_s13  ;;  %v1874_v9 = vld [vmem:[#allocation3 + $0x20] sm:$0xff]   ;;  %v1875_v10 = vld [vmem:[#allocation3 + $0x68] sm:$0xff]   ;;  %vm999_vm4 = vcmask 1045504   ;;  %s1483_s9 = sshll.u32 %s2149_s13, 1 }
  0x2e   : > { %1685 = vmatprep.subr.bf16.mxu1 %v1868_v3  ;;  %v1876_v11 = vld [vmem:[#allocation3 + $0x28] sm:$0xff]   ;;  %v1877_v19 = vld [vmem:[#allocation3 + $0x70] sm:$0xff]   ;;  %v1879_v24 = vld [vmem:[#allocation3 + $0x78] sm:$0xff]   ;;  %vm1125_vm5 = vsmask.f32 5376  ;;  %s183_s14 = scalar_lea.vmem %s2140_s3, %s1483_s9 }
  0x2f   : > { %s2066_s6 = scalar_lea.vmem %s2137_s0, %s1843_s30  ;;  %v1878_v20 = vld [vmem:[#allocation3 + $0x30] sm:$0xff]   ;;  %v1880_v25 = vld [vmem:[#allocation3 + $0x38] sm:$0xff]   ;;  %v1884_v28 = vld [vmem:[#allocation3 + $0x80] sm:$0xff]  }
  0x30   : > { %1666 = vmatpush3.bf16.msra.mxu0 %v1867_v2  ;;  %v186_v12 = vld [vmem:[%s2066_s6] sm:$0xf]  ;;  %v187_v13 = vld [vmem:[%s2066_s6 + $0x4] sm:$0xf]  ;;  %v2071_v15 = vld [vmem:[%s2066_s6 + $0x8] ss:$0 sps:$4 sm:$0xff]  }
  0x31   : > { %1686 = vmatpush3.bf16.msra.mxu1 %v1868_v3  ;;  %1667 = vmatprep.subr.bf16.mxu0 %v1869_v4  ;;  %v1484_v14 = vcombine.low %v186_v12, %v187_v13  ;;  %v240_v18 = vshll.u32 %v2071_v15, 16  ;;  %v244_v27 = vshrl.u32 %v2071_v15, 16  ;;  %v1883_v29 = vld [vmem:[%s2066_s6 + $0x8] ss:$0 sps:$4 sm:$0x77]   ;;  %v1885_v30 = vld [vmem:[#allocation3 + $0xc0] sm:$0xff]  }
  0x32   : > { %1687 = vmatprep.subr.bf16.mxu1 %v1870_v5  ;;  %v1886_v32 = vld [vmem:[#allocation3 + $0x88] sm:$0xff]   ;;  %v1888_v35 = vld [vmem:[#allocation3 + $0x90] sm:$0xff]   ;;  %v469_v37 = vrot.slane %v2071_v15, 1  ;;  %v1890_v48 = vld [vmem:[#allocation3 + $0x98] sm:$0xff]  }
  0x33   : > { %v233_v16 = vshrl.u32 %v1484_v14, 16  ;;  %v235_v17 = vshll.u32 %v1484_v14, 16  ;;  %1699 = vmatprep.mubr.bf16.mxu1 %v1484_v14  ;;  %v242_v22 = vrot.slane %v240_v18, 1  ;;  %v1887_v33 = vld [vmem:[#allocation3 + $0xc8] sm:$0xff]   ;;  %v2084_v40 = vld [vmem:[%s2066_s6 + $0x8] sm:$0xf] }
  0x34   : > { %1668 = vmatpush3.bf16.msra.mxu0 %v1869_v4  ;;  %v446_v34 = vld [vmem:[%s2066_s6] sm:$0xe]  ;;  %v2081_v39 = vld [vmem:[%s2066_s6 + $0x4] sm:$0xf]  ;;  %v1889_v41 = vld [vmem:[#allocation3 + $0xd0] sm:$0xff]  }
  0x35   : > { %1688 = vmatpush3.bf16.msra.mxu1 %v1870_v5  ;;  %1669 = vmatprep.subr.bf16.mxu0 %v1871_v6  ;;  %v237_v21 = vrot.slane %v235_v17, 1  ;;  %v246_v31 = vor.u32 %v244_v27, %v242_v22  ;;  %v1503_v36 = vcombine.low %v446_v34, %v187_v13  ;;  %v572_v38 = vld [vmem:[%s2066_s6] sm:$0x8]  ;;  %v575_v43 = vld [vmem:[%s2066_s6 + $0xc] sm:$0x3]  ;;  %v1891_v50 = vld [vmem:[#allocation3 + $0xd8] sm:$0xff]   ;;  %v1531_v13 = vcombine.low %v2081_v39, %v2084_v40 }
  0x36   : > { %1689 = vmatprep.subr.bf16.mxu1 %v1872_v7  ;;  %v1512_v44 = vcombine.low %v572_v38, %v2081_v39  ;;  %v1513_v45 = vcombine.low %v2084_v40, %v575_v43  ;;  %v1892_v52 = vld [vmem:[#allocation3 + $0xa0] sm:$0xff]   ;;  %v1894_v54 = vld [vmem:[#allocation3 + $0xa8] sm:$0xff]   ;;  %v1896_v56 = vld [vmem:[#allocation3 + $0xb0] sm:$0xff]  }
  0x37   : > { %v238_v23 = vor.u32 %v237_v21, %v233_v16  ;;  %v468_v42 = vrot.slane %v1503_v36, 1  ;;  %v1893_v53 = vld [vmem:[#allocation3 + $0xe0] sm:$0xff]   ;;  %v1895_v55 = vld [vmem:[#allocation3 + $0xe8] sm:$0xff]   ;;  %v1897_v57 = vld [vmem:[#allocation3 + $0xf0] sm:$0xff]  }
  0x38   : > { %1670 = vmatpush3.bf16.msra.mxu0 %v1871_v6  ;;  %v604_v47 = vrot.slane %v1512_v44, 3  ;;  %v605_v49 = vrot.slane %v1513_v45, 3  ;;  %v2094_v58 = vld [vmem:[%s2066_s6 + $0xc] sm:$0x7]  ;;  %v731_v60 = vshrl.u32 %v1512_v44, 16  ;;  %v734_v61 = vshll.u32 %v1512_v44, 16 }
  0x39   : > { %1690 = vmatpush3.bf16.msra.mxu1 %v1872_v7  ;;  %1671 = vmatprep.subr.bf16.mxu0 %v1873_v8  ;;  %v243_v26 = vsel %vm231_vm0, %v238_v23, %v242_v22  ;;  %v470_v46 = vsel %vm467_vm1, %v468_v42, %v469_v37  ;;  %v1522_v59 = vcombine.low %v2084_v40, %v2094_v58  ;;  %v1898_v62 = vld [vmem:[#allocation3 + $0xb8] sm:$0xff]   ;;  %v1901_v6 = vld [vmem:[#allocation3 + $0x100] sm:$0xff]   ;;  %v1907_v14 = vld [vmem:[#allocation3 + $0x110] sm:$0xff]  }
  0x3a   : > { %1691 = vmatprep.subr.bf16.mxu1 %v1874_v9  ;;  %1679 = vmatprep.mubr.bf16.mxu0 %v243_v26  ;;  %v606_v51 = vsel %vm603_vm2, %v604_v47, %v605_v49  ;;  %v1899_v63 = vld [vmem:[#allocation3 + $0xf8] sm:$0xff]   ;;  %v733_v2 = vrot.slane %v731_v60, 3  ;;  %v736_v3 = vrot.slane %v734_v61, 4  ;;  %v1904_v7 = vld [vmem:[#allocation3 + $0x140] sm:$0xff]   ;;  %v1908_v16 = vld [vmem:[#allocation3 + $0x150] sm:$0xff]  }
  0x3b   : > { %v739_v0 = vshrl.u32 %v1522_v59, 16  ;;  %v742_v1 = vshll.u32 %v1522_v59, 16  ;;  %v1909_v15 = vld [vmem:[#allocation3 + $0x118] sm:$0xff]   ;;  %v970_v18 = vld [vmem:[%s2066_s6 + $0xc] sm:$0xf]  ;;  %v1912_v21 = vld [vmem:[#allocation3 + $0x160] sm:$0xff]  }
  0x3c   : > { %1672 = vmatpush3.bf16.msra.mxu0 %v1873_v8  ;;  %v737_v8 = vor.u32 %v736_v3, %v733_v2  ;;  %v1910_v17 = vld [vmem:[#allocation3 + $0x158] sm:$0xff]   ;;  %v969_v23 = vld [vmem:[%s2066_s6 + $0x8] sm:$0xf]  ;;  %v968_v26 = vld [vmem:[%s2066_s6 + $0x4] sm:$0xc] }
  0x3d   : > { %1692 = vmatpush3.bf16.msra.mxu1 %v1874_v9  ;;  %1673 = vmatprep.subr.bf16.mxu0 %v1875_v10  ;;  %v741_v4 = vrot.slane %v739_v0, 3  ;;  %v744_v5 = vrot.slane %v742_v1, 4  ;;  %v1916_v34 = vld [vmem:[#allocation3 + $0x170] sm:$0xff]   ;;  %v1917_v40 = vld [vmem:[#allocation3 + $0x138] sm:$0xff]   ;;  %v1920_v47 = vld [vmem:[#allocation3 + $0x180] sm:$0xff]  }
  0x3e   : > { %1693 = vmatprep.subr.bf16.mxu1 %v1876_v11  ;;  %v1926_v59 = vld [vmem:[#allocation3 + $0x190] sm:$0xff]   ;;  %v1928_v60 = vld [vmem:[#allocation3 + $0x198] sm:$0xff]   ;;  %v1932_v0 = vld [vmem:[#allocation3 + $0x1a8] sm:$0xff]  }
  0x3f   : > { %v2098_v9 = vor.u32 %v744_v5, %v741_v4  ;;  %v1929_v61 = vld [vmem:[#allocation3 + $0x1d8] sm:$0xff]   ;;  %v1933_v1 = vld [vmem:[#allocation3 + $0x1e8] sm:$0xff]   ;;  %v1934_v2 = vld [vmem:[#allocation3 + $0x1b0] sm:$0xff]  }
  0x40   : > { %1674 = vmatpush3.bf16.msra.mxu0 %v1875_v10  ;;  %v1905_v10 = vld [vmem:[#allocation3 + $0x108] sm:$0xff]   ;;  %v1935_v3 = vld [vmem:[#allocation3 + $0x1f0] sm:$0xff]   ;;  %v1936_v4 = vld [vmem:[#allocation3 + $0x1b8] sm:$0xff]  }
  0x41   : > { %1694 = vmatpush3.bf16.msra.mxu1 %v1876_v11  ;;  %1675 = vmatprep.subr.bf16.mxu0 %v1877_v19  ;;  %v1906_v11 = vld [vmem:[#allocation3 + $0x148] sm:$0xff]   ;;  %v746_v12 = vsel %vm729_vm3, %v737_v8, %v2098_v9  ;;  %v1937_v5 = vld [vmem:[#allocation3 + $0x1f8] sm:$0xff]   ;;  %v1943_v8 = vld [vmem:[#allocation3 + $0x210] sm:$0xff]  }
  0x42   : > { %1695 = vmatprep.subr.bf16.mxu1 %v1878_v20 }
  0x44   : > { %1676 = vmatpush3.bf16.msra.mxu0 %v1877_v19  ;;  %v1104_v19 = vld [vmem:[%s2066_s6 + $0x10] sm:$0x3] }
  0x45   : > { %1696 = vmatpush3.bf16.msra.mxu1 %v1878_v20  ;;  %1677 = vmatprep.subr.bf16.mxu0 %v1879_v24  ;;  %v1911_v20 = vld [vmem:[#allocation3 + $0x120] sm:$0xff]   ;;  %v2107_v22 = vcombine.low %v970_v18, %v1104_v19 }
  0x46   : > { %1697 = vmatprep.subr.bf16.mxu1 %v1880_v25 }
  0x47   : > { %v1135_v38 = vshrl.u32 %v2107_v22, 16  ;;  %v1138_v39 = vshll.u32 %v2107_v22, 16 }
  0x48   : > { %1678 = vmatpush3.bf16.msra.mxu0 %v1879_v24  ;;  %v1244_v24 = vld [vmem:[%s2066_s6 + $0x4] sm:$0x8] }
  0x49   : > { %1698 = vmatpush3.bf16.msra.mxu1 %v1880_v25  ;;  %1703 = vmatprep.subr.bf16.mxu0 %v1884_v28  ;;  %v1913_v25 = vld [vmem:[#allocation3 + $0x128] sm:$0xff]   ;;  %v1560_v27 = vcombine.low %v1244_v24, %v969_v23  ;;  %v1137_v45 = vrot.slane %v1135_v38, 2 }
  0x4a   : > { %1723 = vmatprep.subr.bf16.mxu1 %v1885_v30 }
  0x4b   : > { %1680 = vmatmul.mubr.bf16.vlgmr.msra.gmra.mrb[0].mxu0 %v246_v31  ;;  %v1541_v31 = vcombine.low %v968_v26, %v969_v23 }
  0x4c   : > { %1700 = vmatmul.mubr.bf16.vlgmr.msra.gmra.mrb[0].mxu1 %v1883_v29  ;;  %1704 = vmatpush3.bf16.msra.mxu0 %v1884_v28  ;;  %v1266_v28 = vrot.slane %v2107_v22, 3  ;;  %v1914_v29 = vld [vmem:[#allocation3 + $0x168] sm:$0xff]  }
  0x4d   : > { %1724 = vmatpush3.bf16.msra.mxu1 %v1885_v30  ;;  %1705 = vmatprep.subr.bf16.mxu0 %v1886_v32  ;;  %v1265_v30 = vrot.slane %v1560_v27, 3  ;;  %v1127_v36 = vshrl.u32 %v1541_v31, 16 }
  0x4e   : > { %1725 = vmatprep.subr.bf16.mxu1 %v1887_v33  ;;  %1719 = vmatprep.mubr.bf16.mxu0 %v470_v46  ;;  %v1140_v46 = vrot.slane %v1138_v39, 3 }
  0x4f   : > { %1739 = vmatprep.mubr.bf16.mxu1 %v606_v51  ;;  %v1129_v43 = vrot.slane %v1127_v36, 2  ;;  %v1532_v51 = vcombine.low %v2094_v58, %v2094_v58  ;;  %v1927_v58 = vld [vmem:[#allocation3 + $0x1d0] sm:$0xff]  }
  0x50   : > { %1706 = vmatpush3.bf16.msra.mxu0 %v1886_v32  ;;  %v1915_v32 = vld [vmem:[#allocation3 + $0x130] sm:$0xff]  }
  0x51   : > { %1726 = vmatpush3.bf16.msra.mxu1 %v1887_v33  ;;  %1707 = vmatprep.subr.bf16.mxu0 %v1888_v35  ;;  %v2116_v33 = vsel %vm603_vm2, %v1265_v30, %v1266_v28 }
  0x52   : > { %1727 = vmatprep.subr.bf16.mxu1 %v1889_v41 }
  0x54   : > { %1708 = vmatpush3.bf16.msra.mxu0 %v1888_v35  ;;  %v971_v35 = vld [vmem:[%s2066_s6 + $0x10] sm:$0x1] }
  0x55   : > { %1728 = vmatpush3.bf16.msra.mxu1 %v1889_v41  ;;  %1709 = vmatprep.subr.bf16.mxu0 %v1890_v48  ;;  %v1918_v41 = vld [vmem:[#allocation3 + $0x178] sm:$0xff]   ;;  %v1542_v42 = vcombine.low %v970_v18, %v971_v35 }
  0x56   : > { %1729 = vmatprep.subr.bf16.mxu1 %v1891_v50 }
  0x58   : > { %1710 = vmatpush3.bf16.msra.mxu0 %v1890_v48  ;;  %v1923_v48 = vld [vmem:[#allocation3 + $0x1c0] sm:$0xff]  }
  0x59   : > { %1730 = vmatpush3.bf16.msra.mxu1 %v1891_v50  ;;  %1711 = vmatprep.subr.bf16.mxu0 %v1892_v52  ;;  %v1001_v50 = vrot.slane %v1542_v42, 2 }
  0x5a   : > { %1731 = vmatprep.subr.bf16.mxu1 %v1893_v53 }
  0x5c   : > { %1712 = vmatpush3.bf16.msra.mxu0 %v1892_v52 }
  0x5d   : > { %1732 = vmatpush3.bf16.msra.mxu1 %v1893_v53  ;;  %1713 = vmatprep.subr.bf16.mxu0 %v1894_v54  ;;  %v1141_v53 = vor.u32 %v1140_v46, %v1137_v45 }
  0x5e   : > { %1733 = vmatprep.subr.bf16.mxu1 %v1895_v55 }
  0x60   : > { %1714 = vmatpush3.bf16.msra.mxu0 %v1894_v54  ;;  %v1924_v54 = vld [vmem:[#allocation3 + $0x188] sm:$0xff]  }
  0x61   : > { %1734 = vmatpush3.bf16.msra.mxu1 %v1895_v55  ;;  %1715 = vmatprep.subr.bf16.mxu0 %v1896_v56  ;;  %v1925_v55 = vld [vmem:[#allocation3 + $0x1c8] sm:$0xff]  }
  0x62   : > { %1735 = vmatprep.subr.bf16.mxu1 %v1897_v57 }
  0x64   : > { %1716 = vmatpush3.bf16.msra.mxu0 %v1896_v56 }
  0x65   : > { %1736 = vmatpush3.bf16.msra.mxu1 %v1897_v57  ;;  %1717 = vmatprep.subr.bf16.mxu0 %v1898_v62 }
  0x66   : > { %1737 = vmatprep.subr.bf16.mxu1 %v1899_v63 }
  0x68   : > { %1718 = vmatpush3.bf16.msra.mxu0 %v1898_v62  ;;  %v1930_v62 = vld [vmem:[#allocation3 + $0x1a0] sm:$0xff]  }
  0x69   : > { %1738 = vmatpush3.bf16.msra.mxu1 %v1899_v63  ;;  %1743 = vmatprep.subr.bf16.mxu0 %v1901_v6  ;;  %v1931_v63 = vld [vmem:[#allocation3 + $0x1e0] sm:$0xff]  }
  0x6a   : > { %1763 = vmatprep.subr.bf16.mxu1 %v1904_v7 }
  0x6b   : > { %1720 = vmatmul.mubr.bf16.vlgmr.msra.gmra.mrb[4].mxu0 %v469_v37  ;;  %v1130_v37 = vshll.u32 %v1541_v31, 16 }
  0x6c   : > { %1744 = vmatpush3.bf16.msra.mxu0 %v1901_v6  ;;  %1740 = vmatmul.mubr.bf16.vlgmr.msra.gmra.mrb[4].mxu1 %v605_v49  ;;  %v1000_v49 = vrot.slane %v1541_v31, 2  ;;  %v1941_v6 = vld [vmem:[#allocation3 + $0x200] sm:$0xff]  }
  0x6d   : > { %1764 = vmatpush3.bf16.msra.mxu1 %v1904_v7  ;;  %1745 = vmatprep.subr.bf16.mxu0 %v1905_v10  ;;  %v1132_v44 = vrot.slane %v1130_v37, 3  ;;  %v1942_v7 = vld [vmem:[#allocation3 + $0x208] sm:$0xff]  }
  0x6e   : > { %1765 = vmatprep.subr.bf16.mxu1 %v1906_v11  ;;  %1759 = vmatprep.mubr.bf16.mxu0 %v746_v12  ;;  %v1002_v56 = vsel %vm999_vm4, %v1000_v49, %v1001_v50  ;;  %v1947_v12 = vld [vmem:[#allocation3 + $0x230] sm:$0xff]  }
  0x6f   : > { %1779 = vmatprep.mubr.bf16.mxu1 %v1531_v13  ;;  %v1133_v52 = vor.u32 %v1132_v44, %v1129_v43  ;;  %v1948_v13 = vld [vmem:[#allocation3 + $0x238] sm:$0xff]  }
  0x70   : > { %1746 = vmatpush3.bf16.msra.mxu0 %v1905_v10  ;;  %v1945_v10 = vld [vmem:[#allocation3 + $0x220] sm:$0xff]  }
  0x71   : > { %1766 = vmatpush3.bf16.msra.mxu1 %v1906_v11  ;;  %1747 = vmatprep.subr.bf16.mxu0 %v1907_v14  ;;  %v1142_v57 = vsel %vm1125_vm5, %v1133_v52, %v1141_v53  ;;  %v1946_v11 = vld [vmem:[#allocation3 + $0x228] sm:$0xff]  }
  0x72   : > { %1767 = vmatprep.subr.bf16.mxu1 %v1908_v16 }
  0x74   : > { %1748 = vmatpush3.bf16.msra.mxu0 %v1907_v14 }
  0x75   : > { %1768 = vmatpush3.bf16.msra.mxu1 %v1908_v16  ;;  %1749 = vmatprep.subr.bf16.mxu0 %v1909_v15 }
  0x76   : > { %1769 = vmatprep.subr.bf16.mxu1 %v1910_v17 }
  0x78   : > { %1750 = vmatpush3.bf16.msra.mxu0 %v1909_v15 }
  0x79   : > { %1770 = vmatpush3.bf16.msra.mxu1 %v1910_v17  ;;  %1751 = vmatprep.subr.bf16.mxu0 %v1911_v20 }
  0x7a   : > { %1771 = vmatprep.subr.bf16.mxu1 %v1912_v21 }
  0x7c   : > { %1752 = vmatpush3.bf16.msra.mxu0 %v1911_v20 }
  0x7d   : > { %1772 = vmatpush3.bf16.msra.mxu1 %v1912_v21  ;;  %1753 = vmatprep.subr.bf16.mxu0 %v1913_v25 }
  0x7e   : > { %1773 = vmatprep.subr.bf16.mxu1 %v1914_v29 }
  0x80   : > { %1754 = vmatpush3.bf16.msra.mxu0 %v1913_v25 }
  0x81   : > { %1774 = vmatpush3.bf16.msra.mxu1 %v1914_v29  ;;  %1755 = vmatprep.subr.bf16.mxu0 %v1915_v32 }
  0x82   : > { %1775 = vmatprep.subr.bf16.mxu1 %v1916_v34 }
  0x84   : > { %1756 = vmatpush3.bf16.msra.mxu0 %v1915_v32 }
  0x85   : > { %1776 = vmatpush3.bf16.msra.mxu1 %v1916_v34  ;;  %1757 = vmatprep.subr.bf16.mxu0 %v1917_v40 }
  0x86   : > { %1777 = vmatprep.subr.bf16.mxu1 %v1918_v41 }
  0x88   : > { %1758 = vmatpush3.bf16.msra.mxu0 %v1917_v40 }
  0x89   : > { %1778 = vmatpush3.bf16.msra.mxu1 %v1918_v41  ;;  %1783 = vmatprep.subr.bf16.mxu0 %v1920_v47 }
  0x8a   : > { %1803 = vmatprep.subr.bf16.mxu1 %v1923_v48 }
  0x8b   : > { %1760 = vmatmul.mubr.bf16.vlgmr.msra.gmra.mrb[8].mxu0 %v2098_v9  ;;  %v1944_v9 = vld [vmem:[#allocation3 + $0x218] sm:$0xff]  }
  0x8c   : > { %1784 = vmatpush3.bf16.msra.mxu0 %v1920_v47  ;;  %1780 = vmatmul.mubr.bf16.vlgmr.msra.gmra.mrb[8].mxu1 %v1532_v51 }
  0x8d   : > { %1804 = vmatpush3.bf16.msra.mxu1 %v1923_v48  ;;  %1785 = vmatprep.subr.bf16.mxu0 %v1924_v54 }
  0x8e   : > { %1805 = vmatprep.subr.bf16.mxu1 %v1925_v55  ;;  %1799 = vmatprep.mubr.bf16.mxu0 %v1002_v56 }
  0x8f   : > { %1819 = vmatprep.mubr.bf16.mxu1 %v1142_v57 }
  0x90   : > { %1786 = vmatpush3.bf16.msra.mxu0 %v1924_v54 }
  0x91   : > { %1806 = vmatpush3.bf16.msra.mxu1 %v1925_v55  ;;  %1787 = vmatprep.subr.bf16.mxu0 %v1926_v59 }
  0x92   : > { %1807 = vmatprep.subr.bf16.mxu1 %v1927_v58 }
  0x94   : > { %1788 = vmatpush3.bf16.msra.mxu0 %v1926_v59 }
  0x95   : > { %1808 = vmatpush3.bf16.msra.mxu1 %v1927_v58  ;;  %1789 = vmatprep.subr.bf16.mxu0 %v1928_v60 }
  0x96   : > { %1809 = vmatprep.subr.bf16.mxu1 %v1929_v61 }
  0x98   : > { %1790 = vmatpush3.bf16.msra.mxu0 %v1928_v60 }
  0x99   : > { %1810 = vmatpush3.bf16.msra.mxu1 %v1929_v61  ;;  %1791 = vmatprep.subr.bf16.mxu0 %v1930_v62 }
  0x9a   : > { %1811 = vmatprep.subr.bf16.mxu1 %v1931_v63 }
  0x9c   : > { %1792 = vmatpush3.bf16.msra.mxu0 %v1930_v62 }
  0x9d   : > { %1812 = vmatpush3.bf16.msra.mxu1 %v1931_v63  ;;  %1793 = vmatprep.subr.bf16.mxu0 %v1932_v0 }
  0x9e   : > { %1813 = vmatprep.subr.bf16.mxu1 %v1933_v1 }
  0xa0   : > { %1794 = vmatpush3.bf16.msra.mxu0 %v1932_v0 }
  0xa1   : > { %1814 = vmatpush3.bf16.msra.mxu1 %v1933_v1  ;;  %1795 = vmatprep.subr.bf16.mxu0 %v1934_v2 }
  0xa2   : > { %1815 = vmatprep.subr.bf16.mxu1 %v1935_v3 }
  0xa4   : > { %1796 = vmatpush3.bf16.msra.mxu0 %v1934_v2 }
  0xa5   : > { %1816 = vmatpush3.bf16.msra.mxu1 %v1935_v3  ;;  %1797 = vmatprep.subr.bf16.mxu0 %v1936_v4  ;;  %v1569_v3 = vld [vmem:[%s2139_s2] ss:$0 sm:$0xff] }
  0xa6   : > { %1817 = vmatprep.subr.bf16.mxu1 %v1937_v5 }
  0xa8   : > { %1798 = vmatpush3.bf16.msra.mxu0 %v1936_v4 }
  0xa9   : > { %1818 = vmatpush3.bf16.msra.mxu1 %v1937_v5  ;;  %1823 = vmatprep.subr.bf16.mxu0 %v1941_v6 }
  0xab   : > { %1800 = vmatmul.mubr.bf16.vlgmr.msra.gmra.mrb[12].mxu0 %v1001_v50 }
  0xac   : > { %1824 = vmatpush3.bf16.msra.mxu0 %v1941_v6  ;;  %1820 = vmatmul.mubr.bf16.vlgmr.msra.gmra.mrb[12].mxu1 %v1141_v53 }
  0xad   : > { %1825 = vmatprep.subr.bf16.mxu0 %v1942_v7  ;;  %1839 = vmatprep.mubr.bf16.mxu0 %v2116_v33 }
  0xb0   : > { %1826 = vmatpush3.bf16.msra.mxu0 %v1942_v7 }
  0xb1   : > { %1827 = vmatprep.subr.bf16.mxu0 %v1943_v8 }
  0xb4   : > { %1828 = vmatpush3.bf16.msra.mxu0 %v1943_v8 }
  0xb5   : > { %1829 = vmatprep.subr.bf16.mxu0 %v1944_v9 }
  0xb8   : > { %1830 = vmatpush3.bf16.msra.mxu0 %v1944_v9 }
  0xb9   : > { %1831 = vmatprep.subr.bf16.mxu0 %v1945_v10 }
  0xbc   : > { %1832 = vmatpush3.bf16.msra.mxu0 %v1945_v10 }
  0xbd   : > { %1833 = vmatprep.subr.bf16.mxu0 %v1946_v11 }
  0xc0   : > { %1834 = vmatpush3.bf16.msra.mxu0 %v1946_v11 }
  0xc1   : > { %1835 = vmatprep.subr.bf16.mxu0 %v1947_v12 }
  0xc4   : > { %1836 = vmatpush3.bf16.msra.mxu0 %v1947_v12 }
  0xc5   : > { %1837 = vmatprep.subr.bf16.mxu0 %v1948_v13 }
  0xc8   : > { %1838 = vmatpush3.bf16.msra.mxu0 %v1948_v13 }
  0xcb   : > { %1840 = vmatmul.mubr.bf16.vlgmr.msra.gmra.mrb[16].mxu0 %v1266_v28 }
 0x11e   : > { %v1681_v14 = vpop.f32.mrb[0].mxu0 }
 0x11f   : > { %v1701_v16 = vpop.f32.mrb[0].mxu1  ;;  %v331_v15 = vpop.f32.mrb[1].mxu0 }
 0x120   : > { %v441_v17 = vadd.f32 %v1701_v16, %v1681_v14  ;;  %v432_v18 = vpop.f32.mrb[1].mxu1  ;;  %v1682_v19 = vpop.f32.mrb[2].mxu0 }
 0x121   : > { %v433_v20 = vadd.f32 %v432_v18, %v331_v15  ;;  %v1702_v21 = vpop.f32.mrb[2].mxu1  ;;  %v334_v23 = vpop.f32.mrb[3].mxu0 }
 0x122   : > { %v435_v24 = vpop.f32.mrb[3].mxu1 }
 0x123   : > { %v436_v25 = vadd.f32 %v435_v24, %v334_v23 }
 0x13e   : > { %v1721_v26 = vpop.f32.mrb[4].mxu0 }
 0x13f   : > { %v571_v27 = vadd.f32 %v1721_v26, %v441_v17  ;;  %v555_v29 = vpop.f32.mrb[5].mxu0  ;;  %v1741_v30 = vpop.f32.mrb[4].mxu1 }
 0x140   : > { %v569_v31 = vadd.f32 %v555_v29, %v433_v20  ;;  %v1722_v32 = vpop.f32.mrb[6].mxu0  ;;  %v691_v33 = vpop.f32.mrb[5].mxu1 }
 0x141   : > { %v707_v22 = vadd.f32 %v1741_v30, %v571_v27  ;;  %v558_v28 = vpop.f32.mrb[7].mxu0  ;;  %v1742_v34 = vpop.f32.mrb[6].mxu1 }
 0x142   : > { %v570_v35 = vadd.f32 %v558_v28, %v436_v25  ;;  %v705_v36 = vadd.f32 %v691_v33, %v569_v31  ;;  %v694_v37 = vpop.f32.mrb[7].mxu1 }
 0x144   : > { %v706_v38 = vadd.f32 %v694_v37, %v570_v35 }
 0x15e   : > { %v1761_v39 = vpop.f32.mrb[8].mxu0 }
 0x15f   : > { %v847_v40 = vadd.f32 %v1761_v39, %v707_v22  ;;  %v831_v41 = vpop.f32.mrb[9].mxu0  ;;  %v1781_v42 = vpop.f32.mrb[8].mxu1 }
 0x160   : > { %v845_v43 = vadd.f32 %v831_v41, %v705_v36  ;;  %v1762_v44 = vpop.f32.mrb[10].mxu0  ;;  %v951_v45 = vpop.f32.mrb[9].mxu1 }
 0x161   : > { %v967_v46 = vadd.f32 %v1781_v42, %v847_v40  ;;  %v834_v47 = vpop.f32.mrb[11].mxu0  ;;  %v1782_v48 = vpop.f32.mrb[10].mxu1 }
 0x162   : > { %v846_v49 = vadd.f32 %v834_v47, %v706_v38  ;;  %v965_v50 = vadd.f32 %v951_v45, %v845_v43  ;;  %v954_v51 = vpop.f32.mrb[11].mxu1 }
 0x164   : > { %v966_v52 = vadd.f32 %v954_v51, %v846_v49 }
 0x17e   : > { %v1801_v53 = vpop.f32.mrb[12].mxu0 }
 0x17f   : > { %v1103_v54 = vadd.f32 %v1801_v53, %v967_v46  ;;  %v1087_v55 = vpop.f32.mrb[13].mxu0  ;;  %v1821_v56 = vpop.f32.mrb[12].mxu1 }
 0x180   : > { %v1101_v57 = vadd.f32 %v1087_v55, %v965_v50  ;;  %v1802_v59 = vpop.f32.mrb[14].mxu0  ;;  %v1227_v58 = vpop.f32.mrb[13].mxu1 }
 0x181   : > { %v1243_v60 = vadd.f32 %v1821_v56, %v1103_v54  ;;  %v1090_v61 = vpop.f32.mrb[15].mxu0  ;;  %v1822_v62 = vpop.f32.mrb[14].mxu1 }
 0x182   : > { %v1102_v63 = vadd.f32 %v1090_v61, %v966_v52  ;;  %v1241_v0 = vadd.f32 %v1227_v58, %v1101_v57  ;;  %v1230_v1 = vpop.f32.mrb[15].mxu1 }
 0x184   : > { %v1242_v2 = vadd.f32 %v1230_v1, %v1102_v63 }
 0x19e   : > { %v1841_v4 = vpop.f32.mrb[16].mxu0 }
 0x19f   : > { %v1368_v5 = vadd.f32 %v1841_v4, %v1243_v60  ;;  %v1352_v6 = vpop.f32.mrb[17].mxu0 }
 0x1a0   : > { %v1366_v7 = vadd.f32 %v1352_v6, %v1241_v0  ;;  %v1842_v8 = vpop.f32.mrb[18].mxu0 }
 0x1a1   : > { %v1377_v9 = vadd.f32 %v1569_v3, %v1368_v5  ;;  %v1355_v10 = vpop.f32.mrb[19].mxu0 }
 0x1a2   : > { %v1375_v11 = vadd.f32 %v1569_v3, %v1366_v7  ;;  %v1367_v12 = vadd.f32 %v1355_v10, %v1242_v2 }
 0x1a3   : > { %v1380_v13 = vmax.f32 %v1377_v9, 0.0 }
 0x1a4   : > { %v1378_v14 = vmax.f32 %v1375_v11, 0.0  ;;  %v1376_v16 = vadd.f32 %v1569_v3, %v1367_v12 }
 0x1a5   : > { %1383 = vst [vmem:[#allocation2 + $0x10] sm:$0x3f] %v1380_v13 }
 0x1a6   : > { %1381 = vst [vmem:[#allocation2] sm:$0xff] %v1378_v14  ;;  %v1379_v15 = vmax.f32 %v1376_v16, 0.0 }
 0x1a8   : > { %1382 = vst [vmem:[#allocation2 + $0x8] sm:$0xff] %v1379_v15 }
 0x1ac   : > { %v1401_v19 = vld [vmem:[#allocation2 + $0x12] ss:$2 sm:$0x3]  ;;  %v1403_v20 = vld [vmem:[#allocation2 + $0x13] ss:$2 sm:$0x3] }
 0x1ad   : > { %v1384_v17 = vld [vmem:[#allocation2] ss:$2 sm:$0x3]  ;;  %v1386_v18 = vld [vmem:[#allocation2 + $0x1] ss:$2 sm:$0x3]  ;;  %v1405_v29 = vmax.f32 %v1401_v19, %v1403_v20 }
 0x1ae   : > { %v1391_v24 = vmax.f32 %v1384_v17, %v1386_v18 }
 0x1af   : > { %v1388_v21 = vld [vmem:[#allocation2 + $0x6] ss:$2 sm:$0x3]  ;;  %v1390_v23 = vld [vmem:[#allocation2 + $0x7] ss:$2 sm:$0x3] }
 0x1b0   : > { %v1392_v25 = vmax.f32 %v1388_v21, %v1390_v23  ;;  %v1397_v26 = vld [vmem:[#allocation2 + $0xc] ss:$2 sm:$0x3]  ;;  %v1399_v27 = vld [vmem:[#allocation2 + $0xd] ss:$2 sm:$0x3] }
 0x1b1   : > { %v1404_v30 = vmax.f32 %v1397_v26, %v1399_v27 }
 0x1b2   : > { %v1393_v31 = vmax.f32 %v1391_v24, %v1392_v25 }
 0x1b3   : > { %v1406_v32 = vmax.f32 %v1404_v30, %v1405_v29 }
 0x1b4   : > { %v1394_v33 = vpack.c.bf16 %v1393_v31, %v1393_v31 }
 0x1b5   : > { %v1407_v22 = vpack.c.bf16 %v1406_v32, %v1406_v32 }
 0x1b6   : > { %1395 = vst [vmem:[%s183_s14] sm:$0x1] %v1394_v33 }
 0x1b7   : > { %1570 = vst [vmem:[%s183_s14 + $0x1] sm:$0x1] %v1407_v22 }
 0x1b8 PF: > { %s14_s12 = sadd.s32 1, %s1988_s12  }
 0x1b9   : > { %p11_p3 = scmp.ge.s32.totalorder %s14_s12, 4  }
 0x1bb   :  { %13 = sbr.rel (!%p11_p3) target bundleno = 1 (0x1), region = 83 }
 0x1c2   :  { %1429 = vsyncpa [#allocation4], 1 }
 0x1c3   :  { %1431 = vsyncpa [#allocation4 + $0x1], 1 }

// kernel: vgg_forward.5
= control target key start
LH: loop header
LB: loop body
LE: loop exit
PB: predicated region body
PF: predicated region fallthrough
CT: control target
= control target key end

     0   :  { %s2879_s12 = smov 0   ;;  %s3467_s0 = inlined_call_operand.vmem [shape: bf16[2,100,128], index: 0, kind: input, shape index: {}]   ;;  %s3468_s1 = inlined_call_operand.vmem [shape: bf16[9,128,128], index: 1, kind: input, shape index: {}]   ;;  %s3469_s2 = inlined_call_operand.vmem [shape: f32[1,128], index: 2, kind: input, shape index: {}]   ;;  %s3470_s3 = inlined_call_operand.vmem [shape: bf16[2,4,4,128], index: 3, kind: output, shape index: {}]  }
   0x1 LB: > { %s2040_s13 = sadd.s32 4294967295, %s2855_s12   ;;  %p2044_p0 = scmp.ge.s32.totalorder %s2855_s12, 1  ;;  %s2855_s12 = sphi %s2879_s12, %s13_s12  }
   0x2   : > { %p137_p1 = scmp.lt.s32.totalorder %s2855_s12, 3 }
   0x4   : > { %p138_p2 = pnand %p2044_p0, %p137_p1 }
   0x5   : > { %v2750_v0 = vld [vmem:[%s3468_s1 + $0x40] sm:$0xff] (!%p138_p2)   ;;  %v2857_v1 = vmov (!%p138_p2), 0.0   ;;  %v2752_v3 = vld [vmem:[%s3468_s1 + $0x48] sm:$0xff] (!%p138_p2)   ;;  %vm2858_vm0 = vmmov (!%p138_p2), 0   ;;  %p161_p3 = scmp.lt.s32.totalorder (!%p138_p2), %s2040_s13, 1  ;;  %v2754_v5 = vld [vmem:[%s3468_s1 + $0x50] sm:$0xff] (!%p138_p2)  }
   0x6   : > { %141 = sbr.rel (%p138_p2) target bundleno = 450 (0x1c2), region = 32  ;;  %2399 = vmatprep.subr.bf16.mxu0 (!%p138_p2), %v2857_v1  ;;  %2435 = vmatprep.subr.bf16.mxu1 (!%p138_p2), %v2857_v1  ;;  %v2751_v2 = vld [vmem:[%s3468_s1] sm:$0xff] (!%p138_p2)   ;;  %v2753_v4 = vld [vmem:[%s3468_s1 + $0x8] sm:$0xff] (!%p138_p2)   ;;  %v2755_v6 = vld [vmem:[%s3468_s1 + $0x10] sm:$0xff] (!%p138_p2)   ;;  %vm242_vm1 = vsmask.f32 (!%p138_p2), 7424 }
   0x7   : > { %2400 = vmatpush3.bf16.msra.mxu0 (!%p138_p2), %v2750_v0  ;;  %2415 = vmatprep.mubr.msk.bf16.mxu0 (!%p138_p2), %vm2858_vm0, %v2857_v1  ;;  %v2756_v7 = vld [vmem:[%s3468_s1 + $0x58] sm:$0xff] (!%p138_p2)   ;;  %v2758_v9 = vld [vmem:[%s3468_s1 + $0x60] sm:$0xff] (!%p138_p2)   ;;  %v2760_v13 = vld [vmem:[%s3468_s1 + $0x68] sm:$0xff] (!%p138_p2)   ;;  %vm558_vm2 = vcmask (!%p138_p2), 1046528   ;;  %vm957_vm3 = vsmask.f32 (!%p138_p2), 6400 }
   0x8   : > { %2436 = vmatpush3.bf16.msra.mxu1 (!%p138_p2), %v2751_v2  ;;  %2401 = vmatprep.subr.bf16.mxu0 (!%p138_p2), %v2857_v1  ;;  %v2757_v8 = vld [vmem:[%s3468_s1 + $0x18] sm:$0xff] (!%p138_p2)   ;;  %v2759_v10 = vld [vmem:[%s3468_s1 + $0x20] sm:$0xff] (!%p138_p2)   ;;  %v2761_v16 = vld [vmem:[%s3468_s1 + $0x28] sm:$0xff] (!%p138_p2)   ;;  %vm1164_vm4 = vcmask (!%p138_p2), 1045504   ;;  %vm1536_vm5 = vsmask.f32 (!%p138_p2), 5376 }
   0x9   : > { %2437 = vmatprep.subr.bf16.mxu1 (!%p138_p2), %v2857_v1  ;;  %2451 = vmatprep.mubr.msk.bf16.mxu1 (!%p138_p2), %vm2858_vm0, %v2857_v1  ;;  %v2762_v18 = vld [vmem:[%s3468_s1 + $0x70] sm:$0xff] (!%p138_p2)   ;;  %v2764_v23 = vld [vmem:[%s3468_s1 + $0x78] sm:$0xff] (!%p138_p2)   ;;  %v2768_v28 = vld [vmem:[%s3468_s1 + $0x80] sm:$0xff] (!%p138_p2)   ;;  %vm1747_vm6 = vcmask (!%p138_p2), 1044480  }
   0xa   : > { %v2763_v22 = vld [vmem:[%s3468_s1 + $0x30] sm:$0xff] (!%p138_p2)   ;;  %v2765_v24 = vld [vmem:[%s3468_s1 + $0x38] sm:$0xff] (!%p138_p2)   ;;  %v2771_v32 = vld [vmem:[%s3468_s1 + $0xc0] sm:$0xff] (!%p138_p2)  }
   0xb   : > { %2402 = vmatpush3.bf16.msra.mxu0 (!%p138_p2), %v2752_v3  ;;  %v2769_v34 = vld [vmem:[%s3468_s1 + $0x88] sm:$0xff] (!%p138_p2)   ;;  %v2772_v38 = vld [vmem:[%s3468_s1 + $0x90] sm:$0xff] (!%p138_p2)   ;;  %v2775_v46 = vld [vmem:[%s3468_s1 + $0x98] sm:$0xff] (!%p138_p2)  }
   0xc   : > { %2438 = vmatpush3.bf16.msra.mxu1 (!%p138_p2), %v2753_v4  ;;  %2403 = vmatprep.subr.bf16.mxu0 (!%p138_p2), %v2857_v1  ;;  %v2773_v37 = vld [vmem:[%s3468_s1 + $0xc8] sm:$0xff] (!%p138_p2)   ;;  %v2776_v44 = vld [vmem:[%s3468_s1 + $0xd0] sm:$0xff] (!%p138_p2)   ;;  %v2778_v49 = vld [vmem:[%s3468_s1 + $0xd8] sm:$0xff] (!%p138_p2)  }
   0xd   : > { %s3472_s13 = smov (!%p161_p3, %s2040_s13), 1  ;;  %2439 = vmatprep.subr.bf16.mxu1 %v2857_v1  ;;  %v2777_v50 = vld [vmem:[%s3468_s1 + $0xa0] sm:$0xff]   ;;  %v2781_v57 = vld [vmem:[%s3468_s1 + $0xa8] sm:$0xff]   ;;  %v2783_v60 = vld [vmem:[%s3468_s1 + $0xb0] sm:$0xff]  }
   0xe   : > { %s2739_s26 = smul.u32 52, %s3472_s13  ;;  %v2780_v54 = vld [vmem:[%s3468_s1 + $0xe0] sm:$0xff]   ;;  %v2782_v58 = vld [vmem:[%s3468_s1 + $0xe8] sm:$0xff]   ;;  %v2785_v61 = vld [vmem:[%s3468_s1 + $0xf0] sm:$0xff]   ;;  %s2281_s18 = sshll.u32 %s3472_s13, 3 }
   0xf   : > { %2404 = vmatpush3.bf16.msra.mxu0 %v2754_v5  ;;  %v2786_v2 = vld [vmem:[%s3468_s1 + $0xb8] sm:$0xff]   ;;  %s170_s21 = scalar_lea.vmem %s3470_s3, %s2281_s18 }
  0x10   : > { %2440 = vmatpush3.bf16.msra.mxu1 %v2755_v6  ;;  %2405 = vmatprep.subr.bf16.mxu0 %v2857_v1  ;;  %s2929_s6 = scalar_lea.vmem %s3467_s0, %s2739_s26  ;;  %v2787_v3 = vld [vmem:[%s3468_s1 + $0xf8] sm:$0xff]  }
  0x11   : > { %2441 = vmatprep.subr.bf16.mxu1 %v2857_v1  ;;  %v173_v11 = vld [vmem:[%s2929_s6] sm:$0xf]  ;;  %v2941_v12 = vld [vmem:[%s2929_s6 + $0x4] sm:$0xf]  ;;  %v2948_v15 = vld [vmem:[%s2929_s6 + $0x8] sm:$0xff]  }
  0x12   : > { %v2064_v14 = vcombine.low %v173_v11, %v2941_v12  ;;  %v251_v21 = vshll.u32 %v2948_v15, 16  ;;  %v2971_v27 = vld [vmem:[%s2929_s6 + $0x10] sm:$0xff]   ;;  %v255_v30 = vshrl.u32 %v2948_v15, 16  ;;  %v2987_v33 = vld [vmem:[%s2929_s6 + $0x18] sm:$0xff]   ;;  %v3009_v42 = vld [vmem:[%s2929_s6 + $0x20] sm:$0xf] }
  0x13   : > { %2406 = vmatpush3.bf16.msra.mxu0 %v2756_v7  ;;  %v259_v31 = vshll.u32 %v2971_v27, 16  ;;  %v263_v39 = vshrl.u32 %v2971_v27, 16  ;;  %v267_v40 = vshll.u32 %v2987_v33, 16  ;;  %v199_v43 = vld [vmem:[%s2929_s6 + $0x24] sm:$0xf]  ;;  %v271_v52 = vshrl.u32 %v2987_v33, 16 }
  0x14   : > { %2442 = vmatpush3.bf16.msra.mxu1 %v2757_v8  ;;  %2407 = vmatprep.subr.bf16.mxu0 %v2857_v1  ;;  %v246_v17 = vshll.u32 %v2064_v14, 16  ;;  %v244_v19 = vshrl.u32 %v2064_v14, 16  ;;  %v253_v26 = vrot.slane %v251_v21, 1  ;;  %v3021_v48 = vcombine.low %v3009_v42, %v199_v43  ;;  %v182_v63 = vld [vmem:[%s2929_s6 + $0x24] sm:$0x7]  ;;  %v2790_v8 = vld [vmem:[%s2929_s6 + $0xc] sm:$0xff]  }
  0x15   : > { %2443 = vmatprep.subr.bf16.mxu1 %v2857_v1  ;;  %v261_v36 = vrot.slane %v259_v31, 1  ;;  %v269_v45 = vrot.slane %v267_v40, 1  ;;  %v537_v0 = vld [vmem:[%s2929_s6] sm:$0xe]  ;;  %v2077_v6 = vcombine.low %v3009_v42, %v182_v63  ;;  %v2789_v7 = vld [vmem:[%s2929_s6 + $0x4] sm:$0xfe]  }
  0x16   : > { %v248_v20 = vrot.slane %v246_v17, 1  ;;  %v257_v35 = vor.u32 %v255_v30, %v253_v26  ;;  %v275_v53 = vshll.u32 %v3021_v48, 16  ;;  %v279_v62 = vshrl.u32 %v3021_v48, 16  ;;  %v2794_v17 = vld [vmem:[%s3468_s1 + $0x140] sm:$0xff]   ;;  %v2796_v21 = vld [vmem:[%s3468_s1 + $0x148] sm:$0xff]   ;;  %v2801_v30 = vld [vmem:[%s3468_s1 + $0x158] sm:$0xff]  }
  0x17   : > { %2408 = vmatpush3.bf16.msra.mxu0 %v2758_v9  ;;  %v265_v47 = vor.u32 %v263_v39, %v261_v36  ;;  %v273_v55 = vor.u32 %v271_v52, %v269_v45  ;;  %v2102_v5 = vcombine.low %v537_v0, %v2941_v12  ;;  %v756_v11 = vrot.slane %v2789_v7, 1  ;;  %v2802_v31 = vld [vmem:[%s2929_s6 + $0x24] sm:$0xff]   ;;  %v2808_v52 = vld [vmem:[%s3468_s1 + $0x138] sm:$0xff]  }
  0x18   : > { %2444 = vmatpush3.bf16.msra.mxu1 %v2759_v10  ;;  %2409 = vmatprep.subr.bf16.mxu0 %v2857_v1  ;;  %v249_v25 = vor.u32 %v248_v20, %v244_v19  ;;  %v262_v41 = vsel %vm242_vm1, %v257_v35, %v261_v36  ;;  %v277_v56 = vrot.slane %v275_v53, 1  ;;  %v560_v10 = vrot.slane %v2948_v15, 1  ;;  %v2803_v35 = vld [vmem:[%s3468_s1 + $0x160] sm:$0xff]   ;;  %v902_v40 = vld [vmem:[%s2929_s6 + $0x8] sm:$0xf]  ;;  %v2809_v53 = vld [vmem:[%s3468_s1 + $0x178] sm:$0xff]  }
  0x19   : > { %2445 = vmatprep.subr.bf16.mxu1 %v2857_v1  ;;  %v270_v51 = vsel %vm242_vm1, %v265_v47, %v269_v45  ;;  %v559_v9 = vrot.slane %v2102_v5, 1  ;;  %v757_v12 = vrot.slane %v2790_v8, 1  ;;  %v562_v19 = vrot.slane %v2971_v27, 1  ;;  %v901_v39 = vld [vmem:[%s2929_s6 + $0x4] sm:$0xe]  ;;  %v2807_v47 = vld [vmem:[%s3468_s1 + $0x170] sm:$0xff]  }
  0x1a   : > { %v254_v29 = vsel %vm242_vm1, %v249_v25, %v253_v26  ;;  %v278_v59 = vsel %vm242_vm1, %v273_v55, %v277_v56  ;;  %v281_v4 = vor.u32 %v279_v62, %v277_v56  ;;  %v2797_v25 = vld [vmem:[%s2929_s6 + $0x1c] sm:$0xff]   ;;  %v2799_v26 = vld [vmem:[%s3468_s1 + $0x150] sm:$0xff]   ;;  %v566_v36 = vrot.slane %v3021_v48, 1 }
  0x1b   : > { %2410 = vmatpush3.bf16.msra.mxu0 %v2760_v13  ;;  %v561_v13 = vsel %vm558_vm2, %v559_v9, %v560_v10  ;;  %v2156_v43 = vcombine.low %v901_v39, %v902_v40  ;;  %v2813_v5 = vld [vmem:[%s3468_s1 + $0x180] sm:$0xff]  }
  0x1c   : > { %2446 = vmatpush3.bf16.msra.mxu1 %v2761_v16  ;;  %2411 = vmatprep.subr.bf16.mxu0 %v2857_v1  ;;  %v2793_v16 = vld [vmem:[%s2929_s6 + $0x14] sm:$0xff]   ;;  %v3209_v8 = vld [vmem:[%s2929_s6 + $0x1c] sm:$0xff]  }
  0x1d   : > { %2447 = vmatprep.subr.bf16.mxu1 %v2857_v1  ;;  %v759_v20 = vrot.slane %v2793_v16, 1  ;;  %v959_v48 = vshrl.u32 %v2156_v43, 16  ;;  %v2818_v16 = vld [vmem:[%s3468_s1 + $0x1c8] sm:$0xff]  }
  0x1f   : > { %2412 = vmatpush3.bf16.msra.mxu0 %v2762_v18  ;;  %v2792_v18 = vld [vmem:[%s3468_s1 + $0x108] sm:$0xff]   ;;  %v961_v55 = vrot.slane %v959_v48, 1  ;;  %v3294_v48 = vld [vmem:[%s2929_s6 + $0x10] sm:$0xff]  }
  0x20   : > { %2448 = vmatpush3.bf16.msra.mxu1 %v2763_v22  ;;  %2413 = vmatprep.subr.bf16.mxu0 %v2857_v1  ;;  %v563_v22 = vsel %vm558_vm2, %v560_v10, %v562_v19  ;;  %v2816_v10 = vld [vmem:[%s3468_s1 + $0x1c0] sm:$0xff]  }
  0x21   : > { %2449 = vmatprep.subr.bf16.mxu1 %v2857_v1 }
  0x23   : > { %2414 = vmatpush3.bf16.msra.mxu0 %v2764_v23  ;;  %v2795_v23 = vld [vmem:[%s3468_s1 + $0x110] sm:$0xff]  }
  0x24   : > { %2450 = vmatpush3.bf16.msra.mxu1 %v2765_v24  ;;  %2471 = vmatprep.subr.bf16.mxu0 %v2857_v1  ;;  %v760_v24 = vsel %vm558_vm2, %v757_v12, %v759_v20 }
  0x25   : > { %2507 = vmatprep.subr.bf16.mxu1 %v2857_v1 }
  0x26   : > { %2416 = vmatmul.mubr.bf16.vlgmr.msra.gmra.mrb[0].mxu0 %v254_v29  ;;  %v761_v29 = vrot.slane %v2797_v25, 1  ;;  %v2820_v25 = vld [vmem:[%s3468_s1 + $0x198] sm:$0xff]  }
  0x27   : > { %2452 = vmatmul.mubr.bf16.vlgmr.msra.gmra.mrb[0].mxu1 %v2064_v14  ;;  %2472 = vmatpush3.bf16.msra.mxu0 %v2768_v28  ;;  %v2791_v14 = vld [vmem:[%s3468_s1 + $0x100] sm:$0xff]   ;;  %v2798_v28 = vld [vmem:[%s3468_s1 + $0x118] sm:$0xff]  }
  0x28   : > { %2473 = vmatprep.subr.bf16.mxu0 %v2857_v1  ;;  %2419 = vmatprep.mubr.msk.bf16.mxu0 %vm2858_vm0, %v2857_v1 }
  0x29   : > { %2455 = vmatprep.mubr.msk.bf16.mxu1 %vm2858_vm0, %v2857_v1  ;;  %2508 = vmatpush3.bf16.msra.mxu1 %v2771_v32 }
  0x2a   : > { %2509 = vmatprep.subr.bf16.mxu1 %v2857_v1 }
  0x2b   : > { %2474 = vmatpush3.bf16.msra.mxu0 %v2769_v34  ;;  %v762_v34 = vsel %vm558_vm2, %v759_v20, %v761_v29 }
  0x2c   : > { %2475 = vmatprep.subr.bf16.mxu0 %v2857_v1 }
  0x2d   : > { %2510 = vmatpush3.bf16.msra.mxu1 %v2773_v37  ;;  %v763_v37 = vrot.slane %v2802_v31, 1  ;;  %v2822_v31 = vld [vmem:[%s3468_s1 + $0x1a0] sm:$0xff]  }
  0x2e   : > { %2420 = vmatmul.mubr.bf16.gmra.mrb[4].mxu0 %v262_v41  ;;  %2511 = vmatprep.subr.bf16.mxu1 %v2857_v1  ;;  %v2805_v41 = vld [vmem:[%s3468_s1 + $0x168] sm:$0xff]  }
  0x2f   : > { %2456 = vmatmul.mubr.bf16.gmra.mrb[4].mxu1 %v2948_v15  ;;  %2476 = vmatpush3.bf16.msra.mxu0 %v2772_v38  ;;  %v758_v15 = vsel %vm558_vm2, %v756_v11, %v757_v12  ;;  %v2804_v38 = vld [vmem:[%s3468_s1 + $0x128] sm:$0xff]   ;;  %v764_v45 = vsel %vm558_vm2, %v761_v29, %v763_v37  ;;  %v2823_v29 = vld [vmem:[%s3468_s1 + $0x1d8] sm:$0xff]  }
  0x30   : > { %2423 = vmatprep.mubr.msk.bf16.mxu0 %vm2858_vm0, %v2857_v1  ;;  %2459 = vmatprep.mubr.msk.bf16.mxu1 %vm2858_vm0, %v2857_v1  ;;  %v2814_v11 = vld [vmem:[%s3468_s1 + $0x188] sm:$0xff]  }
  0x31   : > { %2477 = vmatprep.subr.bf16.mxu0 %v2857_v1  ;;  %2512 = vmatpush3.bf16.msra.mxu1 %v2776_v44  ;;  %v3166_v44 = vld [vmem:[%s2929_s6 + $0xc] sm:$0xff]  }
  0x32   : > { %2513 = vmatprep.subr.bf16.mxu1 %v2857_v1 }
  0x33   : > { %2478 = vmatpush3.bf16.msra.mxu0 %v2775_v46  ;;  %v2806_v46 = vld [vmem:[%s3468_s1 + $0x130] sm:$0xff]  }
  0x34   : > { %2479 = vmatprep.subr.bf16.mxu0 %v2857_v1 }
  0x35   : > { %2514 = vmatpush3.bf16.msra.mxu1 %v2778_v49  ;;  %v962_v49 = vshll.u32 %v2156_v43, 16 }
  0x36   : > { %2424 = vmatmul.mubr.bf16.gmra.mrb[8].mxu0 %v270_v51  ;;  %2515 = vmatprep.subr.bf16.mxu1 %v2857_v1  ;;  %v970_v51 = vshll.u32 %v3166_v44, 16 }
  0x37   : > { %2460 = vmatmul.mubr.bf16.gmra.mrb[8].mxu1 %v2971_v27  ;;  %2480 = vmatpush3.bf16.msra.mxu0 %v2777_v50  ;;  %v564_v27 = vrot.slane %v2987_v33, 1  ;;  %v967_v50 = vshrl.u32 %v3166_v44, 16  ;;  %v964_v56 = vrot.slane %v962_v49, 2  ;;  %v2830_v49 = vld [vmem:[%s3468_s1 + $0x1f0] sm:$0xff]  }
  0x38   : > { %2427 = vmatprep.mubr.msk.bf16.mxu0 %vm2858_vm0, %v2857_v1  ;;  %2463 = vmatprep.mubr.msk.bf16.mxu1 %vm2858_vm0, %v2857_v1 }
  0x39   : > { %2481 = vmatprep.subr.bf16.mxu0 %v2857_v1  ;;  %2516 = vmatpush3.bf16.msra.mxu1 %v2780_v54  ;;  %v565_v32 = vsel %vm558_vm2, %v562_v19, %v564_v27  ;;  %v567_v42 = vsel %vm558_vm2, %v564_v27, %v566_v36  ;;  %v1143_v54 = vld [vmem:[%s2929_s6 + $0x4] sm:$0xc] }
  0x3a   : > { %2517 = vmatprep.subr.bf16.mxu1 %v2857_v1 }
  0x3b   : > { %2482 = vmatpush3.bf16.msra.mxu0 %v2781_v57  ;;  %v969_v57 = vrot.slane %v967_v50, 1 }
  0x3c   : > { %2483 = vmatprep.subr.bf16.mxu0 %v2857_v1 }
  0x3d   : > { %2518 = vmatpush3.bf16.msra.mxu1 %v2782_v58  ;;  %v972_v58 = vrot.slane %v970_v51, 2 }
  0x3e   : > { %2428 = vmatmul.mubr.bf16.gmra.mrb[12].mxu0 %v278_v59  ;;  %2519 = vmatprep.subr.bf16.mxu1 %v2857_v1  ;;  %v3193_v59 = vld [vmem:[%s2929_s6 + $0x14] sm:$0xff]  }
  0x3f   : > { %2464 = vmatmul.mubr.bf16.gmra.mrb[12].mxu1 %v2987_v33  ;;  %2431 = vmatprep.mubr.msk.bf16.mxu0 %vm2858_vm0, %v2857_v1  ;;  %v2800_v33 = vld [vmem:[%s3468_s1 + $0x120] sm:$0xff]   ;;  %v973_v62 = vor.u32 %v972_v58, %v969_v57  ;;  %v976_v63 = vshrl.u32 %v3193_v59, 16  ;;  %v979_v0 = vshll.u32 %v3193_v59, 16  ;;  %v2832_v57 = vld [vmem:[%s3468_s1 + $0x1f8] sm:$0xff]  }
  0x40   : > { %2467 = vmatprep.mubr.msk.bf16.mxu1 %vm2858_vm0, %v2857_v1  ;;  %2484 = vmatpush3.bf16.msra.mxu0 %v2783_v60  ;;  %v2186_v60 = vcombine.low %v1143_v54, %v902_v40  ;;  %v2827_v40 = vld [vmem:[%s3468_s1 + $0x1e8] sm:$0xff]  }
  0x41   : > { %2520 = vmatpush3.bf16.msra.mxu1 %v2785_v61  ;;  %2485 = vmatprep.subr.bf16.mxu0 %v2857_v1  ;;  %v965_v61 = vor.u32 %v964_v56, %v961_v55  ;;  %v981_v7 = vrot.slane %v979_v0, 2  ;;  %v1546_v55 = vshrl.u32 %v3294_v48, 16  ;;  %v1549_v56 = vshll.u32 %v3294_v48, 16  ;;  %v3317_v0 = vld [vmem:[%s2929_s6 + $0x18] sm:$0xff]  }
  0x42   : > { %2521 = vmatprep.subr.bf16.mxu1 %v2857_v1 }
  0x44   : > { %2486 = vmatpush3.bf16.msra.mxu0 %v2786_v2  ;;  %v1165_v2 = vrot.slane %v2186_v60, 2 }
  0x45   : > { %2522 = vmatpush3.bf16.msra.mxu1 %v2787_v3  ;;  %2543 = vmatprep.subr.bf16.mxu0 %v2857_v1  ;;  %v1166_v3 = vrot.slane %v3166_v44, 2 }
  0x46   : > { %2432 = vmatmul.mubr.bf16.gmra.mrb[16].mxu0 %v281_v4  ;;  %2579 = vmatprep.subr.bf16.mxu1 %v2857_v1  ;;  %v974_v4 = vsel %vm957_vm3, %v965_v61, %v973_v62 }
  0x47   : > { %2468 = vmatmul.mubr.bf16.gmra.mrb[16].mxu1 %v2077_v6  ;;  %2487 = vmatprep.mubr.msk.bf16.mxu0 %vm2858_vm0, %v2857_v1  ;;  %v978_v6 = vrot.slane %v976_v63, 1  ;;  %v1167_v9 = vsel %vm1164_vm4, %v1165_v2, %v1166_v3  ;;  %v1551_v63 = vrot.slane %v1549_v56, 3 }
  0x48   : > { %2523 = vmatprep.mubr.msk.bf16.mxu1 %vm2858_vm0, %v2857_v1 }
  0x49   : > { %v982_v12 = vor.u32 %v981_v7, %v978_v6  ;;  %v1555_v6 = vshrl.u32 %v3317_v0, 16  ;;  %v1558_v7 = vshll.u32 %v3317_v0, 16 }
  0x4e   : > { %2488 = vmatmul.mubr.bf16.vlgmr.msra.gmra.mrb[20].mxu0 %v561_v13  ;;  %v985_v13 = vshrl.u32 %v3209_v8, 16 }
  0x4f   : > { %2524 = vmatmul.mubr.bf16.vlgmr.msra.gmra.mrb[20].mxu1 %v758_v15  ;;  %2544 = vmatpush3.bf16.msra.mxu0 %v2791_v14  ;;  %v988_v14 = vshll.u32 %v3209_v8, 16  ;;  %v1168_v15 = vrot.slane %v3193_v59, 2 }
  0x50   : > { %2545 = vmatprep.subr.bf16.mxu0 %v2857_v1  ;;  %2491 = vmatprep.mubr.msk.bf16.mxu0 %vm2858_vm0, %v2857_v1  ;;  %v987_v19 = vrot.slane %v985_v13, 1  ;;  %v3334_v13 = vld [vmem:[%s2929_s6 + $0x20] sm:$0xff]  }
  0x51   : > { %2527 = vmatprep.mubr.msk.bf16.mxu1 %vm2858_vm0, %v2857_v1  ;;  %2580 = vmatpush3.bf16.msra.mxu1 %v2794_v17  ;;  %v983_v17 = vsel %vm957_vm3, %v973_v62, %v982_v12  ;;  %v990_v20 = vrot.slane %v988_v14, 2  ;;  %v1548_v62 = vrot.slane %v1546_v55, 2  ;;  %v2836_v14 = vld [vmem:[%s3468_s1 + $0x208] sm:$0xff]  }
  0x52   : > { %2581 = vmatprep.subr.bf16.mxu1 %v2857_v1 }
  0x53   : > { %2546 = vmatpush3.bf16.msra.mxu0 %v2792_v18  ;;  %v2817_v18 = vld [vmem:[%s3468_s1 + $0x190] sm:$0xff]  }
  0x54   : > { %2547 = vmatprep.subr.bf16.mxu0 %v2857_v1 }
  0x55   : > { %2582 = vmatpush3.bf16.msra.mxu1 %v2796_v21  ;;  %v3235_v21 = vld [vmem:[%s2929_s6 + $0x24] sm:$0xff]  }
  0x56   : > { %2492 = vmatmul.mubr.bf16.gmra.mrb[24].mxu0 %v563_v22  ;;  %2583 = vmatprep.subr.bf16.mxu1 %v2857_v1  ;;  %v1169_v22 = vsel %vm1164_vm4, %v1166_v3, %v1168_v15  ;;  %v997_v27 = vshll.u32 %v3235_v21, 16  ;;  %v1172_v39 = vrot.slane %v3235_v21, 2  ;;  %v1369_v3 = vrot.slane %v3294_v48, 2 }
  0x57   : > { %2528 = vmatmul.mubr.bf16.gmra.mrb[24].mxu1 %v760_v24  ;;  %2548 = vmatpush3.bf16.msra.mxu0 %v2795_v23  ;;  %v2821_v23 = vld [vmem:[%s3468_s1 + $0x1d0] sm:$0xff]   ;;  %v991_v24 = vor.u32 %v990_v20, %v987_v19 }
  0x58   : > { %2495 = vmatprep.mubr.msk.bf16.mxu0 %vm2858_vm0, %v2857_v1  ;;  %2531 = vmatprep.mubr.msk.bf16.mxu1 %vm2858_vm0, %v2857_v1  ;;  %v2838_v20 = vld [vmem:[%s3468_s1 + $0x210] sm:$0xff]  }
  0x59   : > { %2549 = vmatprep.subr.bf16.mxu0 %v2857_v1  ;;  %2584 = vmatpush3.bf16.msra.mxu1 %v2799_v26  ;;  %v994_v26 = vshrl.u32 %v3235_v21, 16 }
  0x5a   : > { %2585 = vmatprep.subr.bf16.mxu1 %v2857_v1 }
  0x5b   : > { %2550 = vmatpush3.bf16.msra.mxu0 %v2798_v28  ;;  %v1170_v28 = vrot.slane %v3209_v8, 2 }
  0x5c   : > { %2551 = vmatprep.subr.bf16.mxu0 %v2857_v1 }
  0x5d   : > { %2586 = vmatpush3.bf16.msra.mxu1 %v2801_v30  ;;  %v992_v30 = vsel %vm957_vm3, %v982_v12, %v991_v24  ;;  %v1560_v12 = vrot.slane %v1558_v7, 3 }
  0x5e   : > { %2496 = vmatmul.mubr.bf16.gmra.mrb[28].mxu0 %v565_v32  ;;  %2587 = vmatprep.subr.bf16.mxu1 %v2857_v1  ;;  %v996_v32 = vrot.slane %v994_v26, 1  ;;  %v2840_v26 = vld [vmem:[%s3468_s1 + $0x218] sm:$0xff]  }
  0x5f   : > { %2532 = vmatmul.mubr.bf16.gmra.mrb[28].mxu1 %v762_v34  ;;  %2552 = vmatpush3.bf16.msra.mxu0 %v2800_v33  ;;  %v999_v33 = vrot.slane %v997_v27, 2  ;;  %v1171_v34 = vsel %vm1164_vm4, %v1168_v15, %v1170_v28  ;;  %v1371_v15 = vrot.slane %v3317_v0, 2 }
  0x60   : > { %2499 = vmatprep.mubr.msk.bf16.mxu0 %vm2858_vm0, %v2857_v1  ;;  %2535 = vmatprep.mubr.msk.bf16.mxu1 %vm2858_vm0, %v2857_v1 }
  0x61   : > { %2553 = vmatprep.subr.bf16.mxu0 %v2857_v1  ;;  %2588 = vmatpush3.bf16.msra.mxu1 %v2803_v35  ;;  %v2825_v35 = vld [vmem:[%s3468_s1 + $0x1e0] sm:$0xff]   ;;  %v1372_v19 = vsel %vm1164_vm4, %v1369_v3, %v1371_v15 }
  0x62   : > { %2589 = vmatprep.subr.bf16.mxu1 %v2857_v1 }
  0x63   : > { %2554 = vmatpush3.bf16.msra.mxu0 %v2804_v38  ;;  %v2829_v38 = vld [vmem:[%s2929_s6 + $0x2c] ss:$0 sps:$4 sm:$0x11]  }
  0x64   : > { %2555 = vmatprep.subr.bf16.mxu0 %v2857_v1  ;;  %v1003_v44 = vshll.u32 %v2829_v38, 16  ;;  %v1174_v51 = vrot.slane %v2829_v38, 2 }
  0x65   : > { %2590 = vmatpush3.bf16.msra.mxu1 %v2805_v41  ;;  %v1312_v41 = vld [vmem:[%s2929_s6 + $0x8] sm:$0xc] }
  0x66   : > { %2500 = vmatmul.mubr.bf16.gmra.mrb[32].mxu0 %v567_v42  ;;  %2591 = vmatprep.subr.bf16.mxu1 %v2857_v1  ;;  %v3283_v42 = vld [vmem:[%s2929_s6 + $0xc] sm:$0xf]  ;;  %v1005_v50 = vrot.slane %v1003_v44, 2  ;;  %v1175_v59 = vsel %vm1164_vm4, %v1172_v39, %v1174_v51  ;;  %v2847_v51 = vld [vmem:[%s3468_s1 + $0x238] sm:$0xff]  }
  0x67   : > { %2536 = vmatmul.mubr.bf16.gmra.mrb[32].mxu1 %v764_v45  ;;  %2503 = vmatprep.mubr.msk.bf16.mxu0 %vm2858_vm0, %v2857_v1  ;;  %v1173_v45 = vsel %vm1164_vm4, %v1170_v28, %v1172_v39 }
  0x68   : > { %2539 = vmatprep.mubr.msk.bf16.mxu1 %vm2858_vm0, %v2857_v1  ;;  %2556 = vmatpush3.bf16.msra.mxu0 %v2806_v46  ;;  %v2828_v46 = vld [vmem:[%s3468_s1 + $0x1b0] sm:$0xff]  }
  0x69   : > { %2592 = vmatpush3.bf16.msra.mxu1 %v2807_v47  ;;  %2557 = vmatprep.subr.bf16.mxu0 %v2857_v1  ;;  %v2211_v47 = vcombine.low %v1312_v41, %v3283_v42 }
  0x6a   : > { %2593 = vmatprep.subr.bf16.mxu1 %v2857_v1 }
  0x6b   : > { %v1541_v54 = vshll.u32 %v2211_v47, 16  ;;  %v1368_v2 = vrot.slane %v2211_v47, 2 }
  0x6c   : > { %2558 = vmatpush3.bf16.msra.mxu0 %v2808_v52  ;;  %v2831_v52 = vld [vmem:[%s3468_s1 + $0x1b8] sm:$0xff]  }
  0x6d   : > { %2594 = vmatpush3.bf16.msra.mxu1 %v2809_v53  ;;  %2615 = vmatprep.subr.bf16.mxu0 %v2857_v1  ;;  %v1538_v53 = vshrl.u32 %v2211_v47, 16  ;;  %v1543_v61 = vrot.slane %v1541_v54, 3  ;;  %v1370_v8 = vsel %vm1164_vm4, %v1368_v2, %v1369_v3 }
  0x6e   : > { %2504 = vmatmul.mubr.bf16.gmra.mrb[36].mxu0 %v566_v36  ;;  %2651 = vmatprep.subr.bf16.mxu1 %v2857_v1  ;;  %v1000_v36 = vor.u32 %v999_v33, %v996_v32 }
  0x6f   : > { %2540 = vmatmul.mubr.bf16.gmra.mrb[36].mxu1 %v763_v37  ;;  %2559 = vmatprep.mubr.msk.bf16.mxu0 %vm2858_vm0, %v2857_v1  ;;  %v2826_v37 = vld [vmem:[%s3468_s1 + $0x1a8] sm:$0xff]   ;;  %v1540_v60 = vrot.slane %v1538_v53, 2 }
  0x70   : > { %2595 = vmatprep.mubr.msk.bf16.mxu1 %vm2858_vm0, %v2857_v1  ;;  %v1001_v43 = vsel %vm957_vm3, %v991_v24, %v1000_v36  ;;  %v1006_v58 = vsel %vm957_vm3, %v1000_v36, %v1005_v50  ;;  %v3355_v24 = vld [vmem:[%s2929_s6 + $0x28] sm:$0xff]  }
  0x71   : > { %v1573_v28 = vshrl.u32 %v3355_v24, 16  ;;  %v1375_v36 = vrot.slane %v3355_v24, 2 }
  0x73   : > { %v1575_v33 = vrot.slane %v1573_v28, 2 }
  0x76   : > { %2560 = vmatmul.mubr.bf16.vlgmr.msra.gmra.mrb[40].mxu0 %v974_v4  ;;  %v1544_v4 = vor.u32 %v1543_v61, %v1540_v60  ;;  %v1751_v61 = vrot.slane %v3317_v0, 3 }
  0x77   : > { %2596 = vmatmul.mubr.bf16.vlgmr.msra.gmra.mrb[40].mxu1 %v1167_v9  ;;  %2616 = vmatpush3.bf16.msra.mxu0 %v2813_v5  ;;  %v1552_v5 = vor.u32 %v1551_v63, %v1548_v62  ;;  %v2835_v9 = vld [vmem:[%s3468_s1 + $0x200] sm:$0xff]  }
  0x78   : > { %2617 = vmatprep.subr.bf16.mxu0 %v2857_v1  ;;  %2563 = vmatprep.mubr.msk.bf16.mxu0 %vm2858_vm0, %v2857_v1 }
  0x79   : > { %2599 = vmatprep.mubr.msk.bf16.mxu1 %vm2858_vm0, %v2857_v1  ;;  %2652 = vmatpush3.bf16.msra.mxu1 %v2816_v10  ;;  %v1553_v10 = vsel %vm1536_vm5, %v1544_v4, %v1552_v5 }
  0x7a   : > { %2653 = vmatprep.subr.bf16.mxu1 %v2857_v1 }
  0x7b   : > { %2618 = vmatpush3.bf16.msra.mxu0 %v2814_v11  ;;  %v1557_v11 = vrot.slane %v1555_v6, 2 }
  0x7c   : > { %2619 = vmatprep.subr.bf16.mxu0 %v2857_v1 }
  0x7d   : > { %2654 = vmatpush3.bf16.msra.mxu1 %v2818_v16  ;;  %v1561_v16 = vor.u32 %v1560_v12, %v1557_v11 }
  0x7e   : > { %2564 = vmatmul.mubr.bf16.gmra.mrb[44].mxu0 %v983_v17  ;;  %2655 = vmatprep.subr.bf16.mxu1 %v2857_v1  ;;  %v1564_v17 = vshrl.u32 %v3334_v13, 16 }
  0x7f   : > { %2600 = vmatmul.mubr.bf16.gmra.mrb[44].mxu1 %v1169_v22  ;;  %2620 = vmatpush3.bf16.msra.mxu0 %v2817_v18  ;;  %v1567_v18 = vshll.u32 %v3334_v13, 16  ;;  %v1562_v21 = vsel %vm1536_vm5, %v1552_v5, %v1561_v16 }
  0x80   : > { %2567 = vmatprep.mubr.msk.bf16.mxu0 %vm2858_vm0, %v2857_v1  ;;  %2603 = vmatprep.mubr.msk.bf16.mxu1 %vm2858_vm0, %v2857_v1  ;;  %v1566_v22 = vrot.slane %v1564_v17, 2 }
  0x81   : > { %2621 = vmatprep.subr.bf16.mxu0 %v2857_v1  ;;  %2656 = vmatpush3.bf16.msra.mxu1 %v2821_v23  ;;  %v1569_v23 = vrot.slane %v1567_v18, 3 }
  0x82   : > { %2657 = vmatprep.subr.bf16.mxu1 %v2857_v1 }
  0x83   : > { %2622 = vmatpush3.bf16.msra.mxu0 %v2820_v25  ;;  %v1373_v25 = vrot.slane %v3334_v13, 2  ;;  %v1570_v27 = vor.u32 %v1569_v23, %v1566_v22 }
  0x84   : > { %2623 = vmatprep.subr.bf16.mxu0 %v2857_v1 }
  0x85   : > { %2658 = vmatpush3.bf16.msra.mxu1 %v2823_v29  ;;  %v1576_v29 = vshll.u32 %v3355_v24, 16  ;;  %v1571_v32 = vsel %vm1536_vm5, %v1561_v16, %v1570_v27  ;;  %v1376_v41 = vsel %vm1164_vm4, %v1373_v25, %v1375_v36 }
  0x86   : > { %2568 = vmatmul.mubr.bf16.gmra.mrb[48].mxu0 %v992_v30  ;;  %2659 = vmatprep.subr.bf16.mxu1 %v2857_v1  ;;  %v1374_v30 = vsel %vm1164_vm4, %v1371_v15, %v1373_v25 }
  0x87   : > { %2604 = vmatmul.mubr.bf16.gmra.mrb[48].mxu1 %v1171_v34  ;;  %2624 = vmatpush3.bf16.msra.mxu0 %v2822_v31  ;;  %v2841_v31 = vld [vmem:[%s3468_s1 + $0x220] sm:$0xff]   ;;  %v1578_v34 = vrot.slane %v1576_v29, 3 }
  0x88   : > { %2571 = vmatprep.mubr.msk.bf16.mxu0 %vm2858_vm0, %v2857_v1  ;;  %2607 = vmatprep.mubr.msk.bf16.mxu1 %vm2858_vm0, %v2857_v1 }
  0x89   : > { %2625 = vmatprep.subr.bf16.mxu0 %v2857_v1  ;;  %2660 = vmatpush3.bf16.msra.mxu1 %v2825_v35  ;;  %v3377_v35 = vld [vmem:[%s2929_s6 + $0x30] ss:$0 sps:$4 sm:$0x33]   ;;  %v1579_v38 = vor.u32 %v1578_v34, %v1575_v33 }
  0x8a   : > { %2661 = vmatprep.subr.bf16.mxu1 %v2857_v1  ;;  %v1582_v39 = vshrl.u32 %v3377_v35, 16 }
  0x8b   : > { %2626 = vmatpush3.bf16.msra.mxu0 %v2826_v37  ;;  %v2843_v37 = vld [vmem:[%s3468_s1 + $0x228] sm:$0xff]   ;;  %v1580_v44 = vsel %vm1536_vm5, %v1570_v27, %v1579_v38 }
  0x8c   : > { %2627 = vmatprep.subr.bf16.mxu0 %v2857_v1 }
  0x8d   : > { %2662 = vmatpush3.bf16.msra.mxu1 %v2827_v40  ;;  %v1585_v40 = vshll.u32 %v3377_v35, 16 }
  0x8e   : > { %2572 = vmatmul.mubr.bf16.gmra.mrb[52].mxu0 %v1001_v43  ;;  %2663 = vmatprep.subr.bf16.mxu1 %v2857_v1  ;;  %v2845_v43 = vld [vmem:[%s2929_s6 + $0x30] ss:$0 sps:$4 sm:$0x11]  }
  0x8f   : > { %2608 = vmatmul.mubr.bf16.gmra.mrb[52].mxu1 %v1173_v45  ;;  %2575 = vmatprep.mubr.msk.bf16.mxu0 %vm2858_vm0, %v2857_v1  ;;  %v2844_v45 = vld [vmem:[%s3468_s1 + $0x230] sm:$0xff]   ;;  %v1587_v47 = vrot.slane %v1585_v40, 3 }
  0x90   : > { %2611 = vmatprep.mubr.msk.bf16.mxu1 %vm2858_vm0, %v2857_v1  ;;  %2628 = vmatpush3.bf16.msra.mxu0 %v2828_v46  ;;  %v1584_v46 = vrot.slane %v1582_v39, 2 }
  0x91   : > { %2664 = vmatpush3.bf16.msra.mxu1 %v2830_v49  ;;  %2629 = vmatprep.subr.bf16.mxu0 %v2857_v1  ;;  %v1377_v49 = vrot.slane %v2845_v43, 2 }
  0x92   : > { %2665 = vmatprep.subr.bf16.mxu1 %v2857_v1  ;;  %v1588_v50 = vor.u32 %v1587_v47, %v1584_v46 }
  0x93   : > { %v1378_v53 = vsel %vm1164_vm4, %v1375_v36, %v1377_v49 }
  0x94   : > { %2630 = vmatpush3.bf16.msra.mxu0 %v2831_v52  ;;  %v1726_v52 = vld [vmem:[%s2929_s6 + $0x8] sm:$0x8]  ;;  %v1589_v55 = vsel %vm1536_vm5, %v1579_v38, %v1588_v50 }
  0x95   : > { %2666 = vmatpush3.bf16.msra.mxu1 %v2832_v57  ;;  %2687 = vmatprep.subr.bf16.mxu0 %v2857_v1  ;;  %v2266_v54 = vcombine.low %v1726_v52, %v3283_v42  ;;  %v1749_v57 = vrot.slane %v3294_v48, 3  ;;  %v1755_v42 = vrot.slane %v3355_v24, 3  ;;  %v1757_v48 = vrot.slane %v3377_v35, 3 }
  0x96   : > { %2576 = vmatmul.mubr.bf16.gmra.mrb[56].mxu0 %v1006_v58  ;;  %2723 = vmatprep.subr.bf16.mxu1 %v2857_v1  ;;  %v1753_v58 = vrot.slane %v3334_v13, 3 }
  0x97   : > { %2612 = vmatmul.mubr.bf16.gmra.mrb[56].mxu1 %v1175_v59  ;;  %2631 = vmatprep.mubr.msk.bf16.mxu0 %vm2858_vm0, %v2857_v1  ;;  %v1748_v56 = vrot.slane %v2266_v54, 3  ;;  %v1752_v62 = vsel %vm1747_vm6, %v1749_v57, %v1751_v61  ;;  %v1758_v63 = vsel %vm1747_vm6, %v1755_v42, %v1757_v48 }
  0x98   : > { %2667 = vmatprep.mubr.msk.bf16.mxu1 %vm2858_vm0, %v2857_v1  ;;  %v1756_v60 = vsel %vm1747_vm6, %v1753_v58, %v1755_v42  ;;  %v1754_v2 = vsel %vm1747_vm6, %v1751_v61, %v1753_v58 }
  0x99   : > { %v1750_v59 = vsel %vm1747_vm6, %v1748_v56, %v1749_v57 }
  0x9e   : > { %2632 = vmatmul.mubr.bf16.vlgmr.msra.gmra.mrb[60].mxu0 %v1370_v8 }
  0x9f   : > { %2668 = vmatmul.mubr.bf16.vlgmr.msra.gmra.mrb[60].mxu1 %v1553_v10  ;;  %2688 = vmatpush3.bf16.msra.mxu0 %v2835_v9 }
  0xa0   : > { %2689 = vmatprep.subr.bf16.mxu0 %v2857_v1  ;;  %2635 = vmatprep.mubr.msk.bf16.mxu0 %vm2858_vm0, %v2857_v1 }
  0xa1   : > { %2671 = vmatprep.mubr.msk.bf16.mxu1 %vm2858_vm0, %v2857_v1  ;;  %2731 = vmatpush3.bf16.msra.mxu1 %v2835_v9 }
  0xa2   : > { %2724 = vmatprep.subr.bf16.mxu1 %v2857_v1 }
  0xa3   : > { %2690 = vmatpush3.bf16.msra.mxu0 %v2836_v14 }
  0xa4   : > { %2691 = vmatprep.subr.bf16.mxu0 %v2857_v1 }
  0xa5   : > { %2732 = vmatpush3.bf16.msra.mxu1 %v2836_v14 }
  0xa6   : > { %2636 = vmatmul.mubr.bf16.gmra.mrb[64].mxu0 %v1372_v19  ;;  %2725 = vmatprep.subr.bf16.mxu1 %v2857_v1 }
  0xa7   : > { %2672 = vmatmul.mubr.bf16.gmra.mrb[64].mxu1 %v1562_v21  ;;  %2692 = vmatpush3.bf16.msra.mxu0 %v2838_v20 }
  0xa8   : > { %2639 = vmatprep.mubr.msk.bf16.mxu0 %vm2858_vm0, %v2857_v1  ;;  %2675 = vmatprep.mubr.msk.bf16.mxu1 %vm2858_vm0, %v2857_v1 }
  0xa9   : > { %2693 = vmatprep.subr.bf16.mxu0 %v2857_v1  ;;  %2733 = vmatpush3.bf16.msra.mxu1 %v2838_v20 }
  0xaa   : > { %2726 = vmatprep.subr.bf16.mxu1 %v2857_v1 }
  0xab   : > { %2694 = vmatpush3.bf16.msra.mxu0 %v2840_v26 }
  0xac   : > { %2695 = vmatprep.subr.bf16.mxu0 %v2857_v1 }
  0xad   : > { %2734 = vmatpush3.bf16.msra.mxu1 %v2840_v26 }
  0xae   : > { %2640 = vmatmul.mubr.bf16.gmra.mrb[68].mxu0 %v1374_v30  ;;  %2727 = vmatprep.subr.bf16.mxu1 %v2857_v1 }
  0xaf   : > { %2676 = vmatmul.mubr.bf16.gmra.mrb[68].mxu1 %v1571_v32  ;;  %2696 = vmatpush3.bf16.msra.mxu0 %v2841_v31 }
  0xb0   : > { %2643 = vmatprep.mubr.msk.bf16.mxu0 %vm2858_vm0, %v2857_v1  ;;  %2679 = vmatprep.mubr.msk.bf16.mxu1 %vm2858_vm0, %v2857_v1 }
  0xb1   : > { %2735 = vmatpush3.bf16.msra.mxu1 %v2841_v31  ;;  %2697 = vmatprep.subr.bf16.mxu0 %v2857_v1 }
  0xb2   : > { %2728 = vmatprep.subr.bf16.mxu1 %v2857_v1 }
  0xb3   : > { %2698 = vmatpush3.bf16.msra.mxu0 %v2843_v37 }
  0xb4   : > { %2699 = vmatprep.subr.bf16.mxu0 %v2857_v1 }
  0xb5   : > { %2736 = vmatpush3.bf16.msra.mxu1 %v2843_v37 }
  0xb6   : > { %2644 = vmatmul.mubr.bf16.gmra.mrb[72].mxu0 %v1376_v41  ;;  %2729 = vmatprep.subr.bf16.mxu1 %v2857_v1 }
  0xb7   : > { %2680 = vmatmul.mubr.bf16.gmra.mrb[72].mxu1 %v1580_v44  ;;  %2647 = vmatprep.mubr.msk.bf16.mxu0 %vm2858_vm0, %v2857_v1 }
  0xb8   : > { %2683 = vmatprep.mubr.msk.bf16.mxu1 %vm2858_vm0, %v2857_v1  ;;  %2700 = vmatpush3.bf16.msra.mxu0 %v2844_v45 }
  0xb9   : > { %2737 = vmatpush3.bf16.msra.mxu1 %v2844_v45  ;;  %2701 = vmatprep.subr.bf16.mxu0 %v2857_v1 }
  0xba   : > { %2730 = vmatprep.subr.bf16.mxu1 %v2857_v1 }
  0xbc   : > { %2702 = vmatpush3.bf16.msra.mxu0 %v2847_v51 }
  0xbd   : > { %2738 = vmatpush3.bf16.msra.mxu1 %v2847_v51 }
  0xbe   : > { %2648 = vmatmul.mubr.bf16.gmra.mrb[76].mxu0 %v1378_v53 }
  0xbf   : > { %2684 = vmatmul.mubr.bf16.gmra.mrb[76].mxu1 %v1589_v55  ;;  %2703 = vmatprep.mubr.msk.bf16.mxu0 %vm2858_vm0, %v2857_v1 }
  0xc0   : > { %2715 = vmatprep.mubr.msk.bf16.mxu1 %vm2858_vm0, %v2857_v1 }
  0xc6   : > { %2704 = vmatmul.mubr.bf16.vlgmr.msra.gmra.mrb[80].mxu0 %v1750_v59 }
  0xc7   : > { %2716 = vmatmul.mubr.bf16.vlgmr.msra.gmra.mrb[80].mxu1 %v1756_v60  ;;  %2707 = vmatprep.mubr.msk.bf16.mxu0 %vm2858_vm0, %v2857_v1 }
  0xc8   : > { %2719 = vmatprep.mubr.msk.bf16.mxu1 %vm2858_vm0, %v2857_v1 }
  0xce   : > { %2708 = vmatmul.mubr.bf16.gmra.mrb[84].mxu0 %v1752_v62 }
  0xcf   : > { %2720 = vmatmul.mubr.bf16.gmra.mrb[84].mxu1 %v1758_v63  ;;  %2711 = vmatprep.mubr.msk.bf16.mxu0 %vm2858_vm0, %v2857_v1 }
  0xd6   : > { %2712 = vmatmul.mubr.bf16.gmra.mrb[88].mxu0 %v1754_v2 }
  0xf9   : > { %v369_v3 = vpop.f32.mrb[0].mxu0 }
  0xfa   : > { %v498_v4 = vpop.f32.mrb[0].mxu1  ;;  %v2417_v0 = vpop.f32.mrb[1].mxu0 }
  0xfb   : > { %v499_v5 = vadd.f32 %v498_v4, %v369_v3  ;;  %v2453_v6 = vpop.f32.mrb[1].mxu1  ;;  %v372_v7 = vpop.f32.mrb[2].mxu0 }
  0xfc   : > { %v501_v8 = vpop.f32.mrb[2].mxu1  ;;  %v2418_v9 = vpop.f32.mrb[3].mxu0 }
  0xfd   : > { %v502_v10 = vadd.f32 %v501_v8, %v372_v7  ;;  %v2454_v11 = vpop.f32.mrb[3].mxu1 }
 0x101   : > { %v377_v12 = vpop.f32.mrb[4].mxu0 }
 0x102   : > { %v506_v13 = vpop.f32.mrb[4].mxu1  ;;  %v2421_v14 = vpop.f32.mrb[5].mxu0 }
 0x103   : > { %v507_v15 = vadd.f32 %v506_v13, %v377_v12  ;;  %v2457_v16 = vpop.f32.mrb[5].mxu1  ;;  %v380_v17 = vpop.f32.mrb[6].mxu0 }
 0x104   : > { %v509_v1 = vpop.f32.mrb[6].mxu1  ;;  %v2422_v18 = vpop.f32.mrb[7].mxu0 }
 0x105   : > { %v510_v19 = vadd.f32 %v509_v1, %v380_v17  ;;  %v2458_v20 = vpop.f32.mrb[7].mxu1 }
 0x109   : > { %v385_v21 = vpop.f32.mrb[8].mxu0 }
 0x10a   : > { %v514_v22 = vpop.f32.mrb[8].mxu1  ;;  %v2425_v23 = vpop.f32.mrb[9].mxu0 }
 0x10b   : > { %v515_v24 = vadd.f32 %v514_v22, %v385_v21  ;;  %v2461_v25 = vpop.f32.mrb[9].mxu1  ;;  %v388_v26 = vpop.f32.mrb[10].mxu0 }
 0x10c   : > { %v517_v27 = vpop.f32.mrb[10].mxu1  ;;  %v2426_v28 = vpop.f32.mrb[11].mxu0 }
 0x10d   : > { %v518_v29 = vadd.f32 %v517_v27, %v388_v26  ;;  %v2462_v30 = vpop.f32.mrb[11].mxu1 }
 0x111   : > { %v393_v31 = vpop.f32.mrb[12].mxu0 }
 0x112   : > { %v522_v32 = vpop.f32.mrb[12].mxu1  ;;  %v2429_v33 = vpop.f32.mrb[13].mxu0 }
 0x113   : > { %v523_v34 = vadd.f32 %v522_v32, %v393_v31  ;;  %v2465_v35 = vpop.f32.mrb[13].mxu1  ;;  %v396_v36 = vpop.f32.mrb[14].mxu0 }
 0x114   : > { %v525_v37 = vpop.f32.mrb[14].mxu1  ;;  %v2430_v38 = vpop.f32.mrb[15].mxu0 }
 0x115   : > { %v526_v39 = vadd.f32 %v525_v37, %v396_v36  ;;  %v2466_v40 = vpop.f32.mrb[15].mxu1 }
 0x119   : > { %v401_v41 = vpop.f32.mrb[16].mxu0 }
 0x11a   : > { %v530_v43 = vpop.f32.mrb[16].mxu1  ;;  %v2433_v44 = vpop.f32.mrb[17].mxu0 }
 0x11b   : > { %v531_v45 = vadd.f32 %v530_v43, %v401_v41  ;;  %v2469_v46 = vpop.f32.mrb[17].mxu1  ;;  %v404_v47 = vpop.f32.mrb[18].mxu0 }
 0x11c   : > { %v533_v49 = vpop.f32.mrb[18].mxu1  ;;  %v2434_v50 = vpop.f32.mrb[19].mxu0 }
 0x11d   : > { %v534_v51 = vadd.f32 %v533_v49, %v404_v47  ;;  %v2470_v52 = vpop.f32.mrb[19].mxu1 }
 0x121   : > { %v655_v53 = vpop.f32.mrb[20].mxu0 }
 0x122   : > { %v694_v54 = vadd.f32 %v655_v53, %v499_v5  ;;  %v2489_v55 = vpop.f32.mrb[21].mxu0  ;;  %v852_v56 = vpop.f32.mrb[20].mxu1 }
 0x123   : > { %v658_v57 = vpop.f32.mrb[22].mxu0  ;;  %v2525_v58 = vpop.f32.mrb[21].mxu1 }
 0x124   : > { %v695_v42 = vadd.f32 %v658_v57, %v502_v10  ;;  %v891_v59 = vadd.f32 %v852_v56, %v694_v54  ;;  %v2490_v60 = vpop.f32.mrb[23].mxu0  ;;  %v855_v61 = vpop.f32.mrb[22].mxu1 }
 0x125   : > { %v2526_v48 = vpop.f32.mrb[23].mxu1 }
 0x126   : > { %v892_v62 = vadd.f32 %v855_v61, %v695_v42 }
 0x129   : > { %v663_v63 = vpop.f32.mrb[24].mxu0 }
 0x12a   : > { %v696_v2 = vadd.f32 %v663_v63, %v507_v15  ;;  %v2493_v3 = vpop.f32.mrb[25].mxu0  ;;  %v860_v4 = vpop.f32.mrb[24].mxu1 }
 0x12b   : > { %v666_v0 = vpop.f32.mrb[26].mxu0  ;;  %v2529_v6 = vpop.f32.mrb[25].mxu1 }
 0x12c   : > { %v697_v7 = vadd.f32 %v666_v0, %v510_v19  ;;  %v893_v8 = vadd.f32 %v860_v4, %v696_v2  ;;  %v2494_v9 = vpop.f32.mrb[27].mxu0  ;;  %v863_v5 = vpop.f32.mrb[26].mxu1 }
 0x12d   : > { %v2530_v11 = vpop.f32.mrb[27].mxu1 }
 0x12e   : > { %v894_v12 = vadd.f32 %v863_v5, %v697_v7 }
 0x131   : > { %v671_v13 = vpop.f32.mrb[28].mxu0 }
 0x132   : > { %v698_v14 = vadd.f32 %v671_v13, %v515_v24  ;;  %v2497_v10 = vpop.f32.mrb[29].mxu0  ;;  %v868_v16 = vpop.f32.mrb[28].mxu1 }
 0x133   : > { %v674_v17 = vpop.f32.mrb[30].mxu0  ;;  %v2533_v1 = vpop.f32.mrb[29].mxu1 }
 0x134   : > { %v699_v18 = vadd.f32 %v674_v17, %v518_v29  ;;  %v895_v20 = vadd.f32 %v868_v16, %v698_v14  ;;  %v2498_v21 = vpop.f32.mrb[31].mxu0  ;;  %v871_v15 = vpop.f32.mrb[30].mxu1 }
 0x135   : > { %v2534_v22 = vpop.f32.mrb[31].mxu1 }
 0x136   : > { %v896_v23 = vadd.f32 %v871_v15, %v699_v18 }
 0x139   : > { %v679_v25 = vpop.f32.mrb[32].mxu0 }
 0x13a   : > { %v700_v26 = vadd.f32 %v679_v25, %v523_v34  ;;  %v2501_v19 = vpop.f32.mrb[33].mxu0  ;;  %v876_v27 = vpop.f32.mrb[32].mxu1 }
 0x13b   : > { %v682_v28 = vpop.f32.mrb[34].mxu0  ;;  %v2537_v30 = vpop.f32.mrb[33].mxu1 }
 0x13c   : > { %v701_v31 = vadd.f32 %v682_v28, %v526_v39  ;;  %v897_v32 = vadd.f32 %v876_v27, %v700_v26  ;;  %v2502_v33 = vpop.f32.mrb[35].mxu0  ;;  %v879_v24 = vpop.f32.mrb[34].mxu1 }
 0x13d   : > { %v2538_v35 = vpop.f32.mrb[35].mxu1 }
 0x13e   : > { %v898_v36 = vadd.f32 %v879_v24, %v701_v31 }
 0x141   : > { %v687_v37 = vpop.f32.mrb[36].mxu0 }
 0x142   : > { %v702_v38 = vadd.f32 %v687_v37, %v531_v45  ;;  %v2505_v29 = vpop.f32.mrb[37].mxu0  ;;  %v884_v40 = vpop.f32.mrb[36].mxu1 }
 0x143   : > { %v690_v41 = vpop.f32.mrb[38].mxu0  ;;  %v2541_v43 = vpop.f32.mrb[37].mxu1 }
 0x144   : > { %v703_v44 = vadd.f32 %v690_v41, %v534_v51  ;;  %v899_v46 = vadd.f32 %v884_v40, %v702_v38  ;;  %v2506_v47 = vpop.f32.mrb[39].mxu0  ;;  %v887_v34 = vpop.f32.mrb[38].mxu1 }
 0x145   : > { %v2542_v49 = vpop.f32.mrb[39].mxu1 }
 0x146   : > { %v900_v50 = vadd.f32 %v887_v34, %v703_v44 }
 0x149   : > { %v1094_v52 = vpop.f32.mrb[40].mxu0 }
 0x14a   : > { %v1133_v53 = vadd.f32 %v1094_v52, %v891_v59  ;;  %v2561_v39 = vpop.f32.mrb[41].mxu0  ;;  %v1263_v54 = vpop.f32.mrb[40].mxu1 }
 0x14b   : > { %v1097_v55 = vpop.f32.mrb[42].mxu0  ;;  %v2597_v56 = vpop.f32.mrb[41].mxu1 }
 0x14c   : > { %v1134_v57 = vadd.f32 %v1097_v55, %v892_v62  ;;  %v1302_v58 = vadd.f32 %v1263_v54, %v1133_v53  ;;  %v2562_v42 = vpop.f32.mrb[43].mxu0  ;;  %v1266_v45 = vpop.f32.mrb[42].mxu1 }
 0x14d   : > { %v2598_v60 = vpop.f32.mrb[43].mxu1 }
 0x14e   : > { %v1303_v61 = vadd.f32 %v1266_v45, %v1134_v57 }
 0x151   : > { %v1102_v48 = vpop.f32.mrb[44].mxu0 }
 0x152   : > { %v1135_v63 = vadd.f32 %v1102_v48, %v893_v8  ;;  %v2565_v51 = vpop.f32.mrb[45].mxu0  ;;  %v1271_v2 = vpop.f32.mrb[44].mxu1 }
 0x153   : > { %v1105_v3 = vpop.f32.mrb[46].mxu0  ;;  %v2601_v4 = vpop.f32.mrb[45].mxu1 }
 0x154   : > { %v1136_v0 = vadd.f32 %v1105_v3, %v894_v12  ;;  %v1304_v6 = vadd.f32 %v1271_v2, %v1135_v63  ;;  %v2566_v7 = vpop.f32.mrb[47].mxu0  ;;  %v1274_v59 = vpop.f32.mrb[46].mxu1 }
 0x155   : > { %v2602_v9 = vpop.f32.mrb[47].mxu1 }
 0x156   : > { %v1305_v5 = vadd.f32 %v1274_v59, %v1136_v0 }
 0x159   : > { %v1110_v11 = vpop.f32.mrb[48].mxu0 }
 0x15a   : > { %v1137_v13 = vadd.f32 %v1110_v11, %v895_v20  ;;  %v2569_v62 = vpop.f32.mrb[49].mxu0  ;;  %v1279_v14 = vpop.f32.mrb[48].mxu1 }
 0x15b   : > { %v1113_v10 = vpop.f32.mrb[50].mxu0  ;;  %v2605_v16 = vpop.f32.mrb[49].mxu1 }
 0x15c   : > { %v1138_v17 = vadd.f32 %v1113_v10, %v896_v23  ;;  %v1306_v1 = vadd.f32 %v1279_v14, %v1137_v13  ;;  %v2570_v18 = vpop.f32.mrb[51].mxu0  ;;  %v1282_v8 = vpop.f32.mrb[50].mxu1 }
 0x15d   : > { %v2606_v21 = vpop.f32.mrb[51].mxu1 }
 0x15e   : > { %v1307_v15 = vadd.f32 %v1282_v8, %v1138_v17 }
 0x161   : > { %v1118_v22 = vpop.f32.mrb[52].mxu0 }
 0x162   : > { %v1139_v25 = vadd.f32 %v1118_v22, %v897_v32  ;;  %v2573_v12 = vpop.f32.mrb[53].mxu0  ;;  %v1287_v26 = vpop.f32.mrb[52].mxu1 }
 0x163   : > { %v1121_v19 = vpop.f32.mrb[54].mxu0  ;;  %v2609_v27 = vpop.f32.mrb[53].mxu1 }
 0x164   : > { %v1140_v28 = vadd.f32 %v1121_v19, %v898_v36  ;;  %v1308_v30 = vadd.f32 %v1287_v26, %v1139_v25  ;;  %v2574_v31 = vpop.f32.mrb[55].mxu0  ;;  %v1290_v20 = vpop.f32.mrb[54].mxu1 }
 0x165   : > { %v2610_v33 = vpop.f32.mrb[55].mxu1 }
 0x166   : > { %v1309_v24 = vadd.f32 %v1290_v20, %v1140_v28 }
 0x169   : > { %v1126_v35 = vpop.f32.mrb[56].mxu0 }
 0x16a   : > { %v1141_v37 = vadd.f32 %v1126_v35, %v899_v46  ;;  %v2577_v23 = vpop.f32.mrb[57].mxu0  ;;  %v1295_v38 = vpop.f32.mrb[56].mxu1 }
 0x16b   : > { %v1129_v29 = vpop.f32.mrb[58].mxu0  ;;  %v2613_v40 = vpop.f32.mrb[57].mxu1 }
 0x16c   : > { %v1142_v41 = vadd.f32 %v1129_v29, %v900_v50  ;;  %v1310_v43 = vadd.f32 %v1295_v38, %v1141_v37  ;;  %v2578_v44 = vpop.f32.mrb[59].mxu0  ;;  %v1298_v32 = vpop.f32.mrb[58].mxu1 }
 0x16d   : > { %v2614_v47 = vpop.f32.mrb[59].mxu1 }
 0x16e   : > { %v1311_v34 = vadd.f32 %v1298_v32, %v1142_v41 }
 0x171   : > { %v1466_v49 = vpop.f32.mrb[60].mxu0 }
 0x172   : > { %v1505_v52 = vadd.f32 %v1466_v49, %v1302_v58  ;;  %v2633_v36 = vpop.f32.mrb[61].mxu0  ;;  %v1677_v53 = vpop.f32.mrb[60].mxu1 }
 0x173   : > { %v1469_v39 = vpop.f32.mrb[62].mxu0  ;;  %v2669_v54 = vpop.f32.mrb[61].mxu1 }
 0x174   : > { %v1506_v55 = vadd.f32 %v1469_v39, %v1303_v61  ;;  %v1716_v56 = vadd.f32 %v1677_v53, %v1505_v52  ;;  %v2634_v57 = vpop.f32.mrb[63].mxu0  ;;  %v1680_v46 = vpop.f32.mrb[62].mxu1 }
 0x175   : > { %v2670_v42 = vpop.f32.mrb[63].mxu1 }
 0x176   : > { %v1717_v45 = vadd.f32 %v1680_v46, %v1506_v55 }
 0x179   : > { %v1474_v60 = vpop.f32.mrb[64].mxu0 }
 0x17a   : > { %v1507_v48 = vadd.f32 %v1474_v60, %v1304_v6  ;;  %v2637_v50 = vpop.f32.mrb[65].mxu0  ;;  %v1685_v63 = vpop.f32.mrb[64].mxu1 }
 0x17b   : > { %v1477_v51 = vpop.f32.mrb[66].mxu0  ;;  %v2673_v2 = vpop.f32.mrb[65].mxu1 }
 0x17c   : > { %v1508_v3 = vadd.f32 %v1477_v51, %v1305_v5  ;;  %v3433_v4 = vadd.f32 %v1685_v63, %v1507_v48  ;;  %v2638_v58 = vpop.f32.mrb[67].mxu0  ;;  %v1688_v0 = vpop.f32.mrb[66].mxu1 }
 0x17d   : > { %v2674_v7 = vpop.f32.mrb[67].mxu1 }
 0x17e   : > { %v3435_v59 = vadd.f32 %v1688_v0, %v1508_v3 }
 0x181   : > { %v1482_v61 = vpop.f32.mrb[68].mxu0 }
 0x182   : > { %v1509_v9 = vadd.f32 %v1482_v61, %v1306_v1  ;;  %v2641_v11 = vpop.f32.mrb[69].mxu0  ;;  %v1693_v13 = vpop.f32.mrb[68].mxu1 }
 0x183   : > { %v1485_v62 = vpop.f32.mrb[70].mxu0  ;;  %v2677_v14 = vpop.f32.mrb[69].mxu1 }
 0x184   : > { %v1510_v10 = vadd.f32 %v1485_v62, %v1307_v15  ;;  %v3437_v6 = vadd.f32 %v1693_v13, %v1509_v9  ;;  %v2642_v16 = vpop.f32.mrb[71].mxu0  ;;  %v1696_v17 = vpop.f32.mrb[70].mxu1 }
 0x185   : > { %v2678_v18 = vpop.f32.mrb[71].mxu1 }
 0x186   : > { %v3439_v5 = vadd.f32 %v1696_v17, %v1510_v10 }
 0x189   : > { %v1490_v8 = vpop.f32.mrb[72].mxu0 }
 0x18a   : > { %v1511_v21 = vadd.f32 %v1490_v8, %v1308_v30  ;;  %v2645_v22 = vpop.f32.mrb[73].mxu0  ;;  %v1701_v25 = vpop.f32.mrb[72].mxu1 }
 0x18b   : > { %v1493_v12 = vpop.f32.mrb[74].mxu0  ;;  %v2681_v26 = vpop.f32.mrb[73].mxu1 }
 0x18c   : > { %v1512_v19 = vadd.f32 %v1493_v12, %v1309_v24  ;;  %v1722_v1 = vadd.f32 %v1701_v25, %v1511_v21  ;;  %v2646_v27 = vpop.f32.mrb[75].mxu0  ;;  %v1704_v28 = vpop.f32.mrb[74].mxu1  ;;  %v3444_v24 = vld [vmem:[%s3469_s2] ss:$0 sm:$0xff] }
 0x18d   : > { %v2682_v31 = vpop.f32.mrb[75].mxu1 }
 0x18e   : > { %v1723_v20 = vadd.f32 %v1704_v28, %v1512_v19 }
 0x191   : > { %v1498_v15 = vpop.f32.mrb[76].mxu0 }
 0x192   : > { %v1513_v33 = vadd.f32 %v1498_v15, %v1310_v43  ;;  %v2649_v35 = vpop.f32.mrb[77].mxu0  ;;  %v1709_v37 = vpop.f32.mrb[76].mxu1 }
 0x193   : > { %v1501_v23 = vpop.f32.mrb[78].mxu0  ;;  %v2685_v38 = vpop.f32.mrb[77].mxu1 }
 0x194   : > { %v1514_v29 = vadd.f32 %v1501_v23, %v1311_v34  ;;  %v1724_v40 = vadd.f32 %v1709_v37, %v1513_v33  ;;  %v2650_v41 = vpop.f32.mrb[79].mxu0  ;;  %v1712_v30 = vpop.f32.mrb[78].mxu1 }
 0x195   : > { %v2686_v44 = vpop.f32.mrb[79].mxu1 }
 0x196   : > { %v1725_v32 = vadd.f32 %v1712_v30, %v1514_v29 }
 0x199   : > { %v1846_v47 = vpop.f32.mrb[80].mxu0 }
 0x19a   : > { %v1885_v49 = vadd.f32 %v1846_v47, %v1716_v56  ;;  %v1870_v52 = vpop.f32.mrb[80].mxu1  ;;  %v2705_v36 = vpop.f32.mrb[81].mxu0 }
 0x19b   : > { %v1891_v43 = vadd.f32 %v1870_v52, %v1722_v1  ;;  %v2717_v53 = vpop.f32.mrb[81].mxu1  ;;  %v1849_v39 = vpop.f32.mrb[82].mxu0 }
 0x19c   : > { %v1901_v54 = vadd.f32 %v3444_v24, %v1885_v49  ;;  %v1886_v34 = vadd.f32 %v1849_v39, %v1717_v45  ;;  %v1873_v55 = vpop.f32.mrb[82].mxu1  ;;  %v2706_v57 = vpop.f32.mrb[83].mxu0 }
 0x19d   : > { %v1907_v46 = vadd.f32 %v3444_v24, %v1891_v43  ;;  %v1892_v42 = vadd.f32 %v1873_v55, %v1723_v20  ;;  %v2718_v60 = vpop.f32.mrb[83].mxu1 }
 0x19e   : > { %v1911_v48 = vmax.f32 %v1901_v54, 0.0  ;;  %v1902_v50 = vadd.f32 %v3444_v24, %v1886_v34 }
 0x19f   : > { %v1917_v63 = vmax.f32 %v1907_v46, 0.0  ;;  %v1908_v56 = vadd.f32 %v3444_v24, %v1892_v42 }
 0x1a0   : > { %1921 = vst [vmem:[#allocation2] sm:$0xff] %v1911_v48  ;;  %v1912_v51 = vmax.f32 %v1902_v50, 0.0 }
 0x1a1   : > { %1927 = vst [vmem:[#allocation2 + $0x30] sm:$0xff] %v1917_v63  ;;  %v1918_v2 = vmax.f32 %v1908_v56, 0.0  ;;  %v1854_v3 = vpop.f32.mrb[84].mxu0 }
 0x1a2   : > { %1922 = vst [vmem:[#allocation2 + $0x8] sm:$0xff] %v1912_v51  ;;  %v1887_v45 = vadd.f32 %v1854_v3, %v3433_v4  ;;  %v1878_v58 = vpop.f32.mrb[84].mxu1  ;;  %v2709_v0 = vpop.f32.mrb[85].mxu0 }
 0x1a3   : > { %1928 = vst [vmem:[#allocation2 + $0x38] sm:$0xff] %v1918_v2  ;;  %v1893_v7 = vadd.f32 %v1878_v58, %v1724_v40  ;;  %v2721_v61 = vpop.f32.mrb[85].mxu1  ;;  %v1857_v9 = vpop.f32.mrb[86].mxu0 }
 0x1a4   : > { %v1903_v11 = vadd.f32 %v3444_v24, %v1887_v45  ;;  %v1888_v13 = vadd.f32 %v1857_v9, %v3435_v59  ;;  %v1881_v62 = vpop.f32.mrb[86].mxu1  ;;  %v2710_v14 = vpop.f32.mrb[87].mxu0 }
 0x1a5   : > { %v1909_v10 = vadd.f32 %v3444_v24, %v1893_v7  ;;  %v1894_v16 = vadd.f32 %v1881_v62, %v1725_v32  ;;  %v2722_v17 = vpop.f32.mrb[87].mxu1 }
 0x1a6   : > { %v1913_v18 = vmax.f32 %v1903_v11, 0.0  ;;  %v1904_v8 = vadd.f32 %v3444_v24, %v1888_v13 }
 0x1a7   : > { %v1910_v4 = vadd.f32 %v3444_v24, %v1894_v16  ;;  %v1919_v21 = vmax.f32 %v1909_v10, 0.0  ;;  %v1931_v19 = vld [vmem:[#allocation2] ss:$2 sm:$0xf] }
 0x1a8   : > { %1923 = vst [vmem:[#allocation2 + $0x10] sm:$0xff] %v1913_v18  ;;  %v1914_v22 = vmax.f32 %v1904_v8, 0.0  ;;  %v1933_v28 = vld [vmem:[#allocation2 + $0x1] ss:$2 sm:$0xf] }
 0x1a9   : > { %v1920_v25 = vmax.f32 %v1910_v4, 0.0  ;;  %v1862_v12 = vpop.f32.mrb[88].mxu0  ;;  %1929 = vst [vmem:[#allocation2 + $0x40] sm:$0xff] %v1919_v21  ;;  %v1938_v37 = vmax.f32 %v1931_v19, %v1933_v28 }
 0x1aa   : > { %1924 = vst [vmem:[#allocation2 + $0x18] sm:$0xff] %v1914_v22  ;;  %v1889_v59 = vadd.f32 %v1862_v12, %v3437_v6  ;;  %v2713_v26 = vpop.f32.mrb[89].mxu0  ;;  %v1962_v55 = vld [vmem:[#allocation2 + $0x32] ss:$2 sm:$0xf] }
 0x1ab   : > { %1930 = vst [vmem:[#allocation2 + $0x48] sm:$0x3f] %v1920_v25  ;;  %v1865_v27 = vpop.f32.mrb[90].mxu0  ;;  %v1964_v57 = vld [vmem:[#allocation2 + $0x33] ss:$2 sm:$0xf] }
 0x1ac   : > { %v1905_v1 = vadd.f32 %v3444_v24, %v1889_v59  ;;  %v1890_v31 = vadd.f32 %v1865_v27, %v3439_v5  ;;  %v2714_v20 = vpop.f32.mrb[91].mxu0  ;;  %v1966_v48 = vmax.f32 %v1962_v55, %v1964_v57 }
 0x1ae   : > { %v1915_v15 = vmax.f32 %v1905_v1, 0.0  ;;  %v1906_v38 = vadd.f32 %v3444_v24, %v1890_v31 }
 0x1af   : > { %v1935_v33 = vld [vmem:[#allocation2 + $0xa] ss:$2 sm:$0xf]  ;;  %v1937_v35 = vld [vmem:[#allocation2 + $0xb] ss:$2 sm:$0xf] }
 0x1b0   : > { %v1939_v23 = vmax.f32 %v1935_v33, %v1937_v35  ;;  %1925 = vst [vmem:[#allocation2 + $0x20] sm:$0xff] %v1915_v15  ;;  %v1972_v6 = vld [vmem:[#allocation2 + $0x3c] ss:$2 sm:$0xf]  ;;  %v1916_v47 = vmax.f32 %v1906_v38, 0.0 }
 0x1b1   : > { %v1974_v29 = vld [vmem:[#allocation2 + $0x3d] ss:$2 sm:$0xf]  ;;  %v1944_v49 = vld [vmem:[#allocation2 + $0x14] ss:$2 sm:$0xf] }
 0x1b2   : > { %v1940_v40 = vmax.f32 %v1938_v37, %v1939_v23  ;;  %v1976_v41 = vld [vmem:[#allocation2 + $0x46] ss:$2 sm:$0xf]  ;;  %v1978_v30 = vld [vmem:[#allocation2 + $0x47] ss:$2 sm:$0xf]  ;;  %v1979_v44 = vmax.f32 %v1972_v6, %v1974_v29 }
 0x1b3   : > { %v1980_v32 = vmax.f32 %v1976_v41, %v1978_v30  ;;  %v1946_v52 = vld [vmem:[#allocation2 + $0x15] ss:$2 sm:$0xf]  ;;  %1926 = vst [vmem:[#allocation2 + $0x28] sm:$0xff] %v1916_v47 }
 0x1b4   : > { %v1941_v5 = vpack.c.bf16 %v1940_v40, %v1940_v40  ;;  %v1951_v53 = vmax.f32 %v1944_v49, %v1946_v52 }
 0x1b5   : > { %v1981_v36 = vmax.f32 %v1979_v44, %v1980_v32 }
 0x1b6   : > { %1942 = vst [vmem:[%s170_s21] sm:$0x3] %v1941_v5 }
 0x1b7   : > { %v1948_v43 = vld [vmem:[#allocation2 + $0x1e] ss:$2 sm:$0xf]  ;;  %v1950_v24 = vld [vmem:[#allocation2 + $0x1f] ss:$2 sm:$0xf]  ;;  %v1982_v39 = vpack.c.bf16 %v1981_v36, %v1981_v36 }
 0x1b8   : > { %v1952_v54 = vmax.f32 %v1948_v43, %v1950_v24 }
 0x1b9   : > { %2278 = vst [vmem:[%s170_s21 + $0x6] sm:$0x3] %v1982_v39 }
 0x1ba   : > { %v1953_v34 = vmax.f32 %v1951_v53, %v1952_v54  ;;  %v1958_v42 = vld [vmem:[#allocation2 + $0x28] ss:$2 sm:$0xf]  ;;  %v1960_v60 = vld [vmem:[#allocation2 + $0x29] ss:$2 sm:$0xf] }
 0x1bb   : > { %v1965_v50 = vmax.f32 %v1958_v42, %v1960_v60 }
 0x1bc   : > { %v1954_v46 = vpack.c.bf16 %v1953_v34, %v1953_v34 }
 0x1bd   : > { %v1967_v63 = vmax.f32 %v1965_v50, %v1966_v48 }
 0x1be   : > { %2276 = vst [vmem:[%s170_s21 + $0x2] sm:$0x3] %v1954_v46 }
 0x1bf   : > { %v1968_v56 = vpack.c.bf16 %v1967_v63, %v1967_v63 }
 0x1c1   : > { %2277 = vst [vmem:[%s170_s21 + $0x4] sm:$0x3] %v1968_v56 }
 0x1c2 PF: > { %s13_s12 = sadd.s32 1, %s2855_s12  }
 0x1c3   : > { %p10_p4 = scmp.ge.s32.totalorder %s13_s12, 4  }
 0x1c5   :  { %12 = sbr.rel (!%p10_p4) target bundleno = 1 (0x1), region = 88 }

// kernel: vgg_forward.7
= control target key start
LH: loop header
LB: loop body
LE: loop exit
PB: predicated region body
PF: predicated region fallthrough
CT: control target
= control target key end

     0   :  { %v159_v38 = vlaneseq  ;;  %v3140_v39 = vmov 1966171168   ;;  %s4108_s0 = inlined_call_operand.vmem [shape: bf16[2,512], index: 0, kind: input, shape index: {}]   ;;  %s4109_s1 = inlined_call_operand.vmem [shape: bf16[512,512], index: 1, kind: input, shape index: {}]   ;;  %s4110_s2 = inlined_call_operand.vmem [shape: f32[1,512], index: 2, kind: input, shape index: {}]   ;;  %s4111_s3 = inlined_call_operand.vmem [shape: bf16[512,512], index: 3, kind: input, shape index: {}]   ;;  %s4112_s4 = inlined_call_operand.vmem [shape: f32[1,512], index: 4, kind: input, shape index: {}]   ;;  %s4113_s5 = inlined_call_operand.vmem [shape: bf16[512,128], index: 5, kind: input, shape index: {}]   ;;  %s4114_s6 = inlined_call_operand.vmem [shape: f32[1,128], index: 6, kind: input, shape index: {}]   ;;  %s4115_s7 = inlined_call_operand.hbm [shape: f32[2,128], index: 7, kind: output, shape index: {}]  }
   0x1   :  { %v2700_v0 = vld [vmem:[%s4109_s1 + $0x4] ss:$16 sps:$4 sm:$0xff]   ;;  %v2702_v1 = vld [vmem:[%s4109_s1 + $0xc] ss:$16 sps:$4 sm:$0xff]   ;;  %v2704_v2 = vld [vmem:[%s4109_s1] ss:$16 sps:$4 sm:$0xff]   ;;  %v189_v40 = vunpack.c.l.s4 %v3140_v39 }
   0x2   :  { %848 = vmatprep.subr.bf16.mxu0 %v2700_v0  ;;  %v2705_v3 = vld [vmem:[%s4109_s1 + $0x8] ss:$16 sps:$4 sm:$0xff]   ;;  %930 = vmatprep.subr.bf16.mxu1 %v2702_v1  ;;  %v2706_v4 = vld [vmem:[%s4109_s1 + $0x24] ss:$16 sps:$4 sm:$0xff]   ;;  %v2708_v5 = vld [vmem:[%s4109_s1 + $0x2c] ss:$16 sps:$4 sm:$0xff]  }
   0x3   :  { %849 = vmatpush1.bf16.msra.mxu0 %v2704_v2  ;;  %931 = vmatpush1.bf16.msra.mxu1 %v2705_v3  ;;  %v2710_v6 = vld [vmem:[%s4109_s1 + $0x20] ss:$16 sps:$4 sm:$0xff]   ;;  %v2711_v7 = vld [vmem:[%s4109_s1 + $0x28] ss:$16 sps:$4 sm:$0xff]   ;;  %v2712_v8 = vld [vmem:[%s4109_s1 + $0x44] ss:$16 sps:$4 sm:$0xff]   ;;  %v190_v46 = vunpack.c.0.s8 %v189_v40 }
   0x4   :  { %850 = vmatprep.subr.bf16.mxu0 %v2706_v4  ;;  %932 = vmatprep.subr.bf16.mxu1 %v2708_v5  ;;  %v2714_v9 = vld [vmem:[%s4109_s1 + $0x4c] ss:$16 sps:$4 sm:$0xff]   ;;  %v2716_v10 = vld [vmem:[%s4109_s1 + $0x40] ss:$16 sps:$4 sm:$0xff]   ;;  %v2717_v11 = vld [vmem:[%s4109_s1 + $0x48] ss:$16 sps:$4 sm:$0xff]  }
   0x5   :  { %v2718_v12 = vld [vmem:[%s4109_s1 + $0x64] ss:$16 sps:$4 sm:$0xff]   ;;  %v2720_v13 = vld [vmem:[%s4109_s1 + $0x6c] ss:$16 sps:$4 sm:$0xff]   ;;  %v2722_v14 = vld [vmem:[%s4109_s1 + $0x60] ss:$16 sps:$4 sm:$0xff]  }
   0x6   :  { %v2723_v15 = vld [vmem:[%s4109_s1 + $0x68] ss:$16 sps:$4 sm:$0xff]   ;;  %v2724_v16 = vld [vmem:[%s4109_s1 + $0x84] ss:$16 sps:$4 sm:$0xff]   ;;  %v2726_v17 = vld [vmem:[%s4109_s1 + $0x8c] ss:$16 sps:$4 sm:$0xff]  }
   0x7   :  { %851 = vmatpush1.bf16.msra.mxu0 %v2710_v6  ;;  %933 = vmatpush1.bf16.msra.mxu1 %v2711_v7  ;;  %v2728_v18 = vld [vmem:[%s4109_s1 + $0x80] ss:$16 sps:$4 sm:$0xff]   ;;  %v2729_v19 = vld [vmem:[%s4109_s1 + $0x88] ss:$16 sps:$4 sm:$0xff]   ;;  %v2730_v20 = vld [vmem:[%s4109_s1 + $0xa4] ss:$16 sps:$4 sm:$0xff]  }
   0x8   :  { %852 = vmatprep.subr.bf16.mxu0 %v2712_v8  ;;  %934 = vmatprep.subr.bf16.mxu1 %v2714_v9  ;;  %v2732_v21 = vld [vmem:[%s4109_s1 + $0xac] ss:$16 sps:$4 sm:$0xff]   ;;  %v2734_v22 = vld [vmem:[%s4109_s1 + $0xa0] ss:$16 sps:$4 sm:$0xff]   ;;  %v2735_v23 = vld [vmem:[%s4109_s1 + $0xa8] ss:$16 sps:$4 sm:$0xff]  }
   0x9   :  { %v2736_v24 = vld [vmem:[%s4109_s1 + $0xc4] ss:$16 sps:$4 sm:$0xff]   ;;  %v2738_v25 = vld [vmem:[%s4109_s1 + $0xcc] ss:$16 sps:$4 sm:$0xff]   ;;  %v2740_v26 = vld [vmem:[%s4109_s1 + $0xc0] ss:$16 sps:$4 sm:$0xff]  }
   0xa   :  { %v2741_v27 = vld [vmem:[%s4109_s1 + $0xc8] ss:$16 sps:$4 sm:$0xff]   ;;  %v2742_v28 = vld [vmem:[%s4109_s1 + $0xe4] ss:$16 sps:$4 sm:$0xff]   ;;  %v2744_v29 = vld [vmem:[%s4109_s1 + $0xec] ss:$16 sps:$4 sm:$0xff]  }
   0xb   :  { %853 = vmatpush1.bf16.msra.mxu0 %v2716_v10  ;;  %935 = vmatpush1.bf16.msra.mxu1 %v2717_v11  ;;  %v2746_v30 = vld [vmem:[%s4109_s1 + $0xe0] ss:$16 sps:$4 sm:$0xff]   ;;  %v2747_v31 = vld [vmem:[%s4109_s1 + $0xe8] ss:$16 sps:$4 sm:$0xff]   ;;  %v2748_v32 = vld [vmem:[%s4109_s1 + $0x104] ss:$16 sps:$4 sm:$0xff]  }
   0xc   :  { %854 = vmatprep.subr.bf16.mxu0 %v2718_v12  ;;  %936 = vmatprep.subr.bf16.mxu1 %v2720_v13  ;;  %v2750_v33 = vld [vmem:[%s4109_s1 + $0x10c] ss:$16 sps:$4 sm:$0xff]   ;;  %v2752_v34 = vld [vmem:[%s4109_s1 + $0x100] ss:$16 sps:$4 sm:$0xff]   ;;  %v2753_v35 = vld [vmem:[%s4109_s1 + $0x108] ss:$16 sps:$4 sm:$0xff]  }
   0xd   :  { %v2754_v36 = vld [vmem:[%s4109_s1 + $0x124] ss:$16 sps:$4 sm:$0xff]   ;;  %v2756_v37 = vld [vmem:[%s4109_s1 + $0x12c] ss:$16 sps:$4 sm:$0xff]   ;;  %v2758_v41 = vld [vmem:[%s4109_s1 + $0x120] ss:$16 sps:$4 sm:$0xff]  }
   0xe   :  { %v2759_v42 = vld [vmem:[%s4109_s1 + $0x128] ss:$16 sps:$4 sm:$0xff]   ;;  %v2760_v43 = vld [vmem:[%s4109_s1 + $0x144] ss:$16 sps:$4 sm:$0xff]   ;;  %v2762_v44 = vld [vmem:[%s4109_s1 + $0x14c] ss:$16 sps:$4 sm:$0xff]  }
   0xf   :  { %855 = vmatpush1.bf16.msra.mxu0 %v2722_v14  ;;  %937 = vmatpush1.bf16.msra.mxu1 %v2723_v15  ;;  %v3308_v45 = vshrl.u32 %v159_v38, 7  ;;  %v2764_v47 = vld [vmem:[%s4109_s1 + $0x140] ss:$16 sps:$4 sm:$0xff]   ;;  %v2765_v48 = vld [vmem:[%s4109_s1 + $0x148] ss:$16 sps:$4 sm:$0xff]  }
  0x10   :  { %856 = vmatprep.subr.bf16.mxu0 %v2724_v16  ;;  %938 = vmatprep.subr.bf16.mxu1 %v2726_v17  ;;  %v2766_v49 = vld [vmem:[%s4109_s1 + $0x164] ss:$16 sps:$4 sm:$0xff]   ;;  %v2768_v50 = vld [vmem:[%s4109_s1 + $0x16c] ss:$16 sps:$4 sm:$0xff]   ;;  %v2770_v53 = vld [vmem:[%s4109_s1 + $0x160] ss:$16 sps:$4 sm:$0xff]  }
  0x11   :  { %v193_v51 = vsub.s32 %v190_v46, %v3308_v45  ;;  %v2340_v52 = vld.sshfl [vmem:[%s4108_s0] sm:$0x33 pattern:$0x75316420]  ;;  %v2771_v54 = vld [vmem:[%s4109_s1 + $0x168] ss:$16 sps:$4 sm:$0xff]  }
  0x12   :  { %v187_v55 = vcombine.high %v2340_v52, %v2340_v52  ;;  %v2772_v56 = vld [vmem:[%s4109_s1 + $0x184] ss:$16 sps:$4 sm:$0xff]   ;;  %v2774_v57 = vld [vmem:[%s4109_s1 + $0x18c] ss:$16 sps:$4 sm:$0xff]   ;;  %v2776_v59 = vld [vmem:[%s4109_s1 + $0x180] ss:$16 sps:$4 sm:$0xff]  }
  0x13   :  { %857 = vmatpush1.bf16.msra.mxu0 %v2728_v18  ;;  %939 = vmatpush1.bf16.msra.mxu1 %v2729_v19  ;;  %v2777_v60 = vld [vmem:[%s4109_s1 + $0x188] ss:$16 sps:$4 sm:$0xff]   ;;  %v2778_v61 = vld [vmem:[%s4109_s1 + $0x1a4] ss:$16 sps:$4 sm:$0xff]   ;;  %v2780_v62 = vld [vmem:[%s4109_s1 + $0x1ac] ss:$16 sps:$4 sm:$0xff]   ;;  %v3389_v12 = vrot.slane %v2340_v52, %v193_v51 }
  0x14   :  { %858 = vmatprep.subr.bf16.mxu0 %v2730_v20  ;;  %940 = vmatprep.subr.bf16.mxu1 %v2732_v21  ;;  %v201_v58 = vrot.slane %v187_v55, %v193_v51  ;;  %v2782_v63 = vld [vmem:[%s4109_s1 + $0x1a0] ss:$16 sps:$4 sm:$0xff]   ;;  %v2783_v0 = vld [vmem:[%s4109_s1 + $0x1a8] ss:$16 sps:$4 sm:$0xff]   ;;  %v2784_v1 = vld [vmem:[%s4109_s1 + $0x1c4] ss:$16 sps:$4 sm:$0xff]  }
  0x15   :  { %v2786_v2 = vld [vmem:[%s4109_s1 + $0x1cc] ss:$16 sps:$4 sm:$0xff]   ;;  %v2788_v3 = vld [vmem:[%s4109_s1 + $0x1c0] ss:$16 sps:$4 sm:$0xff]   ;;  %v2789_v4 = vld [vmem:[%s4109_s1 + $0x1c8] ss:$16 sps:$4 sm:$0xff]  }
  0x16   :  { %880 = vmatprep.mubr.bf16.mxu0 %v201_v58  ;;  %962 = vmatprep.mubr.bf16.mxu1 %v201_v58  ;;  %v2790_v5 = vld [vmem:[%s4109_s1 + $0x1e4] ss:$16 sps:$4 sm:$0xff]   ;;  %v2792_v6 = vld [vmem:[%s4109_s1 + $0x1ec] ss:$16 sps:$4 sm:$0xff]   ;;  %v2794_v7 = vld [vmem:[%s4109_s1 + $0x1e0] ss:$16 sps:$4 sm:$0xff]   ;;  %v203_v16 = vcombine.high %v201_v58, %v201_v58 }
  0x17   :  { %859 = vmatpush1.bf16.msra.mxu0 %v2734_v22  ;;  %941 = vmatpush1.bf16.msra.mxu1 %v2735_v23  ;;  %v2795_v8 = vld [vmem:[%s4109_s1 + $0x1e8] ss:$16 sps:$4 sm:$0xff]   ;;  %v2798_v9 = vld [vmem:[%s4109_s1 + $0x204] ss:$16 sps:$4 sm:$0xff]   ;;  %v2801_v10 = vld [vmem:[%s4109_s1 + $0x20c] ss:$16 sps:$4 sm:$0xff]  }
  0x18   :  { %860 = vmatprep.subr.bf16.mxu0 %v2736_v24  ;;  %942 = vmatprep.subr.bf16.mxu1 %v2738_v25  ;;  %v2796_v11 = vld [vmem:[%s4109_s1 + $0x200] ss:$16 sps:$4 sm:$0xff]   ;;  %v2799_v13 = vld [vmem:[%s4109_s1 + $0x208] ss:$16 sps:$4 sm:$0xff]   ;;  %v2804_v14 = vld [vmem:[%s4109_s1 + $0x224] ss:$16 sps:$4 sm:$0xff]  }
  0x19   :  { %v2807_v15 = vld [vmem:[%s4109_s1 + $0x22c] ss:$16 sps:$4 sm:$0xff]   ;;  %v2802_v17 = vld [vmem:[%s4109_s1 + $0x220] ss:$16 sps:$4 sm:$0xff]   ;;  %v2805_v18 = vld [vmem:[%s4109_s1 + $0x228] ss:$16 sps:$4 sm:$0xff]  }
  0x1a   :  { %v2810_v19 = vld [vmem:[%s4109_s1 + $0x244] ss:$16 sps:$4 sm:$0xff]   ;;  %v2813_v20 = vld [vmem:[%s4109_s1 + $0x24c] ss:$16 sps:$4 sm:$0xff]   ;;  %v2808_v21 = vld [vmem:[%s4109_s1 + $0x240] ss:$16 sps:$4 sm:$0xff]  }
  0x1b   :  { %861 = vmatpush1.bf16.msra.mxu0 %v2740_v26  ;;  %943 = vmatpush1.bf16.msra.mxu1 %v2741_v27  ;;  %v2811_v22 = vld [vmem:[%s4109_s1 + $0x248] ss:$16 sps:$4 sm:$0xff]   ;;  %v2816_v23 = vld [vmem:[%s4109_s1 + $0x264] ss:$16 sps:$4 sm:$0xff]   ;;  %v2819_v24 = vld [vmem:[%s4109_s1 + $0x26c] ss:$16 sps:$4 sm:$0xff]  }
  0x1c   :  { %862 = vmatprep.subr.bf16.mxu0 %v2742_v28  ;;  %944 = vmatprep.subr.bf16.mxu1 %v2744_v29  ;;  %v2814_v25 = vld [vmem:[%s4109_s1 + $0x260] ss:$16 sps:$4 sm:$0xff]   ;;  %v2817_v26 = vld [vmem:[%s4109_s1 + $0x268] ss:$16 sps:$4 sm:$0xff]   ;;  %v2822_v27 = vld [vmem:[%s4109_s1 + $0x284] ss:$16 sps:$4 sm:$0xff]  }
  0x1d   :  { %v2825_v28 = vld [vmem:[%s4109_s1 + $0x28c] ss:$16 sps:$4 sm:$0xff]   ;;  %v2820_v29 = vld [vmem:[%s4109_s1 + $0x280] ss:$16 sps:$4 sm:$0xff]   ;;  %v2835_v38 = vld [vmem:[%s4109_s1 + $0x2c8] ss:$16 sps:$4 sm:$0xff]  }
  0x1e   :  { %v2840_v39 = vld [vmem:[%s4109_s1 + $0x2e4] ss:$16 sps:$4 sm:$0xff]   ;;  %v2843_v40 = vld [vmem:[%s4109_s1 + $0x2ec] ss:$16 sps:$4 sm:$0xff]   ;;  %v2844_v46 = vld [vmem:[%s4109_s1 + $0x300] ss:$16 sps:$4 sm:$0xff]  }
  0x1f   :  { %863 = vmatpush1.bf16.msra.mxu0 %v2746_v30  ;;  %945 = vmatpush1.bf16.msra.mxu1 %v2747_v31  ;;  %v2823_v30 = vld [vmem:[%s4109_s1 + $0x288] ss:$16 sps:$4 sm:$0xff]   ;;  %v2828_v31 = vld [vmem:[%s4109_s1 + $0x2a4] ss:$16 sps:$4 sm:$0xff]   ;;  %v2862_v58 = vld [vmem:[%s4109_s1 + $0x360] ss:$16 sps:$4 sm:$0xff]  }
  0x20   :  { %864 = vmatprep.subr.bf16.mxu0 %v2748_v32  ;;  %946 = vmatprep.subr.bf16.mxu1 %v2750_v33  ;;  %v2831_v32 = vld [vmem:[%s4109_s1 + $0x2ac] ss:$16 sps:$4 sm:$0xff]   ;;  %v2826_v33 = vld [vmem:[%s4109_s1 + $0x2a0] ss:$16 sps:$4 sm:$0xff]   ;;  %v2853_v51 = vld [vmem:[%s4109_s1 + $0x328] ss:$16 sps:$4 sm:$0xff]  }
  0x21   :  { %v2858_v52 = vld [vmem:[%s4109_s1 + $0x344] ss:$16 sps:$4 sm:$0xff]   ;;  %v2859_v55 = vld [vmem:[%s4109_s1 + $0x348] ss:$16 sps:$4 sm:$0xff]  }
  0x23   :  { %865 = vmatpush1.bf16.msra.mxu0 %v2752_v34  ;;  %947 = vmatpush1.bf16.msra.mxu1 %v2753_v35  ;;  %v2829_v34 = vld [vmem:[%s4109_s1 + $0x2a8] ss:$16 sps:$4 sm:$0xff]   ;;  %v2834_v35 = vld [vmem:[%s4109_s1 + $0x2c4] ss:$16 sps:$4 sm:$0xff]  }
  0x24   :  { %866 = vmatprep.subr.bf16.mxu0 %v2754_v36  ;;  %948 = vmatprep.subr.bf16.mxu1 %v2756_v37  ;;  %v2837_v36 = vld [vmem:[%s4109_s1 + $0x2cc] ss:$16 sps:$4 sm:$0xff]   ;;  %v2832_v37 = vld [vmem:[%s4109_s1 + $0x2c0] ss:$16 sps:$4 sm:$0xff]  }
  0x27   :  { %867 = vmatpush1.bf16.msra.mxu0 %v2758_v41  ;;  %949 = vmatpush1.bf16.msra.mxu1 %v2759_v42  ;;  %v2838_v41 = vld [vmem:[%s4109_s1 + $0x2e0] ss:$16 sps:$4 sm:$0xff]   ;;  %v2841_v42 = vld [vmem:[%s4109_s1 + $0x2e8] ss:$16 sps:$4 sm:$0xff]  }
  0x28   :  { %868 = vmatprep.subr.bf16.mxu0 %v2760_v43  ;;  %950 = vmatprep.subr.bf16.mxu1 %v2762_v44  ;;  %v2846_v43 = vld [vmem:[%s4109_s1 + $0x304] ss:$16 sps:$4 sm:$0xff]   ;;  %v2849_v44 = vld [vmem:[%s4109_s1 + $0x30c] ss:$16 sps:$4 sm:$0xff]  }
  0x2b   :  { %869 = vmatpush1.bf16.msra.mxu0 %v2764_v47  ;;  %951 = vmatpush1.bf16.msra.mxu1 %v2765_v48  ;;  %v2847_v47 = vld [vmem:[%s4109_s1 + $0x308] ss:$16 sps:$4 sm:$0xff]   ;;  %v2852_v48 = vld [vmem:[%s4109_s1 + $0x324] ss:$16 sps:$4 sm:$0xff]  }
  0x2c   :  { %870 = vmatprep.subr.bf16.mxu0 %v2766_v49  ;;  %952 = vmatprep.subr.bf16.mxu1 %v2768_v50  ;;  %v2855_v49 = vld [vmem:[%s4109_s1 + $0x32c] ss:$16 sps:$4 sm:$0xff]   ;;  %v2850_v50 = vld [vmem:[%s4109_s1 + $0x320] ss:$16 sps:$4 sm:$0xff]  }
  0x2f   :  { %871 = vmatpush1.bf16.msra.mxu0 %v2770_v53  ;;  %953 = vmatpush1.bf16.msra.mxu1 %v2771_v54  ;;  %v2861_v53 = vld [vmem:[%s4109_s1 + $0x34c] ss:$16 sps:$4 sm:$0xff]   ;;  %v2856_v54 = vld [vmem:[%s4109_s1 + $0x340] ss:$16 sps:$4 sm:$0xff]  }
  0x30   :  { %872 = vmatprep.subr.bf16.mxu0 %v2772_v56  ;;  %954 = vmatprep.subr.bf16.mxu1 %v2774_v57  ;;  %v2864_v56 = vld [vmem:[%s4109_s1 + $0x364] ss:$16 sps:$4 sm:$0xff]   ;;  %v2867_v57 = vld [vmem:[%s4109_s1 + $0x36c] ss:$16 sps:$4 sm:$0xff]  }
  0x33   :  { %873 = vmatpush1.bf16.msra.mxu0 %v2776_v59  ;;  %955 = vmatpush1.bf16.msra.mxu1 %v2777_v60  ;;  %v2865_v59 = vld [vmem:[%s4109_s1 + $0x368] ss:$16 sps:$4 sm:$0xff]   ;;  %v2870_v60 = vld [vmem:[%s4109_s1 + $0x384] ss:$16 sps:$4 sm:$0xff]  }
  0x34   :  { %874 = vmatprep.subr.bf16.mxu0 %v2778_v61  ;;  %956 = vmatprep.subr.bf16.mxu1 %v2780_v62  ;;  %v2873_v61 = vld [vmem:[%s4109_s1 + $0x38c] ss:$16 sps:$4 sm:$0xff]   ;;  %v2868_v62 = vld [vmem:[%s4109_s1 + $0x380] ss:$16 sps:$4 sm:$0xff]  }
  0x37   :  { %875 = vmatpush1.bf16.msra.mxu0 %v2782_v63  ;;  %957 = vmatpush1.bf16.msra.mxu1 %v2783_v0  ;;  %v2871_v63 = vld [vmem:[%s4109_s1 + $0x388] ss:$16 sps:$4 sm:$0xff]   ;;  %v2876_v0 = vld [vmem:[%s4109_s1 + $0x3a4] ss:$16 sps:$4 sm:$0xff]  }
  0x38   :  { %876 = vmatprep.subr.bf16.mxu0 %v2784_v1  ;;  %958 = vmatprep.subr.bf16.mxu1 %v2786_v2  ;;  %v2879_v1 = vld [vmem:[%s4109_s1 + $0x3ac] ss:$16 sps:$4 sm:$0xff]   ;;  %v2874_v2 = vld [vmem:[%s4109_s1 + $0x3a0] ss:$16 sps:$4 sm:$0xff]  }
  0x3b   :  { %877 = vmatpush1.bf16.msra.mxu0 %v2788_v3  ;;  %959 = vmatpush1.bf16.msra.mxu1 %v2789_v4  ;;  %v2877_v3 = vld [vmem:[%s4109_s1 + $0x3a8] ss:$16 sps:$4 sm:$0xff]   ;;  %v2882_v4 = vld [vmem:[%s4109_s1 + $0x3c4] ss:$16 sps:$4 sm:$0xff]  }
  0x3c   :  { %878 = vmatprep.subr.bf16.mxu0 %v2790_v5  ;;  %960 = vmatprep.subr.bf16.mxu1 %v2792_v6  ;;  %v2885_v5 = vld [vmem:[%s4109_s1 + $0x3cc] ss:$16 sps:$4 sm:$0xff]   ;;  %v2880_v6 = vld [vmem:[%s4109_s1 + $0x3c0] ss:$16 sps:$4 sm:$0xff]  }
  0x3f   :  { %879 = vmatpush1.bf16.msra.mxu0 %v2794_v7  ;;  %961 = vmatpush1.bf16.msra.mxu1 %v2795_v8  ;;  %v2883_v7 = vld [vmem:[%s4109_s1 + $0x3c8] ss:$16 sps:$4 sm:$0xff]   ;;  %v2888_v8 = vld [vmem:[%s4109_s1 + $0x3e4] ss:$16 sps:$4 sm:$0xff]  }
  0x40   :  { %889 = vmatprep.subr.bf16.mxu0 %v2798_v9  ;;  %971 = vmatprep.subr.bf16.mxu1 %v2801_v10  ;;  %v2891_v9 = vld [vmem:[%s4109_s1 + $0x3ec] ss:$16 sps:$4 sm:$0xff]   ;;  %v2886_v10 = vld [vmem:[%s4109_s1 + $0x3e0] ss:$16 sps:$4 sm:$0xff]  }
  0x42   :  { %881 = vmatmul.mubr.bf16.vlgmr.msra.gmra.mrb[0].mxu0 %v3389_v12  ;;  %963 = vmatmul.mubr.bf16.vlgmr.msra.gmra.mrb[0].mxu1 %v3389_v12 }
  0x43   :  { %890 = vmatpush1.bf16.msra.mxu0 %v2796_v11  ;;  %972 = vmatpush1.bf16.msra.mxu1 %v2799_v13  ;;  %v2889_v11 = vld [vmem:[%s4109_s1 + $0x3e8] ss:$16 sps:$4 sm:$0xff]   ;;  %v2894_v13 = vld [vmem:[%s4111_s3 + $0x4] ss:$16 sps:$4 sm:$0xff]  }
  0x44   :  { %891 = vmatprep.subr.bf16.mxu0 %v2804_v14  ;;  %973 = vmatprep.subr.bf16.mxu1 %v2807_v15  ;;  %v2897_v14 = vld [vmem:[%s4111_s3 + $0xc] ss:$16 sps:$4 sm:$0xff]   ;;  %v2892_v15 = vld [vmem:[%s4111_s3] ss:$16 sps:$4 sm:$0xff]  }
  0x45   :  { %921 = vmatprep.mubr.bf16.mxu0 %v203_v16  ;;  %1003 = vmatprep.mubr.bf16.mxu1 %v203_v16  ;;  %v2895_v16 = vld [vmem:[%s4111_s3 + $0x8] ss:$16 sps:$4 sm:$0xff]  }
  0x47   :  { %892 = vmatpush1.bf16.msra.mxu0 %v2802_v17  ;;  %974 = vmatpush1.bf16.msra.mxu1 %v2805_v18  ;;  %v202_v17 = vcombine.high %v3389_v12, %v3389_v12  ;;  %v2900_v18 = vld [vmem:[%s4111_s3 + $0x24] ss:$16 sps:$4 sm:$0xff]   ;;  %v2901_v12 = vld [vmem:[%s4111_s3 + $0x28] ss:$16 sps:$4 sm:$0xff]  }
  0x48   :  { %893 = vmatprep.subr.bf16.mxu0 %v2810_v19  ;;  %975 = vmatprep.subr.bf16.mxu1 %v2813_v20  ;;  %v2903_v19 = vld [vmem:[%s4111_s3 + $0x2c] ss:$16 sps:$4 sm:$0xff]   ;;  %v2898_v20 = vld [vmem:[%s4111_s3 + $0x20] ss:$16 sps:$4 sm:$0xff]  }
  0x4b   :  { %894 = vmatpush1.bf16.msra.mxu0 %v2808_v21  ;;  %976 = vmatpush1.bf16.msra.mxu1 %v2811_v22  ;;  %v2906_v21 = vld [vmem:[%s4111_s3 + $0x44] ss:$16 sps:$4 sm:$0xff]   ;;  %v2909_v22 = vld [vmem:[%s4111_s3 + $0x4c] ss:$16 sps:$4 sm:$0xff]  }
  0x4c   :  { %895 = vmatprep.subr.bf16.mxu0 %v2816_v23  ;;  %977 = vmatprep.subr.bf16.mxu1 %v2819_v24  ;;  %v2904_v23 = vld [vmem:[%s4111_s3 + $0x40] ss:$16 sps:$4 sm:$0xff]   ;;  %v2907_v24 = vld [vmem:[%s4111_s3 + $0x48] ss:$16 sps:$4 sm:$0xff]  }
  0x4f   :  { %896 = vmatpush1.bf16.msra.mxu0 %v2814_v25  ;;  %978 = vmatpush1.bf16.msra.mxu1 %v2817_v26  ;;  %v2912_v25 = vld [vmem:[%s4111_s3 + $0x64] ss:$16 sps:$4 sm:$0xff]   ;;  %v2915_v26 = vld [vmem:[%s4111_s3 + $0x6c] ss:$16 sps:$4 sm:$0xff]  }
  0x50   :  { %897 = vmatprep.subr.bf16.mxu0 %v2822_v27  ;;  %979 = vmatprep.subr.bf16.mxu1 %v2825_v28  ;;  %v2910_v27 = vld [vmem:[%s4111_s3 + $0x60] ss:$16 sps:$4 sm:$0xff]   ;;  %v2913_v28 = vld [vmem:[%s4111_s3 + $0x68] ss:$16 sps:$4 sm:$0xff]  }
  0x53   :  { %898 = vmatpush1.bf16.msra.mxu0 %v2820_v29  ;;  %980 = vmatpush1.bf16.msra.mxu1 %v2823_v30  ;;  %v2918_v29 = vld [vmem:[%s4111_s3 + $0x84] ss:$16 sps:$4 sm:$0xff]   ;;  %v2921_v30 = vld [vmem:[%s4111_s3 + $0x8c] ss:$16 sps:$4 sm:$0xff]  }
  0x54   :  { %899 = vmatprep.subr.bf16.mxu0 %v2828_v31  ;;  %981 = vmatprep.subr.bf16.mxu1 %v2831_v32  ;;  %v2916_v31 = vld [vmem:[%s4111_s3 + $0x80] ss:$16 sps:$4 sm:$0xff]   ;;  %v2919_v32 = vld [vmem:[%s4111_s3 + $0x88] ss:$16 sps:$4 sm:$0xff]  }
  0x57   :  { %900 = vmatpush1.bf16.msra.mxu0 %v2826_v33  ;;  %982 = vmatpush1.bf16.msra.mxu1 %v2829_v34  ;;  %v2924_v33 = vld [vmem:[%s4111_s3 + $0xa4] ss:$16 sps:$4 sm:$0xff]   ;;  %v2927_v34 = vld [vmem:[%s4111_s3 + $0xac] ss:$16 sps:$4 sm:$0xff]  }
  0x58   :  { %901 = vmatprep.subr.bf16.mxu0 %v2834_v35  ;;  %983 = vmatprep.subr.bf16.mxu1 %v2837_v36  ;;  %v2922_v35 = vld [vmem:[%s4111_s3 + $0xa0] ss:$16 sps:$4 sm:$0xff]   ;;  %v2925_v36 = vld [vmem:[%s4111_s3 + $0xa8] ss:$16 sps:$4 sm:$0xff]  }
  0x5b   :  { %902 = vmatpush1.bf16.msra.mxu0 %v2832_v37  ;;  %984 = vmatpush1.bf16.msra.mxu1 %v2835_v38  ;;  %v2930_v37 = vld [vmem:[%s4111_s3 + $0xc4] ss:$16 sps:$4 sm:$0xff]   ;;  %v2933_v38 = vld [vmem:[%s4111_s3 + $0xcc] ss:$16 sps:$4 sm:$0xff]  }
  0x5c   :  { %903 = vmatprep.subr.bf16.mxu0 %v2840_v39  ;;  %985 = vmatprep.subr.bf16.mxu1 %v2843_v40  ;;  %v2928_v39 = vld [vmem:[%s4111_s3 + $0xc0] ss:$16 sps:$4 sm:$0xff]   ;;  %v2931_v40 = vld [vmem:[%s4111_s3 + $0xc8] ss:$16 sps:$4 sm:$0xff]  }
  0x5f   :  { %904 = vmatpush1.bf16.msra.mxu0 %v2838_v41  ;;  %986 = vmatpush1.bf16.msra.mxu1 %v2841_v42  ;;  %v2936_v41 = vld [vmem:[%s4111_s3 + $0xe4] ss:$16 sps:$4 sm:$0xff]   ;;  %v2939_v42 = vld [vmem:[%s4111_s3 + $0xec] ss:$16 sps:$4 sm:$0xff]  }
  0x60   :  { %905 = vmatprep.subr.bf16.mxu0 %v2846_v43  ;;  %987 = vmatprep.subr.bf16.mxu1 %v2849_v44  ;;  %v2934_v43 = vld [vmem:[%s4111_s3 + $0xe0] ss:$16 sps:$4 sm:$0xff]   ;;  %v2937_v44 = vld [vmem:[%s4111_s3 + $0xe8] ss:$16 sps:$4 sm:$0xff]  }
  0x63   :  { %906 = vmatpush1.bf16.msra.mxu0 %v2844_v46  ;;  %988 = vmatpush1.bf16.msra.mxu1 %v2847_v47  ;;  %v2942_v46 = vld [vmem:[%s4111_s3 + $0x104] ss:$16 sps:$4 sm:$0xff]   ;;  %v2945_v47 = vld [vmem:[%s4111_s3 + $0x10c] ss:$16 sps:$4 sm:$0xff]  }
  0x64   :  { %907 = vmatprep.subr.bf16.mxu0 %v2852_v48  ;;  %989 = vmatprep.subr.bf16.mxu1 %v2855_v49  ;;  %v2940_v48 = vld [vmem:[%s4111_s3 + $0x100] ss:$16 sps:$4 sm:$0xff]   ;;  %v2943_v49 = vld [vmem:[%s4111_s3 + $0x108] ss:$16 sps:$4 sm:$0xff]  }
  0x67   :  { %908 = vmatpush1.bf16.msra.mxu0 %v2850_v50  ;;  %990 = vmatpush1.bf16.msra.mxu1 %v2853_v51  ;;  %v2948_v50 = vld [vmem:[%s4111_s3 + $0x124] ss:$16 sps:$4 sm:$0xff]   ;;  %v2951_v51 = vld [vmem:[%s4111_s3 + $0x12c] ss:$16 sps:$4 sm:$0xff]  }
  0x68   :  { %909 = vmatprep.subr.bf16.mxu0 %v2858_v52  ;;  %991 = vmatprep.subr.bf16.mxu1 %v2861_v53  ;;  %v2946_v52 = vld [vmem:[%s4111_s3 + $0x120] ss:$16 sps:$4 sm:$0xff]   ;;  %v2949_v53 = vld [vmem:[%s4111_s3 + $0x128] ss:$16 sps:$4 sm:$0xff]  }
  0x6b   :  { %910 = vmatpush1.bf16.msra.mxu0 %v2856_v54  ;;  %992 = vmatpush1.bf16.msra.mxu1 %v2859_v55  ;;  %v2954_v54 = vld [vmem:[%s4111_s3 + $0x144] ss:$16 sps:$4 sm:$0xff]   ;;  %v2957_v55 = vld [vmem:[%s4111_s3 + $0x14c] ss:$16 sps:$4 sm:$0xff]  }
  0x6c   :  { %911 = vmatprep.subr.bf16.mxu0 %v2864_v56  ;;  %993 = vmatprep.subr.bf16.mxu1 %v2867_v57  ;;  %v2952_v56 = vld [vmem:[%s4111_s3 + $0x140] ss:$16 sps:$4 sm:$0xff]   ;;  %v2955_v57 = vld [vmem:[%s4111_s3 + $0x148] ss:$16 sps:$4 sm:$0xff]  }
  0x6f   :  { %912 = vmatpush1.bf16.msra.mxu0 %v2862_v58  ;;  %994 = vmatpush1.bf16.msra.mxu1 %v2865_v59 }
  0x70   :  { %913 = vmatprep.subr.bf16.mxu0 %v2870_v60  ;;  %995 = vmatprep.subr.bf16.mxu1 %v2873_v61 }
  0x73   :  { %914 = vmatpush1.bf16.msra.mxu0 %v2868_v62  ;;  %996 = vmatpush1.bf16.msra.mxu1 %v2871_v63 }
  0x74   :  { %915 = vmatprep.subr.bf16.mxu0 %v2876_v0  ;;  %997 = vmatprep.subr.bf16.mxu1 %v2879_v1 }
  0x77   :  { %916 = vmatpush1.bf16.msra.mxu0 %v2874_v2  ;;  %998 = vmatpush1.bf16.msra.mxu1 %v2877_v3 }
  0x78   :  { %917 = vmatprep.subr.bf16.mxu0 %v2882_v4  ;;  %999 = vmatprep.subr.bf16.mxu1 %v2885_v5 }
  0x7b   :  { %918 = vmatpush1.bf16.msra.mxu0 %v2880_v6  ;;  %1000 = vmatpush1.bf16.msra.mxu1 %v2883_v7 }
  0x7c   :  { %919 = vmatprep.subr.bf16.mxu0 %v2888_v8  ;;  %1001 = vmatprep.subr.bf16.mxu1 %v2891_v9 }
  0x7f   :  { %920 = vmatpush1.bf16.msra.mxu0 %v2886_v10  ;;  %1002 = vmatpush1.bf16.msra.mxu1 %v2889_v11 }
  0x80   :  { %1810 = vmatprep.subr.bf16.mxu0 %v2894_v13  ;;  %1892 = vmatprep.subr.bf16.mxu1 %v2897_v14 }
  0x82   :  { %922 = vmatmul.mubr.bf16.vlgmr.msra.gmra.mrb[0].mxu0 %v202_v17  ;;  %1004 = vmatmul.mubr.bf16.vlgmr.msra.gmra.mrb[0].mxu1 %v202_v17 }
  0x83   :  { %1811 = vmatpush1.bf16.msra.mxu0 %v2892_v15  ;;  %1893 = vmatpush1.bf16.msra.mxu1 %v2895_v16 }
  0x84   :  { %1812 = vmatprep.subr.bf16.mxu0 %v2900_v18  ;;  %1894 = vmatprep.subr.bf16.mxu1 %v2903_v19 }
  0x87   :  { %1813 = vmatpush1.bf16.msra.mxu0 %v2898_v20  ;;  %1895 = vmatpush1.bf16.msra.mxu1 %v2901_v12 }
  0x88   :  { %1814 = vmatprep.subr.bf16.mxu0 %v2906_v21  ;;  %1896 = vmatprep.subr.bf16.mxu1 %v2909_v22 }
  0x8b   :  { %1815 = vmatpush1.bf16.msra.mxu0 %v2904_v23  ;;  %1897 = vmatpush1.bf16.msra.mxu1 %v2907_v24 }
  0x8c   :  { %1816 = vmatprep.subr.bf16.mxu0 %v2912_v25  ;;  %1898 = vmatprep.subr.bf16.mxu1 %v2915_v26 }
  0x8f   :  { %1817 = vmatpush1.bf16.msra.mxu0 %v2910_v27  ;;  %1899 = vmatpush1.bf16.msra.mxu1 %v2913_v28 }
  0x90   :  { %1818 = vmatprep.subr.bf16.mxu0 %v2918_v29  ;;  %1900 = vmatprep.subr.bf16.mxu1 %v2921_v30 }
  0x93   :  { %1819 = vmatpush1.bf16.msra.mxu0 %v2916_v31  ;;  %1901 = vmatpush1.bf16.msra.mxu1 %v2919_v32 }
  0x94   :  { %1820 = vmatprep.subr.bf16.mxu0 %v2924_v33  ;;  %1902 = vmatprep.subr.bf16.mxu1 %v2927_v34 }
  0x97   :  { %1821 = vmatpush1.bf16.msra.mxu0 %v2922_v35  ;;  %1903 = vmatpush1.bf16.msra.mxu1 %v2925_v36 }
  0x98   :  { %1822 = vmatprep.subr.bf16.mxu0 %v2930_v37  ;;  %1904 = vmatprep.subr.bf16.mxu1 %v2933_v38 }
  0x9b   :  { %1823 = vmatpush1.bf16.msra.mxu0 %v2928_v39  ;;  %1905 = vmatpush1.bf16.msra.mxu1 %v2931_v40 }
  0x9c   :  { %1824 = vmatprep.subr.bf16.mxu0 %v2936_v41  ;;  %1906 = vmatprep.subr.bf16.mxu1 %v2939_v42 }
  0x9f   :  { %1825 = vmatpush1.bf16.msra.mxu0 %v2934_v43  ;;  %1907 = vmatpush1.bf16.msra.mxu1 %v2937_v44 }
  0xa0   :  { %1826 = vmatprep.subr.bf16.mxu0 %v2942_v46  ;;  %1908 = vmatprep.subr.bf16.mxu1 %v2945_v47 }
  0xa3   :  { %1827 = vmatpush1.bf16.msra.mxu0 %v2940_v48  ;;  %1909 = vmatpush1.bf16.msra.mxu1 %v2943_v49 }
  0xa4   :  { %1828 = vmatprep.subr.bf16.mxu0 %v2948_v50  ;;  %1910 = vmatprep.subr.bf16.mxu1 %v2951_v51 }
  0xa7   :  { %1829 = vmatpush1.bf16.msra.mxu0 %v2946_v52  ;;  %1911 = vmatpush1.bf16.msra.mxu1 %v2949_v53 }
  0xa8   :  { %12 = vsyncpa [#allocation3], 0  ;;  %1830 = vmatprep.subr.bf16.mxu0 %v2954_v54  ;;  %1912 = vmatprep.subr.bf16.mxu1 %v2957_v55  ;;  %v2960_v58 = vld [vmem:[%s4111_s3 + $0x164] ss:$16 sps:$4 sm:$0xff]   ;;  %v2963_v59 = vld [vmem:[%s4111_s3 + $0x16c] ss:$16 sps:$4 sm:$0xff]  }
  0xa9   :  { %v2958_v60 = vld [vmem:[%s4111_s3 + $0x160] ss:$16 sps:$4 sm:$0xff]   ;;  %v2961_v61 = vld [vmem:[%s4111_s3 + $0x168] ss:$16 sps:$4 sm:$0xff]   ;;  %v2966_v62 = vld [vmem:[%s4111_s3 + $0x184] ss:$16 sps:$4 sm:$0xff]  }
  0xaa   :  { %v2969_v63 = vld [vmem:[%s4111_s3 + $0x18c] ss:$16 sps:$4 sm:$0xff]   ;;  %v2964_v0 = vld [vmem:[%s4111_s3 + $0x180] ss:$16 sps:$4 sm:$0xff]   ;;  %v2967_v1 = vld [vmem:[%s4111_s3 + $0x188] ss:$16 sps:$4 sm:$0xff]  }
  0xab   :  { %1831 = vmatpush1.bf16.msra.mxu0 %v2952_v56  ;;  %1913 = vmatpush1.bf16.msra.mxu1 %v2955_v57  ;;  %v2972_v2 = vld [vmem:[%s4111_s3 + $0x1a4] ss:$16 sps:$4 sm:$0xff]   ;;  %v2975_v3 = vld [vmem:[%s4111_s3 + $0x1ac] ss:$16 sps:$4 sm:$0xff]   ;;  %v2970_v4 = vld [vmem:[%s4111_s3 + $0x1a0] ss:$16 sps:$4 sm:$0xff]  }
  0xac   :  { %1832 = vmatprep.subr.bf16.mxu0 %v2960_v58  ;;  %1914 = vmatprep.subr.bf16.mxu1 %v2963_v59  ;;  %v2973_v5 = vld [vmem:[%s4111_s3 + $0x1a8] ss:$16 sps:$4 sm:$0xff]   ;;  %v2978_v6 = vld [vmem:[%s4111_s3 + $0x1c4] ss:$16 sps:$4 sm:$0xff]   ;;  %v2981_v7 = vld [vmem:[%s4111_s3 + $0x1cc] ss:$16 sps:$4 sm:$0xff]  }
  0xad   :  { %v2976_v8 = vld [vmem:[%s4111_s3 + $0x1c0] ss:$16 sps:$4 sm:$0xff]   ;;  %v2979_v9 = vld [vmem:[%s4111_s3 + $0x1c8] ss:$16 sps:$4 sm:$0xff]   ;;  %v2984_v10 = vld [vmem:[%s4111_s3 + $0x1e4] ss:$16 sps:$4 sm:$0xff]  }
  0xae   :  { %v2987_v11 = vld [vmem:[%s4111_s3 + $0x1ec] ss:$16 sps:$4 sm:$0xff]   ;;  %v2982_v13 = vld [vmem:[%s4111_s3 + $0x1e0] ss:$16 sps:$4 sm:$0xff]   ;;  %v2985_v14 = vld [vmem:[%s4111_s3 + $0x1e8] ss:$16 sps:$4 sm:$0xff]  }
  0xaf   :  { %1833 = vmatpush1.bf16.msra.mxu0 %v2958_v60  ;;  %1915 = vmatpush1.bf16.msra.mxu1 %v2961_v61  ;;  %v2990_v15 = vld [vmem:[%s4111_s3 + $0x204] ss:$16 sps:$4 sm:$0xff]   ;;  %v2993_v16 = vld [vmem:[%s4111_s3 + $0x20c] ss:$16 sps:$4 sm:$0xff]   ;;  %v161_v17 = vsub.s32 0, %v3308_v45  ;;  %v165_v19 = vsub.s32 1, %v3308_v45 }
  0xb0   :  { %1834 = vmatprep.subr.bf16.mxu0 %v2966_v62  ;;  %1916 = vmatprep.subr.bf16.mxu1 %v2969_v63  ;;  %v3780_v18 = vld [vmem:[%s4110_s2] sm:$0xf]  ;;  %v173_v20 = vsub.s32 3, %v3308_v45  ;;  %v2991_v39 = vld [vmem:[%s4111_s3 + $0x208] ss:$16 sps:$4 sm:$0xff]   ;;  %s3141_s0 = smov [#allocation2]  }
  0xb1   :  { %v162_v12 = vrot.slane %v3780_v18, %v161_v17  ;;  %v166_v21 = vrot.slane %v3780_v18, %v165_v19  ;;  %v2988_v38 = vld [vmem:[%s4111_s3 + $0x200] ss:$16 sps:$4 sm:$0xff]   ;;  %v2996_v41 = vld [vmem:[%s4111_s3 + $0x224] ss:$16 sps:$4 sm:$0xff]   ;;  %v2999_v42 = vld [vmem:[%s4111_s3 + $0x22c] ss:$16 sps:$4 sm:$0xff]  }
  0xb2   :  { %v174_v22 = vrot.slane %v3780_v18, %v173_v20  ;;  %v2994_v44 = vld [vmem:[%s4111_s3 + $0x220] ss:$16 sps:$4 sm:$0xff]   ;;  %v2997_v46 = vld [vmem:[%s4111_s3 + $0x228] ss:$16 sps:$4 sm:$0xff]   ;;  %v3002_v47 = vld [vmem:[%s4111_s3 + $0x244] ss:$16 sps:$4 sm:$0xff]  }
  0xb3   :  { %1835 = vmatpush1.bf16.msra.mxu0 %v2964_v0  ;;  %1917 = vmatpush1.bf16.msra.mxu1 %v2967_v1  ;;  %v3005_v48 = vld [vmem:[%s4111_s3 + $0x24c] ss:$16 sps:$4 sm:$0xff]   ;;  %v3000_v49 = vld [vmem:[%s4111_s3 + $0x240] ss:$16 sps:$4 sm:$0xff]   ;;  %v3003_v50 = vld [vmem:[%s4111_s3 + $0x248] ss:$16 sps:$4 sm:$0xff]  }
  0xb4   :  { %1836 = vmatprep.subr.bf16.mxu0 %v2972_v2  ;;  %1918 = vmatprep.subr.bf16.mxu1 %v2975_v3  ;;  %v3008_v51 = vld [vmem:[%s4111_s3 + $0x264] ss:$16 sps:$4 sm:$0xff]   ;;  %v3011_v52 = vld [vmem:[%s4111_s3 + $0x26c] ss:$16 sps:$4 sm:$0xff]   ;;  %v3006_v53 = vld [vmem:[%s4111_s3 + $0x260] ss:$16 sps:$4 sm:$0xff]  }
  0xb5   :  { %v3009_v54 = vld [vmem:[%s4111_s3 + $0x268] ss:$16 sps:$4 sm:$0xff]   ;;  %v3014_v55 = vld [vmem:[%s4111_s3 + $0x284] ss:$16 sps:$4 sm:$0xff]   ;;  %v3017_v56 = vld [vmem:[%s4111_s3 + $0x28c] ss:$16 sps:$4 sm:$0xff]  }
  0xb6   :  { %v3012_v57 = vld [vmem:[%s4111_s3 + $0x280] ss:$16 sps:$4 sm:$0xff]   ;;  %v3015_v58 = vld [vmem:[%s4111_s3 + $0x288] ss:$16 sps:$4 sm:$0xff]   ;;  %v3020_v59 = vld [vmem:[%s4111_s3 + $0x2a4] ss:$16 sps:$4 sm:$0xff]  }
  0xb7   :  { %1837 = vmatpush1.bf16.msra.mxu0 %v2970_v4  ;;  %1919 = vmatpush1.bf16.msra.mxu1 %v2973_v5  ;;  %v3023_v60 = vld [vmem:[%s4111_s3 + $0x2ac] ss:$16 sps:$4 sm:$0xff]   ;;  %v3018_v61 = vld [vmem:[%s4111_s3 + $0x2a0] ss:$16 sps:$4 sm:$0xff]   ;;  %v3021_v62 = vld [vmem:[%s4111_s3 + $0x2a8] ss:$16 sps:$4 sm:$0xff]  }
  0xb8   :  { %1838 = vmatprep.subr.bf16.mxu0 %v2978_v6  ;;  %1920 = vmatprep.subr.bf16.mxu1 %v2981_v7  ;;  %v3026_v63 = vld [vmem:[%s4111_s3 + $0x2c4] ss:$16 sps:$4 sm:$0xff]   ;;  %v3029_v0 = vld [vmem:[%s4111_s3 + $0x2cc] ss:$16 sps:$4 sm:$0xff]   ;;  %v3024_v1 = vld [vmem:[%s4111_s3 + $0x2c0] ss:$16 sps:$4 sm:$0xff]  }
  0xb9   :  { %v3027_v2 = vld [vmem:[%s4111_s3 + $0x2c8] ss:$16 sps:$4 sm:$0xff]   ;;  %v3032_v3 = vld [vmem:[%s4111_s3 + $0x2e4] ss:$16 sps:$4 sm:$0xff]   ;;  %v3035_v4 = vld [vmem:[%s4111_s3 + $0x2ec] ss:$16 sps:$4 sm:$0xff]  }
  0xba   :  { %v3030_v5 = vld [vmem:[%s4111_s3 + $0x2e0] ss:$16 sps:$4 sm:$0xff]   ;;  %v3033_v6 = vld [vmem:[%s4111_s3 + $0x2e8] ss:$16 sps:$4 sm:$0xff]   ;;  %v3038_v7 = vld [vmem:[%s4111_s3 + $0x304] ss:$16 sps:$4 sm:$0xff]  }
  0xbb   :  { %1839 = vmatpush1.bf16.msra.mxu0 %v2976_v8  ;;  %1921 = vmatpush1.bf16.msra.mxu1 %v2979_v9  ;;  %v3041_v8 = vld [vmem:[%s4111_s3 + $0x30c] ss:$16 sps:$4 sm:$0xff]   ;;  %v3036_v9 = vld [vmem:[%s4111_s3 + $0x300] ss:$16 sps:$4 sm:$0xff]   ;;  %s2332_s11 = sshll.u32 %s3141_s0, 4  ;;  %s2333_s11 = int_to_ptr.vmem [resolvable:$true] %s2332_s11 }
  0xbc   :  { %1840 = vmatprep.subr.bf16.mxu0 %v2984_v10  ;;  %1922 = vmatprep.subr.bf16.mxu1 %v2987_v11  ;;  %v3039_v10 = vld [vmem:[%s4111_s3 + $0x308] ss:$16 sps:$4 sm:$0xff]   ;;  %v3044_v11 = vld [vmem:[%s4111_s3 + $0x324] ss:$16 sps:$4 sm:$0xff]   ;;  %s3116_s12 = scalar_lea.vmem %s2333_s11, 32  ;;  %p3121_p1 = scmp.lt.s32.totalorder %s2333_s11, %s2333_s11 }
  0xbd   :  { %p3117_p0 = scmp.ne.s32.totalorder %s2333_s11, %s3116_s12  ;;  %p3122_p2 = scmp.lt.s32.totalorder %s3116_s12, %s3116_s12 }
  0xbf   :  { %1841 = vmatpush1.bf16.msra.mxu0 %v2982_v13  ;;  %1923 = vmatpush1.bf16.msra.mxu1 %v2985_v14  ;;  %v3047_v13 = vld [vmem:[%s4111_s3 + $0x32c] ss:$16 sps:$4 sm:$0xff]   ;;  %v3042_v14 = vld [vmem:[%s4111_s3 + $0x320] ss:$16 sps:$4 sm:$0xff]   ;;  %p3123_p3 = por %p3122_p2, %p3121_p1 }
  0xc0   :  { %1851 = vmatprep.subr.bf16.mxu0 %v2990_v15  ;;  %1933 = vmatprep.subr.bf16.mxu1 %v2993_v16  ;;  %v3045_v15 = vld [vmem:[%s4111_s3 + $0x328] ss:$16 sps:$4 sm:$0xff]   ;;  %v3050_v16 = vld [vmem:[%s4111_s3 + $0x344] ss:$16 sps:$4 sm:$0xff]  }
  0xc1   :  { %p3124_p4 = pnand %p3123_p3, %p3117_p0 }
 0x155   :  { %v923_v23 = vpop.f32.mrb[0].mxu0  ;;  %v3793_v24 = vpop.f32.mrb[0].mxu1 }
 0x156   :  { %v2674_v25 = vadd.f32 %v923_v23, %v162_v12  ;;  %v925_v26 = vpop.f32.mrb[1].mxu0  ;;  %v1007_v27 = vpop.f32.mrb[1].mxu1  ;;  %v3053_v12 = vld [vmem:[%s4111_s3 + $0x34c] ss:$16 sps:$4 sm:$0xff]   ;;  %v3056_v23 = vld [vmem:[%s4111_s3 + $0x364] ss:$16 sps:$4 sm:$0xff]  }
 0x157   :  { %v2675_v28 = vadd.f32 %v925_v26, %v166_v21  ;;  %v2677_v29 = vadd.f32 %v1007_v27, %v174_v22  ;;  %v927_v30 = vpop.f32.mrb[2].mxu0  ;;  %v1009_v31 = vpop.f32.mrb[2].mxu1  ;;  %v3048_v21 = vld [vmem:[%s4111_s3 + $0x340] ss:$16 sps:$4 sm:$0xff]   ;;  %v3051_v22 = vld [vmem:[%s4111_s3 + $0x348] ss:$16 sps:$4 sm:$0xff]  }
 0x158   :  { %v1012_v32 = vmax.f32 %v2674_v25, 0.0  ;;  %v928_v33 = vpop.f32.mrb[3].mxu0  ;;  %v1010_v34 = vpop.f32.mrb[3].mxu1  ;;  %v3059_v25 = vld [vmem:[%s4111_s3 + $0x36c] ss:$16 sps:$4 sm:$0xff]  }
 0x159   :  { %v1013_v35 = vmax.f32 %v2675_v28, 0.0  ;;  %v1015_v36 = vmax.f32 %v2677_v29, 0.0  ;;  %v3054_v26 = vld [vmem:[%s4111_s3 + $0x360] ss:$16 sps:$4 sm:$0xff]   ;;  %v3057_v27 = vld [vmem:[%s4111_s3 + $0x368] ss:$16 sps:$4 sm:$0xff]  }
 0x15a   :  { %v1016_v40 = vpack.c.bf16 %v1012_v32, %v1012_v32  ;;  %v3062_v28 = vld [vmem:[%s4111_s3 + $0x384] ss:$16 sps:$4 sm:$0xff]   ;;  %v3065_v29 = vld [vmem:[%s4111_s3 + $0x38c] ss:$16 sps:$4 sm:$0xff]   ;;  %v3060_v30 = vld [vmem:[%s4111_s3 + $0x380] ss:$16 sps:$4 sm:$0xff]  }
 0x15b   :  { %v1017_v37 = vpack.c.bf16 %v1013_v35, %v1013_v35  ;;  %v1019_v43 = vpack.c.bf16 %v1015_v36, %v1015_v36  ;;  %v3063_v31 = vld [vmem:[%s4111_s3 + $0x388] ss:$16 sps:$4 sm:$0xff]   ;;  %v169_v32 = vsub.s32 2, %v3308_v45  ;;  %v3068_v33 = vld [vmem:[%s4111_s3 + $0x3a4] ss:$16 sps:$4 sm:$0xff]  }
 0x15c   :  { %v3071_v34 = vld [vmem:[%s4111_s3 + $0x3ac] ss:$16 sps:$4 sm:$0xff]   ;;  %v3066_v35 = vld [vmem:[%s4111_s3 + $0x3a0] ss:$16 sps:$4 sm:$0xff]   ;;  %v3069_v36 = vld [vmem:[%s4111_s3 + $0x3a8] ss:$16 sps:$4 sm:$0xff]  }
 0x15d   :  { %1842 = vmatprep.mubr.bf16.mxu0 %v1017_v37  ;;  %1924 = vmatprep.mubr.bf16.mxu1 %v1017_v37  ;;  %v170_v37 = vrot.slane %v3780_v18, %v169_v32  ;;  %v3075_v18 = vld [vmem:[%s4111_s3 + $0x3c8] ss:$16 sps:$4 sm:$0xff]  }
 0x15e   :  { %1843 = vmatmul.mubr.bf16.vlgmr.msra.gmra.mrb[4].mxu0 %v1016_v40  ;;  %1925 = vmatmul.mubr.bf16.vlgmr.msra.gmra.mrb[4].mxu1 %v1016_v40  ;;  %v3072_v40 = vld [vmem:[%s4111_s3 + $0x3c0] ss:$16 sps:$4 sm:$0xff]  }
 0x15f   :  { %1852 = vmatpush1.bf16.msra.mxu0 %v2988_v38  ;;  %1934 = vmatpush1.bf16.msra.mxu1 %v2991_v39  ;;  %v3074_v38 = vld [vmem:[%s4111_s3 + $0x3c4] ss:$16 sps:$4 sm:$0xff]   ;;  %v3077_v39 = vld [vmem:[%s4111_s3 + $0x3cc] ss:$16 sps:$4 sm:$0xff]  }
 0x160   :  { %1883 = vmatprep.mubr.bf16.mxu0 %v1019_v43  ;;  %1965 = vmatprep.mubr.bf16.mxu1 %v1019_v43  ;;  %v3083_v43 = vld [vmem:[%s4111_s3 + $0x3ec] ss:$16 sps:$4 sm:$0xff]  }
 0x161   :  { %1853 = vmatprep.subr.bf16.mxu0 %v2996_v41  ;;  %1935 = vmatprep.subr.bf16.mxu1 %v2999_v42  ;;  %v2676_v41 = vadd.f32 %v3793_v24, %v170_v37  ;;  %v3080_v42 = vld [vmem:[%s4111_s3 + $0x3e4] ss:$16 sps:$4 sm:$0xff]   ;;  %v3081_v24 = vld [vmem:[%s4111_s3 + $0x3e8] ss:$16 sps:$4 sm:$0xff]  }
 0x163   :  { %1854 = vmatpush1.bf16.msra.mxu0 %v2994_v44  ;;  %1936 = vmatpush1.bf16.msra.mxu1 %v2997_v46  ;;  %v3078_v44 = vld [vmem:[%s4111_s3 + $0x3e0] ss:$16 sps:$4 sm:$0xff]   ;;  %v1014_v46 = vmax.f32 %v2676_v41, 0.0 }
 0x164   :  { %1855 = vmatprep.subr.bf16.mxu0 %v3002_v47  ;;  %1937 = vmatprep.subr.bf16.mxu1 %v3005_v48  ;;  %v3084_v47 = vld [vmem:[%s4113_s5 + $0x40] sm:$0xff]  }
 0x165   :  { %v3085_v48 = vld [vmem:[%s4113_s5 + $0xc0] sm:$0xff]  }
 0x167   :  { %1856 = vmatpush1.bf16.msra.mxu0 %v3000_v49  ;;  %1938 = vmatpush1.bf16.msra.mxu1 %v3003_v50  ;;  %v3086_v49 = vld [vmem:[%s4113_s5] sm:$0xff]  }
 0x168   :  { %1857 = vmatprep.subr.bf16.mxu0 %v3008_v51  ;;  %1939 = vmatprep.subr.bf16.mxu1 %v3011_v52  ;;  %v3087_v50 = vld [vmem:[%s4113_s5 + $0x80] sm:$0xff]   ;;  %v1018_v51 = vpack.c.bf16 %v1014_v46, %v1014_v46  ;;  %v3088_v52 = vld [vmem:[%s4113_s5 + $0x48] sm:$0xff]  }
 0x16b   :  { %1858 = vmatpush1.bf16.msra.mxu0 %v3006_v53  ;;  %1940 = vmatpush1.bf16.msra.mxu1 %v3009_v54  ;;  %v3089_v53 = vld [vmem:[%s4113_s5 + $0xc8] sm:$0xff]  }
 0x16c   :  { %1859 = vmatprep.subr.bf16.mxu0 %v3014_v55  ;;  %1941 = vmatprep.subr.bf16.mxu1 %v3017_v56  ;;  %v3090_v54 = vld [vmem:[%s4113_s5 + $0x8] sm:$0xff]   ;;  %v3092_v56 = vld [vmem:[%s4113_s5 + $0x50] sm:$0xff]  }
 0x16d   :  { %v3091_v55 = vld [vmem:[%s4113_s5 + $0x88] sm:$0xff]  }
 0x16f   :  { %1860 = vmatpush1.bf16.msra.mxu0 %v3012_v57  ;;  %1942 = vmatpush1.bf16.msra.mxu1 %v3015_v58  ;;  %v3093_v57 = vld [vmem:[%s4113_s5 + $0xd0] sm:$0xff]  }
 0x170   :  { %1861 = vmatprep.subr.bf16.mxu0 %v3020_v59  ;;  %1943 = vmatprep.subr.bf16.mxu1 %v3023_v60  ;;  %v3094_v58 = vld [vmem:[%s4113_s5 + $0x10] sm:$0xff]   ;;  %v3096_v60 = vld [vmem:[%s4113_s5 + $0x58] sm:$0xff]  }
 0x171   :  { %v3095_v59 = vld [vmem:[%s4113_s5 + $0x90] sm:$0xff]  }
 0x173   :  { %1862 = vmatpush1.bf16.msra.mxu0 %v3018_v61  ;;  %1944 = vmatpush1.bf16.msra.mxu1 %v3021_v62  ;;  %v3097_v61 = vld [vmem:[%s4113_s5 + $0xd8] sm:$0xff]  }
 0x174   :  { %1863 = vmatprep.subr.bf16.mxu0 %v3026_v63  ;;  %1945 = vmatprep.subr.bf16.mxu1 %v3029_v0  ;;  %v3098_v62 = vld [vmem:[%s4113_s5 + $0x18] sm:$0xff]   ;;  %v3100_v0 = vld [vmem:[%s4113_s5 + $0x60] sm:$0xff]  }
 0x175   :  { %v3099_v63 = vld [vmem:[%s4113_s5 + $0x98] sm:$0xff]  }
 0x177   :  { %1864 = vmatpush1.bf16.msra.mxu0 %v3024_v1  ;;  %1946 = vmatpush1.bf16.msra.mxu1 %v3027_v2  ;;  %v3101_v1 = vld [vmem:[%s4113_s5 + $0xe0] sm:$0xff]  }
 0x178   :  { %1865 = vmatprep.subr.bf16.mxu0 %v3032_v3  ;;  %1947 = vmatprep.subr.bf16.mxu1 %v3035_v4  ;;  %v3102_v2 = vld [vmem:[%s4113_s5 + $0x20] sm:$0xff]   ;;  %v3104_v4 = vld [vmem:[%s4113_s5 + $0x68] sm:$0xff]  }
 0x179   :  { %v3103_v3 = vld [vmem:[%s4113_s5 + $0xa0] sm:$0xff]  }
 0x17b   :  { %1866 = vmatpush1.bf16.msra.mxu0 %v3030_v5  ;;  %1948 = vmatpush1.bf16.msra.mxu1 %v3033_v6  ;;  %v3105_v5 = vld [vmem:[%s4113_s5 + $0xe8] sm:$0xff]  }
 0x17c   :  { %1867 = vmatprep.subr.bf16.mxu0 %v3038_v7  ;;  %1949 = vmatprep.subr.bf16.mxu1 %v3041_v8  ;;  %v3106_v6 = vld [vmem:[%s4113_s5 + $0x28] sm:$0xff]   ;;  %v3108_v8 = vld [vmem:[%s4113_s5 + $0x70] sm:$0xff]  }
 0x17d   :  { %v3107_v7 = vld [vmem:[%s4113_s5 + $0xa8] sm:$0xff]  }
 0x17f   :  { %1868 = vmatpush1.bf16.msra.mxu0 %v3036_v9  ;;  %1950 = vmatpush1.bf16.msra.mxu1 %v3039_v10  ;;  %v3109_v9 = vld [vmem:[%s4113_s5 + $0xf0] sm:$0xff]  }
 0x180   :  { %1869 = vmatprep.subr.bf16.mxu0 %v3044_v11  ;;  %1951 = vmatprep.subr.bf16.mxu1 %v3047_v13  ;;  %v3110_v10 = vld [vmem:[%s4113_s5 + $0x30] sm:$0xff]   ;;  %v3112_v13 = vld [vmem:[%s4113_s5 + $0x78] sm:$0xff]  }
 0x181   :  { %v3111_v11 = vld [vmem:[%s4113_s5 + $0xb0] sm:$0xff]  }
 0x183   :  { %1870 = vmatpush1.bf16.msra.mxu0 %v3042_v14  ;;  %1952 = vmatpush1.bf16.msra.mxu1 %v3045_v15  ;;  %v3113_v14 = vld [vmem:[%s4113_s5 + $0xf8] sm:$0xff]  }
 0x184   :  { %1871 = vmatprep.subr.bf16.mxu0 %v3050_v16  ;;  %1953 = vmatprep.subr.bf16.mxu1 %v3053_v12  ;;  %v3114_v15 = vld [vmem:[%s4113_s5 + $0x38] sm:$0xff]   ;;  %v1148_v12 = vld [vmem:[%s4112_s4] sm:$0xf] }
 0x185   :  { %v3115_v16 = vld [vmem:[%s4113_s5 + $0xb8] sm:$0xff]  }
 0x187   :  { %1872 = vmatpush1.bf16.msra.mxu0 %v3048_v21  ;;  %1954 = vmatpush1.bf16.msra.mxu1 %v3051_v22  ;;  %v1153_v21 = vrot.slane %v1148_v12, %v161_v17  ;;  %v1161_v22 = vrot.slane %v1148_v12, %v169_v32 }
 0x188   :  { %1873 = vmatprep.subr.bf16.mxu0 %v3056_v23  ;;  %1955 = vmatprep.subr.bf16.mxu1 %v3059_v25  ;;  %v1157_v23 = vrot.slane %v1148_v12, %v165_v19  ;;  %v1165_v25 = vrot.slane %v1148_v12, %v173_v20 }
 0x18b   :  { %1874 = vmatpush1.bf16.msra.mxu0 %v3054_v26  ;;  %1956 = vmatpush1.bf16.msra.mxu1 %v3057_v27 }
 0x18c   :  { %1875 = vmatprep.subr.bf16.mxu0 %v3062_v28  ;;  %1957 = vmatprep.subr.bf16.mxu1 %v3065_v29 }
 0x18f   :  { %1876 = vmatpush1.bf16.msra.mxu0 %v3060_v30  ;;  %1958 = vmatpush1.bf16.msra.mxu1 %v3063_v31 }
 0x190   :  { %1877 = vmatprep.subr.bf16.mxu0 %v3068_v33  ;;  %1959 = vmatprep.subr.bf16.mxu1 %v3071_v34 }
 0x193   :  { %1878 = vmatpush1.bf16.msra.mxu0 %v3066_v35  ;;  %1960 = vmatpush1.bf16.msra.mxu1 %v3069_v36 }
 0x194   :  { %1879 = vmatprep.subr.bf16.mxu0 %v3074_v38  ;;  %1961 = vmatprep.subr.bf16.mxu1 %v3077_v39 }
 0x197   :  { %1880 = vmatpush1.bf16.msra.mxu0 %v3072_v40  ;;  %1962 = vmatpush1.bf16.msra.mxu1 %v3075_v18 }
 0x198   :  { %1881 = vmatprep.subr.bf16.mxu0 %v3080_v42  ;;  %1963 = vmatprep.subr.bf16.mxu1 %v3083_v43  ;;  %v2597_v43 = vld [vmem:[%s4114_s6] ss:$0 sm:$0xff] }
 0x19b   :  { %1882 = vmatpush1.bf16.msra.mxu0 %v3078_v44  ;;  %1964 = vmatpush1.bf16.msra.mxu1 %v3081_v24 }
 0x19c   :  { %2630 = vmatprep.subr.bf16.mxu0 %v3084_v47  ;;  %2652 = vmatprep.subr.bf16.mxu1 %v3085_v48 }
 0x19e   :  { %1884 = vmatmul.mubr.bf16.vlgmr.msra.gmra.mrb[4].mxu0 %v1018_v51  ;;  %1966 = vmatmul.mubr.bf16.vlgmr.msra.gmra.mrb[4].mxu1 %v1018_v51 }
 0x19f   :  { %2631 = vmatpush3.bf16.msra.mxu0 %v3086_v49  ;;  %2653 = vmatpush3.bf16.msra.mxu1 %v3087_v50 }
 0x1a0   :  { %2632 = vmatprep.subr.bf16.mxu0 %v3088_v52  ;;  %2654 = vmatprep.subr.bf16.mxu1 %v3089_v53 }
 0x1a3   :  { %2633 = vmatpush3.bf16.msra.mxu0 %v3090_v54  ;;  %2655 = vmatpush3.bf16.msra.mxu1 %v3091_v55 }
 0x1a4   :  { %2634 = vmatprep.subr.bf16.mxu0 %v3092_v56  ;;  %2656 = vmatprep.subr.bf16.mxu1 %v3093_v57 }
 0x1a7   :  { %2635 = vmatpush3.bf16.msra.mxu0 %v3094_v58  ;;  %2657 = vmatpush3.bf16.msra.mxu1 %v3095_v59 }
 0x1a8   :  { %2636 = vmatprep.subr.bf16.mxu0 %v3096_v60  ;;  %2658 = vmatprep.subr.bf16.mxu1 %v3097_v61 }
 0x1ab   :  { %2637 = vmatpush3.bf16.msra.mxu0 %v3098_v62  ;;  %2659 = vmatpush3.bf16.msra.mxu1 %v3099_v63 }
 0x1ac   :  { %2638 = vmatprep.subr.bf16.mxu0 %v3100_v0  ;;  %2660 = vmatprep.subr.bf16.mxu1 %v3101_v1 }
 0x1af   :  { %2639 = vmatpush3.bf16.msra.mxu0 %v3102_v2  ;;  %2661 = vmatpush3.bf16.msra.mxu1 %v3103_v3 }
 0x1b0   :  { %2640 = vmatprep.subr.bf16.mxu0 %v3104_v4  ;;  %2662 = vmatprep.subr.bf16.mxu1 %v3105_v5 }
 0x1b3   :  { %2641 = vmatpush3.bf16.msra.mxu0 %v3106_v6  ;;  %2663 = vmatpush3.bf16.msra.mxu1 %v3107_v7 }
 0x1b4   :  { %2642 = vmatprep.subr.bf16.mxu0 %v3108_v8  ;;  %2664 = vmatprep.subr.bf16.mxu1 %v3109_v9 }
 0x1b7   :  { %2643 = vmatpush3.bf16.msra.mxu0 %v3110_v10  ;;  %2665 = vmatpush3.bf16.msra.mxu1 %v3111_v11 }
 0x1b8   :  { %2644 = vmatprep.subr.bf16.mxu0 %v3112_v13  ;;  %2666 = vmatprep.subr.bf16.mxu1 %v3113_v14 }
 0x1bb   :  { %2645 = vmatpush3.bf16.msra.mxu0 %v3114_v15  ;;  %2667 = vmatpush3.bf16.msra.mxu1 %v3115_v16 }
 0x271   :  { %v1885_v26 = vpop.f32.mrb[4].mxu0  ;;  %v1967_v27 = vpop.f32.mrb[4].mxu1 }
 0x272   :  { %v2678_v28 = vadd.f32 %v1885_v26, %v1153_v21  ;;  %v2680_v29 = vadd.f32 %v1967_v27, %v1161_v22  ;;  %v1887_v30 = vpop.f32.mrb[5].mxu0  ;;  %v1969_v31 = vpop.f32.mrb[5].mxu1 }
 0x273   :  { %v2679_v33 = vadd.f32 %v1887_v30, %v1157_v23  ;;  %v2681_v34 = vadd.f32 %v1969_v31, %v1165_v25  ;;  %v1889_v35 = vpop.f32.mrb[6].mxu0  ;;  %v1971_v36 = vpop.f32.mrb[6].mxu1 }
 0x274   :  { %v1974_v17 = vmax.f32 %v2678_v28, 0.0  ;;  %v1976_v37 = vmax.f32 %v2680_v29, 0.0  ;;  %v1890_v38 = vpop.f32.mrb[7].mxu0  ;;  %v1972_v32 = vpop.f32.mrb[7].mxu1 }
 0x275   :  { %v1975_v39 = vmax.f32 %v2679_v33, 0.0  ;;  %v1977_v40 = vmax.f32 %v2681_v34, 0.0 }
 0x276   :  { %v1978_v45 = vpack.c.bf16 %v1974_v17, %v1974_v17  ;;  %v1980_v20 = vpack.c.bf16 %v1976_v37, %v1976_v37 }
 0x277   :  { %v1979_v19 = vpack.c.bf16 %v1975_v39, %v1975_v39  ;;  %v1981_v18 = vpack.c.bf16 %v1977_v40, %v1977_v40 }
 0x279   :  { %2277 = vmatprep.mubr.bf16.mxu0 %v1979_v19  ;;  %2317 = vmatprep.mubr.bf16.mxu1 %v1981_v18 }
 0x27a   :  { %2278 = vmatmul.mubr.bf16.vlgmr.msra.gmra.mrb[8].mxu0 %v1978_v45  ;;  %2318 = vmatmul.mubr.bf16.vlgmr.msra.gmra.mrb[8].mxu1 %v1980_v20 }
 0x34d   :  { %v2646_v41 = vpop.f32.mrb[8].mxu0  ;;  %v2668_v42 = vpop.f32.mrb[8].mxu1 }
 0x34e   :  { %v2647_v44 = vpop.f32.mrb[9].mxu0  ;;  %v2669_v24 = vpop.f32.mrb[9].mxu1 }
 0x34f   :  { %v2648_v46 = vadd.f32 %v2647_v44, %v2646_v41  ;;  %v2670_v47 = vadd.f32 %v2669_v24, %v2668_v42  ;;  %v2649_v48 = vpop.f32.mrb[10].mxu0  ;;  %v2671_v49 = vpop.f32.mrb[10].mxu1 }
 0x350   :  { %v2650_v50 = vpop.f32.mrb[11].mxu0  ;;  %v2672_v51 = vpop.f32.mrb[11].mxu1 }
 0x351   :  { %v2280_v52 = vadd.f32 %v2648_v46, %v2597_v43 }
 0x353   :  { %v2320_v53 = vadd.f32 %v2670_v47, %v2280_v52 }
 0x355   :  { %2325 = vst [vmem:[#allocation2] sm:$0x3] %v2320_v53 }
 0x356   :  { %3127 = shalt.err (!%p3124_p4)
}
 0x357   :  { %s3128_s14 = scalar_lea.hbm %s4115_s7, 32 }
 0x358   :  { %p3129_p5 = scmp.ne.s32.totalorder %s4115_s7, %s3128_s14  ;;  %p3132_p6 = scmp.lt.u32.totalorder %s3128_s14, %s4115_s7 }
 0x35a   :  { %p3134_p7 = pnand %p3132_p6, %p3129_p5 }
 0x35c   :  { %3137 = shalt.err (!%p3134_p7)
}
 0x35d   :  { %2335 = dma.vmem_to_hbm [thread:$0]  %s2333_s11, 32, %s4115_s7, [#allocation3]  }
 0x35e   :  { %3138 = dma.done.wait [#allocation3], 32  }
 0x35f   :  { %3139 = vsyncadd [#allocation3], 4294967264 }
 0x360   :  { %2339 = vsyncpa [#allocation3], 1 }

// kernel: vgg_forward.4
= control target key start
LH: loop header
LB: loop body
LE: loop exit
PB: predicated region body
PF: predicated region fallthrough
CT: control target
= control target key end

     0   :  { %s5202_s12 = smov 0   ;;  %s6085_s0 = inlined_call_operand.vmem [shape: bf16[2,324,3], index: 0, kind: input, shape index: {}]   ;;  %s6086_s1 = inlined_call_operand.vmem [shape: bf16[9,3,128], index: 1, kind: input, shape index: {}]   ;;  %s6087_s2 = inlined_call_operand.vmem [shape: f32[1,128], index: 2, kind: input, shape index: {}]   ;;  %s6088_s3 = inlined_call_operand.vmem [shape: bf16[2,8,8,128], index: 3, kind: output, shape index: {}]  }
   0x1 LB: > { %s4013_s13 = sadd.s32 4294967295, %s5179_s12   ;;  %p4017_p0 = scmp.ge.s32.totalorder %s5179_s12, 1  ;;  %s5179_s12 = sphi %s5202_s12, %s13_s12  }
   0x2   : > { %p137_p1 = scmp.lt.s32.totalorder %s5179_s12, 3 }
   0x4   : > { %p138_p2 = pnand %p4017_p0, %p137_p1 }
   0x5   : > { %vm502_vm0 = vcmask (!%p138_p2), 1040384   ;;  %vm503_vm1 = vcmask (!%p138_p2), 1041408   ;;  %v4134_v0 = vld [vmem:[%s6086_s1 + $0x8] sm:$0x3] (!%p138_p2)  ;;  %p161_p3 = scmp.lt.s32.totalorder (!%p138_p2), %s4013_s13, 1  ;;  %v5181_v1 = vmov (!%p138_p2), 65535  }
   0x6   : > { %141 = sbr.rel (%p138_p2) target bundleno = 588 (0x24c), region = 32  ;;  %v504_v2 = vsel (!%p138_p2), %vm502_vm0, 4294967295, %v5181_v1  ;;  %v4021_v3 = vld [vmem:[%s6086_s1 + $0x2] sm:$0x3] (!%p138_p2)  ;;  %v4172_v5 = vld [vmem:[%s6086_s1 + $0xa] sm:$0x3] (!%p138_p2) }
   0x7   : > { %v5216_v4 = vsel (!%p138_p2), %vm503_vm1, %v504_v2, 0  ;;  %v209_v9 = vld [vmem:[%s6086_s1] sm:$0x3] (!%p138_p2)  ;;  %vm303_vm2 = vsmask.f32 (!%p138_p2), 7424  ;;  %vm447_vm3 = vcmask (!%p138_p2), 23552  }
   0x8   : > { %v5224_v6 = vand.u32 (!%p138_p2), %v4134_v0, %v5216_v4  ;;  %v507_v7 = vand.u32 (!%p138_p2), %v4021_v3, %v5216_v4  ;;  %v5228_v8 = vand.u32 (!%p138_p2), %v4172_v5, %v5216_v4  ;;  %v5235_v10 = vand.u32 (!%p138_p2), %v5216_v4, %v209_v9  ;;  %v4192_v11 = vld [vmem:[%s6086_s1 + $0xc] sm:$0x3] (!%p138_p2)  ;;  %v4077_v17 = vld [vmem:[%s6086_s1 + $0x4] sm:$0x3] (!%p138_p2) }
   0x9   : > { %vm1783_vm4 = vsmask.f32 (!%p138_p2), 6400  ;;  %v5278_v26 = vand.u32 (!%p138_p2), %v4192_v11, %v5216_v4  ;;  %v5287_v35 = vand.u32 (!%p138_p2), %v4077_v17, %v5216_v4  ;;  %vm2226_vm5 = vcmask (!%p138_p2), 1045504  }
   0xa   : > { %4604 = vmatprep.subr.bf16.mxu0 (!%p138_p2), %v5224_v6  ;;  %4452 = vmatprep.subr.bf16.mxu1 (!%p138_p2), %v507_v7  ;;  %vm912_vm6 = vcmask (!%p138_p2), 1046528   ;;  %vm2979_vm7 = vsmask.f32 (!%p138_p2), 5376  ;;  %vm3426_vm8 = vcmask (!%p138_p2), 1044480  }
   0xb   : > { %4605 = vmatpush3.bf16.msra.mxu0 (!%p138_p2), %v5224_v6  ;;  %4453 = vmatpush3.bf16.msra.mxu1 (!%p138_p2), %v507_v7 }
   0xc   : > { %4642 = vmatprep.subr.bf16.mxu0 (!%p138_p2), %v5228_v8  ;;  %4490 = vmatprep.subr.bf16.mxu1 (!%p138_p2), %v5235_v10 }
   0xd   : > { %s6090_s13 = smov (!%p161_p3, %s4013_s13), 1 }
   0xe   : > { %s5084_s22 = smul.u32 164, %s6090_s13  ;;  %s4280_s11 = sshll.u32 %s6090_s13, 5 }
   0xf   : > { %s6042_s16 = scalar_lea.vmem %s6088_s3, %s4280_s11 }
  0x10   : > { %s5242_s25 = scalar_lea.vmem %s6085_s0, %s5084_s22 }
  0x11   : > { %v173_v12 = vld [vmem:[%s5242_s25] sm:$0xf]  ;;  %v5249_v13 = vld [vmem:[%s5242_s25 + $0x4] sm:$0xf]  ;;  %v5257_v15 = vld [vmem:[%s5242_s25 + $0x8] sm:$0xff]  }
  0x12   : > { %v5254_v14 = vcombine.low %v173_v12, %v5249_v13  ;;  %v1651_v16 = vld [vmem:[%s5242_s25 + $0x8] sm:$0xe]  ;;  %v5264_v18 = vld [vmem:[%s5242_s25 + $0xc] sm:$0xf]  ;;  %v312_v21 = vshll.u32 %v5257_v15, 16  ;;  %v316_v22 = vshrl.u32 %v5257_v15, 16 }
  0x13   : > { %v5271_v23 = vld [vmem:[%s5242_s25 + $0x10] sm:$0xff]   ;;  %v4135_v25 = vcombine.low %v1651_v16, %v5264_v18  ;;  %v5284_v34 = vld [vmem:[%s5242_s25 + $0x18] sm:$0xff]   ;;  %v5293_v41 = vld [vmem:[%s5242_s25 + $0x20] sm:$0xff]  }
  0x14   : > { %v305_v19 = vshrl.u32 %v5254_v14, 16  ;;  %v307_v20 = vshll.u32 %v5254_v14, 16  ;;  %v5274_v24 = vld [vmem:[%s5242_s25 + $0x10] sm:$0xff]   ;;  %v314_v28 = vrot.slane %v312_v21, 1  ;;  %v1793_v29 = vshrl.u32 %v5271_v23, 16  ;;  %v5290_v40 = vld [vmem:[%s5242_s25 + $0x18] sm:$0xff]  }
  0x15   : > { %v1796_v30 = vshll.u32 %v5271_v23, 16  ;;  %v1785_v31 = vshrl.u32 %v4135_v25, 16  ;;  %v1788_v32 = vshll.u32 %v4135_v25, 16  ;;  %v320_v33 = vshll.u32 %v5274_v24, 16  ;;  %v5303_v54 = vld [vmem:[%s5242_s25 + $0x20] sm:$0xff]   ;;  %v5306_v55 = vld [vmem:[%s5242_s25 + $0x28] sm:$0xff]  }
  0x16   : > { %v309_v27 = vrot.slane %v307_v20, 1  ;;  %v318_v37 = vor.u32 %v316_v22, %v314_v28  ;;  %v1795_v38 = vrot.slane %v1793_v29, 1  ;;  %v1802_v45 = vshrl.u32 %v5284_v34, 16  ;;  %v5312_v60 = vld [vmem:[%s5242_s25 + $0x28] sm:$0xff]   ;;  %v5319_v1 = vld [vmem:[%s5242_s25 + $0x30] sm:$0xff]   ;;  %v5337_v29 = vld [vmem:[%s5242_s25 + $0x38] sm:$0xff]  }
  0x17   : > { %v1798_v39 = vrot.slane %v1796_v30, 2  ;;  %v1787_v42 = vrot.slane %v1785_v31, 1  ;;  %v1790_v43 = vrot.slane %v1788_v32, 2  ;;  %v322_v44 = vrot.slane %v320_v33, 1  ;;  %v5324_v9 = vld [vmem:[%s5242_s25 + $0x30] sm:$0xff]  }
  0x18   : > { %v310_v36 = vor.u32 %v309_v27, %v305_v19  ;;  %v1805_v48 = vshll.u32 %v5284_v34, 16  ;;  %v324_v49 = vshrl.u32 %v5274_v24, 16  ;;  %v1804_v52 = vrot.slane %v1802_v45, 1 }
  0x19   : > { %v1799_v47 = vor.u32 %v1798_v39, %v1795_v38  ;;  %v1791_v50 = vor.u32 %v1790_v43, %v1787_v42  ;;  %v323_v51 = vsel %vm303_vm2, %v318_v37, %v322_v44  ;;  %v328_v53 = vshll.u32 %v5290_v40, 16  ;;  %v5346_v42 = vld [vmem:[%s5242_s25 + $0x38] sm:$0xff]  }
  0x1a   : > { %v315_v46 = vsel %vm303_vm2, %v310_v36, %v314_v28  ;;  %v1807_v56 = vrot.slane %v1805_v48, 2  ;;  %v326_v57 = vor.u32 %v324_v49, %v322_v44  ;;  %v1811_v58 = vshrl.u32 %v5293_v41, 16 }
  0x1b   : > { %4454 = vmatprep.mubr.msk.bf16.mxu1 %vm447_vm3, %v315_v46  ;;  %v1814_v59 = vshll.u32 %v5293_v41, 16  ;;  %v1800_v61 = vsel %vm1783_vm4, %v1791_v50, %v1799_v47  ;;  %v330_v62 = vrot.slane %v328_v53, 1  ;;  %v332_v63 = vshrl.u32 %v5290_v40, 16  ;;  %v5356_v50 = vld [vmem:[%s5242_s25 + $0x40] sm:$0xff]  }
  0x1c   : > { %4455 = vmatmul.mubr.msk.bf16.vlgmr.msra.gmra.mrb[0].mxu1 %vm447_vm3, %v323_v51  ;;  %v336_v0 = vshll.u32 %v5303_v54, 16  ;;  %4606 = vmatprep.mubr.msk.bf16.mxu0 %vm447_vm3, %v1800_v61  ;;  %v1808_v2 = vor.u32 %v1807_v56, %v1804_v52  ;;  %v1813_v3 = vrot.slane %v1811_v58, 1  ;;  %v1820_v7 = vshrl.u32 %v5306_v55, 16 }
  0x1d   : > { %4491 = vmatpush3.bf16.msra.mxu1 %v5235_v10  ;;  %v1816_v5 = vrot.slane %v1814_v59, 2  ;;  %v331_v11 = vsel %vm303_vm2, %v326_v57, %v330_v62  ;;  %v334_v12 = vor.u32 %v332_v63, %v330_v62  ;;  %v1823_v10 = vshll.u32 %v5306_v55, 16  ;;  %v5361_v57 = vld [vmem:[%s5242_s25 + $0x40] sm:$0xff]  }
  0x1e   : > { %4528 = vmatprep.subr.bf16.mxu1 %v5287_v35  ;;  %v338_v16 = vrot.slane %v336_v0, 1  ;;  %v1809_v17 = vsel %vm1783_vm4, %v1799_v47, %v1808_v2  ;;  %4458 = vmatprep.mubr.msk.bf16.mxu1 %vm447_vm3, %v331_v11  ;;  %v1822_v20 = vrot.slane %v1820_v7, 1  ;;  %v340_v21 = vshrl.u32 %v5303_v54, 16  ;;  %v5372_v7 = vld [vmem:[%s5242_s25 + $0x48] sm:$0xff]  }
  0x1f   : > { %v1817_v19 = vor.u32 %v1816_v5, %v1813_v3  ;;  %4607 = vmatmul.mubr.msk.bf16.vlgmr.msra.gmra.mrb[0].mxu0 %vm447_vm3, %v1809_v17  ;;  %v1825_v25 = vrot.slane %v1823_v10, 2  ;;  %v344_v27 = vshll.u32 %v5312_v60, 16  ;;  %v1829_v28 = vshrl.u32 %v5319_v1, 16  ;;  %v5369_v5 = vld [vmem:[%s5242_s25 + $0x48] sm:$0xff]  }
  0x20   : > { %v339_v22 = vsel %vm303_vm2, %v334_v12, %v338_v16  ;;  %4643 = vmatpush3.bf16.msra.mxu0 %v5228_v8  ;;  %v342_v31 = vor.u32 %v340_v21, %v338_v16  ;;  %v1832_v32 = vshll.u32 %v5319_v1, 16  ;;  %v348_v33 = vshrl.u32 %v5312_v60, 16 }
  0x21   : > { %v1818_v30 = vsel %vm1783_vm4, %v1808_v2, %v1817_v19  ;;  %v1826_v36 = vor.u32 %v1825_v25, %v1822_v20  ;;  %v346_v37 = vrot.slane %v344_v27, 1  ;;  %v1831_v38 = vrot.slane %v1829_v28, 1  ;;  %4680 = vmatprep.subr.bf16.mxu0 %v5278_v26  ;;  %v5381_v20 = vld [vmem:[%s5242_s25 + $0x50] sm:$0xff]  }
  0x22   : > { %4610 = vmatprep.mubr.msk.bf16.mxu0 %vm447_vm3, %v1818_v30  ;;  %v352_v39 = vshll.u32 %v5324_v9, 16  ;;  %v1834_v8 = vrot.slane %v1832_v32, 2  ;;  %v1838_v43 = vshrl.u32 %v5337_v29, 16  ;;  %v1841_v44 = vshll.u32 %v5337_v29, 16 }
  0x23   : > { %v356_v45 = vshrl.u32 %v5324_v9, 16  ;;  %v1827_v46 = vsel %vm1783_vm4, %v1817_v19, %v1826_v36  ;;  %v347_v47 = vsel %vm303_vm2, %v342_v31, %v346_v37  ;;  %v350_v48 = vor.u32 %v348_v33, %v346_v37  ;;  %v5389_v31 = vld [vmem:[%s5242_s25 + $0x50] sm:$0xff]  }
  0x24   : > { %4459 = vmatmul.mubr.msk.bf16.gmra.mrb[4].mxu1 %vm447_vm3, %v339_v22  ;;  %v354_v49 = vrot.slane %v352_v39, 1  ;;  %v1835_v51 = vor.u32 %v1834_v8, %v1831_v38  ;;  %v1840_v52 = vrot.slane %v1838_v43, 1  ;;  %v1843_v53 = vrot.slane %v1841_v44, 2 }
  0x25   : > { %4462 = vmatprep.mubr.msk.bf16.mxu1 %vm447_vm3, %v347_v47  ;;  %v360_v56 = vshll.u32 %v5346_v42, 16  ;;  %v1847_v61 = vshrl.u32 %v5356_v50, 16  ;;  %v1850_v62 = vshll.u32 %v5356_v50, 16  ;;  %v364_v3 = vshrl.u32 %v5346_v42, 16  ;;  %v5399_v47 = vld [vmem:[%s5242_s25 + $0x58] sm:$0xff]  }
  0x26   : > { %v355_v58 = vsel %vm303_vm2, %v350_v48, %v354_v49  ;;  %v358_v59 = vor.u32 %v356_v45, %v354_v49  ;;  %v1836_v63 = vsel %vm1783_vm4, %v1826_v36, %v1835_v51  ;;  %v1844_v0 = vor.u32 %v1843_v53, %v1840_v52  ;;  %v5394_v36 = vld [vmem:[%s5242_s25 + $0x58] sm:$0xff]  }
  0x27   : > { %v362_v2 = vrot.slane %v360_v56, 1  ;;  %4611 = vmatmul.mubr.msk.bf16.gmra.mrb[4].mxu0 %vm447_vm3, %v1827_v46  ;;  %v1849_v11 = vrot.slane %v1847_v61, 1  ;;  %v1852_v12 = vrot.slane %v1850_v62, 2  ;;  %v368_v16 = vshll.u32 %v5361_v57, 16 }
  0x28   : > { %v372_v10 = vshrl.u32 %v5361_v57, 16  ;;  %4614 = vmatprep.mubr.msk.bf16.mxu0 %vm447_vm3, %v1836_v63  ;;  %v1856_v19 = vshrl.u32 %v5369_v5, 16  ;;  %v1859_v22 = vshll.u32 %v5369_v5, 16  ;;  %v376_v25 = vshll.u32 %v5372_v7, 16  ;;  %v2220_v63 = vld [vmem:[%s5242_s25 + $0x8] sm:$0xc] }
  0x29   : > { %v363_v17 = vsel %vm303_vm2, %v358_v59, %v362_v2  ;;  %v1853_v21 = vor.u32 %v1852_v12, %v1849_v11  ;;  %v370_v27 = vrot.slane %v368_v16, 1  ;;  %v1865_v28 = vshrl.u32 %v5381_v20, 16 }
  0x2a   : > { %v1868_v30 = vshll.u32 %v5381_v20, 16  ;;  %v1845_v32 = vsel %vm1783_vm4, %v1835_v51, %v1844_v0  ;;  %v366_v33 = vor.u32 %v364_v3, %v362_v2  ;;  %v1858_v37 = vrot.slane %v1856_v19, 1 }
  0x2b   : > { %v1861_v38 = vrot.slane %v1859_v22, 2  ;;  %v374_v39 = vor.u32 %v372_v10, %v370_v27  ;;  %v378_v8 = vrot.slane %v376_v25, 1  ;;  %v1854_v43 = vsel %vm1783_vm4, %v1844_v0, %v1853_v21  ;;  %v5413_v0 = vld [vmem:[%s5242_s25 + $0x60] sm:$0xff]  }
  0x2c   : > { %4463 = vmatmul.mubr.msk.bf16.gmra.mrb[8].mxu1 %vm447_vm3, %v355_v58  ;;  %v1867_v44 = vrot.slane %v1865_v28, 1  ;;  %v1870_v45 = vrot.slane %v1868_v30, 2  ;;  %v384_v46 = vshll.u32 %v5389_v31, 16  ;;  %v371_v48 = vsel %vm303_vm2, %v366_v33, %v370_v27 }
  0x2d   : > { %4466 = vmatprep.mubr.msk.bf16.mxu1 %vm447_vm3, %v363_v17  ;;  %v380_v49 = vshrl.u32 %v5372_v7, 16  ;;  %v1874_v51 = vshrl.u32 %v5394_v36, 16  ;;  %v1877_v52 = vshll.u32 %v5394_v36, 16  ;;  %v1862_v53 = vor.u32 %v1861_v38, %v1858_v37  ;;  %v5418_v17 = vld [vmem:[%s5242_s25 + $0x68] sm:$0xff]  }
  0x2e   : > { %v379_v56 = vsel %vm303_vm2, %v374_v39, %v378_v8  ;;  %v388_v58 = vshrl.u32 %v5389_v31, 16  ;;  %v392_v59 = vshll.u32 %v5399_v47, 16  ;;  %v1871_v61 = vor.u32 %v1870_v45, %v1867_v44  ;;  %v5435_v39 = vld [vmem:[%s5242_s25 + $0x70] sm:$0xff]  }
  0x2f   : > { %4615 = vmatmul.mubr.msk.bf16.gmra.mrb[8].mxu0 %vm447_vm3, %v1845_v32  ;;  %v386_v62 = vrot.slane %v384_v46, 1  ;;  %v382_v2 = vor.u32 %v380_v49, %v378_v8  ;;  %v1876_v3 = vrot.slane %v1874_v51, 1  ;;  %v1879_v11 = vrot.slane %v1877_v52, 2  ;;  %v5441_v46 = vld [vmem:[%s5242_s25 + $0x78] sm:$0xff]  }
  0x30   : > { %4618 = vmatprep.mubr.msk.bf16.mxu0 %vm447_vm3, %v1854_v43  ;;  %v1863_v12 = vsel %vm1783_vm4, %v1853_v21, %v1862_v53  ;;  %v394_v10 = vrot.slane %v392_v59, 1  ;;  %v1872_v19 = vsel %vm1783_vm4, %v1862_v53, %v1871_v61  ;;  %v4173_v22 = vcombine.low %v2220_v63, %v5264_v18  ;;  %v210_v63 = vld [vmem:[%s5242_s25 + $0x8c] sm:$0xf] }
  0x31   : > { %v390_v16 = vor.u32 %v388_v58, %v386_v62  ;;  %v400_v25 = vshll.u32 %v5413_v0, 16  ;;  %v387_v27 = vsel %vm303_vm2, %v382_v2, %v386_v62  ;;  %v396_v28 = vshrl.u32 %v5399_v47, 16  ;;  %v5458_v62 = vld [vmem:[%s5242_s25 + $0x88] sm:$0xf] }
  0x32   : > { %v5427_v21 = vor.u32 %v1879_v11, %v1876_v3  ;;  %v404_v32 = vshrl.u32 %v5413_v0, 16  ;;  %v408_v33 = vshll.u32 %v5418_v17, 16  ;;  %v2227_v18 = vrot.slane %v4173_v22, 2 }
  0x33   : > { %v395_v30 = vsel %vm303_vm2, %v390_v16, %v394_v10  ;;  %v2228_v37 = vrot.slane %v5271_v23, 2  ;;  %v402_v38 = vrot.slane %v400_v25, 1  ;;  %v398_v8 = vor.u32 %v396_v28, %v394_v10 }
  0x34   : > { %4467 = vmatmul.mubr.msk.bf16.gmra.mrb[12].mxu1 %vm447_vm3, %v371_v48  ;;  %v1881_v43 = vsel %vm1783_vm4, %v1871_v61, %v5427_v21  ;;  %v410_v45 = vrot.slane %v408_v33, 1  ;;  %v416_v48 = vshll.u32 %v5435_v39, 16  ;;  %v412_v51 = vshrl.u32 %v5418_v17, 16  ;;  %v5455_v61 = vld [vmem:[%s5242_s25 + $0x80] sm:$0xff]  }
  0x35   : > { %4470 = vmatprep.mubr.msk.bf16.mxu1 %vm447_vm3, %v379_v56  ;;  %v406_v44 = vor.u32 %v404_v32, %v402_v38  ;;  %v2229_v23 = vsel %vm2226_vm5, %v2227_v18, %v2228_v37  ;;  %v403_v49 = vsel %vm303_vm2, %v398_v8, %v402_v38  ;;  %v2230_v52 = vrot.slane %v5284_v34, 2  ;;  %v4230_v34 = vld [vmem:[%s6086_s1 + $0xe] sm:$0x3] }
  0x36   : > { %v420_v56 = vshrl.u32 %v5435_v39, 16  ;;  %v424_v58 = vshll.u32 %v5441_v46, 16  ;;  %v2232_v59 = vrot.slane %v5293_v41, 2  ;;  %v418_v2 = vrot.slane %v416_v48, 1 }
  0x37   : > { %4619 = vmatmul.mubr.msk.bf16.gmra.mrb[12].mxu0 %vm447_vm3, %v1863_v12  ;;  %v411_v53 = vsel %vm303_vm2, %v406_v44, %v410_v45  ;;  %v414_v3 = vor.u32 %v412_v51, %v410_v45  ;;  %v2231_v11 = vsel %vm2226_vm5, %v2228_v37, %v2230_v52  ;;  %v5468_v41 = vcombine.low %v5458_v62, %v210_v63 }
  0x38   : > { %4622 = vmatprep.mubr.msk.bf16.mxu0 %vm447_vm3, %v1872_v19  ;;  %v422_v12 = vor.u32 %v420_v56, %v418_v2  ;;  %v426_v16 = vrot.slane %v424_v58, 1  ;;  %v2233_v10 = vsel %vm2226_vm5, %v2230_v52, %v2232_v59  ;;  %v432_v19 = vshll.u32 %v5455_v61, 16  ;;  %v5510_v56 = vld [vmem:[%s5242_s25 + $0x60] sm:$0xff]  }
  0x39   : > { %v5473_v22 = vand.u32 %v4230_v34, %v5216_v4  ;;  %v419_v25 = vsel %vm303_vm2, %v414_v3, %v418_v2  ;;  %v428_v28 = vshrl.u32 %v5441_v46, 16  ;;  %v436_v32 = vshrl.u32 %v5455_v61, 16  ;;  %v5530_v2 = vld [vmem:[%s5242_s25 + $0x68] sm:$0xff]   ;;  %v5535_v34 = vld [vmem:[%s5242_s25 + $0x70] sm:$0xff]  }
  0x3a   : > { %v440_v33 = vshll.u32 %v5468_v41, 16  ;;  %v2236_v18 = vrot.slane %v5319_v1, 2  ;;  %v434_v37 = vrot.slane %v432_v19, 1  ;;  %v2238_v1 = vrot.slane %v5337_v29, 2 }
  0x3b   : > { %v444_v48 = vshrl.u32 %v5468_v41, 16  ;;  %v2242_v29 = vrot.slane %v5369_v5, 2  ;;  %v2246_v5 = vrot.slane %v5394_v36, 2  ;;  %v2250_v3 = vrot.slane %v5530_v2, 2 }
  0x3c   : > { %4471 = vmatmul.mubr.msk.bf16.gmra.mrb[16].mxu1 %vm447_vm3, %v387_v27  ;;  %v2234_v27 = vrot.slane %v5306_v55, 2  ;;  %v430_v55 = vor.u32 %v428_v28, %v426_v16  ;;  %v438_v38 = vor.u32 %v436_v32, %v434_v37  ;;  %v442_v8 = vrot.slane %v440_v33, 1  ;;  %v5563_v28 = vld [vmem:[%s5242_s25 + $0x88] sm:$0xff]   ;;  %v5567_v32 = vld [vmem:[%s5242_s25 + $0x90] sm:$0xff]  }
  0x3d   : > { %4474 = vmatprep.mubr.msk.bf16.mxu1 %vm447_vm3, %v395_v30  ;;  %v427_v30 = vsel %vm303_vm2, %v422_v12, %v426_v16  ;;  %v2258_v33 = vrot.slane %v5563_v28, 2 }
  0x3e   : > { %v435_v44 = vsel %vm303_vm2, %v430_v55, %v434_v37  ;;  %v443_v45 = vsel %vm303_vm2, %v438_v38, %v442_v8  ;;  %v446_v52 = vor.u32 %v444_v48, %v442_v8  ;;  %v2534_v37 = vld [vmem:[%s5242_s25 + $0x10] sm:$0xc]  ;;  %v5577_v55 = vld [vmem:[%s5242_s25 + $0x14] sm:$0xf] }
  0x3f   : > { %4623 = vmatmul.mubr.msk.bf16.gmra.mrb[16].mxu0 %vm447_vm3, %v1881_v43  ;;  %v2237_v43 = vsel %vm2226_vm5, %v2234_v27, %v2236_v18  ;;  %v5583_v38 = vld [vmem:[%s5242_s25 + $0x98] ss:$0 sps:$4 sm:$0x11]  }
  0x40   : > { %4644 = vmatprep.mubr.msk.bf16.mxu0 %vm447_vm3, %v2229_v23  ;;  %v2240_v23 = vrot.slane %v5356_v50, 2 }
  0x42   : > { %v2241_v51 = vsel %vm2226_vm5, %v2238_v1, %v2240_v23  ;;  %v2243_v50 = vsel %vm2226_vm5, %v2240_v23, %v2242_v29 }
  0x44   : > { %4475 = vmatmul.mubr.msk.bf16.gmra.mrb[20].mxu1 %vm447_vm3, %v403_v49  ;;  %v2239_v49 = vsel %vm2226_vm5, %v2236_v18, %v2238_v1  ;;  %v2260_v18 = vrot.slane %v5567_v32, 2  ;;  %v2262_v1 = vrot.slane %v5583_v38, 2 }
  0x45   : > { %4478 = vmatprep.mubr.msk.bf16.mxu1 %vm447_vm3, %v411_v53  ;;  %v2244_v53 = vrot.slane %v5381_v20, 2  ;;  %v2248_v20 = vrot.slane %v5510_v56, 2 }
  0x46   : > { %v2261_v8 = vsel %vm2226_vm5, %v2258_v33, %v2260_v18  ;;  %v2263_v48 = vsel %vm2226_vm5, %v2260_v18, %v2262_v1  ;;  %v5662_v18 = vld [vmem:[%s5242_s25 + $0x50] sm:$0xff]  }
  0x47   : > { %4645 = vmatmul.mubr.msk.bf16.vlgmr.msra.gmra.mrb[0].mxu0 %vm447_vm3, %v2231_v11  ;;  %v2245_v58 = vsel %vm2226_vm5, %v2242_v29, %v2244_v53  ;;  %v2247_v63 = vsel %vm2226_vm5, %v2244_v53, %v2246_v5  ;;  %v2249_v36 = vsel %vm2226_vm5, %v2246_v5, %v2248_v20  ;;  %v2252_v11 = vrot.slane %v5535_v34, 2 }
  0x48   : > { %4681 = vmatpush3.bf16.msra.mxu0 %v5278_v26  ;;  %4648 = vmatprep.mubr.msk.bf16.mxu0 %vm447_vm3, %v2233_v10  ;;  %v2235_v26 = vsel %vm2226_vm5, %v2232_v59, %v2234_v27  ;;  %v4097_v59 = vld [vmem:[%s6086_s1 + $0x6] sm:$0x3]  ;;  %v2251_v12 = vsel %vm2226_vm5, %v2248_v20, %v2250_v3  ;;  %v5626_v20 = vld [vmem:[%s5242_s25 + $0x38] sm:$0xff]  }
  0x49   : > { %4718 = vmatprep.subr.bf16.mxu0 %v5473_v22  ;;  %v2253_v16 = vsel %vm2226_vm5, %v2250_v3, %v2252_v11  ;;  %v5551_v10 = vld [vmem:[%s5242_s25 + $0x80] sm:$0xff]   ;;  %v2675_v3 = vrot.slane %v5626_v20, 2 }
  0x4c   : > { %4479 = vmatmul.mubr.msk.bf16.gmra.mrb[24].mxu1 %vm447_vm3, %v419_v25  ;;  %v2256_v25 = vrot.slane %v5551_v10, 2 }
  0x4d   : > { %4482 = vmatprep.mubr.msk.bf16.mxu1 %vm447_vm3, %v427_v30 }
  0x4f   : > { %4649 = vmatmul.mubr.msk.bf16.gmra.mrb[4].mxu0 %vm447_vm3, %v2235_v26  ;;  %v2259_v26 = vsel %vm2226_vm5, %v2256_v25, %v2258_v33 }
  0x50   : > { %4652 = vmatprep.mubr.msk.bf16.mxu0 %vm447_vm3, %v2237_v43  ;;  %v5587_v43 = vcombine.low %v2534_v37, %v5577_v55 }
  0x54   : > { %4483 = vmatmul.mubr.msk.bf16.gmra.mrb[28].mxu1 %vm447_vm3, %v435_v44  ;;  %v5590_v44 = vld [vmem:[%s5242_s25 + $0x18] sm:$0xff]  }
  0x55   : > { %4486 = vmatprep.mubr.msk.bf16.mxu1 %vm447_vm3, %v443_v45  ;;  %v2666_v45 = vrot.slane %v5587_v43, 2  ;;  %v2667_v23 = vrot.slane %v5590_v44, 2 }
  0x57   : > { %4653 = vmatmul.mubr.msk.bf16.gmra.mrb[8].mxu0 %vm447_vm3, %v2239_v49  ;;  %v5603_v49 = vld [vmem:[%s5242_s25 + $0x20] sm:$0xff]  }
  0x58   : > { %4656 = vmatprep.mubr.msk.bf16.mxu0 %vm447_vm3, %v2241_v51  ;;  %v2668_v51 = vsel %vm2226_vm5, %v2666_v45, %v2667_v23  ;;  %v2669_v29 = vrot.slane %v5603_v49, 2  ;;  %v2681_v45 = vrot.slane %v5662_v18, 2 }
  0x5c   : > { %4487 = vmatmul.mubr.msk.bf16.gmra.mrb[32].mxu1 %vm447_vm3, %v446_v52  ;;  %v5607_v52 = vld [vmem:[%s5242_s25 + $0x28] sm:$0xff]  }
  0x5d   : > { %4492 = vmatprep.mubr.msk.bf16.mxu1 %vm447_vm3, %v5254_v14  ;;  %v5520_v14 = vand.u32 %v4097_v59, %v5216_v4  ;;  %v2671_v53 = vrot.slane %v5607_v52, 2  ;;  %v5622_v59 = vld [vmem:[%s5242_s25 + $0x30] sm:$0xff]  }
  0x5f   : > { %4657 = vmatmul.mubr.msk.bf16.gmra.mrb[12].mxu0 %vm447_vm3, %v2243_v50  ;;  %v4250_v50 = vld [vmem:[%s6086_s1 + $0x10] sm:$0x3]  ;;  %v2672_v5 = vsel %vm2226_vm5, %v2669_v29, %v2671_v53 }
  0x60   : > { %4660 = vmatprep.mubr.msk.bf16.mxu0 %vm447_vm3, %v2245_v58  ;;  %v2670_v58 = vsel %vm2226_vm5, %v2667_v23, %v2669_v29  ;;  %v918_v29 = vrot.slane %v5290_v40, 1 }
  0x64   : > { %4493 = vmatmul.mubr.msk.bf16.vlgmr.msra.gmra.mrb[0].mxu1 %vm447_vm3, %v5257_v15 }
  0x65   : > { %4496 = vmatprep.mubr.msk.bf16.mxu1 %vm447_vm3, %v5274_v24  ;;  %4529 = vmatpush3.bf16.msra.mxu1 %v5287_v35  ;;  %v5544_v35 = vld [vmem:[%s5242_s25 + $0x78] sm:$0xff]  }
  0x66   : > { %4566 = vmatprep.subr.bf16.mxu1 %v5520_v14  ;;  %v2254_v19 = vrot.slane %v5544_v35, 2 }
  0x67   : > { %4661 = vmatmul.mubr.msk.bf16.gmra.mrb[16].mxu0 %vm447_vm3, %v2247_v63  ;;  %v5629_v63 = vand.u32 %v4250_v50, %v5216_v4  ;;  %v5685_v50 = vld [vmem:[%s5242_s25 + $0x68] sm:$0xff]  }
  0x68   : > { %4664 = vmatprep.mubr.msk.bf16.mxu0 %vm447_vm3, %v2249_v36  ;;  %v2255_v27 = vsel %vm2226_vm5, %v2252_v11, %v2254_v19  ;;  %v2257_v30 = vsel %vm2226_vm5, %v2254_v19, %v2256_v25  ;;  %v2673_v36 = vrot.slane %v5622_v59, 2  ;;  %v5643_v11 = vld [vmem:[%s5242_s25 + $0x40] sm:$0xff]  }
  0x69   : > { %v2677_v19 = vrot.slane %v5643_v11, 2 }
  0x6a   : > { %v2674_v4 = vsel %vm2226_vm5, %v2671_v53, %v2673_v36 }
  0x6b   : > { %v2678_v33 = vsel %vm2226_vm5, %v2675_v3, %v2677_v19 }
  0x6c   : > { %4497 = vmatmul.mubr.msk.bf16.gmra.mrb[4].mxu1 %vm447_vm3, %v5290_v40  ;;  %v920_v40 = vrot.slane %v5303_v54, 1 }
  0x6d   : > { %4500 = vmatprep.mubr.msk.bf16.mxu1 %vm447_vm3, %v5303_v54 }
  0x6e   : > { %v921_v54 = vsel %vm912_vm6, %v918_v29, %v920_v40 }
  0x6f   : > { %4665 = vmatmul.mubr.msk.bf16.gmra.mrb[20].mxu0 %vm447_vm3, %v2251_v12  ;;  %v5647_v12 = vld [vmem:[%s5242_s25 + $0x48] sm:$0xff]  }
  0x70   : > { %4668 = vmatprep.mubr.msk.bf16.mxu0 %vm447_vm3, %v2253_v16  ;;  %v906_v16 = vld [vmem:[%s5242_s25] sm:$0xe] }
  0x71   : > { %v4078_v25 = vcombine.low %v906_v16, %v5249_v13  ;;  %v5667_v13 = vld [vmem:[%s5242_s25 + $0x58] sm:$0xff]  }
  0x73   : > { %v913_v37 = vrot.slane %v4078_v25, 1 }
  0x74   : > { %4501 = vmatmul.mubr.msk.bf16.gmra.mrb[8].mxu1 %vm447_vm3, %v5312_v60 }
  0x75   : > { %4504 = vmatprep.mubr.msk.bf16.mxu1 %vm447_vm3, %v5324_v9 }
  0x77   : > { %4669 = vmatmul.mubr.msk.bf16.gmra.mrb[24].mxu0 %vm447_vm3, %v2255_v27  ;;  %v2679_v27 = vrot.slane %v5647_v12, 2 }
  0x78   : > { %4672 = vmatprep.mubr.msk.bf16.mxu0 %vm447_vm3, %v2257_v30  ;;  %v208_v30 = vld [vmem:[%s5242_s25 + $0x8c] sm:$0x7] }
  0x79   : > { %v4058_v1 = vcombine.low %v5458_v62, %v208_v30  ;;  %v5680_v62 = vld [vmem:[%s5242_s25 + $0x60] sm:$0xff]  }
  0x7c   : > { %4505 = vmatmul.mubr.msk.bf16.gmra.mrb[12].mxu1 %vm447_vm3, %v5346_v42 }
  0x7d   : > { %4508 = vmatprep.mubr.msk.bf16.mxu1 %vm447_vm3, %v5361_v57 }
  0x7f   : > { %4673 = vmatmul.mubr.msk.bf16.gmra.mrb[28].mxu0 %vm447_vm3, %v2259_v26  ;;  %v914_v26 = vrot.slane %v5257_v15, 1  ;;  %v916_v15 = vrot.slane %v5274_v24, 1  ;;  %v2685_v24 = vrot.slane %v5680_v62, 2 }
  0x80   : > { %4676 = vmatprep.mubr.msk.bf16.mxu0 %vm447_vm3, %v2261_v8  ;;  %v2680_v8 = vsel %vm2226_vm5, %v2677_v19, %v2679_v27  ;;  %v5705_v19 = vld [vmem:[%s5242_s25 + $0x78] sm:$0xff]  }
  0x81   : > { %v915_v23 = vsel %vm912_vm6, %v913_v37, %v914_v26  ;;  %v926_v37 = vrot.slane %v5346_v42, 1  ;;  %v928_v42 = vrot.slane %v5361_v57, 1 }
  0x84   : > { %4509 = vmatmul.mubr.msk.bf16.gmra.mrb[16].mxu1 %vm447_vm3, %v5372_v7 }
  0x85   : > { %4512 = vmatprep.mubr.msk.bf16.mxu1 %vm447_vm3, %v5389_v31 }
  0x87   : > { %4677 = vmatmul.mubr.msk.bf16.gmra.mrb[32].mxu0 %vm447_vm3, %v2263_v48  ;;  %v2683_v48 = vrot.slane %v5667_v13, 2 }
  0x88   : > { %4682 = vmatprep.mubr.msk.bf16.mxu0 %vm447_vm3, %v2668_v51  ;;  %v2682_v51 = vsel %vm2226_vm5, %v2679_v27, %v2681_v45  ;;  %v2691_v27 = vrot.slane %v5705_v19, 2 }
  0x89   : > { %v2684_v53 = vsel %vm2226_vm5, %v2681_v45, %v2683_v48 }
  0x8c   : > { %4513 = vmatmul.mubr.msk.bf16.gmra.mrb[20].mxu1 %vm447_vm3, %v5399_v47 }
  0x8d   : > { %4516 = vmatprep.mubr.msk.bf16.mxu1 %vm447_vm3, %v5413_v0 }
  0x8f   : > { %4683 = vmatmul.mubr.msk.bf16.vlgmr.msra.gmra.mrb[0].mxu0 %vm447_vm3, %v2670_v58  ;;  %v917_v58 = vsel %vm912_vm6, %v914_v26, %v916_v15 }
  0x90   : > { %4719 = vmatpush3.bf16.msra.mxu0 %v5473_v22  ;;  %4686 = vmatprep.mubr.msk.bf16.mxu0 %vm447_vm3, %v2672_v5  ;;  %v2676_v22 = vsel %vm2226_vm5, %v2673_v36, %v2675_v3  ;;  %v919_v5 = vsel %vm912_vm6, %v916_v15, %v918_v29  ;;  %v2687_v36 = vrot.slane %v5685_v50, 2  ;;  %v2686_v3 = vsel %vm2226_vm5, %v2683_v48, %v2685_v24  ;;  %v5736_v15 = vld [vmem:[%s5242_s25 + $0x90] sm:$0xff]   ;;  %v5740_v29 = vld [vmem:[%s5242_s25 + $0x98] sm:$0xff]  }
  0x91   : > { %4756 = vmatprep.subr.bf16.mxu0 %v5629_v63 }
  0x92   : > { %v2688_v16 = vsel %vm2226_vm5, %v2685_v24, %v2687_v36  ;;  %v2697_v24 = vrot.slane %v5736_v15, 2 }
  0x94   : > { %4517 = vmatmul.mubr.msk.bf16.gmra.mrb[24].mxu1 %vm447_vm3, %v5418_v17 }
  0x95   : > { %4520 = vmatprep.mubr.msk.bf16.mxu1 %vm447_vm3, %v5435_v39 }
  0x97   : > { %4687 = vmatmul.mubr.msk.bf16.gmra.mrb[4].mxu0 %vm447_vm3, %v2674_v4  ;;  %v5699_v4 = vld [vmem:[%s5242_s25 + $0x70] sm:$0xff]  }
  0x98   : > { %4690 = vmatprep.mubr.msk.bf16.mxu0 %vm447_vm3, %v2676_v22  ;;  %v922_v22 = vrot.slane %v5312_v60, 1  ;;  %v924_v60 = vrot.slane %v5324_v9, 1 }
  0x9a   : > { %v923_v25 = vsel %vm912_vm6, %v920_v40, %v922_v22  ;;  %v927_v45 = vsel %vm912_vm6, %v924_v60, %v926_v37  ;;  %v2989_v40 = vshrl.u32 %v5590_v44, 16 }
  0x9c   : > { %4521 = vmatmul.mubr.msk.bf16.gmra.mrb[28].mxu1 %vm447_vm3, %v5441_v46 }
  0x9d   : > { %4524 = vmatprep.mubr.msk.bf16.mxu1 %vm447_vm3, %v5455_v61 }
  0x9f   : > { %4691 = vmatmul.mubr.msk.bf16.gmra.mrb[8].mxu0 %vm447_vm3, %v2678_v33  ;;  %v5718_v33 = vld [vmem:[%s5242_s25 + $0x80] sm:$0xff]  }
  0xa0   : > { %4694 = vmatprep.mubr.msk.bf16.mxu0 %vm447_vm3, %v2680_v8  ;;  %v5723_v8 = vld [vmem:[%s5242_s25 + $0x88] sm:$0xff]   ;;  %v2693_v9 = vrot.slane %v5718_v33, 2 }
  0xa2   : > { %v2694_v48 = vsel %vm2226_vm5, %v2691_v27, %v2693_v9 }
  0xa4   : > { %4525 = vmatmul.mubr.msk.bf16.gmra.mrb[32].mxu1 %vm447_vm3, %v4058_v1  ;;  %v925_v1 = vsel %vm912_vm6, %v922_v22, %v924_v60  ;;  %v932_v22 = vrot.slane %v5389_v31, 1 }
  0xa5   : > { %4530 = vmatprep.mubr.msk.bf16.mxu1 %vm447_vm3, %v915_v23  ;;  %v2695_v23 = vrot.slane %v5723_v8, 2 }
  0xa7   : > { %4695 = vmatmul.mubr.msk.bf16.gmra.mrb[12].mxu0 %vm447_vm3, %v2682_v51  ;;  %v930_v51 = vrot.slane %v5372_v7, 1  ;;  %v2984_v7 = vshll.u32 %v5587_v43, 16 }
  0xa8   : > { %4698 = vmatprep.mubr.msk.bf16.mxu0 %vm447_vm3, %v2684_v53  ;;  %v2696_v53 = vsel %vm2226_vm5, %v2693_v9, %v2695_v23  ;;  %v3001_v9 = vshll.u32 %v5603_v49, 16 }
  0xa9   : > { %v931_v57 = vsel %vm912_vm6, %v928_v42, %v930_v51  ;;  %v2986_v60 = vrot.slane %v2984_v7, 3 }
  0xac   : > { %4531 = vmatmul.mubr.msk.bf16.vlgmr.msra.gmra.mrb[0].mxu1 %vm447_vm3, %v917_v58  ;;  %v929_v58 = vsel %vm912_vm6, %v926_v37, %v928_v42  ;;  %v933_v37 = vsel %vm912_vm6, %v930_v51, %v932_v22  ;;  %v3010_v42 = vshll.u32 %v5607_v52, 16 }
  0xad   : > { %4534 = vmatprep.mubr.msk.bf16.mxu1 %vm447_vm3, %v919_v5  ;;  %4567 = vmatpush3.bf16.msra.mxu1 %v5520_v14  ;;  %v2689_v14 = vrot.slane %v5699_v4, 2  ;;  %v2699_v5 = vrot.slane %v5740_v29, 2 }
  0xae   : > { %4794 = vmatprep.subr.bf16.mxu1 %v5224_v6  ;;  %v3012_v7 = vrot.slane %v3010_v42, 3  ;;  %v944_v42 = vrot.slane %v5455_v61, 1 }
  0xaf   : > { %4699 = vmatmul.mubr.msk.bf16.gmra.mrb[16].mxu0 %vm447_vm3, %v2686_v3  ;;  %v2690_v30 = vsel %vm2226_vm5, %v2687_v36, %v2689_v14  ;;  %v2692_v26 = vsel %vm2226_vm5, %v2689_v14, %v2691_v27  ;;  %v2981_v36 = vshrl.u32 %v5587_v43, 16  ;;  %v2992_v3 = vshll.u32 %v5590_v44, 16  ;;  %v5152_v14 = vld [vmem:[%s5242_s25 + $0xa0] ss:$0 sps:$4 sm:$0x11]  }
  0xb0   : > { %4702 = vmatprep.mubr.msk.bf16.mxu0 %vm447_vm3, %v2688_v16  ;;  %v2698_v16 = vsel %vm2226_vm5, %v2695_v23, %v2697_v24  ;;  %v2991_v43 = vrot.slane %v2989_v40, 2 }
  0xb1   : > { %v2983_v27 = vrot.slane %v2981_v36, 2 }
  0xb4   : > { %4535 = vmatmul.mubr.msk.bf16.gmra.mrb[4].mxu1 %vm447_vm3, %v921_v54  ;;  %v2700_v54 = vsel %vm2226_vm5, %v2697_v24, %v2699_v5  ;;  %v938_v24 = vrot.slane %v5418_v17, 1  ;;  %v3025_v17 = vshrl.u32 %v5626_v20, 16 }
  0xb5   : > { %4538 = vmatprep.mubr.msk.bf16.mxu1 %vm447_vm3, %v923_v25  ;;  %v934_v25 = vrot.slane %v5399_v47, 1  ;;  %v3007_v47 = vshrl.u32 %v5607_v52, 16 }
  0xb7   : > { %4703 = vmatmul.mubr.msk.bf16.gmra.mrb[20].mxu0 %vm447_vm3, %v2690_v30  ;;  %v2994_v30 = vrot.slane %v2992_v3, 3  ;;  %v935_v31 = vsel %vm912_vm6, %v932_v22, %v934_v25  ;;  %v3009_v36 = vrot.slane %v3007_v47, 2  ;;  %v3046_v47 = vshll.u32 %v5647_v12, 16 }
  0xb8   : > { %4706 = vmatprep.mubr.msk.bf16.mxu0 %vm447_vm3, %v2692_v26  ;;  %v2701_v26 = vrot.slane %v5152_v14, 2  ;;  %v940_v14 = vrot.slane %v5435_v39, 1 }
  0xb9   : > { %v2995_v23 = vor.u32 %v2994_v30, %v2991_v43  ;;  %v942_v43 = vrot.slane %v5441_v46, 1 }
  0xba   : > { %v2702_v51 = vsel %vm2226_vm5, %v2699_v5, %v2701_v26  ;;  %v3019_v5 = vshll.u32 %v5622_v59, 16 }
  0xbc   : > { %4539 = vmatmul.mubr.msk.bf16.gmra.mrb[8].mxu1 %vm447_vm3, %v925_v1  ;;  %v2998_v1 = vshrl.u32 %v5603_v49, 16 }
  0xbd   : > { %4542 = vmatprep.mubr.msk.bf16.mxu1 %vm447_vm3, %v927_v45  ;;  %v2987_v45 = vor.u32 %v2986_v60, %v2983_v27  ;;  %v3021_v60 = vrot.slane %v3019_v5, 3  ;;  %v3061_v5 = vshrl.u32 %v5667_v13, 16 }
  0xbf   : > { %4707 = vmatmul.mubr.msk.bf16.gmra.mrb[24].mxu0 %vm447_vm3, %v2694_v48  ;;  %v936_v48 = vrot.slane %v5413_v0, 1  ;;  %v3016_v0 = vshrl.u32 %v5622_v59, 16 }
  0xc0   : > { %4710 = vmatprep.mubr.msk.bf16.mxu0 %vm447_vm3, %v2696_v53  ;;  %v3000_v53 = vrot.slane %v2998_v1, 2  ;;  %v3034_v1 = vshrl.u32 %v5643_v11, 16 }
  0xc1   : > { %v937_v40 = vsel %vm912_vm6, %v934_v25, %v936_v48  ;;  %v939_v22 = vsel %vm912_vm6, %v936_v48, %v938_v24  ;;  %v3018_v27 = vrot.slane %v3016_v0, 2 }
  0xc2   : > { %v3036_v48 = vrot.slane %v3034_v1, 2  ;;  %v3070_v1 = vshrl.u32 %v5680_v62, 16 }
  0xc3   : > { %v3022_v39 = vor.u32 %v3021_v60, %v3018_v27 }
  0xc4   : > { %4543 = vmatmul.mubr.msk.bf16.gmra.mrb[12].mxu1 %vm447_vm3, %v929_v58  ;;  %v3003_v58 = vrot.slane %v3001_v9, 3  ;;  %v3037_v9 = vshll.u32 %v5643_v11, 16 }
  0xc5   : > { %4546 = vmatprep.mubr.msk.bf16.mxu1 %vm447_vm3, %v931_v57  ;;  %v2996_v57 = vsel %vm2979_vm7, %v2987_v45, %v2995_v23  ;;  %v943_v45 = vsel %vm912_vm6, %v940_v14, %v942_v43 }
  0xc6   : > { %v3004_v3 = vor.u32 %v3003_v58, %v3000_v53  ;;  %v946_v53 = vrot.slane %v5468_v41, 1  ;;  %v5154_v41 = vld [vmem:[%s5242_s25 + $0x10] sm:$0xff]  }
  0xc7   : > { %4711 = vmatmul.mubr.msk.bf16.gmra.mrb[28].mxu0 %vm447_vm3, %v2698_v16  ;;  %v3013_v16 = vor.u32 %v3012_v7, %v3009_v36  ;;  %v945_v36 = vsel %vm912_vm6, %v942_v43, %v944_v42  ;;  %v1347_v27 = vrot.slane %v5154_v41, 1  ;;  %v3063_v43 = vrot.slane %v3061_v5, 2 }
  0xc8   : > { %4714 = vmatprep.mubr.msk.bf16.mxu0 %vm447_vm3, %v2700_v54  ;;  %v3028_v54 = vshll.u32 %v5626_v20, 16  ;;  %v3005_v25 = vsel %vm2979_vm7, %v2995_v23, %v3004_v3  ;;  %v3043_v23 = vshrl.u32 %v5647_v12, 16  ;;  %v947_v61 = vsel %vm912_vm6, %v944_v42, %v946_v53 }
  0xc9   : > { %v3014_v30 = vsel %vm2979_vm7, %v3004_v3, %v3013_v16  ;;  %v3055_v3 = vshll.u32 %v5662_v18, 16  ;;  %v3100_v5 = vshll.u32 %v5705_v19, 16 }
  0xca   : > { %v3030_v26 = vrot.slane %v3028_v54, 3 }
  0xcc   : > { %4547 = vmatmul.mubr.msk.bf16.gmra.mrb[16].mxu1 %vm447_vm3, %v933_v37  ;;  %v3027_v37 = vrot.slane %v3025_v17, 2 }
  0xcd   : > { %4550 = vmatprep.mubr.msk.bf16.mxu1 %vm447_vm3, %v935_v31  ;;  %v941_v31 = vsel %vm912_vm6, %v938_v24, %v940_v14  ;;  %v3045_v24 = vrot.slane %v3043_v23, 2  ;;  %v3057_v14 = vrot.slane %v3055_v3, 3  ;;  %v3082_v23 = vshll.u32 %v5685_v50, 16 }
  0xce   : > { %v3031_v46 = vor.u32 %v3030_v26, %v3027_v37  ;;  %v5155_v37 = vld [vmem:[%s5242_s25 + $0x18] sm:$0xff]   ;;  %v3091_v3 = vshll.u32 %v5699_v4, 16 }
  0xcf   : > { %4715 = vmatmul.mubr.msk.bf16.gmra.mrb[32].mxu0 %vm447_vm3, %v2702_v51  ;;  %v3023_v51 = vsel %vm2979_vm7, %v3013_v16, %v3022_v39  ;;  %v3064_v16 = vshll.u32 %v5667_v13, 16 }
  0xd0   : > { %4720 = vmatprep.mubr.msk.bf16.mxu0 %vm447_vm3, %v2996_v57  ;;  %v3032_v58 = vsel %vm2979_vm7, %v3022_v39, %v3031_v46  ;;  %v3048_v57 = vrot.slane %v3046_v47, 3  ;;  %v5156_v39 = vld [vmem:[%s5242_s25 + $0x20] sm:$0xff]   ;;  %v1349_v47 = vrot.slane %v5155_v37, 1  ;;  %v5159_v37 = vld [vmem:[%s5242_s25 + $0x38] sm:$0xff]  }
  0xd2   : > { %v3049_v0 = vor.u32 %v3048_v57, %v3045_v24  ;;  %v3084_v57 = vrot.slane %v3082_v23, 3  ;;  %v1357_v23 = vrot.slane %v5159_v37, 1  ;;  %v5163_v37 = vld [vmem:[%s5242_s25 + $0x58] sm:$0xff]  }
  0xd4   : > { %4551 = vmatmul.mubr.msk.bf16.gmra.mrb[20].mxu1 %vm447_vm3, %v937_v40  ;;  %v3052_v40 = vshrl.u32 %v5662_v18, 16 }
  0xd5   : > { %4554 = vmatprep.mubr.msk.bf16.mxu1 %vm447_vm3, %v939_v22  ;;  %v5153_v22 = vld [vmem:[%s5242_s25 + $0x8] sm:$0xfe]  }
  0xd6   : > { %v3054_v54 = vrot.slane %v3052_v40, 2  ;;  %v3088_v40 = vshrl.u32 %v5699_v4, 16 }
  0xd7   : > { %4721 = vmatmul.mubr.msk.bf16.vlgmr.msra.gmra.mrb[0].mxu0 %vm447_vm3, %v3005_v25  ;;  %v1346_v25 = vrot.slane %v5153_v22, 1  ;;  %v5158_v22 = vld [vmem:[%s5242_s25 + $0x30] sm:$0xff]  }
  0xd8   : > { %4757 = vmatpush3.bf16.msra.mxu0 %v5629_v63  ;;  %4724 = vmatprep.mubr.msk.bf16.mxu0 %vm447_vm3, %v3014_v30  ;;  %v3039_v63 = vrot.slane %v3037_v9, 3  ;;  %v3066_v30 = vrot.slane %v3064_v16, 3  ;;  %v3058_v26 = vor.u32 %v3057_v14, %v3054_v54  ;;  %v3073_v9 = vshll.u32 %v5680_v62, 16 }
  0xd9   : > { %v3090_v54 = vrot.slane %v3088_v40, 2  ;;  %v3093_v14 = vrot.slane %v3091_v3, 3  ;;  %v3127_v40 = vshll.u32 %v5736_v15, 16  ;;  %v5162_v3 = vld [vmem:[%s5242_s25 + $0x50] sm:$0xff]  }
  0xda   : > { %v3040_v7 = vor.u32 %v3039_v63, %v3036_v48  ;;  %v3059_v42 = vsel %vm2979_vm7, %v3049_v0, %v3058_v26  ;;  %v3072_v48 = vrot.slane %v3070_v1, 2  ;;  %v3075_v63 = vrot.slane %v3073_v9, 3  ;;  %v5160_v9 = vld [vmem:[%s5242_s25 + $0x40] sm:$0xff]  }
  0xdb   : > { %v3109_v1 = vshll.u32 %v5718_v33, 16 }
  0xdc   : > { %4555 = vmatmul.mubr.msk.bf16.gmra.mrb[24].mxu1 %vm447_vm3, %v941_v31  ;;  %v3041_v17 = vsel %vm2979_vm7, %v3031_v46, %v3040_v7  ;;  %v3050_v60 = vsel %vm2979_vm7, %v3040_v7, %v3049_v0  ;;  %v1348_v31 = vsel %vm912_vm6, %v1346_v25, %v1347_v27  ;;  %v3079_v46 = vshrl.u32 %v5685_v50, 16  ;;  %v5157_v7 = vld [vmem:[%s5242_s25 + $0x28] sm:$0xff]  }
  0xdd   : > { %4558 = vmatprep.mubr.msk.bf16.mxu1 %vm447_vm3, %v943_v45  ;;  %v3067_v45 = vor.u32 %v3066_v30, %v3063_v43  ;;  %v3097_v0 = vshrl.u32 %v5705_v19, 16  ;;  %v1353_v16 = vrot.slane %v5157_v7, 1  ;;  %v1355_v25 = vrot.slane %v5158_v22, 1 }
  0xde   : > { %v3081_v24 = vrot.slane %v3079_v46, 2  ;;  %v3102_v43 = vrot.slane %v3100_v5, 3  ;;  %v3118_v46 = vshll.u32 %v5723_v8, 16 }
  0xdf   : > { %4725 = vmatmul.mubr.msk.bf16.gmra.mrb[4].mxu0 %vm447_vm3, %v3023_v51  ;;  %v1351_v51 = vrot.slane %v5156_v39, 1 }
  0xe0   : > { %4728 = vmatprep.mubr.msk.bf16.mxu0 %vm447_vm3, %v3032_v58  ;;  %v3068_v58 = vsel %vm2979_vm7, %v3058_v26, %v3067_v45  ;;  %v3085_v41 = vor.u32 %v3084_v57, %v3081_v24  ;;  %v3094_v26 = vor.u32 %v3093_v14, %v3090_v54  ;;  %v3120_v24 = vrot.slane %v3118_v46, 3 }
  0xe1   : > { %v1354_v30 = vsel %vm912_vm6, %v1351_v51, %v1353_v16  ;;  %v1358_v57 = vsel %vm912_vm6, %v1355_v25, %v1357_v23  ;;  %v3129_v54 = vrot.slane %v3127_v40, 3  ;;  %v1363_v14 = vrot.slane %v5162_v3, 1 }
  0xe2   : > { %v1365_v46 = vrot.slane %v5163_v37, 1  ;;  %v5172_v37 = vld [vmem:[%s5242_s25 + $0x90] sm:$0xff]  }
  0xe4   : > { %4559 = vmatmul.mubr.msk.bf16.gmra.mrb[28].mxu1 %vm447_vm3, %v945_v36  ;;  %v1350_v36 = vsel %vm912_vm6, %v1347_v27, %v1349_v47 }
  0xe5   : > { %4562 = vmatprep.mubr.msk.bf16.mxu1 %vm447_vm3, %v947_v61  ;;  %v1352_v61 = vsel %vm912_vm6, %v1349_v47, %v1351_v51  ;;  %v3095_v47 = vsel %vm2979_vm7, %v3085_v41, %v3094_v26 }
  0xe7   : > { %4729 = vmatmul.mubr.msk.bf16.gmra.mrb[8].mxu0 %vm447_vm3, %v3041_v17 }
  0xe8   : > { %4732 = vmatprep.mubr.msk.bf16.mxu0 %vm447_vm3, %v3050_v60  ;;  %v3099_v60 = vrot.slane %v3097_v0, 2  ;;  %v3136_v0 = vshll.u32 %v5740_v29, 16 }
  0xea   : > { %v3103_v39 = vor.u32 %v3102_v43, %v3099_v60  ;;  %v3138_v43 = vrot.slane %v3136_v0, 3  ;;  %v5169_v0 = vld [vmem:[%s5242_s25 + $0x78] sm:$0xff]  }
  0xec   : > { %4563 = vmatmul.mubr.msk.bf16.gmra.mrb[32].mxu1 %vm447_vm3, %v946_v53  ;;  %v3076_v53 = vor.u32 %v3075_v63, %v3072_v48  ;;  %v3111_v48 = vrot.slane %v3109_v1, 3  ;;  %v1359_v63 = vrot.slane %v5160_v9, 1  ;;  %v3104_v51 = vsel %vm2979_vm7, %v3094_v26, %v3103_v39  ;;  %v5165_v9 = vld [vmem:[%s5242_s25 + $0x60] sm:$0xff]  }
  0xed   : > { %4568 = vmatprep.mubr.msk.bf16.mxu1 %vm447_vm3, %v1348_v31  ;;  %v3106_v31 = vshrl.u32 %v5718_v33, 16 }
  0xee   : > { %v3077_v17 = vsel %vm2979_vm7, %v3067_v45, %v3076_v53  ;;  %v3086_v27 = vsel %vm2979_vm7, %v3076_v53, %v3085_v41  ;;  %v3115_v45 = vshrl.u32 %v5723_v8, 16  ;;  %v1360_v53 = vsel %vm912_vm6, %v1357_v23, %v1359_v63 }
  0xef   : > { %4733 = vmatmul.mubr.msk.bf16.gmra.mrb[12].mxu0 %vm447_vm3, %v3059_v42  ;;  %v3108_v42 = vrot.slane %v3106_v31, 2  ;;  %v3133_v41 = vshrl.u32 %v5740_v29, 16 }
  0xf0   : > { %4736 = vmatprep.mubr.msk.bf16.mxu0 %vm447_vm3, %v3068_v58  ;;  %v3117_v58 = vrot.slane %v3115_v45, 2  ;;  %v3420_v45 = vld [vmem:[%s5242_s25 + $0x10] sm:$0x8] }
  0xf1   : > { %v3112_v7 = vor.u32 %v3111_v48, %v3108_v42  ;;  %v3135_v60 = vrot.slane %v3133_v41, 2  ;;  %v1367_v48 = vrot.slane %v5165_v9, 1  ;;  %v1883_v9 = vshrl.u32 %v5510_v56, 16 }
  0xf2   : > { %v3121_v22 = vor.u32 %v3120_v24, %v3117_v58  ;;  %v1366_v58 = vsel %vm912_vm6, %v1363_v14, %v1365_v46  ;;  %v5167_v24 = vld [vmem:[%s5242_s25 + $0x68] sm:$0xff]  }
  0xf4   : > { %4569 = vmatmul.mubr.msk.bf16.vlgmr.msra.gmra.mrb[0].mxu1 %vm447_vm3, %v1350_v36  ;;  %v5161_v36 = vld [vmem:[%s5242_s25 + $0x48] sm:$0xff]  }
  0xf5   : > { %4572 = vmatprep.mubr.msk.bf16.mxu1 %vm447_vm3, %v1352_v61  ;;  %4795 = vmatpush3.bf16.msra.mxu1 %v5224_v6  ;;  %v1356_v6 = vsel %vm912_vm6, %v1353_v16, %v1355_v25  ;;  %v3124_v61 = vshrl.u32 %v5736_v15, 16  ;;  %v1361_v5 = vrot.slane %v5161_v36, 1  ;;  %v3113_v16 = vsel %vm2979_vm7, %v3103_v39, %v3112_v7  ;;  %v5873_v25 = vld [vmem:[%s5242_s25 + $0xa0] ss:$0 sps:$4 sm:$0x33]  }
  0xf6   : > { %v3142_v31 = vshrl.u32 %v5873_v25, 16  ;;  %v3145_v1 = vshll.u32 %v5873_v25, 16  ;;  %v3139_v39 = vor.u32 %v3138_v43, %v3135_v60  ;;  %v1368_v36 = vsel %vm912_vm6, %v1365_v46, %v1367_v48  ;;  %v5171_v43 = vld [vmem:[%s5242_s25 + $0x88] sm:$0xff]  }
  0xf7   : > { %4737 = vmatmul.mubr.msk.bf16.gmra.mrb[16].mxu0 %vm447_vm3, %v3077_v17  ;;  %v3126_v17 = vrot.slane %v3124_v61, 2  ;;  %v3428_v61 = vrot.slane %v5590_v44, 3  ;;  %v3430_v44 = vrot.slane %v5603_v49, 3 }
  0xf8   : > { %4740 = vmatprep.mubr.msk.bf16.mxu0 %vm447_vm3, %v3086_v27  ;;  %v3122_v27 = vsel %vm2979_vm7, %v3112_v7, %v3121_v22  ;;  %v3147_v42 = vrot.slane %v3145_v1, 3  ;;  %v5168_v7 = vld [vmem:[%s5242_s25 + $0x70] sm:$0xff]   ;;  %v1379_v1 = vrot.slane %v5172_v37, 1 }
  0xf9   : > { %v3130_v26 = vor.u32 %v3129_v54, %v3126_v17  ;;  %v1371_v3 = vrot.slane %v5168_v7, 1  ;;  %v3432_v17 = vrot.slane %v5607_v52, 3  ;;  %v1373_v54 = vrot.slane %v5169_v0, 1 }
  0xfb   : > { %v3131_v23 = vsel %vm2979_vm7, %v3121_v22, %v3130_v26  ;;  %v3433_v60 = vsel %vm3426_vm8, %v3430_v44, %v3432_v17  ;;  %v1374_v49 = vsel %vm912_vm6, %v1371_v3, %v1373_v54 }
  0xfc   : > { %4573 = vmatmul.mubr.msk.bf16.gmra.mrb[4].mxu1 %vm447_vm3, %v1354_v30  ;;  %v1362_v30 = vsel %vm912_vm6, %v1359_v63, %v1361_v5  ;;  %v3140_v63 = vsel %vm2979_vm7, %v3130_v26, %v3139_v39  ;;  %v3436_v26 = vrot.slane %v5626_v20, 3  ;;  %v3438_v20 = vrot.slane %v5643_v11, 3 }
  0xfd   : > { %4576 = vmatprep.mubr.msk.bf16.mxu1 %vm447_vm3, %v1356_v6  ;;  %v1364_v6 = vsel %vm912_vm6, %v1361_v5, %v1363_v14  ;;  %v3431_v14 = vsel %vm3426_vm8, %v3428_v61, %v3430_v44  ;;  %v1904_v11 = vshll.u32 %v5535_v34, 16 }
  0xff   : > { %4741 = vmatmul.mubr.msk.bf16.gmra.mrb[20].mxu0 %vm447_vm3, %v3095_v47  ;;  %v3144_v47 = vrot.slane %v3142_v31, 2 }
 0x100   : > { %4744 = vmatprep.mubr.msk.bf16.mxu0 %vm447_vm3, %v3104_v51  ;;  %v4251_v51 = vcombine.low %v3420_v45, %v5577_v55  ;;  %v1369_v55 = vrot.slane %v5167_v24, 1 }
 0x102   : > { %v1370_v41 = vsel %vm912_vm6, %v1367_v48, %v1369_v55  ;;  %v1372_v5 = vsel %vm912_vm6, %v1369_v55, %v1371_v3  ;;  %v1895_v48 = vshll.u32 %v5530_v2, 16  ;;  %v1910_v55 = vshrl.u32 %v5544_v35, 16 }
 0x104   : > { %4577 = vmatmul.mubr.msk.bf16.gmra.mrb[8].mxu1 %vm447_vm3, %v1358_v57  ;;  %v3148_v57 = vor.u32 %v3147_v42, %v3144_v47  ;;  %v3440_v42 = vrot.slane %v5647_v12, 3  ;;  %v1912_v0 = vrot.slane %v1910_v55, 1 }
 0x105   : > { %4580 = vmatprep.mubr.msk.bf16.mxu1 %vm447_vm3, %v1360_v53  ;;  %v3427_v53 = vrot.slane %v4251_v51, 3 }
 0x106   : > { %v3149_v40 = vsel %vm2979_vm7, %v3139_v39, %v3148_v57  ;;  %v1886_v39 = vshll.u32 %v5510_v56, 16  ;;  %v1892_v56 = vshrl.u32 %v5530_v2, 16  ;;  %v3441_v24 = vsel %vm3426_vm8, %v3438_v20, %v3440_v42 }
 0x107   : > { %4745 = vmatmul.mubr.msk.bf16.gmra.mrb[24].mxu0 %vm447_vm3, %v3113_v16  ;;  %v3429_v22 = vsel %vm3426_vm8, %v3427_v53, %v3428_v61  ;;  %v5170_v16 = vld [vmem:[%s5242_s25 + $0x80] sm:$0xff]   ;;  %v1897_v57 = vrot.slane %v1895_v48, 2  ;;  %v1906_v53 = vrot.slane %v1904_v11, 2  ;;  %v3444_v61 = vrot.slane %v5667_v13, 3 }
 0x108   : > { %4748 = vmatprep.mubr.msk.bf16.mxu0 %vm447_vm3, %v3122_v27  ;;  %v1375_v27 = vrot.slane %v5170_v16, 1  ;;  %v1888_v47 = vrot.slane %v1886_v39, 2  ;;  %v1894_v12 = vrot.slane %v1892_v56, 1  ;;  %v3460_v56 = vrot.slane %v5740_v29, 3 }
 0x10a   : > { %v1376_v52 = vsel %vm912_vm6, %v1373_v54, %v1375_v27  ;;  %v3448_v54 = vrot.slane %v5685_v50, 3 }
 0x10c   : > { %4581 = vmatmul.mubr.msk.bf16.gmra.mrb[12].mxu1 %vm447_vm3, %v1362_v30  ;;  %v3434_v30 = vrot.slane %v5622_v59, 3 }
 0x10d   : > { %4584 = vmatprep.mubr.msk.bf16.mxu1 %vm447_vm3, %v1364_v6  ;;  %v1377_v6 = vrot.slane %v5171_v43, 1  ;;  %v1940_v43 = vshll.u32 %v5567_v32, 16 }
 0x10e   : > { %v3435_v31 = vsel %vm3426_vm8, %v3432_v17, %v3434_v30  ;;  %v3437_v45 = vsel %vm3426_vm8, %v3434_v30, %v3436_v26 }
 0x10f   : > { %4749 = vmatmul.mubr.msk.bf16.gmra.mrb[28].mxu0 %vm447_vm3, %v3131_v23  ;;  %v1378_v59 = vsel %vm912_vm6, %v1375_v27, %v1377_v6  ;;  %v1380_v46 = vsel %vm912_vm6, %v1377_v6, %v1379_v1  ;;  %v1885_v23 = vrot.slane %v1883_v9, 1  ;;  %v1931_v27 = vshll.u32 %v5563_v28, 16 }
 0x110   : > { %4752 = vmatprep.mubr.msk.bf16.mxu0 %vm447_vm3, %v3140_v63  ;;  %v3439_v63 = vsel %vm3426_vm8, %v3436_v26, %v3438_v20  ;;  %v3450_v26 = vrot.slane %v5699_v4, 3 }
 0x111   : > { %v1889_v51 = vor.u32 %v1888_v47, %v1885_v23  ;;  %v1933_v37 = vrot.slane %v1931_v27, 2 }
 0x112   : > { %v3451_v9 = vsel %vm3426_vm8, %v3448_v54, %v3450_v26 }
 0x113   : > { %v1890_v2 = vsel %vm1783_vm4, %v5427_v21, %v1889_v51  ;;  %v1922_v21 = vshll.u32 %v5551_v10, 16 }
 0x114   : > { %4585 = vmatmul.mubr.msk.bf16.gmra.mrb[16].mxu1 %vm447_vm3, %v1366_v58  ;;  %v1901_v58 = vshrl.u32 %v5535_v34, 16  ;;  %v1898_v34 = vor.u32 %v1897_v57, %v1894_v12 }
 0x115   : > { %4588 = vmatprep.mubr.msk.bf16.mxu1 %vm447_vm3, %v1368_v36  ;;  %v3442_v36 = vrot.slane %v5662_v18, 3  ;;  %v1919_v18 = vshrl.u32 %v5551_v10, 16  ;;  %v1924_v17 = vrot.slane %v1922_v21, 2 }
 0x116   : > { %v1903_v7 = vrot.slane %v1901_v58, 1  ;;  %v1899_v13 = vsel %vm1783_vm4, %v1889_v51, %v1898_v34 }
 0x117   : > { %4753 = vmatmul.mubr.msk.bf16.gmra.mrb[32].mxu0 %vm447_vm3, %v3149_v40  ;;  %v1913_v40 = vshll.u32 %v5544_v35, 16  ;;  %v3443_v3 = vsel %vm3426_vm8, %v3440_v42, %v3442_v36  ;;  %v1921_v16 = vrot.slane %v1919_v18, 1 }
 0x118   : > { %4758 = vmatprep.mubr.msk.bf16.mxu0 %vm447_vm3, %v3429_v22  ;;  %v1907_v22 = vor.u32 %v1906_v53, %v1903_v7 }
 0x119   : > { %v1915_v44 = vrot.slane %v1913_v40, 2 }
 0x11a   : > { %v1908_v35 = vsel %vm1783_vm4, %v1898_v34, %v1907_v22 }
 0x11b   : > { %v1916_v10 = vor.u32 %v1915_v44, %v1912_v0 }
 0x11c   : > { %4589 = vmatmul.mubr.msk.bf16.gmra.mrb[20].mxu1 %vm447_vm3, %v1370_v41  ;;  %v3445_v41 = vsel %vm3426_vm8, %v3442_v36, %v3444_v61 }
 0x11d   : > { %4592 = vmatprep.mubr.msk.bf16.mxu1 %vm447_vm3, %v1372_v5  ;;  %v3446_v5 = vrot.slane %v5680_v62, 3  ;;  %v1937_v62 = vshrl.u32 %v5567_v32, 16  ;;  %v1917_v50 = vsel %vm1783_vm4, %v1907_v22, %v1916_v10 }
 0x11f   : > { %4759 = vmatmul.mubr.msk.bf16.vlgmr.msra.gmra.mrb[0].mxu0 %vm447_vm3, %v3431_v14  ;;  %v1928_v14 = vshrl.u32 %v5563_v28, 16  ;;  %v3449_v30 = vsel %vm3426_vm8, %v3446_v5, %v3448_v54  ;;  %v1939_v6 = vrot.slane %v1937_v62, 1 }
 0x120   : > { %4762 = vmatprep.mubr.msk.bf16.mxu0 %vm447_vm3, %v3433_v60  ;;  %v3447_v60 = vsel %vm3426_vm8, %v3444_v61, %v3446_v5 }
 0x124   : > { %4593 = vmatmul.mubr.msk.bf16.gmra.mrb[24].mxu1 %vm447_vm3, %v1374_v49  ;;  %v1925_v49 = vor.u32 %v1924_v17, %v1921_v16 }
 0x125   : > { %4596 = vmatprep.mubr.msk.bf16.mxu1 %vm447_vm3, %v1376_v52  ;;  %v1930_v52 = vrot.slane %v1928_v14, 1 }
 0x126   : > { %v1926_v28 = vsel %vm1783_vm4, %v1916_v10, %v1925_v49 }
 0x127   : > { %4763 = vmatmul.mubr.msk.bf16.gmra.mrb[4].mxu0 %vm447_vm3, %v3435_v31  ;;  %v1942_v31 = vrot.slane %v1940_v43, 2  ;;  %v1934_v32 = vor.u32 %v1933_v37, %v1930_v52 }
 0x128   : > { %4766 = vmatprep.mubr.msk.bf16.mxu0 %vm447_vm3, %v3437_v45 }
 0x129   : > { %v1943_v39 = vor.u32 %v1942_v31, %v1939_v6  ;;  %v1935_v4 = vsel %vm1783_vm4, %v1925_v49, %v1934_v32 }
 0x12b   : > { %v1944_v20 = vsel %vm1783_vm4, %v1934_v32, %v1943_v39 }
 0x12c   : > { %4597 = vmatmul.mubr.msk.bf16.gmra.mrb[28].mxu1 %vm447_vm3, %v1378_v59  ;;  %v1946_v59 = vshll.u32 %v5583_v38, 16 }
 0x12d   : > { %4600 = vmatprep.mubr.msk.bf16.mxu1 %vm447_vm3, %v1380_v46  ;;  %v3456_v46 = vrot.slane %v5723_v8, 3 }
 0x12e   : > { %v1948_v23 = vrot.slane %v1946_v59, 2 }
 0x12f   : > { %4767 = vmatmul.mubr.msk.bf16.gmra.mrb[8].mxu0 %vm447_vm3, %v3439_v63  ;;  %v3462_v63 = vrot.slane %v5873_v25, 3 }
 0x130   : > { %4770 = vmatprep.mubr.msk.bf16.mxu0 %vm447_vm3, %v3441_v24  ;;  %v1949_v38 = vsel %vm1783_vm4, %v1943_v39, %v1948_v23 }
 0x131   : > { %v3463_v51 = vsel %vm3426_vm8, %v3460_v56, %v3462_v63 }
 0x134   : > { %4601 = vmatmul.mubr.msk.bf16.gmra.mrb[32].mxu1 %vm447_vm3, %v1379_v1  ;;  %v3452_v1 = vrot.slane %v5705_v19, 3  ;;  %v3454_v19 = vrot.slane %v5718_v33, 3  ;;  %v3458_v33 = vrot.slane %v5736_v15, 3 }
 0x135   : > { %4626 = vmatprep.mubr.msk.bf16.mxu1 %vm447_vm3, %v1890_v2 }
 0x136   : > { %v3453_v45 = vsel %vm3426_vm8, %v3450_v26, %v3452_v1  ;;  %v3455_v47 = vsel %vm3426_vm8, %v3452_v1, %v3454_v19  ;;  %v3457_v42 = vsel %vm3426_vm8, %v3454_v19, %v3456_v46  ;;  %v3459_v8 = vsel %vm3426_vm8, %v3456_v46, %v3458_v33 }
 0x137   : > { %4771 = vmatmul.mubr.msk.bf16.gmra.mrb[12].mxu0 %vm447_vm3, %v3443_v3  ;;  %v3461_v48 = vsel %vm3426_vm8, %v3458_v33, %v3460_v56 }
 0x138   : > { %4774 = vmatprep.mubr.msk.bf16.mxu0 %vm447_vm3, %v3445_v41  ;;  %v6022_v41 = vld [vmem:[%s6087_s2] ss:$0 sm:$0xff] }
 0x13c   : > { %4627 = vmatmul.mubr.msk.bf16.vlgmr.msra.gmra.mrb[20].mxu1 %vm447_vm3, %v1899_v13 }
 0x13d   : > { %4630 = vmatprep.mubr.msk.bf16.mxu1 %vm447_vm3, %v1908_v35 }
 0x13f   : > { %4775 = vmatmul.mubr.msk.bf16.gmra.mrb[16].mxu0 %vm447_vm3, %v3447_v60 }
 0x140   : > { %4778 = vmatprep.mubr.msk.bf16.mxu0 %vm447_vm3, %v3449_v30 }
 0x144   : > { %4631 = vmatmul.mubr.msk.bf16.gmra.mrb[24].mxu1 %vm447_vm3, %v1917_v50 }
 0x145   : > { %4634 = vmatprep.mubr.msk.bf16.mxu1 %vm447_vm3, %v1926_v28 }
 0x147   : > { %4779 = vmatmul.mubr.msk.bf16.gmra.mrb[20].mxu0 %vm447_vm3, %v3451_v9 }
 0x148   : > { %4782 = vmatprep.mubr.msk.bf16.mxu0 %vm447_vm3, %v3453_v45 }
 0x14c   : > { %4635 = vmatmul.mubr.msk.bf16.gmra.mrb[28].mxu1 %vm447_vm3, %v1935_v4 }
 0x14d   : > { %4638 = vmatprep.mubr.msk.bf16.mxu1 %vm447_vm3, %v1944_v20 }
 0x14f   : > { %4783 = vmatmul.mubr.msk.bf16.gmra.mrb[24].mxu0 %vm447_vm3, %v3455_v47 }
 0x150   : > { %4786 = vmatprep.mubr.msk.bf16.mxu0 %vm447_vm3, %v3457_v42 }
 0x154   : > { %4639 = vmatmul.mubr.msk.bf16.gmra.mrb[32].mxu1 %vm447_vm3, %v1949_v38 }
 0x157   : > { %4787 = vmatmul.mubr.msk.bf16.gmra.mrb[28].mxu0 %vm447_vm3, %v3459_v8 }
 0x158   : > { %4790 = vmatprep.mubr.msk.bf16.mxu0 %vm447_vm3, %v3461_v48 }
 0x15f   : > { %4791 = vmatmul.mubr.msk.bf16.gmra.mrb[32].mxu0 %vm447_vm3, %v3463_v51 }
 0x1c7   : > { %v4570_v58 = vpop.f32.mrb[0].mxu1 }
 0x1c8   : > { %v1472_v15 = vpop.f32.mrb[1].mxu1 }
 0x1c9   : > { %v4571_v11 = vpop.f32.mrb[2].mxu1 }
 0x1ca   : > { %v1475_v29 = vpop.f32.mrb[3].mxu1 }
 0x1cf   : > { %v4574_v24 = vpop.f32.mrb[4].mxu1 }
 0x1d0   : > { %v1488_v12 = vpop.f32.mrb[5].mxu1 }
 0x1d1   : > { %v4575_v57 = vpop.f32.mrb[6].mxu1 }
 0x1d2   : > { %v1491_v36 = vpop.f32.mrb[7].mxu1 }
 0x1d7   : > { %v4578_v2 = vpop.f32.mrb[8].mxu1 }
 0x1d8   : > { %v1504_v7 = vpop.f32.mrb[9].mxu1 }
 0x1d9   : > { %v4579_v53 = vpop.f32.mrb[10].mxu1 }
 0x1da   : > { %v1507_v61 = vpop.f32.mrb[11].mxu1 }
 0x1df   : > { %v6003_v34 = vpop.f32.mrb[12].mxu1 }
 0x1e0   : > { %v6005_v55 = vpop.f32.mrb[13].mxu1 }
 0x1e1   : > { %v6007_v25 = vpop.f32.mrb[14].mxu1 }
 0x1e2   : > { %v6009_v40 = vpop.f32.mrb[15].mxu1 }
 0x1e7   : > { %v6011_v3 = vpop.f32.mrb[16].mxu1 }
 0x1e8   : > { %v6013_v22 = vpop.f32.mrb[17].mxu1 }
 0x1e9   : > { %v6015_v18 = vpop.f32.mrb[18].mxu1 }
 0x1ea   : > { %v6017_v21 = vpop.f32.mrb[19].mxu1 }
 0x1f2   : > { %v4760_v13 = vpop.f32.mrb[0].mxu0 }
 0x1f3   : > { %v4796_v0 = vadd.f32 %v4760_v13, %v4570_v58  ;;  %v3555_v44 = vpop.f32.mrb[1].mxu0 }
 0x1f4   : > { %v4797_v5 = vadd.f32 %v3555_v44, %v1472_v15  ;;  %v4761_v35 = vpop.f32.mrb[2].mxu0 }
 0x1f5   : > { %v3742_v16 = vadd.f32 %v4796_v0, %v6022_v41  ;;  %v4798_v17 = vadd.f32 %v4761_v35, %v4571_v11  ;;  %v3558_v54 = vpop.f32.mrb[3].mxu0 }
 0x1f6   : > { %v3740_v10 = vadd.f32 %v4797_v5, %v6022_v41  ;;  %v4799_v14 = vadd.f32 %v3558_v54, %v1475_v29 }
 0x1f7   : > { %v3778_v27 = vmax.f32 %v3742_v16, 0.0  ;;  %v3743_v60 = vadd.f32 %v4798_v17, %v6022_v41 }
 0x1f8   : > { %v3776_v49 = vmax.f32 %v3740_v10, 0.0  ;;  %v3741_v62 = vadd.f32 %v4799_v14, %v6022_v41 }
 0x1f9   : > { %3814 = vst [vmem:[#allocation2 + $0x10] sm:$0xff] %v3778_v27  ;;  %v3779_v43 = vmax.f32 %v3743_v60, 0.0 }
 0x1fa   : > { %3812 = vst [vmem:[#allocation2] sm:$0xff] %v3776_v49  ;;  %v3777_v30 = vmax.f32 %v3741_v62, 0.0  ;;  %v4764_v50 = vpop.f32.mrb[4].mxu0 }
 0x1fb   : > { %3815 = vst [vmem:[#allocation2 + $0x18] sm:$0xff] %v3779_v43  ;;  %v4800_v52 = vadd.f32 %v4764_v50, %v4574_v24  ;;  %v3571_v37 = vpop.f32.mrb[5].mxu0 }
 0x1fc   : > { %3813 = vst [vmem:[#allocation2 + $0x8] sm:$0xff] %v3777_v30  ;;  %v4801_v26 = vadd.f32 %v3571_v37, %v1488_v12  ;;  %v4765_v28 = vpop.f32.mrb[6].mxu0 }
 0x1fd   : > { %v3746_v6 = vadd.f32 %v4800_v52, %v6022_v41  ;;  %v4802_v31 = vadd.f32 %v4765_v28, %v4575_v57  ;;  %v3574_v1 = vpop.f32.mrb[7].mxu0 }
 0x1fe   : > { %v3744_v32 = vadd.f32 %v4801_v26, %v6022_v41  ;;  %v4803_v9 = vadd.f32 %v3574_v1, %v1491_v36 }
 0x1ff   : > { %v3782_v39 = vmax.f32 %v3746_v6, 0.0  ;;  %v3747_v45 = vadd.f32 %v4802_v31, %v6022_v41 }
 0x200   : > { %v3780_v4 = vmax.f32 %v3744_v32, 0.0  ;;  %v3745_v59 = vadd.f32 %v4803_v9, %v6022_v41 }
 0x201   : > { %3818 = vst [vmem:[#allocation2 + $0x30] sm:$0xff] %v3782_v39  ;;  %v3783_v19 = vmax.f32 %v3747_v45, 0.0 }
 0x202   : > { %3816 = vst [vmem:[#allocation2 + $0x20] sm:$0xff] %v3780_v4  ;;  %v3781_v20 = vmax.f32 %v3745_v59, 0.0  ;;  %v4768_v46 = vpop.f32.mrb[8].mxu0 }
 0x203   : > { %3819 = vst [vmem:[#allocation2 + $0x38] sm:$0xff] %v3783_v19  ;;  %v4804_v23 = vadd.f32 %v4768_v46, %v4578_v2  ;;  %v3587_v47 = vpop.f32.mrb[9].mxu0  ;;  %v3848_v51 = vld [vmem:[#allocation2] ss:$2 sm:$0xff]  ;;  %v3850_v58 = vld [vmem:[#allocation2 + $0x1] ss:$2 sm:$0xff] }
 0x204   : > { %3817 = vst [vmem:[#allocation2 + $0x28] sm:$0xff] %v3781_v20  ;;  %v4805_v42 = vadd.f32 %v3587_v47, %v1504_v7  ;;  %v4769_v38 = vpop.f32.mrb[10].mxu0  ;;  %v3855_v2 = vmax.f32 %v3848_v51, %v3850_v58 }
 0x205   : > { %v3750_v33 = vadd.f32 %v4804_v23, %v6022_v41  ;;  %v4806_v56 = vadd.f32 %v4769_v38, %v4579_v53  ;;  %v3590_v8 = vpop.f32.mrb[11].mxu0 }
 0x206   : > { %v3748_v48 = vadd.f32 %v4805_v42, %v6022_v41  ;;  %v4807_v63 = vadd.f32 %v3590_v8, %v1507_v61 }
 0x207   : > { %v3786_v15 = vmax.f32 %v3750_v33, 0.0  ;;  %v3751_v11 = vadd.f32 %v4806_v56, %v6022_v41 }
 0x208   : > { %v3784_v29 = vmax.f32 %v3748_v48, 0.0  ;;  %v3749_v24 = vadd.f32 %v4807_v63, %v6022_v41 }
 0x209   : > { %v3852_v12 = vld [vmem:[#allocation2 + $0x12] ss:$2 sm:$0xff]  ;;  %v3854_v57 = vld [vmem:[#allocation2 + $0x13] ss:$2 sm:$0xff]  ;;  %3822 = vst [vmem:[#allocation2 + $0x50] sm:$0xff] %v3786_v15  ;;  %v3787_v36 = vmax.f32 %v3751_v11, 0.0 }
 0x20a   : > { %v3856_v7 = vmax.f32 %v3852_v12, %v3854_v57  ;;  %3820 = vst [vmem:[#allocation2 + $0x40] sm:$0xff] %v3784_v29  ;;  %v3785_v53 = vmax.f32 %v3749_v24, 0.0  ;;  %v4772_v13 = vpop.f32.mrb[12].mxu0 }
 0x20b   : > { %3823 = vst [vmem:[#allocation2 + $0x58] sm:$0xff] %v3787_v36  ;;  %v4808_v61 = vadd.f32 %v4772_v13, %v6003_v34  ;;  %v3603_v0 = vpop.f32.mrb[13].mxu0  ;;  %v3863_v49 = vld [vmem:[#allocation2 + $0x25] ss:$2 sm:$0xff] }
 0x20c   : > { %v3857_v44 = vmax.f32 %v3855_v2, %v3856_v7  ;;  %3821 = vst [vmem:[#allocation2 + $0x48] sm:$0xff] %v3785_v53  ;;  %v4809_v5 = vadd.f32 %v3603_v0, %v6005_v55  ;;  %v4773_v35 = vpop.f32.mrb[14].mxu0  ;;  %v3861_v55 = vld [vmem:[#allocation2 + $0x24] ss:$2 sm:$0xff] }
 0x20d   : > { %v3754_v16 = vadd.f32 %v4808_v61, %v6022_v41  ;;  %v4810_v17 = vadd.f32 %v4773_v35, %v6007_v25  ;;  %v3606_v54 = vpop.f32.mrb[15].mxu0  ;;  %v3868_v6 = vmax.f32 %v3861_v55, %v3863_v49 }
 0x20e   : > { %v3858_v14 = vpack.c.bf16 %v3857_v44, %v3857_v44  ;;  %v3752_v34 = vadd.f32 %v4809_v5, %v6022_v41  ;;  %v4811_v27 = vadd.f32 %v3606_v54, %v6009_v40 }
 0x20f   : > { %v4628_v10 = vpop.f32.mrb[20].mxu1  ;;  %v3790_v62 = vmax.f32 %v3754_v16, 0.0  ;;  %v3755_v43 = vadd.f32 %v4810_v17, %v6022_v41 }
 0x210   : > { %v2121_v60 = vpop.f32.mrb[21].mxu1  ;;  %3859 = vst [vmem:[%s6042_s16] sm:$0xf] %v3858_v14  ;;  %v3788_v50 = vmax.f32 %v3752_v34, 0.0  ;;  %v3753_v52 = vadd.f32 %v4811_v27, %v6022_v41 }
 0x211   : > { %v4629_v30 = vpop.f32.mrb[22].mxu1  ;;  %v3865_v25 = vld [vmem:[#allocation2 + $0x36] ss:$2 sm:$0xff]  ;;  %v3867_v26 = vld [vmem:[#allocation2 + $0x37] ss:$2 sm:$0xff]  ;;  %3826 = vst [vmem:[#allocation2 + $0x70] sm:$0xff] %v3790_v62 }
 0x212   : > { %v2124_v37 = vpop.f32.mrb[23].mxu1  ;;  %v3791_v28 = vmax.f32 %v3755_v43, 0.0  ;;  %v3869_v31 = vmax.f32 %v3865_v25, %v3867_v26  ;;  %3824 = vst [vmem:[#allocation2 + $0x60] sm:$0xff] %v3788_v50  ;;  %v3789_v40 = vmax.f32 %v3753_v52, 0.0  ;;  %v4776_v1 = vpop.f32.mrb[16].mxu0 }
 0x213   : > { %v4812_v32 = vadd.f32 %v4776_v1, %v6011_v3  ;;  %v3619_v9 = vpop.f32.mrb[17].mxu0  ;;  %v3875_v63 = vld [vmem:[#allocation2 + $0x48] ss:$2 sm:$0xff]  ;;  %v3877_v51 = vld [vmem:[#allocation2 + $0x49] ss:$2 sm:$0xff] }
 0x214   : > { %3827 = vst [vmem:[#allocation2 + $0x78] sm:$0xff] %v3791_v28  ;;  %v3870_v39 = vmax.f32 %v3868_v6, %v3869_v31  ;;  %3825 = vst [vmem:[#allocation2 + $0x68] sm:$0xff] %v3789_v40  ;;  %v4813_v45 = vadd.f32 %v3619_v9, %v6013_v22  ;;  %v4777_v4 = vpop.f32.mrb[18].mxu0  ;;  %v3882_v24 = vmax.f32 %v3875_v63, %v3877_v51 }
 0x215   : > { %v3758_v59 = vadd.f32 %v4812_v32, %v6022_v41  ;;  %v4814_v19 = vadd.f32 %v4777_v4, %v6015_v18  ;;  %v3622_v20 = vpop.f32.mrb[19].mxu0 }
 0x216   : > { %v3871_v23 = vpack.c.bf16 %v3870_v39, %v3870_v39  ;;  %v3756_v47 = vadd.f32 %v4813_v45, %v6022_v41  ;;  %v4815_v42 = vadd.f32 %v3622_v20, %v6017_v21 }
 0x217   : > { %v4632_v46 = vpop.f32.mrb[24].mxu1  ;;  %v3794_v3 = vmax.f32 %v3758_v59, 0.0  ;;  %v3759_v33 = vadd.f32 %v4814_v19, %v6022_v41 }
 0x218   : > { %v2137_v38 = vpop.f32.mrb[25].mxu1  ;;  %4271 = vst [vmem:[%s6042_s16 + $0x4] sm:$0xf] %v3871_v23  ;;  %v3792_v8 = vmax.f32 %v3756_v47, 0.0  ;;  %v3757_v22 = vadd.f32 %v4815_v42, %v6022_v41 }
 0x219   : > { %v4633_v56 = vpop.f32.mrb[26].mxu1  ;;  %3830 = vst [vmem:[#allocation2 + $0x90] sm:$0xff] %v3794_v3  ;;  %v3795_v18 = vmax.f32 %v3759_v33, 0.0 }
 0x21a   : > { %v2140_v48 = vpop.f32.mrb[27].mxu1  ;;  %3828 = vst [vmem:[#allocation2 + $0x80] sm:$0xff] %v3792_v8  ;;  %v3793_v58 = vmax.f32 %v3757_v22, 0.0  ;;  %v4780_v15 = vpop.f32.mrb[20].mxu0 }
 0x21b   : > { %v3879_v11 = vld [vmem:[#allocation2 + $0x5a] ss:$2 sm:$0xff]  ;;  %v3881_v29 = vld [vmem:[#allocation2 + $0x5b] ss:$2 sm:$0xff]  ;;  %3831 = vst [vmem:[#allocation2 + $0x98] sm:$0xff] %v3795_v18  ;;  %v4816_v21 = vadd.f32 %v4780_v15, %v4628_v10  ;;  %v3635_v57 = vpop.f32.mrb[21].mxu0 }
 0x21c   : > { %v3883_v12 = vmax.f32 %v3879_v11, %v3881_v29  ;;  %3829 = vst [vmem:[#allocation2 + $0x88] sm:$0xff] %v3793_v58  ;;  %v4817_v2 = vadd.f32 %v3635_v57, %v2121_v60  ;;  %v4781_v7 = vpop.f32.mrb[22].mxu0  ;;  %v3889_v34 = vld [vmem:[#allocation2 + $0x6c] ss:$2 sm:$0xff]  ;;  %v3891_v27 = vld [vmem:[#allocation2 + $0x6d] ss:$2 sm:$0xff] }
 0x21d   : > { %v3762_v36 = vadd.f32 %v4816_v21, %v6022_v41  ;;  %v4818_v61 = vadd.f32 %v4781_v7, %v4629_v30  ;;  %v3638_v0 = vpop.f32.mrb[23].mxu0  ;;  %v3896_v25 = vmax.f32 %v3889_v34, %v3891_v27 }
 0x21e   : > { %v3884_v13 = vmax.f32 %v3882_v24, %v3883_v12  ;;  %v3760_v35 = vadd.f32 %v4817_v2, %v6022_v41  ;;  %v4819_v16 = vadd.f32 %v3638_v0, %v2124_v37 }
 0x21f   : > { %v4636_v53 = vpop.f32.mrb[28].mxu1  ;;  %v3798_v5 = vmax.f32 %v3762_v36, 0.0  ;;  %v3763_v10 = vadd.f32 %v4818_v61, %v6022_v41 }
 0x220   : > { %v2153_v44 = vpop.f32.mrb[29].mxu1  ;;  %v3885_v54 = vpack.c.bf16 %v3884_v13, %v3884_v13  ;;  %v3796_v60 = vmax.f32 %v3760_v35, 0.0  ;;  %v3761_v55 = vadd.f32 %v4819_v16, %v6022_v41 }
 0x221   : > { %v4637_v17 = vpop.f32.mrb[30].mxu1  ;;  %3834 = vst [vmem:[#allocation2 + $0xb0] sm:$0xff] %v3798_v5  ;;  %v3799_v49 = vmax.f32 %v3763_v10, 0.0 }
 0x222   : > { %v2156_v14 = vpop.f32.mrb[31].mxu1  ;;  %4272 = vst [vmem:[%s6042_s16 + $0x8] sm:$0xf] %v3885_v54  ;;  %v4784_v62 = vpop.f32.mrb[24].mxu0  ;;  %3832 = vst [vmem:[#allocation2 + $0xa0] sm:$0xff] %v3796_v60  ;;  %v3797_v50 = vmax.f32 %v3761_v55, 0.0 }
 0x223   : > { %v3893_v43 = vld [vmem:[#allocation2 + $0x7e] ss:$2 sm:$0xff]  ;;  %v3895_v30 = vld [vmem:[#allocation2 + $0x7f] ss:$2 sm:$0xff]  ;;  %v4820_v52 = vadd.f32 %v4784_v62, %v4632_v46  ;;  %v3651_v37 = vpop.f32.mrb[25].mxu0  ;;  %3835 = vst [vmem:[#allocation2 + $0xb8] sm:$0xff] %v3799_v49 }
 0x224   : > { %v3897_v26 = vmax.f32 %v3893_v43, %v3895_v30  ;;  %v4821_v28 = vadd.f32 %v3651_v37, %v2137_v38  ;;  %v4785_v6 = vpop.f32.mrb[26].mxu0  ;;  %3833 = vst [vmem:[#allocation2 + $0xa8] sm:$0xff] %v3797_v50  ;;  %v3903_v3 = vld [vmem:[#allocation2 + $0x90] ss:$2 sm:$0xff]  ;;  %v3905_v33 = vld [vmem:[#allocation2 + $0x91] ss:$2 sm:$0xff] }
 0x225   : > { %v3766_v31 = vadd.f32 %v4820_v52, %v6022_v41  ;;  %v4822_v40 = vadd.f32 %v4785_v6, %v4633_v56  ;;  %v3654_v1 = vpop.f32.mrb[27].mxu0  ;;  %v3910_v15 = vmax.f32 %v3903_v3, %v3905_v33 }
 0x226   : > { %v3898_v9 = vmax.f32 %v3896_v25, %v3897_v26  ;;  %v3764_v39 = vadd.f32 %v4821_v28, %v6022_v41  ;;  %v4823_v45 = vadd.f32 %v3654_v1, %v2140_v48 }
 0x227   : > { %v4640_v32 = vpop.f32.mrb[32].mxu1  ;;  %v3802_v59 = vmax.f32 %v3766_v31, 0.0  ;;  %v3767_v19 = vadd.f32 %v4822_v40, %v6022_v41 }
 0x228   : > { %v2169_v4 = vpop.f32.mrb[33].mxu1  ;;  %v3899_v46 = vpack.c.bf16 %v3898_v9, %v3898_v9  ;;  %v3800_v23 = vmax.f32 %v3764_v39, 0.0  ;;  %v3765_v47 = vadd.f32 %v4823_v45, %v6022_v41 }
 0x229   : > { %v4641_v20 = vpop.f32.mrb[34].mxu1  ;;  %3838 = vst [vmem:[#allocation2 + $0xd0] sm:$0xff] %v3802_v59  ;;  %v3803_v38 = vmax.f32 %v3767_v19, 0.0 }
 0x22a   : > { %v2172_v42 = vpop.f32.mrb[35].mxu1  ;;  %4273 = vst [vmem:[%s6042_s16 + $0xc] sm:$0xf] %v3899_v46  ;;  %3836 = vst [vmem:[#allocation2 + $0xc0] sm:$0xff] %v3800_v23  ;;  %v3801_v56 = vmax.f32 %v3765_v47, 0.0  ;;  %v4788_v8 = vpop.f32.mrb[28].mxu0 }
 0x22b   : > { %3839 = vst [vmem:[#allocation2 + $0xd8] sm:$0xff] %v3803_v38  ;;  %v4824_v22 = vadd.f32 %v4788_v8, %v4636_v53  ;;  %v3667_v48 = vpop.f32.mrb[29].mxu0  ;;  %v3907_v63 = vld [vmem:[#allocation2 + $0xa2] ss:$2 sm:$0xff]  ;;  %v3909_v51 = vld [vmem:[#allocation2 + $0xa3] ss:$2 sm:$0xff] }
 0x22c   : > { %3837 = vst [vmem:[#allocation2 + $0xc8] sm:$0xff] %v3801_v56  ;;  %v4825_v18 = vadd.f32 %v3667_v48, %v2153_v44  ;;  %v4789_v58 = vpop.f32.mrb[30].mxu0  ;;  %v3911_v11 = vmax.f32 %v3907_v63, %v3909_v51 }
 0x22d   : > { %v3770_v29 = vadd.f32 %v4824_v22, %v6022_v41  ;;  %v4826_v21 = vadd.f32 %v4789_v58, %v4637_v17  ;;  %v3670_v24 = vpop.f32.mrb[31].mxu0 }
 0x22e   : > { %v3768_v12 = vadd.f32 %v4825_v18, %v6022_v41  ;;  %v4827_v57 = vadd.f32 %v3670_v24, %v2156_v14  ;;  %v3912_v36 = vmax.f32 %v3910_v15, %v3911_v11 }
 0x22f   : > { %v3806_v2 = vmax.f32 %v3770_v29, 0.0  ;;  %v3771_v7 = vadd.f32 %v4826_v21, %v6022_v41 }
 0x230   : > { %v3804_v53 = vmax.f32 %v3768_v12, 0.0  ;;  %v3769_v13 = vadd.f32 %v4827_v57, %v6022_v41  ;;  %v3913_v61 = vpack.c.bf16 %v3912_v36, %v3912_v36 }
 0x231   : > { %v3917_v0 = vld [vmem:[#allocation2 + $0xb4] ss:$2 sm:$0xff]  ;;  %v3919_v44 = vld [vmem:[#allocation2 + $0xb5] ss:$2 sm:$0xff]  ;;  %3842 = vst [vmem:[#allocation2 + $0xf0] sm:$0xff] %v3806_v2  ;;  %v3807_v5 = vmax.f32 %v3771_v7, 0.0 }
 0x232   : > { %3840 = vst [vmem:[#allocation2 + $0xe0] sm:$0xff] %v3804_v53  ;;  %v3805_v35 = vmax.f32 %v3769_v13, 0.0  ;;  %v4792_v16 = vpop.f32.mrb[32].mxu0  ;;  %4274 = vst [vmem:[%s6042_s16 + $0x10] sm:$0xf] %v3913_v61  ;;  %v3924_v34 = vmax.f32 %v3917_v0, %v3919_v44 }
 0x233   : > { %v3921_v17 = vld [vmem:[#allocation2 + $0xc6] ss:$2 sm:$0xff]  ;;  %v3923_v54 = vld [vmem:[#allocation2 + $0xc7] ss:$2 sm:$0xff]  ;;  %3843 = vst [vmem:[#allocation2 + $0xf8] sm:$0xff] %v3807_v5  ;;  %v4828_v10 = vadd.f32 %v4792_v16, %v4640_v32  ;;  %v3683_v14 = vpop.f32.mrb[33].mxu0 }
 0x234   : > { %v3925_v27 = vmax.f32 %v3921_v17, %v3923_v54  ;;  %3841 = vst [vmem:[#allocation2 + $0xe8] sm:$0xff] %v3805_v35  ;;  %v4829_v60 = vadd.f32 %v3683_v14, %v2169_v4  ;;  %v4793_v55 = vpop.f32.mrb[34].mxu0 }
 0x235   : > { %v3774_v49 = vadd.f32 %v4828_v10, %v6022_v41  ;;  %v4830_v62 = vadd.f32 %v4793_v55, %v4641_v20  ;;  %v3686_v43 = vpop.f32.mrb[35].mxu0 }
 0x236   : > { %v3926_v30 = vmax.f32 %v3924_v34, %v3925_v27  ;;  %v3772_v50 = vadd.f32 %v4829_v60, %v6022_v41  ;;  %v4831_v52 = vadd.f32 %v3686_v43, %v2172_v42 }
 0x237   : > { %v3810_v37 = vmax.f32 %v3774_v49, 0.0  ;;  %v3775_v25 = vadd.f32 %v4830_v62, %v6022_v41 }
 0x238   : > { %v3927_v26 = vpack.c.bf16 %v3926_v30, %v3926_v30  ;;  %v3808_v28 = vmax.f32 %v3772_v50, 0.0  ;;  %v3773_v6 = vadd.f32 %v4831_v52, %v6022_v41 }
 0x239   : > { %v3931_v31 = vld [vmem:[#allocation2 + $0xd8] ss:$2 sm:$0xff]  ;;  %v3933_v40 = vld [vmem:[#allocation2 + $0xd9] ss:$2 sm:$0xff]  ;;  %3846 = vst [vmem:[#allocation2 + $0x110] sm:$0xff] %v3810_v37  ;;  %v3811_v1 = vmax.f32 %v3775_v25, 0.0 }
 0x23a   : > { %4275 = vst [vmem:[%s6042_s16 + $0x14] sm:$0xf] %v3927_v26  ;;  %3844 = vst [vmem:[#allocation2 + $0x100] sm:$0xff] %v3808_v28  ;;  %v3809_v32 = vmax.f32 %v3773_v6, 0.0  ;;  %v3938_v45 = vmax.f32 %v3931_v31, %v3933_v40 }
 0x23b   : > { %v3935_v9 = vld [vmem:[#allocation2 + $0xea] ss:$2 sm:$0xff]  ;;  %v3937_v39 = vld [vmem:[#allocation2 + $0xeb] ss:$2 sm:$0xff]  ;;  %3847 = vst [vmem:[#allocation2 + $0x118] sm:$0x3f] %v3811_v1 }
 0x23c   : > { %v3939_v4 = vmax.f32 %v3935_v9, %v3937_v39  ;;  %3845 = vst [vmem:[#allocation2 + $0x108] sm:$0xff] %v3809_v32 }
 0x23e   : > { %v3940_v59 = vmax.f32 %v3938_v45, %v3939_v4 }
 0x240   : > { %v3941_v19 = vpack.c.bf16 %v3940_v59, %v3940_v59 }
 0x242   : > { %4276 = vst [vmem:[%s6042_s16 + $0x18] sm:$0xf] %v3941_v19 }
 0x243   : > { %v3945_v20 = vld [vmem:[#allocation2 + $0xfc] ss:$2 sm:$0xff]  ;;  %v3947_v41 = vld [vmem:[#allocation2 + $0xfd] ss:$2 sm:$0xff] }
 0x244   : > { %v3949_v46 = vld [vmem:[#allocation2 + $0x10e] ss:$2 sm:$0xff]  ;;  %v3951_v23 = vld [vmem:[#allocation2 + $0x10f] ss:$2 sm:$0xff]  ;;  %v3952_v47 = vmax.f32 %v3945_v20, %v3947_v41 }
 0x245   : > { %v3953_v42 = vmax.f32 %v3949_v46, %v3951_v23 }
 0x247   : > { %v3954_v38 = vmax.f32 %v3952_v47, %v3953_v42 }
 0x249   : > { %v3955_v3 = vpack.c.bf16 %v3954_v38, %v3954_v38 }
 0x24b   : > { %4277 = vst [vmem:[%s6042_s16 + $0x1c] sm:$0xf] %v3955_v3 }
 0x24c PF: > { %s13_s12 = sadd.s32 1, %s5179_s12  }
 0x24d   : > { %p10_p4 = scmp.ge.s32.totalorder %s13_s12, 4  }
 0x24f   :  { %12 = sbr.rel (!%p10_p4) target bundleno = 1 (0x1), region = 108 }

</bundles_post_ra>
